<compile_context>
chip_gen: v5e
topology: v5e:2x2
jax: 0.10.0
libtpu: 0.0.40
codegen_flags: <defaults>
</compile_context>

<pallas_src>
import math

import jax
import jax.numpy as jnp
from jax.experimental import pallas as pl
from jax.experimental.pallas import tpu as pltpu


def _round_up(x, m):
    return (x + m - 1) // m * m


def _pad_gate_rows(w, h, hp):
    """Pad the 4 gate chunks (i,f,g,o) along rows: (4h, D) -> (4hp, D) with zero rows."""
    d = w.shape[1]
    w4 = w.reshape(4, h, d)
    return jnp.pad(w4, ((0, 0), (0, hp - h), (0, 0))).reshape(4 * hp, d)


def _pad_gate_vec(b, h, hp):
    """Pad a (4h,) bias per gate chunk -> (1, 4hp)."""
    return jnp.pad(b.reshape(4, h), ((0, 0), (0, hp - h))).reshape(1, 4 * hp)


def _make_kernel(n_layers, hidden_pad, time_block):
    L, Hp, TB = n_layers, hidden_pad, time_block

    def kernel(*refs):
        # refs: xproj, w_hh0, [w_cat_1, b_1, ..., w_cat_{L-1}, b_{L-1}],
        #       out_ref, h_scratch, c_scratch
        xp_ref = refs[0]
        whh0_ref = refs[1]
        layer_refs = refs[2:2 + 2 * (L - 1)]
        out_ref = refs[2 + 2 * (L - 1)]
        h_sc = refs[3 + 2 * (L - 1)]
        c_sc = refs[4 + 2 * (L - 1)]

        t_idx = pl.program_id(1)

        @pl.when(t_idx == 0)
        def _():
            h_sc[...] = jnp.zeros_like(h_sc)
            c_sc[...] = jnp.zeros_like(c_sc)

        # Grid-invariant weights/biases: read once per grid invocation, reuse across TB steps.
        w_hh0 = whh0_ref[...]                                       # (Hp, 4Hp)
        w_cats = [layer_refs[2 * i][...] for i in range(L - 1)]     # (2Hp, 4Hp)
        b_ls = [layer_refs[2 * i + 1][...] for i in range(L - 1)]   # (1, 4Hp) f32
        cdtype = w_hh0.dtype

        def lstm_cell(gates, c_prev):
            # Gate slices are 128-lane aligned (Hp % 128 == 0) -> cheap vreg selects.
            i_g = jax.nn.sigmoid(gates[:, 0 * Hp:1 * Hp])
            f_g = jax.nn.sigmoid(gates[:, 1 * Hp:2 * Hp])
            g_g = jnp.tanh(gates[:, 2 * Hp:3 * Hp])
            o_g = jax.nn.sigmoid(gates[:, 3 * Hp:4 * Hp])
            c_new = f_g * c_prev + i_g * g_g
            h_new = o_g * jnp.tanh(c_new)
            return h_new, c_new

        for tb in range(TB):  # short, fixed trip count -> fully unrolled for LLO scheduling
            # ---- layer 0: x @ W_ih0 + b0 precomputed in XLA, pipelined in via xp_ref ----
            h_prev = h_sc[0]
            c_prev = c_sc[0]
            gates = xp_ref[tb] + jnp.dot(h_prev.astype(cdtype), w_hh0,
                                         preferred_element_type=jnp.float32)
            h_new, c_new = lstm_cell(gates, c_prev)
            h_sc[0] = h_new
            c_sc[0] = c_new
            out_ref[tb, 0] = h_new.astype(out_ref.dtype)
            x = h_new

            # ---- layers 1..L-1: single fused MXU push [x, h_prev] @ [W_ih; W_hh] ----
            for l in range(1, L):
                h_prev = h_sc[l]
                c_prev = c_sc[l]
                xh = jnp.concatenate([x, h_prev], axis=1).astype(cdtype)   # (B, 2Hp)
                gates = (jnp.dot(xh, w_cats[l - 1],
                                 preferred_element_type=jnp.float32)
                         + b_ls[l - 1])
                h_new, c_new = lstm_cell(gates, c_prev)
                h_sc[l] = h_new
                c_sc[l] = c_new
                out_ref[tb, l] = h_new.astype(out_ref.dtype)
                x = h_new

    return kernel


def stacked_lstm_forward(xs, params, num_steps, *, use_bf16=True):
    B, S, D_in = xs.shape
    layers = params["layers"]
    L = len(layers)
    hidden_sizes = [w_hh.shape[1] for (_, w_hh, _, _) in layers]
    H = hidden_sizes[-1]
    # The shared classifier applied to every layer's h requires equal hidden sizes.
    assert all(h == H for h in hidden_sizes), hidden_sizes
    w_cls, b_cls = params["classifier"]
    C = w_cls.shape[0]
    T = num_steps
    assert 1 <= T <= S

    f32 = jnp.float32
    cdtype = jnp.bfloat16 if use_bf16 else f32
    hi = jax.lax.Precision.HIGHEST

    # ---- padded sizes: lane-dense hidden (mult of 128), sublane-mult batch ----
    Hp = _round_up(H, 128)
    G = 4 * Hp
    B_pad = _round_up(B, 8)
    if B_pad > 128:
        B_pad = _round_up(B, 128)
        BB = 128
    else:
        BB = B_pad
    nb = B_pad // BB
    # Time blocking: up to 8 steps per grid invocation (amortizes per-step grid overhead).
    TB = next(tb for tb in (8, 4, 2, 1) if T % tb == 0)
    nt = T // TB

    # ---- last T time steps, time-major, batch-padded ----
    xs_t = jnp.transpose(xs[:, S - T:, :], (1, 0, 2)).astype(f32)   # (T, B, D)
    xs_t = jnp.pad(xs_t, ((0, 0), (0, B_pad - B), (0, 0)))          # (T, B_pad, D)

    # ---- layer 0: hoist input projection + bias out of the recurrence (one big matmul) ----
    w_ih0, w_hh0, b_ih0, b_hh0 = layers[0]
    w_ih0_t = _pad_gate_rows(w_ih0, H, Hp).T                        # (D, 4Hp)
    b0 = _pad_gate_vec(b_ih0 + b_hh0, H, Hp).astype(f32)            # (1, 4Hp)
    xproj = (jnp.dot(xs_t.reshape(T * B_pad, D_in), w_ih0_t, precision=hi)
             .reshape(T, B_pad, G) + b0).astype(f32)                # (T, B_pad, 4Hp)
    w_hh0_t = jnp.pad(_pad_gate_rows(w_hh0, H, Hp),
                      ((0, 0), (0, Hp - H))).T.astype(cdtype)       # (Hp, 4Hp)

    kernel_args = [xproj, w_hh0_t]
    in_specs = [
        pl.BlockSpec((TB, BB, G), lambda bi, ti: (ti, bi, 0)),
        pl.BlockSpec((Hp, G), lambda bi, ti: (0, 0)),
    ]

    # ---- layers 1..L-1: fused [W_ih; W_hh] (2Hp, 4Hp) + combined bias ----
    for (w_ih, w_hh, b_ih, b_hh) in layers[1:]:
        w_ih_p = jnp.pad(_pad_gate_rows(w_ih, H, Hp), ((0, 0), (0, Hp - H))).T  # (Hp,4Hp)
        w_hh_p = jnp.pad(_pad_gate_rows(w_hh, H, Hp), ((0, 0), (0, Hp - H))).T  # (Hp,4Hp)
        w_cat = jnp.concatenate([w_ih_p, w_hh_p], axis=0).astype(cdtype)        # (2Hp,4Hp)
        b_l = _pad_gate_vec(b_ih + b_hh, H, Hp).astype(f32)
        kernel_args += [w_cat, b_l]
        in_specs.append(pl.BlockSpec((2 * Hp, G), lambda bi, ti: (0, 0)))
        in_specs.append(pl.BlockSpec((1, G), lambda bi, ti: (0, 0)))

    grid_spec = pltpu.PrefetchScalarGridSpec(
        num_scalar_prefetch=0,
        grid=(nb, nt),                                  # (batch-parallel, time-serial)
        in_specs=in_specs,
        out_specs=pl.BlockSpec((TB, L, BB, Hp), lambda bi, ti: (ti, 0, bi, 0)),
        scratch_shapes=[pltpu.VMEM((L, BB, Hp), f32),   # hidden state (f32, carried over time)
                        pltpu.VMEM((L, BB, Hp), f32)],  # cell state (f32, carried over time)
    )

    h_all = pl.pallas_call(
        _make_kernel(L, Hp, TB),
        out_shape=jax.ShapeDtypeStruct((T, L, B_pad, Hp), f32),
        grid_spec=grid_spec,
        compiler_params=pltpu.CompilerParams(
            dimension_semantics=("parallel", "arbitrary")),
    )(*kernel_args)

    # ---- classifier head hoisted out of the serial loop: one batched matmul ----
    h_real = h_all[:, :, :B, :H]                                    # (T, L, B, H)
    logits = (jnp.dot(h_real.reshape(T * L * B, H), jnp.transpose(w_cls),
                      precision=hi) + b_cls).reshape(T, L, B, C)

    # (T, L, B, C) -> (B, C, T*L)  == torch.stack(logits_t, dim=2), order (t, layer)
    return jnp.transpose(logits, (2, 3, 0, 1)).reshape(B, C, T * L)


def stacked_lstm_reference(xs, params, num_steps):
    """Pure-JAX reference matching the PyTorch forward semantics."""
    B, S, _ = xs.shape
    layers = params["layers"]
    L = len(layers)
    H = layers[0][1].shape[1]
    w_cls, b_cls = params["classifier"]
    hs = [jnp.zeros((B, H), jnp.float32) for _ in range(L)]
    cs = [jnp.zeros((B, H), jnp.float32) for _ in range(L)]
    hi = jax.lax.Precision.HIGHEST
    logits_t = []
    for t in range(num_steps):
        x = xs[:, S - num_steps + t, :]
        for l, (w_ih, w_hh, b_ih, b_hh) in enumerate(layers):
            gates = (jnp.dot(x, w_ih.T, precision=hi) + b_ih
                     + jnp.dot(hs[l], w_hh.T, precision=hi) + b_hh)
            i, f, g, o = jnp.split(gates, 4, axis=1)
            i, f, o = jax.nn.sigmoid(i), jax.nn.sigmoid(f), jax.nn.sigmoid(o)
            g = jnp.tanh(g)
            cs[l] = f * cs[l] + i * g
            hs[l] = o * jnp.tanh(cs[l])
            x = hs[l]
            logits_t.append(jnp.dot(x, w_cls.T, precision=hi) + b_cls)
    return jnp.stack(logits_t, axis=2)


def init_params(key, input_size, hidden_sizes, num_classes):
    """Deterministic init mimicking nn.LSTMCell / nn.Linear uniform(-1/sqrt(H), 1/sqrt(H))."""
    cfg = [input_size] + list(hidden_sizes)
    layers = []
    for d_in, h in zip(cfg[:-1], cfg[1:]):
        bound = 1.0 / math.sqrt(h)
        key, k1, k2, k3, k4 = jax.random.split(key, 5)
        w_ih = jax.random.uniform(k1, (4 * h, d_in), jnp.float32, -bound, bound)
        w_hh = jax.random.uniform(k2, (4 * h, h), jnp.float32, -bound, bound)
        b_ih = jax.random.uniform(k3, (4 * h,), jnp.float32, -bound, bound)
        b_hh = jax.random.uniform(k4, (4 * h,), jnp.float32, -bound, bound)
        layers.append((w_ih, w_hh, b_ih, b_hh))
    h_last = hidden_sizes[-1]
    bound = 1.0 / math.sqrt(h_last)
    key, k1, k2 = jax.random.split(key, 3)
    w_cls = jax.random.uniform(k1, (num_classes, h_last), jnp.float32, -bound, bound)
    b_cls = jax.random.uniform(k2, (num_classes,), jnp.float32, -bound, bound)
    return {"layers": layers, "classifier": (w_cls, b_cls)}


if __name__ == "__main__":
    # Small shapes consistent with the module's forward:
    batch, seq, input_size = 2, 10, 16
    hidden_sizes = [32, 32]      # must be equal for classifier(x) per layer to type-check
    num_classes = 10
    num_steps = 8

    key = jax.random.PRNGKey(0)
    key, kx, kp = jax.random.split(key, 3)
    xs = jax.random.normal(kx, (batch, seq, input_size), jnp.float32)
    params = init_params(kp, input_size, hidden_sizes, num_classes)

    ref = stacked_lstm_reference(xs, params, num_steps)
    expected_shape = (batch, num_classes, num_steps * len(hidden_sizes))

    # 1) f32 weights: structural-correctness check.
    out_f32 = jax.block_until_ready(
        stacked_lstm_forward(xs, params, num_steps, use_bf16=False))
    assert out_f32.shape == expected_shape, out_f32.shape
    err_f32 = float(jnp.max(jnp.abs(out_f32 - ref)))
    assert err_f32 < 1e-2, f"f32 max abs err {err_f32}"

    # 2) bf16 weights (performance configuration): f32 state/accumulation, looser tol.
    out_bf16 = jax.block_until_ready(
        stacked_lstm_forward(xs, params, num_steps, use_bf16=True))
    assert out_bf16.shape == expected_shape, out_bf16.shape
    err_bf16 = float(jnp.max(jnp.abs(out_bf16 - ref)))
    assert err_bf16 < 3e-2, f"bf16 max abs err {err_bf16}"

    print("KERNEL_OK")
</pallas_src>

<mosaic_0001>
module attributes {stable_mosaic.version = 11 : i64} {
  func.func @kernel(%arg0: i32, %arg1: i32, %arg2: memref<8x8x512xf32, #tpu.memory_space<vmem>>, %arg3: memref<128x512xf32, #tpu.memory_space<vmem>>, %arg4: memref<256x512xf32, #tpu.memory_space<vmem>>, %arg5: memref<1x512xf32, #tpu.memory_space<vmem>>, %arg6: memref<8x2x8x128xf32, #tpu.memory_space<vmem>>, %arg7: memref<2x8x128xf32, #tpu.memory_space<vmem>>, %arg8: memref<2x8x128xf32, #tpu.memory_space<vmem>>) attributes {dimension_semantics = [#tpu.dimension_semantics<parallel>, #tpu.dimension_semantics<arbitrary>], iteration_bounds = array<i64: 1, 1>, scalar_prefetch = 0 : i64, scratch_operands = 2 : i64, tpu.core_type = #tpu.core_type<tc>, window_params = [{transform_indices = @transform_0, window_bounds = array<i64: 8, 8, 512>}, {pipeline_mode = #tpu.pipeline_mode<synchronous>, transform_indices = @transform_1, window_bounds = array<i64: 128, 512>}, {pipeline_mode = #tpu.pipeline_mode<synchronous>, transform_indices = @transform_2, window_bounds = array<i64: 256, 512>}, {pipeline_mode = #tpu.pipeline_mode<synchronous>, transform_indices = @transform_3, window_bounds = array<i64: 1, 512>}, {transform_indices = @transform_4, window_bounds = array<i64: 8, 2, 8, 128>}]} {
    %c0_i32 = arith.constant 0 : i32
    %0 = arith.cmpi eq, %arg1, %c0_i32 : i32
    %1 = arith.extui %0 : i1 to i32
    %c0_i32_0 = arith.constant 0 : i32
    %2 = arith.cmpi ne, %1, %c0_i32_0 : i32
    scf.if %2 {
      %cst_342 = arith.constant 0.000000e+00 : f32
      %678 = vector.broadcast %cst_342 : f32 to vector<2x8x128xf32>
      %c0_343 = arith.constant 0 : index
      %c0_344 = arith.constant 0 : index
      %c0_345 = arith.constant 0 : index
      %679 = vector.load %arg7[%c0_343, %c0_344, %c0_345] : memref<2x8x128xf32, #tpu.memory_space<vmem>>, vector<2x8x128xf32>
      tpu.vector_store %arg7[%c0_343, %c0_344, %c0_345], %678 {strides = array<i32>} : memref<2x8x128xf32, #tpu.memory_space<vmem>>, vector<2x8x128xf32>,
      %cst_346 = arith.constant 0.000000e+00 : f32
      %680 = vector.broadcast %cst_346 : f32 to vector<2x8x128xf32>
      %c0_347 = arith.constant 0 : index
      %c0_348 = arith.constant 0 : index
      %c0_349 = arith.constant 0 : index
      %681 = vector.load %arg8[%c0_347, %c0_348, %c0_349] : memref<2x8x128xf32, #tpu.memory_space<vmem>>, vector<2x8x128xf32>
      tpu.vector_store %arg8[%c0_347, %c0_348, %c0_349], %680 {strides = array<i32>} : memref<2x8x128xf32, #tpu.memory_space<vmem>>, vector<2x8x128xf32>,
    } else {
    }
    %c0 = arith.constant 0 : index
    %c0_1 = arith.constant 0 : index
    %3 = vector.load %arg3[%c0, %c0_1] : memref<128x512xf32, #tpu.memory_space<vmem>>, vector<128x512xf32>
    %c0_2 = arith.constant 0 : index
    %c0_3 = arith.constant 0 : index
    %4 = vector.load %arg4[%c0_2, %c0_3] : memref<256x512xf32, #tpu.memory_space<vmem>>, vector<256x512xf32>
    %c0_4 = arith.constant 0 : index
    %c0_5 = arith.constant 0 : index
    %5 = vector.load %arg5[%c0_4, %c0_5] : memref<1x512xf32, #tpu.memory_space<vmem>>, vector<1x512xf32>
    %c0_6 = arith.constant 0 : index
    %c0_7 = arith.constant 0 : index
    %c0_8 = arith.constant 0 : index
    %6 = vector.load %arg7[%c0_6, %c0_7, %c0_8] : memref<2x8x128xf32, #tpu.memory_space<vmem>>, vector<1x8x128xf32>
    %7 = vector.shape_cast %6 : vector<1x8x128xf32> to vector<8x128xf32>
    %c0_9 = arith.constant 0 : index
    %c0_10 = arith.constant 0 : index
    %c0_11 = arith.constant 0 : index
    %8 = vector.load %arg8[%c0_9, %c0_10, %c0_11] : memref<2x8x128xf32, #tpu.memory_space<vmem>>, vector<1x8x128xf32>
    %9 = vector.shape_cast %8 : vector<1x8x128xf32> to vector<8x128xf32>
    %c0_12 = arith.constant 0 : index
    %c0_13 = arith.constant 0 : index
    %c0_14 = arith.constant 0 : index
    %10 = vector.load %arg2[%c0_12, %c0_13, %c0_14] : memref<8x8x512xf32, #tpu.memory_space<vmem>>, vector<1x8x512xf32>
    %11 = vector.shape_cast %10 : vector<1x8x512xf32> to vector<8x512xf32>
    %cst = arith.constant dense<0.000000e+00> : vector<8x512xf32>
    %12 = tpu.matmul %7, %3, %cst {dimension_numbers = #tpu.dot_dimension_numbers<[1], [0], [0], [1], [0, 0, 1, 1], [], []>} : vector<8x128xf32>, vector<128x512xf32>, vector<8x512xf32> -> vector<8x512xf32>
    %13 = arith.addf %11, %12 : vector<8x512xf32>
    %14 = vector.extract_strided_slice %13 {offsets = [0, 0], sizes = [8, 128], strides = [1, 1]} : vector<8x512xf32> to vector<8x128xf32>
    %15 = arith.negf %14 : vector<8x128xf32>
    %16 = math.exp %15 : vector<8x128xf32>
    %cst_15 = arith.constant 1.000000e+00 : f32
    %17 = vector.broadcast %cst_15 : f32 to vector<8x128xf32>
    %18 = arith.addf %17, %16 : vector<8x128xf32>
    %19 = arith.divf %17, %18 : vector<8x128xf32>
    %20 = vector.extract_strided_slice %13 {offsets = [0, 128], sizes = [8, 128], strides = [1, 1]} : vector<8x512xf32> to vector<8x128xf32>
    %21 = arith.negf %20 : vector<8x128xf32>
    %22 = math.exp %21 : vector<8x128xf32>
    %cst_16 = arith.constant 1.000000e+00 : f32
    %23 = vector.broadcast %cst_16 : f32 to vector<8x128xf32>
    %24 = arith.addf %23, %22 : vector<8x128xf32>
    %25 = arith.divf %23, %24 : vector<8x128xf32>
    %26 = vector.extract_strided_slice %13 {offsets = [0, 256], sizes = [8, 128], strides = [1, 1]} : vector<8x512xf32> to vector<8x128xf32>
    %27 = math.tanh %26 : vector<8x128xf32>
    %28 = vector.extract_strided_slice %13 {offsets = [0, 384], sizes = [8, 128], strides = [1, 1]} : vector<8x512xf32> to vector<8x128xf32>
    %29 = arith.negf %28 : vector<8x128xf32>
    %30 = math.exp %29 : vector<8x128xf32>
    %cst_17 = arith.constant 1.000000e+00 : f32
    %31 = vector.broadcast %cst_17 : f32 to vector<8x128xf32>
    %32 = arith.addf %31, %30 : vector<8x128xf32>
    %33 = arith.divf %31, %32 : vector<8x128xf32>
    %34 = arith.mulf %25, %9 : vector<8x128xf32>
    %35 = arith.mulf %19, %27 : vector<8x128xf32>
    %36 = arith.addf %34, %35 : vector<8x128xf32>
    %37 = math.tanh %36 : vector<8x128xf32>
    %38 = arith.mulf %33, %37 : vector<8x128xf32>
    %c0_18 = arith.constant 0 : index
    %c0_19 = arith.constant 0 : index
    %c0_20 = arith.constant 0 : index
    %39 = vector.load %arg7[%c0_18, %c0_19, %c0_20] : memref<2x8x128xf32, #tpu.memory_space<vmem>>, vector<1x8x128xf32>
    %40 = vector.shape_cast %39 : vector<1x8x128xf32> to vector<8x128xf32>
    %41 = vector.shape_cast %38 : vector<8x128xf32> to vector<1x8x128xf32>
    tpu.vector_store %arg7[%c0_18, %c0_19, %c0_20], %41 {strides = array<i32>} : memref<2x8x128xf32, #tpu.memory_space<vmem>>, vector<1x8x128xf32>,
    %c0_21 = arith.constant 0 : index
    %c0_22 = arith.constant 0 : index
    %c0_23 = arith.constant 0 : index
    %42 = vector.load %arg8[%c0_21, %c0_22, %c0_23] : memref<2x8x128xf32, #tpu.memory_space<vmem>>, vector<1x8x128xf32>
    %43 = vector.shape_cast %42 : vector<1x8x128xf32> to vector<8x128xf32>
    %44 = vector.shape_cast %36 : vector<8x128xf32> to vector<1x8x128xf32>
    tpu.vector_store %arg8[%c0_21, %c0_22, %c0_23], %44 {strides = array<i32>} : memref<2x8x128xf32, #tpu.memory_space<vmem>>, vector<1x8x128xf32>,
    %c0_24 = arith.constant 0 : index
    %c0_25 = arith.constant 0 : index
    %c0_26 = arith.constant 0 : index
    %c0_27 = arith.constant 0 : index
    %45 = vector.load %arg6[%c0_24, %c0_25, %c0_26, %c0_27] : memref<8x2x8x128xf32, #tpu.memory_space<vmem>>, vector<1x1x8x128xf32>
    %46 = vector.shape_cast %45 : vector<1x1x8x128xf32> to vector<8x128xf32>
    %47 = vector.shape_cast %38 : vector<8x128xf32> to vector<1x1x8x128xf32>
    tpu.vector_store %arg6[%c0_24, %c0_25, %c0_26, %c0_27], %47 {strides = array<i32>} : memref<8x2x8x128xf32, #tpu.memory_space<vmem>>, vector<1x1x8x128xf32>,
    %c1 = arith.constant 1 : index
    %c0_28 = arith.constant 0 : index
    %c0_29 = arith.constant 0 : index
    %48 = vector.load %arg7[%c1, %c0_28, %c0_29] : memref<2x8x128xf32, #tpu.memory_space<vmem>>, vector<1x8x128xf32>
    %49 = vector.shape_cast %48 : vector<1x8x128xf32> to vector<8x128xf32>
    %c1_30 = arith.constant 1 : index
    %c0_31 = arith.constant 0 : index
    %c0_32 = arith.constant 0 : index
    %50 = vector.load %arg8[%c1_30, %c0_31, %c0_32] : memref<2x8x128xf32, #tpu.memory_space<vmem>>, vector<1x8x128xf32>
    %51 = vector.shape_cast %50 : vector<1x8x128xf32> to vector<8x128xf32>
    %52 = tpu.concatenate %38, %49 in 1 : vector<8x128xf32>, vector<8x128xf32> -> vector<8x256xf32>
    %cst_33 = arith.constant dense<0.000000e+00> : vector<8x512xf32>
    %53 = tpu.matmul %52, %4, %cst_33 {dimension_numbers = #tpu.dot_dimension_numbers<[1], [0], [0], [1], [0, 0, 1, 1], [], []>} : vector<8x256xf32>, vector<256x512xf32>, vector<8x512xf32> -> vector<8x512xf32>
    %54 = vector.broadcast %5 : vector<1x512xf32> to vector<8x512xf32>
    %55 = arith.addf %53, %54 : vector<8x512xf32>
    %56 = vector.extract_strided_slice %55 {offsets = [0, 0], sizes = [8, 128], strides = [1, 1]} : vector<8x512xf32> to vector<8x128xf32>
    %57 = arith.negf %56 : vector<8x128xf32>
    %58 = math.exp %57 : vector<8x128xf32>
    %cst_34 = arith.constant 1.000000e+00 : f32
    %59 = vector.broadcast %cst_34 : f32 to vector<8x128xf32>
    %60 = arith.addf %59, %58 : vector<8x128xf32>
    %61 = arith.divf %59, %60 : vector<8x128xf32>
    %62 = vector.extract_strided_slice %55 {offsets = [0, 128], sizes = [8, 128], strides = [1, 1]} : vector<8x512xf32> to vector<8x128xf32>
    %63 = arith.negf %62 : vector<8x128xf32>
    %64 = math.exp %63 : vector<8x128xf32>
    %cst_35 = arith.constant 1.000000e+00 : f32
    %65 = vector.broadcast %cst_35 : f32 to vector<8x128xf32>
    %66 = arith.addf %65, %64 : vector<8x128xf32>
    %67 = arith.divf %65, %66 : vector<8x128xf32>
    %68 = vector.extract_strided_slice %55 {offsets = [0, 256], sizes = [8, 128], strides = [1, 1]} : vector<8x512xf32> to vector<8x128xf32>
    %69 = math.tanh %68 : vector<8x128xf32>
    %70 = vector.extract_strided_slice %55 {offsets = [0, 384], sizes = [8, 128], strides = [1, 1]} : vector<8x512xf32> to vector<8x128xf32>
    %71 = arith.negf %70 : vector<8x128xf32>
    %72 = math.exp %71 : vector<8x128xf32>
    %cst_36 = arith.constant 1.000000e+00 : f32
    %73 = vector.broadcast %cst_36 : f32 to vector<8x128xf32>
    %74 = arith.addf %73, %72 : vector<8x128xf32>
    %75 = arith.divf %73, %74 : vector<8x128xf32>
    %76 = arith.mulf %67, %51 : vector<8x128xf32>
    %77 = arith.mulf %61, %69 : vector<8x128xf32>
    %78 = arith.addf %76, %77 : vector<8x128xf32>
    %79 = math.tanh %78 : vector<8x128xf32>
    %80 = arith.mulf %75, %79 : vector<8x128xf32>
    %c1_37 = arith.constant 1 : index
    %c0_38 = arith.constant 0 : index
    %c0_39 = arith.constant 0 : index
    %81 = vector.load %arg7[%c1_37, %c0_38, %c0_39] : memref<2x8x128xf32, #tpu.memory_space<vmem>>, vector<1x8x128xf32>
    %82 = vector.shape_cast %81 : vector<1x8x128xf32> to vector<8x128xf32>
    %83 = vector.shape_cast %80 : vector<8x128xf32> to vector<1x8x128xf32>
    tpu.vector_store %arg7[%c1_37, %c0_38, %c0_39], %83 {strides = array<i32>} : memref<2x8x128xf32, #tpu.memory_space<vmem>>, vector<1x8x128xf32>,
    %c1_40 = arith.constant 1 : index
    %c0_41 = arith.constant 0 : index
    %c0_42 = arith.constant 0 : index
    %84 = vector.load %arg8[%c1_40, %c0_41, %c0_42] : memref<2x8x128xf32, #tpu.memory_space<vmem>>, vector<1x8x128xf32>
    %85 = vector.shape_cast %84 : vector<1x8x128xf32> to vector<8x128xf32>
    %86 = vector.shape_cast %78 : vector<8x128xf32> to vector<1x8x128xf32>
    tpu.vector_store %arg8[%c1_40, %c0_41, %c0_42], %86 {strides = array<i32>} : memref<2x8x128xf32, #tpu.memory_space<vmem>>, vector<1x8x128xf32>,
    %c0_43 = arith.constant 0 : index
    %c1_44 = arith.constant 1 : index
    %c0_45 = arith.constant 0 : index
    %c0_46 = arith.constant 0 : index
    %87 = vector.load %arg6[%c0_43, %c1_44, %c0_45, %c0_46] : memref<8x2x8x128xf32, #tpu.memory_space<vmem>>, vector<1x1x8x128xf32>
    %88 = vector.shape_cast %87 : vector<1x1x8x128xf32> to vector<8x128xf32>
    %89 = vector.shape_cast %80 : vector<8x128xf32> to vector<1x1x8x128xf32>
    tpu.vector_store %arg6[%c0_43, %c1_44, %c0_45, %c0_46], %89 {strides = array<i32>} : memref<8x2x8x128xf32, #tpu.memory_space<vmem>>, vector<1x1x8x128xf32>,
    %c0_47 = arith.constant 0 : index
    %c0_48 = arith.constant 0 : index
    %c0_49 = arith.constant 0 : index
    %90 = vector.load %arg7[%c0_47, %c0_48, %c0_49] : memref<2x8x128xf32, #tpu.memory_space<vmem>>, vector<1x8x128xf32>
    %91 = vector.shape_cast %90 : vector<1x8x128xf32> to vector<8x128xf32>
    %c0_50 = arith.constant 0 : index
    %c0_51 = arith.constant 0 : index
    %c0_52 = arith.constant 0 : index
    %92 = vector.load %arg8[%c0_50, %c0_51, %c0_52] : memref<2x8x128xf32, #tpu.memory_space<vmem>>, vector<1x8x128xf32>
    %93 = vector.shape_cast %92 : vector<1x8x128xf32> to vector<8x128xf32>
    %c1_53 = arith.constant 1 : index
    %c0_54 = arith.constant 0 : index
    %c0_55 = arith.constant 0 : index
    %94 = vector.load %arg2[%c1_53, %c0_54, %c0_55] : memref<8x8x512xf32, #tpu.memory_space<vmem>>, vector<1x8x512xf32>
    %95 = vector.shape_cast %94 : vector<1x8x512xf32> to vector<8x512xf32>
    %cst_56 = arith.constant dense<0.000000e+00> : vector<8x512xf32>
    %96 = tpu.matmul %91, %3, %cst_56 {dimension_numbers = #tpu.dot_dimension_numbers<[1], [0], [0], [1], [0, 0, 1, 1], [], []>} : vector<8x128xf32>, vector<128x512xf32>, vector<8x512xf32> -> vector<8x512xf32>
    %97 = arith.addf %95, %96 : vector<8x512xf32>
    %98 = vector.extract_strided_slice %97 {offsets = [0, 0], sizes = [8, 128], strides = [1, 1]} : vector<8x512xf32> to vector<8x128xf32>
    %99 = arith.negf %98 : vector<8x128xf32>
    %100 = math.exp %99 : vector<8x128xf32>
    %cst_57 = arith.constant 1.000000e+00 : f32
    %101 = vector.broadcast %cst_57 : f32 to vector<8x128xf32>
    %102 = arith.addf %101, %100 : vector<8x128xf32>
    %103 = arith.divf %101, %102 : vector<8x128xf32>
    %104 = vector.extract_strided_slice %97 {offsets = [0, 128], sizes = [8, 128], strides = [1, 1]} : vector<8x512xf32> to vector<8x128xf32>
    %105 = arith.negf %104 : vector<8x128xf32>
    %106 = math.exp %105 : vector<8x128xf32>
    %cst_58 = arith.constant 1.000000e+00 : f32
    %107 = vector.broadcast %cst_58 : f32 to vector<8x128xf32>
    %108 = arith.addf %107, %106 : vector<8x128xf32>
    %109 = arith.divf %107, %108 : vector<8x128xf32>
    %110 = vector.extract_strided_slice %97 {offsets = [0, 256], sizes = [8, 128], strides = [1, 1]} : vector<8x512xf32> to vector<8x128xf32>
    %111 = math.tanh %110 : vector<8x128xf32>
    %112 = vector.extract_strided_slice %97 {offsets = [0, 384], sizes = [8, 128], strides = [1, 1]} : vector<8x512xf32> to vector<8x128xf32>
    %113 = arith.negf %112 : vector<8x128xf32>
    %114 = math.exp %113 : vector<8x128xf32>
    %cst_59 = arith.constant 1.000000e+00 : f32
    %115 = vector.broadcast %cst_59 : f32 to vector<8x128xf32>
    %116 = arith.addf %115, %114 : vector<8x128xf32>
    %117 = arith.divf %115, %116 : vector<8x128xf32>
    %118 = arith.mulf %109, %93 : vector<8x128xf32>
    %119 = arith.mulf %103, %111 : vector<8x128xf32>
    %120 = arith.addf %118, %119 : vector<8x128xf32>
    %121 = math.tanh %120 : vector<8x128xf32>
    %122 = arith.mulf %117, %121 : vector<8x128xf32>
    %c0_60 = arith.constant 0 : index
    %c0_61 = arith.constant 0 : index
    %c0_62 = arith.constant 0 : index
    %123 = vector.load %arg7[%c0_60, %c0_61, %c0_62] : memref<2x8x128xf32, #tpu.memory_space<vmem>>, vector<1x8x128xf32>
    %124 = vector.shape_cast %123 : vector<1x8x128xf32> to vector<8x128xf32>
    %125 = vector.shape_cast %122 : vector<8x128xf32> to vector<1x8x128xf32>
    tpu.vector_store %arg7[%c0_60, %c0_61, %c0_62], %125 {strides = array<i32>} : memref<2x8x128xf32, #tpu.memory_space<vmem>>, vector<1x8x128xf32>,
    %c0_63 = arith.constant 0 : index
    %c0_64 = arith.constant 0 : index
    %c0_65 = arith.constant 0 : index
    %126 = vector.load %arg8[%c0_63, %c0_64, %c0_65] : memref<2x8x128xf32, #tpu.memory_space<vmem>>, vector<1x8x128xf32>
    %127 = vector.shape_cast %126 : vector<1x8x128xf32> to vector<8x128xf32>
    %128 = vector.shape_cast %120 : vector<8x128xf32> to vector<1x8x128xf32>
    tpu.vector_store %arg8[%c0_63, %c0_64, %c0_65], %128 {strides = array<i32>} : memref<2x8x128xf32, #tpu.memory_space<vmem>>, vector<1x8x128xf32>,
    %c1_66 = arith.constant 1 : index
    %c0_67 = arith.constant 0 : index
    %c0_68 = arith.constant 0 : index
    %c0_69 = arith.constant 0 : index
    %129 = vector.load %arg6[%c1_66, %c0_67, %c0_68, %c0_69] : memref<8x2x8x128xf32, #tpu.memory_space<vmem>>, vector<1x1x8x128xf32>
    %130 = vector.shape_cast %129 : vector<1x1x8x128xf32> to vector<8x128xf32>
    %131 = vector.shape_cast %122 : vector<8x128xf32> to vector<1x1x8x128xf32>
    tpu.vector_store %arg6[%c1_66, %c0_67, %c0_68, %c0_69], %131 {strides = array<i32>} : memref<8x2x8x128xf32, #tpu.memory_space<vmem>>, vector<1x1x8x128xf32>,
    %c1_70 = arith.constant 1 : index
    %c0_71 = arith.constant 0 : index
    %c0_72 = arith.constant 0 : index
    %132 = vector.load %arg7[%c1_70, %c0_71, %c0_72] : memref<2x8x128xf32, #tpu.memory_space<vmem>>, vector<1x8x128xf32>
    %133 = vector.shape_cast %132 : vector<1x8x128xf32> to vector<8x128xf32>
    %c1_73 = arith.constant 1 : index
    %c0_74 = arith.constant 0 : index
    %c0_75 = arith.constant 0 : index
    %134 = vector.load %arg8[%c1_73, %c0_74, %c0_75] : memref<2x8x128xf32, #tpu.memory_space<vmem>>, vector<1x8x128xf32>
    %135 = vector.shape_cast %134 : vector<1x8x128xf32> to vector<8x128xf32>
    %136 = tpu.concatenate %122, %133 in 1 : vector<8x128xf32>, vector<8x128xf32> -> vector<8x256xf32>
    %cst_76 = arith.constant dense<0.000000e+00> : vector<8x512xf32>
    %137 = tpu.matmul %136, %4, %cst_76 {dimension_numbers = #tpu.dot_dimension_numbers<[1], [0], [0], [1], [0, 0, 1, 1], [], []>} : vector<8x256xf32>, vector<256x512xf32>, vector<8x512xf32> -> vector<8x512xf32>
    %138 = vector.broadcast %5 : vector<1x512xf32> to vector<8x512xf32>
    %139 = arith.addf %137, %138 : vector<8x512xf32>
    %140 = vector.extract_strided_slice %139 {offsets = [0, 0], sizes = [8, 128], strides = [1, 1]} : vector<8x512xf32> to vector<8x128xf32>
    %141 = arith.negf %140 : vector<8x128xf32>
    %142 = math.exp %141 : vector<8x128xf32>
    %cst_77 = arith.constant 1.000000e+00 : f32
    %143 = vector.broadcast %cst_77 : f32 to vector<8x128xf32>
    %144 = arith.addf %143, %142 : vector<8x128xf32>
    %145 = arith.divf %143, %144 : vector<8x128xf32>
    %146 = vector.extract_strided_slice %139 {offsets = [0, 128], sizes = [8, 128], strides = [1, 1]} : vector<8x512xf32> to vector<8x128xf32>
    %147 = arith.negf %146 : vector<8x128xf32>
    %148 = math.exp %147 : vector<8x128xf32>
    %cst_78 = arith.constant 1.000000e+00 : f32
    %149 = vector.broadcast %cst_78 : f32 to vector<8x128xf32>
    %150 = arith.addf %149, %148 : vector<8x128xf32>
    %151 = arith.divf %149, %150 : vector<8x128xf32>
    %152 = vector.extract_strided_slice %139 {offsets = [0, 256], sizes = [8, 128], strides = [1, 1]} : vector<8x512xf32> to vector<8x128xf32>
    %153 = math.tanh %152 : vector<8x128xf32>
    %154 = vector.extract_strided_slice %139 {offsets = [0, 384], sizes = [8, 128], strides = [1, 1]} : vector<8x512xf32> to vector<8x128xf32>
    %155 = arith.negf %154 : vector<8x128xf32>
    %156 = math.exp %155 : vector<8x128xf32>
    %cst_79 = arith.constant 1.000000e+00 : f32
    %157 = vector.broadcast %cst_79 : f32 to vector<8x128xf32>
    %158 = arith.addf %157, %156 : vector<8x128xf32>
    %159 = arith.divf %157, %158 : vector<8x128xf32>
    %160 = arith.mulf %151, %135 : vector<8x128xf32>
    %161 = arith.mulf %145, %153 : vector<8x128xf32>
    %162 = arith.addf %160, %161 : vector<8x128xf32>
    %163 = math.tanh %162 : vector<8x128xf32>
    %164 = arith.mulf %159, %163 : vector<8x128xf32>
    %c1_80 = arith.constant 1 : index
    %c0_81 = arith.constant 0 : index
    %c0_82 = arith.constant 0 : index
    %165 = vector.load %arg7[%c1_80, %c0_81, %c0_82] : memref<2x8x128xf32, #tpu.memory_space<vmem>>, vector<1x8x128xf32>
    %166 = vector.shape_cast %165 : vector<1x8x128xf32> to vector<8x128xf32>
    %167 = vector.shape_cast %164 : vector<8x128xf32> to vector<1x8x128xf32>
    tpu.vector_store %arg7[%c1_80, %c0_81, %c0_82], %167 {strides = array<i32>} : memref<2x8x128xf32, #tpu.memory_space<vmem>>, vector<1x8x128xf32>,
    %c1_83 = arith.constant 1 : index
    %c0_84 = arith.constant 0 : index
    %c0_85 = arith.constant 0 : index
    %168 = vector.load %arg8[%c1_83, %c0_84, %c0_85] : memref<2x8x128xf32, #tpu.memory_space<vmem>>, vector<1x8x128xf32>
    %169 = vector.shape_cast %168 : vector<1x8x128xf32> to vector<8x128xf32>
    %170 = vector.shape_cast %162 : vector<8x128xf32> to vector<1x8x128xf32>
    tpu.vector_store %arg8[%c1_83, %c0_84, %c0_85], %170 {strides = array<i32>} : memref<2x8x128xf32, #tpu.memory_space<vmem>>, vector<1x8x128xf32>,
    %c1_86 = arith.constant 1 : index
    %c1_87 = arith.constant 1 : index
    %c0_88 = arith.constant 0 : index
    %c0_89 = arith.constant 0 : index
    %171 = vector.load %arg6[%c1_86, %c1_87, %c0_88, %c0_89] : memref<8x2x8x128xf32, #tpu.memory_space<vmem>>, vector<1x1x8x128xf32>
    %172 = vector.shape_cast %171 : vector<1x1x8x128xf32> to vector<8x128xf32>
    %173 = vector.shape_cast %164 : vector<8x128xf32> to vector<1x1x8x128xf32>
    tpu.vector_store %arg6[%c1_86, %c1_87, %c0_88, %c0_89], %173 {strides = array<i32>} : memref<8x2x8x128xf32, #tpu.memory_space<vmem>>, vector<1x1x8x128xf32>,
    %c0_90 = arith.constant 0 : index
    %c0_91 = arith.constant 0 : index
    %c0_92 = arith.constant 0 : index
    %174 = vector.load %arg7[%c0_90, %c0_91, %c0_92] : memref<2x8x128xf32, #tpu.memory_space<vmem>>, vector<1x8x128xf32>
    %175 = vector.shape_cast %174 : vector<1x8x128xf32> to vector<8x128xf32>
    %c0_93 = arith.constant 0 : index
    %c0_94 = arith.constant 0 : index
    %c0_95 = arith.constant 0 : index
    %176 = vector.load %arg8[%c0_93, %c0_94, %c0_95] : memref<2x8x128xf32, #tpu.memory_space<vmem>>, vector<1x8x128xf32>
    %177 = vector.shape_cast %176 : vector<1x8x128xf32> to vector<8x128xf32>
    %c2 = arith.constant 2 : index
    %c0_96 = arith.constant 0 : index
    %c0_97 = arith.constant 0 : index
    %178 = vector.load %arg2[%c2, %c0_96, %c0_97] : memref<8x8x512xf32, #tpu.memory_space<vmem>>, vector<1x8x512xf32>
    %179 = vector.shape_cast %178 : vector<1x8x512xf32> to vector<8x512xf32>
    %cst_98 = arith.constant dense<0.000000e+00> : vector<8x512xf32>
    %180 = tpu.matmul %175, %3, %cst_98 {dimension_numbers = #tpu.dot_dimension_numbers<[1], [0], [0], [1], [0, 0, 1, 1], [], []>} : vector<8x128xf32>, vector<128x512xf32>, vector<8x512xf32> -> vector<8x512xf32>
    %181 = arith.addf %179, %180 : vector<8x512xf32>
    %182 = vector.extract_strided_slice %181 {offsets = [0, 0], sizes = [8, 128], strides = [1, 1]} : vector<8x512xf32> to vector<8x128xf32>
    %183 = arith.negf %182 : vector<8x128xf32>
    %184 = math.exp %183 : vector<8x128xf32>
    %cst_99 = arith.constant 1.000000e+00 : f32
    %185 = vector.broadcast %cst_99 : f32 to vector<8x128xf32>
    %186 = arith.addf %185, %184 : vector<8x128xf32>
    %187 = arith.divf %185, %186 : vector<8x128xf32>
    %188 = vector.extract_strided_slice %181 {offsets = [0, 128], sizes = [8, 128], strides = [1, 1]} : vector<8x512xf32> to vector<8x128xf32>
    %189 = arith.negf %188 : vector<8x128xf32>
    %190 = math.exp %189 : vector<8x128xf32>
    %cst_100 = arith.constant 1.000000e+00 : f32
    %191 = vector.broadcast %cst_100 : f32 to vector<8x128xf32>
    %192 = arith.addf %191, %190 : vector<8x128xf32>
    %193 = arith.divf %191, %192 : vector<8x128xf32>
    %194 = vector.extract_strided_slice %181 {offsets = [0, 256], sizes = [8, 128], strides = [1, 1]} : vector<8x512xf32> to vector<8x128xf32>
    %195 = math.tanh %194 : vector<8x128xf32>
    %196 = vector.extract_strided_slice %181 {offsets = [0, 384], sizes = [8, 128], strides = [1, 1]} : vector<8x512xf32> to vector<8x128xf32>
    %197 = arith.negf %196 : vector<8x128xf32>
    %198 = math.exp %197 : vector<8x128xf32>
    %cst_101 = arith.constant 1.000000e+00 : f32
    %199 = vector.broadcast %cst_101 : f32 to vector<8x128xf32>
    %200 = arith.addf %199, %198 : vector<8x128xf32>
    %201 = arith.divf %199, %200 : vector<8x128xf32>
    %202 = arith.mulf %193, %177 : vector<8x128xf32>
    %203 = arith.mulf %187, %195 : vector<8x128xf32>
    %204 = arith.addf %202, %203 : vector<8x128xf32>
    %205 = math.tanh %204 : vector<8x128xf32>
    %206 = arith.mulf %201, %205 : vector<8x128xf32>
    %c0_102 = arith.constant 0 : index
    %c0_103 = arith.constant 0 : index
    %c0_104 = arith.constant 0 : index
    %207 = vector.load %arg7[%c0_102, %c0_103, %c0_104] : memref<2x8x128xf32, #tpu.memory_space<vmem>>, vector<1x8x128xf32>
    %208 = vector.shape_cast %207 : vector<1x8x128xf32> to vector<8x128xf32>
    %209 = vector.shape_cast %206 : vector<8x128xf32> to vector<1x8x128xf32>
    tpu.vector_store %arg7[%c0_102, %c0_103, %c0_104], %209 {strides = array<i32>} : memref<2x8x128xf32, #tpu.memory_space<vmem>>, vector<1x8x128xf32>,
    %c0_105 = arith.constant 0 : index
    %c0_106 = arith.constant 0 : index
    %c0_107 = arith.constant 0 : index
    %210 = vector.load %arg8[%c0_105, %c0_106, %c0_107] : memref<2x8x128xf32, #tpu.memory_space<vmem>>, vector<1x8x128xf32>
    %211 = vector.shape_cast %210 : vector<1x8x128xf32> to vector<8x128xf32>
    %212 = vector.shape_cast %204 : vector<8x128xf32> to vector<1x8x128xf32>
    tpu.vector_store %arg8[%c0_105, %c0_106, %c0_107], %212 {strides = array<i32>} : memref<2x8x128xf32, #tpu.memory_space<vmem>>, vector<1x8x128xf32>,
    %c2_108 = arith.constant 2 : index
    %c0_109 = arith.constant 0 : index
    %c0_110 = arith.constant 0 : index
    %c0_111 = arith.constant 0 : index
    %213 = vector.load %arg6[%c2_108, %c0_109, %c0_110, %c0_111] : memref<8x2x8x128xf32, #tpu.memory_space<vmem>>, vector<1x1x8x128xf32>
    %214 = vector.shape_cast %213 : vector<1x1x8x128xf32> to vector<8x128xf32>
    %215 = vector.shape_cast %206 : vector<8x128xf32> to vector<1x1x8x128xf32>
    tpu.vector_store %arg6[%c2_108, %c0_109, %c0_110, %c0_111], %215 {strides = array<i32>} : memref<8x2x8x128xf32, #tpu.memory_space<vmem>>, vector<1x1x8x128xf32>,
    %c1_112 = arith.constant 1 : index
    %c0_113 = arith.constant 0 : index
    %c0_114 = arith.constant 0 : index
    %216 = vector.load %arg7[%c1_112, %c0_113, %c0_114] : memref<2x8x128xf32, #tpu.memory_space<vmem>>, vector<1x8x128xf32>
    %217 = vector.shape_cast %216 : vector<1x8x128xf32> to vector<8x128xf32>
    %c1_115 = arith.constant 1 : index
    %c0_116 = arith.constant 0 : index
    %c0_117 = arith.constant 0 : index
    %218 = vector.load %arg8[%c1_115, %c0_116, %c0_117] : memref<2x8x128xf32, #tpu.memory_space<vmem>>, vector<1x8x128xf32>
    %219 = vector.shape_cast %218 : vector<1x8x128xf32> to vector<8x128xf32>
    %220 = tpu.concatenate %206, %217 in 1 : vector<8x128xf32>, vector<8x128xf32> -> vector<8x256xf32>
    %cst_118 = arith.constant dense<0.000000e+00> : vector<8x512xf32>
    %221 = tpu.matmul %220, %4, %cst_118 {dimension_numbers = #tpu.dot_dimension_numbers<[1], [0], [0], [1], [0, 0, 1, 1], [], []>} : vector<8x256xf32>, vector<256x512xf32>, vector<8x512xf32> -> vector<8x512xf32>
    %222 = vector.broadcast %5 : vector<1x512xf32> to vector<8x512xf32>
    %223 = arith.addf %221, %222 : vector<8x512xf32>
    %224 = vector.extract_strided_slice %223 {offsets = [0, 0], sizes = [8, 128], strides = [1, 1]} : vector<8x512xf32> to vector<8x128xf32>
    %225 = arith.negf %224 : vector<8x128xf32>
    %226 = math.exp %225 : vector<8x128xf32>
    %cst_119 = arith.constant 1.000000e+00 : f32
    %227 = vector.broadcast %cst_119 : f32 to vector<8x128xf32>
    %228 = arith.addf %227, %226 : vector<8x128xf32>
    %229 = arith.divf %227, %228 : vector<8x128xf32>
    %230 = vector.extract_strided_slice %223 {offsets = [0, 128], sizes = [8, 128], strides = [1, 1]} : vector<8x512xf32> to vector<8x128xf32>
    %231 = arith.negf %230 : vector<8x128xf32>
    %232 = math.exp %231 : vector<8x128xf32>
    %cst_120 = arith.constant 1.000000e+00 : f32
    %233 = vector.broadcast %cst_120 : f32 to vector<8x128xf32>
    %234 = arith.addf %233, %232 : vector<8x128xf32>
    %235 = arith.divf %233, %234 : vector<8x128xf32>
    %236 = vector.extract_strided_slice %223 {offsets = [0, 256], sizes = [8, 128], strides = [1, 1]} : vector<8x512xf32> to vector<8x128xf32>
    %237 = math.tanh %236 : vector<8x128xf32>
    %238 = vector.extract_strided_slice %223 {offsets = [0, 384], sizes = [8, 128], strides = [1, 1]} : vector<8x512xf32> to vector<8x128xf32>
    %239 = arith.negf %238 : vector<8x128xf32>
    %240 = math.exp %239 : vector<8x128xf32>
    %cst_121 = arith.constant 1.000000e+00 : f32
    %241 = vector.broadcast %cst_121 : f32 to vector<8x128xf32>
    %242 = arith.addf %241, %240 : vector<8x128xf32>
    %243 = arith.divf %241, %242 : vector<8x128xf32>
    %244 = arith.mulf %235, %219 : vector<8x128xf32>
    %245 = arith.mulf %229, %237 : vector<8x128xf32>
    %246 = arith.addf %244, %245 : vector<8x128xf32>
    %247 = math.tanh %246 : vector<8x128xf32>
    %248 = arith.mulf %243, %247 : vector<8x128xf32>
    %c1_122 = arith.constant 1 : index
    %c0_123 = arith.constant 0 : index
    %c0_124 = arith.constant 0 : index
    %249 = vector.load %arg7[%c1_122, %c0_123, %c0_124] : memref<2x8x128xf32, #tpu.memory_space<vmem>>, vector<1x8x128xf32>
    %250 = vector.shape_cast %249 : vector<1x8x128xf32> to vector<8x128xf32>
    %251 = vector.shape_cast %248 : vector<8x128xf32> to vector<1x8x128xf32>
    tpu.vector_store %arg7[%c1_122, %c0_123, %c0_124], %251 {strides = array<i32>} : memref<2x8x128xf32, #tpu.memory_space<vmem>>, vector<1x8x128xf32>,
    %c1_125 = arith.constant 1 : index
    %c0_126 = arith.constant 0 : index
    %c0_127 = arith.constant 0 : index
    %252 = vector.load %arg8[%c1_125, %c0_126, %c0_127] : memref<2x8x128xf32, #tpu.memory_space<vmem>>, vector<1x8x128xf32>
    %253 = vector.shape_cast %252 : vector<1x8x128xf32> to vector<8x128xf32>
    %254 = vector.shape_cast %246 : vector<8x128xf32> to vector<1x8x128xf32>
    tpu.vector_store %arg8[%c1_125, %c0_126, %c0_127], %254 {strides = array<i32>} : memref<2x8x128xf32, #tpu.memory_space<vmem>>, vector<1x8x128xf32>,
    %c2_128 = arith.constant 2 : index
    %c1_129 = arith.constant 1 : index
    %c0_130 = arith.constant 0 : index
    %c0_131 = arith.constant 0 : index
    %255 = vector.load %arg6[%c2_128, %c1_129, %c0_130, %c0_131] : memref<8x2x8x128xf32, #tpu.memory_space<vmem>>, vector<1x1x8x128xf32>
    %256 = vector.shape_cast %255 : vector<1x1x8x128xf32> to vector<8x128xf32>
    %257 = vector.shape_cast %248 : vector<8x128xf32> to vector<1x1x8x128xf32>
    tpu.vector_store %arg6[%c2_128, %c1_129, %c0_130, %c0_131], %257 {strides = array<i32>} : memref<8x2x8x128xf32, #tpu.memory_space<vmem>>, vector<1x1x8x128xf32>,
    %c0_132 = arith.constant 0 : index
    %c0_133 = arith.constant 0 : index
    %c0_134 = arith.constant 0 : index
    %258 = vector.load %arg7[%c0_132, %c0_133, %c0_134] : memref<2x8x128xf32, #tpu.memory_space<vmem>>, vector<1x8x128xf32>
    %259 = vector.shape_cast %258 : vector<1x8x128xf32> to vector<8x128xf32>
    %c0_135 = arith.constant 0 : index
    %c0_136 = arith.constant 0 : index
    %c0_137 = arith.constant 0 : index
    %260 = vector.load %arg8[%c0_135, %c0_136, %c0_137] : memref<2x8x128xf32, #tpu.memory_space<vmem>>, vector<1x8x128xf32>
    %261 = vector.shape_cast %260 : vector<1x8x128xf32> to vector<8x128xf32>
    %c3 = arith.constant 3 : index
    %c0_138 = arith.constant 0 : index
    %c0_139 = arith.constant 0 : index
    %262 = vector.load %arg2[%c3, %c0_138, %c0_139] : memref<8x8x512xf32, #tpu.memory_space<vmem>>, vector<1x8x512xf32>
    %263 = vector.shape_cast %262 : vector<1x8x512xf32> to vector<8x512xf32>
    %cst_140 = arith.constant dense<0.000000e+00> : vector<8x512xf32>
    %264 = tpu.matmul %259, %3, %cst_140 {dimension_numbers = #tpu.dot_dimension_numbers<[1], [0], [0], [1], [0, 0, 1, 1], [], []>} : vector<8x128xf32>, vector<128x512xf32>, vector<8x512xf32> -> vector<8x512xf32>
    %265 = arith.addf %263, %264 : vector<8x512xf32>
    %266 = vector.extract_strided_slice %265 {offsets = [0, 0], sizes = [8, 128], strides = [1, 1]} : vector<8x512xf32> to vector<8x128xf32>
    %267 = arith.negf %266 : vector<8x128xf32>
    %268 = math.exp %267 : vector<8x128xf32>
    %cst_141 = arith.constant 1.000000e+00 : f32
    %269 = vector.broadcast %cst_141 : f32 to vector<8x128xf32>
    %270 = arith.addf %269, %268 : vector<8x128xf32>
    %271 = arith.divf %269, %270 : vector<8x128xf32>
    %272 = vector.extract_strided_slice %265 {offsets = [0, 128], sizes = [8, 128], strides = [1, 1]} : vector<8x512xf32> to vector<8x128xf32>
    %273 = arith.negf %272 : vector<8x128xf32>
    %274 = math.exp %273 : vector<8x128xf32>
    %cst_142 = arith.constant 1.000000e+00 : f32
    %275 = vector.broadcast %cst_142 : f32 to vector<8x128xf32>
    %276 = arith.addf %275, %274 : vector<8x128xf32>
    %277 = arith.divf %275, %276 : vector<8x128xf32>
    %278 = vector.extract_strided_slice %265 {offsets = [0, 256], sizes = [8, 128], strides = [1, 1]} : vector<8x512xf32> to vector<8x128xf32>
    %279 = math.tanh %278 : vector<8x128xf32>
    %280 = vector.extract_strided_slice %265 {offsets = [0, 384], sizes = [8, 128], strides = [1, 1]} : vector<8x512xf32> to vector<8x128xf32>
    %281 = arith.negf %280 : vector<8x128xf32>
    %282 = math.exp %281 : vector<8x128xf32>
    %cst_143 = arith.constant 1.000000e+00 : f32
    %283 = vector.broadcast %cst_143 : f32 to vector<8x128xf32>
    %284 = arith.addf %283, %282 : vector<8x128xf32>
    %285 = arith.divf %283, %284 : vector<8x128xf32>
    %286 = arith.mulf %277, %261 : vector<8x128xf32>
    %287 = arith.mulf %271, %279 : vector<8x128xf32>
    %288 = arith.addf %286, %287 : vector<8x128xf32>
    %289 = math.tanh %288 : vector<8x128xf32>
    %290 = arith.mulf %285, %289 : vector<8x128xf32>
    %c0_144 = arith.constant 0 : index
    %c0_145 = arith.constant 0 : index
    %c0_146 = arith.constant 0 : index
    %291 = vector.load %arg7[%c0_144, %c0_145, %c0_146] : memref<2x8x128xf32, #tpu.memory_space<vmem>>, vector<1x8x128xf32>
    %292 = vector.shape_cast %291 : vector<1x8x128xf32> to vector<8x128xf32>
    %293 = vector.shape_cast %290 : vector<8x128xf32> to vector<1x8x128xf32>
    tpu.vector_store %arg7[%c0_144, %c0_145, %c0_146], %293 {strides = array<i32>} : memref<2x8x128xf32, #tpu.memory_space<vmem>>, vector<1x8x128xf32>,
    %c0_147 = arith.constant 0 : index
    %c0_148 = arith.constant 0 : index
    %c0_149 = arith.constant 0 : index
    %294 = vector.load %arg8[%c0_147, %c0_148, %c0_149] : memref<2x8x128xf32, #tpu.memory_space<vmem>>, vector<1x8x128xf32>
    %295 = vector.shape_cast %294 : vector<1x8x128xf32> to vector<8x128xf32>
    %296 = vector.shape_cast %288 : vector<8x128xf32> to vector<1x8x128xf32>
    tpu.vector_store %arg8[%c0_147, %c0_148, %c0_149], %296 {strides = array<i32>} : memref<2x8x128xf32, #tpu.memory_space<vmem>>, vector<1x8x128xf32>,
    %c3_150 = arith.constant 3 : index
    %c0_151 = arith.constant 0 : index
    %c0_152 = arith.constant 0 : index
    %c0_153 = arith.constant 0 : index
    %297 = vector.load %arg6[%c3_150, %c0_151, %c0_152, %c0_153] : memref<8x2x8x128xf32, #tpu.memory_space<vmem>>, vector<1x1x8x128xf32>
    %298 = vector.shape_cast %297 : vector<1x1x8x128xf32> to vector<8x128xf32>
    %299 = vector.shape_cast %290 : vector<8x128xf32> to vector<1x1x8x128xf32>
    tpu.vector_store %arg6[%c3_150, %c0_151, %c0_152, %c0_153], %299 {strides = array<i32>} : memref<8x2x8x128xf32, #tpu.memory_space<vmem>>, vector<1x1x8x128xf32>,
    %c1_154 = arith.constant 1 : index
    %c0_155 = arith.constant 0 : index
    %c0_156 = arith.constant 0 : index
    %300 = vector.load %arg7[%c1_154, %c0_155, %c0_156] : memref<2x8x128xf32, #tpu.memory_space<vmem>>, vector<1x8x128xf32>
    %301 = vector.shape_cast %300 : vector<1x8x128xf32> to vector<8x128xf32>
    %c1_157 = arith.constant 1 : index
    %c0_158 = arith.constant 0 : index
    %c0_159 = arith.constant 0 : index
    %302 = vector.load %arg8[%c1_157, %c0_158, %c0_159] : memref<2x8x128xf32, #tpu.memory_space<vmem>>, vector<1x8x128xf32>
    %303 = vector.shape_cast %302 : vector<1x8x128xf32> to vector<8x128xf32>
    %304 = tpu.concatenate %290, %301 in 1 : vector<8x128xf32>, vector<8x128xf32> -> vector<8x256xf32>
    %cst_160 = arith.constant dense<0.000000e+00> : vector<8x512xf32>
    %305 = tpu.matmul %304, %4, %cst_160 {dimension_numbers = #tpu.dot_dimension_numbers<[1], [0], [0], [1], [0, 0, 1, 1], [], []>} : vector<8x256xf32>, vector<256x512xf32>, vector<8x512xf32> -> vector<8x512xf32>
    %306 = vector.broadcast %5 : vector<1x512xf32> to vector<8x512xf32>
    %307 = arith.addf %305, %306 : vector<8x512xf32>
    %308 = vector.extract_strided_slice %307 {offsets = [0, 0], sizes = [8, 128], strides = [1, 1]} : vector<8x512xf32> to vector<8x128xf32>
    %309 = arith.negf %308 : vector<8x128xf32>
    %310 = math.exp %309 : vector<8x128xf32>
    %cst_161 = arith.constant 1.000000e+00 : f32
    %311 = vector.broadcast %cst_161 : f32 to vector<8x128xf32>
    %312 = arith.addf %311, %310 : vector<8x128xf32>
    %313 = arith.divf %311, %312 : vector<8x128xf32>
    %314 = vector.extract_strided_slice %307 {offsets = [0, 128], sizes = [8, 128], strides = [1, 1]} : vector<8x512xf32> to vector<8x128xf32>
    %315 = arith.negf %314 : vector<8x128xf32>
    %316 = math.exp %315 : vector<8x128xf32>
    %cst_162 = arith.constant 1.000000e+00 : f32
    %317 = vector.broadcast %cst_162 : f32 to vector<8x128xf32>
    %318 = arith.addf %317, %316 : vector<8x128xf32>
    %319 = arith.divf %317, %318 : vector<8x128xf32>
    %320 = vector.extract_strided_slice %307 {offsets = [0, 256], sizes = [8, 128], strides = [1, 1]} : vector<8x512xf32> to vector<8x128xf32>
    %321 = math.tanh %320 : vector<8x128xf32>
    %322 = vector.extract_strided_slice %307 {offsets = [0, 384], sizes = [8, 128], strides = [1, 1]} : vector<8x512xf32> to vector<8x128xf32>
    %323 = arith.negf %322 : vector<8x128xf32>
    %324 = math.exp %323 : vector<8x128xf32>
    %cst_163 = arith.constant 1.000000e+00 : f32
    %325 = vector.broadcast %cst_163 : f32 to vector<8x128xf32>
    %326 = arith.addf %325, %324 : vector<8x128xf32>
    %327 = arith.divf %325, %326 : vector<8x128xf32>
    %328 = arith.mulf %319, %303 : vector<8x128xf32>
    %329 = arith.mulf %313, %321 : vector<8x128xf32>
    %330 = arith.addf %328, %329 : vector<8x128xf32>
    %331 = math.tanh %330 : vector<8x128xf32>
    %332 = arith.mulf %327, %331 : vector<8x128xf32>
    %c1_164 = arith.constant 1 : index
    %c0_165 = arith.constant 0 : index
    %c0_166 = arith.constant 0 : index
    %333 = vector.load %arg7[%c1_164, %c0_165, %c0_166] : memref<2x8x128xf32, #tpu.memory_space<vmem>>, vector<1x8x128xf32>
    %334 = vector.shape_cast %333 : vector<1x8x128xf32> to vector<8x128xf32>
    %335 = vector.shape_cast %332 : vector<8x128xf32> to vector<1x8x128xf32>
    tpu.vector_store %arg7[%c1_164, %c0_165, %c0_166], %335 {strides = array<i32>} : memref<2x8x128xf32, #tpu.memory_space<vmem>>, vector<1x8x128xf32>,
    %c1_167 = arith.constant 1 : index
    %c0_168 = arith.constant 0 : index
    %c0_169 = arith.constant 0 : index
    %336 = vector.load %arg8[%c1_167, %c0_168, %c0_169] : memref<2x8x128xf32, #tpu.memory_space<vmem>>, vector<1x8x128xf32>
    %337 = vector.shape_cast %336 : vector<1x8x128xf32> to vector<8x128xf32>
    %338 = vector.shape_cast %330 : vector<8x128xf32> to vector<1x8x128xf32>
    tpu.vector_store %arg8[%c1_167, %c0_168, %c0_169], %338 {strides = array<i32>} : memref<2x8x128xf32, #tpu.memory_space<vmem>>, vector<1x8x128xf32>,
    %c3_170 = arith.constant 3 : index
    %c1_171 = arith.constant 1 : index
    %c0_172 = arith.constant 0 : index
    %c0_173 = arith.constant 0 : index
    %339 = vector.load %arg6[%c3_170, %c1_171, %c0_172, %c0_173] : memref<8x2x8x128xf32, #tpu.memory_space<vmem>>, vector<1x1x8x128xf32>
    %340 = vector.shape_cast %339 : vector<1x1x8x128xf32> to vector<8x128xf32>
    %341 = vector.shape_cast %332 : vector<8x128xf32> to vector<1x1x8x128xf32>
    tpu.vector_store %arg6[%c3_170, %c1_171, %c0_172, %c0_173], %341 {strides = array<i32>} : memref<8x2x8x128xf32, #tpu.memory_space<vmem>>, vector<1x1x8x128xf32>,
    %c0_174 = arith.constant 0 : index
    %c0_175 = arith.constant 0 : index
    %c0_176 = arith.constant 0 : index
    %342 = vector.load %arg7[%c0_174, %c0_175, %c0_176] : memref<2x8x128xf32, #tpu.memory_space<vmem>>, vector<1x8x128xf32>
    %343 = vector.shape_cast %342 : vector<1x8x128xf32> to vector<8x128xf32>
    %c0_177 = arith.constant 0 : index
    %c0_178 = arith.constant 0 : index
    %c0_179 = arith.constant 0 : index
    %344 = vector.load %arg8[%c0_177, %c0_178, %c0_179] : memref<2x8x128xf32, #tpu.memory_space<vmem>>, vector<1x8x128xf32>
    %345 = vector.shape_cast %344 : vector<1x8x128xf32> to vector<8x128xf32>
    %c4 = arith.constant 4 : index
    %c0_180 = arith.constant 0 : index
    %c0_181 = arith.constant 0 : index
    %346 = vector.load %arg2[%c4, %c0_180, %c0_181] : memref<8x8x512xf32, #tpu.memory_space<vmem>>, vector<1x8x512xf32>
    %347 = vector.shape_cast %346 : vector<1x8x512xf32> to vector<8x512xf32>
    %cst_182 = arith.constant dense<0.000000e+00> : vector<8x512xf32>
    %348 = tpu.matmul %343, %3, %cst_182 {dimension_numbers = #tpu.dot_dimension_numbers<[1], [0], [0], [1], [0, 0, 1, 1], [], []>} : vector<8x128xf32>, vector<128x512xf32>, vector<8x512xf32> -> vector<8x512xf32>
    %349 = arith.addf %347, %348 : vector<8x512xf32>
    %350 = vector.extract_strided_slice %349 {offsets = [0, 0], sizes = [8, 128], strides = [1, 1]} : vector<8x512xf32> to vector<8x128xf32>
    %351 = arith.negf %350 : vector<8x128xf32>
    %352 = math.exp %351 : vector<8x128xf32>
    %cst_183 = arith.constant 1.000000e+00 : f32
    %353 = vector.broadcast %cst_183 : f32 to vector<8x128xf32>
    %354 = arith.addf %353, %352 : vector<8x128xf32>
    %355 = arith.divf %353, %354 : vector<8x128xf32>
    %356 = vector.extract_strided_slice %349 {offsets = [0, 128], sizes = [8, 128], strides = [1, 1]} : vector<8x512xf32> to vector<8x128xf32>
    %357 = arith.negf %356 : vector<8x128xf32>
    %358 = math.exp %357 : vector<8x128xf32>
    %cst_184 = arith.constant 1.000000e+00 : f32
    %359 = vector.broadcast %cst_184 : f32 to vector<8x128xf32>
    %360 = arith.addf %359, %358 : vector<8x128xf32>
    %361 = arith.divf %359, %360 : vector<8x128xf32>
    %362 = vector.extract_strided_slice %349 {offsets = [0, 256], sizes = [8, 128], strides = [1, 1]} : vector<8x512xf32> to vector<8x128xf32>
    %363 = math.tanh %362 : vector<8x128xf32>
    %364 = vector.extract_strided_slice %349 {offsets = [0, 384], sizes = [8, 128], strides = [1, 1]} : vector<8x512xf32> to vector<8x128xf32>
    %365 = arith.negf %364 : vector<8x128xf32>
    %366 = math.exp %365 : vector<8x128xf32>
    %cst_185 = arith.constant 1.000000e+00 : f32
    %367 = vector.broadcast %cst_185 : f32 to vector<8x128xf32>
    %368 = arith.addf %367, %366 : vector<8x128xf32>
    %369 = arith.divf %367, %368 : vector<8x128xf32>
    %370 = arith.mulf %361, %345 : vector<8x128xf32>
    %371 = arith.mulf %355, %363 : vector<8x128xf32>
    %372 = arith.addf %370, %371 : vector<8x128xf32>
    %373 = math.tanh %372 : vector<8x128xf32>
    %374 = arith.mulf %369, %373 : vector<8x128xf32>
    %c0_186 = arith.constant 0 : index
    %c0_187 = arith.constant 0 : index
    %c0_188 = arith.constant 0 : index
    %375 = vector.load %arg7[%c0_186, %c0_187, %c0_188] : memref<2x8x128xf32, #tpu.memory_space<vmem>>, vector<1x8x128xf32>
    %376 = vector.shape_cast %375 : vector<1x8x128xf32> to vector<8x128xf32>
    %377 = vector.shape_cast %374 : vector<8x128xf32> to vector<1x8x128xf32>
    tpu.vector_store %arg7[%c0_186, %c0_187, %c0_188], %377 {strides = array<i32>} : memref<2x8x128xf32, #tpu.memory_space<vmem>>, vector<1x8x128xf32>,
    %c0_189 = arith.constant 0 : index
    %c0_190 = arith.constant 0 : index
    %c0_191 = arith.constant 0 : index
    %378 = vector.load %arg8[%c0_189, %c0_190, %c0_191] : memref<2x8x128xf32, #tpu.memory_space<vmem>>, vector<1x8x128xf32>
    %379 = vector.shape_cast %378 : vector<1x8x128xf32> to vector<8x128xf32>
    %380 = vector.shape_cast %372 : vector<8x128xf32> to vector<1x8x128xf32>
    tpu.vector_store %arg8[%c0_189, %c0_190, %c0_191], %380 {strides = array<i32>} : memref<2x8x128xf32, #tpu.memory_space<vmem>>, vector<1x8x128xf32>,
    %c4_192 = arith.constant 4 : index
    %c0_193 = arith.constant 0 : index
    %c0_194 = arith.constant 0 : index
    %c0_195 = arith.constant 0 : index
    %381 = vector.load %arg6[%c4_192, %c0_193, %c0_194, %c0_195] : memref<8x2x8x128xf32, #tpu.memory_space<vmem>>, vector<1x1x8x128xf32>
    %382 = vector.shape_cast %381 : vector<1x1x8x128xf32> to vector<8x128xf32>
    %383 = vector.shape_cast %374 : vector<8x128xf32> to vector<1x1x8x128xf32>
    tpu.vector_store %arg6[%c4_192, %c0_193, %c0_194, %c0_195], %383 {strides = array<i32>} : memref<8x2x8x128xf32, #tpu.memory_space<vmem>>, vector<1x1x8x128xf32>,
    %c1_196 = arith.constant 1 : index
    %c0_197 = arith.constant 0 : index
    %c0_198 = arith.constant 0 : index
    %384 = vector.load %arg7[%c1_196, %c0_197, %c0_198] : memref<2x8x128xf32, #tpu.memory_space<vmem>>, vector<1x8x128xf32>
    %385 = vector.shape_cast %384 : vector<1x8x128xf32> to vector<8x128xf32>
    %c1_199 = arith.constant 1 : index
    %c0_200 = arith.constant 0 : index
    %c0_201 = arith.constant 0 : index
    %386 = vector.load %arg8[%c1_199, %c0_200, %c0_201] : memref<2x8x128xf32, #tpu.memory_space<vmem>>, vector<1x8x128xf32>
    %387 = vector.shape_cast %386 : vector<1x8x128xf32> to vector<8x128xf32>
    %388 = tpu.concatenate %374, %385 in 1 : vector<8x128xf32>, vector<8x128xf32> -> vector<8x256xf32>
    %cst_202 = arith.constant dense<0.000000e+00> : vector<8x512xf32>
    %389 = tpu.matmul %388, %4, %cst_202 {dimension_numbers = #tpu.dot_dimension_numbers<[1], [0], [0], [1], [0, 0, 1, 1], [], []>} : vector<8x256xf32>, vector<256x512xf32>, vector<8x512xf32> -> vector<8x512xf32>
    %390 = vector.broadcast %5 : vector<1x512xf32> to vector<8x512xf32>
    %391 = arith.addf %389, %390 : vector<8x512xf32>
    %392 = vector.extract_strided_slice %391 {offsets = [0, 0], sizes = [8, 128], strides = [1, 1]} : vector<8x512xf32> to vector<8x128xf32>
    %393 = arith.negf %392 : vector<8x128xf32>
    %394 = math.exp %393 : vector<8x128xf32>
    %cst_203 = arith.constant 1.000000e+00 : f32
    %395 = vector.broadcast %cst_203 : f32 to vector<8x128xf32>
    %396 = arith.addf %395, %394 : vector<8x128xf32>
    %397 = arith.divf %395, %396 : vector<8x128xf32>
    %398 = vector.extract_strided_slice %391 {offsets = [0, 128], sizes = [8, 128], strides = [1, 1]} : vector<8x512xf32> to vector<8x128xf32>
    %399 = arith.negf %398 : vector<8x128xf32>
    %400 = math.exp %399 : vector<8x128xf32>
    %cst_204 = arith.constant 1.000000e+00 : f32
    %401 = vector.broadcast %cst_204 : f32 to vector<8x128xf32>
    %402 = arith.addf %401, %400 : vector<8x128xf32>
    %403 = arith.divf %401, %402 : vector<8x128xf32>
    %404 = vector.extract_strided_slice %391 {offsets = [0, 256], sizes = [8, 128], strides = [1, 1]} : vector<8x512xf32> to vector<8x128xf32>
    %405 = math.tanh %404 : vector<8x128xf32>
    %406 = vector.extract_strided_slice %391 {offsets = [0, 384], sizes = [8, 128], strides = [1, 1]} : vector<8x512xf32> to vector<8x128xf32>
    %407 = arith.negf %406 : vector<8x128xf32>
    %408 = math.exp %407 : vector<8x128xf32>
    %cst_205 = arith.constant 1.000000e+00 : f32
    %409 = vector.broadcast %cst_205 : f32 to vector<8x128xf32>
    %410 = arith.addf %409, %408 : vector<8x128xf32>
    %411 = arith.divf %409, %410 : vector<8x128xf32>
    %412 = arith.mulf %403, %387 : vector<8x128xf32>
    %413 = arith.mulf %397, %405 : vector<8x128xf32>
    %414 = arith.addf %412, %413 : vector<8x128xf32>
    %415 = math.tanh %414 : vector<8x128xf32>
    %416 = arith.mulf %411, %415 : vector<8x128xf32>
    %c1_206 = arith.constant 1 : index
    %c0_207 = arith.constant 0 : index
    %c0_208 = arith.constant 0 : index
    %417 = vector.load %arg7[%c1_206, %c0_207, %c0_208] : memref<2x8x128xf32, #tpu.memory_space<vmem>>, vector<1x8x128xf32>
    %418 = vector.shape_cast %417 : vector<1x8x128xf32> to vector<8x128xf32>
    %419 = vector.shape_cast %416 : vector<8x128xf32> to vector<1x8x128xf32>
    tpu.vector_store %arg7[%c1_206, %c0_207, %c0_208], %419 {strides = array<i32>} : memref<2x8x128xf32, #tpu.memory_space<vmem>>, vector<1x8x128xf32>,
    %c1_209 = arith.constant 1 : index
    %c0_210 = arith.constant 0 : index
    %c0_211 = arith.constant 0 : index
    %420 = vector.load %arg8[%c1_209, %c0_210, %c0_211] : memref<2x8x128xf32, #tpu.memory_space<vmem>>, vector<1x8x128xf32>
    %421 = vector.shape_cast %420 : vector<1x8x128xf32> to vector<8x128xf32>
    %422 = vector.shape_cast %414 : vector<8x128xf32> to vector<1x8x128xf32>
    tpu.vector_store %arg8[%c1_209, %c0_210, %c0_211], %422 {strides = array<i32>} : memref<2x8x128xf32, #tpu.memory_space<vmem>>, vector<1x8x128xf32>,
    %c4_212 = arith.constant 4 : index
    %c1_213 = arith.constant 1 : index
    %c0_214 = arith.constant 0 : index
    %c0_215 = arith.constant 0 : index
    %423 = vector.load %arg6[%c4_212, %c1_213, %c0_214, %c0_215] : memref<8x2x8x128xf32, #tpu.memory_space<vmem>>, vector<1x1x8x128xf32>
    %424 = vector.shape_cast %423 : vector<1x1x8x128xf32> to vector<8x128xf32>
    %425 = vector.shape_cast %416 : vector<8x128xf32> to vector<1x1x8x128xf32>
    tpu.vector_store %arg6[%c4_212, %c1_213, %c0_214, %c0_215], %425 {strides = array<i32>} : memref<8x2x8x128xf32, #tpu.memory_space<vmem>>, vector<1x1x8x128xf32>,
    %c0_216 = arith.constant 0 : index
    %c0_217 = arith.constant 0 : index
    %c0_218 = arith.constant 0 : index
    %426 = vector.load %arg7[%c0_216, %c0_217, %c0_218] : memref<2x8x128xf32, #tpu.memory_space<vmem>>, vector<1x8x128xf32>
    %427 = vector.shape_cast %426 : vector<1x8x128xf32> to vector<8x128xf32>
    %c0_219 = arith.constant 0 : index
    %c0_220 = arith.constant 0 : index
    %c0_221 = arith.constant 0 : index
    %428 = vector.load %arg8[%c0_219, %c0_220, %c0_221] : memref<2x8x128xf32, #tpu.memory_space<vmem>>, vector<1x8x128xf32>
    %429 = vector.shape_cast %428 : vector<1x8x128xf32> to vector<8x128xf32>
    %c5 = arith.constant 5 : index
    %c0_222 = arith.constant 0 : index
    %c0_223 = arith.constant 0 : index
    %430 = vector.load %arg2[%c5, %c0_222, %c0_223] : memref<8x8x512xf32, #tpu.memory_space<vmem>>, vector<1x8x512xf32>
    %431 = vector.shape_cast %430 : vector<1x8x512xf32> to vector<8x512xf32>
    %cst_224 = arith.constant dense<0.000000e+00> : vector<8x512xf32>
    %432 = tpu.matmul %427, %3, %cst_224 {dimension_numbers = #tpu.dot_dimension_numbers<[1], [0], [0], [1], [0, 0, 1, 1], [], []>} : vector<8x128xf32>, vector<128x512xf32>, vector<8x512xf32> -> vector<8x512xf32>
    %433 = arith.addf %431, %432 : vector<8x512xf32>
    %434 = vector.extract_strided_slice %433 {offsets = [0, 0], sizes = [8, 128], strides = [1, 1]} : vector<8x512xf32> to vector<8x128xf32>
    %435 = arith.negf %434 : vector<8x128xf32>
    %436 = math.exp %435 : vector<8x128xf32>
    %cst_225 = arith.constant 1.000000e+00 : f32
    %437 = vector.broadcast %cst_225 : f32 to vector<8x128xf32>
    %438 = arith.addf %437, %436 : vector<8x128xf32>
    %439 = arith.divf %437, %438 : vector<8x128xf32>
    %440 = vector.extract_strided_slice %433 {offsets = [0, 128], sizes = [8, 128], strides = [1, 1]} : vector<8x512xf32> to vector<8x128xf32>
    %441 = arith.negf %440 : vector<8x128xf32>
    %442 = math.exp %441 : vector<8x128xf32>
    %cst_226 = arith.constant 1.000000e+00 : f32
    %443 = vector.broadcast %cst_226 : f32 to vector<8x128xf32>
    %444 = arith.addf %443, %442 : vector<8x128xf32>
    %445 = arith.divf %443, %444 : vector<8x128xf32>
    %446 = vector.extract_strided_slice %433 {offsets = [0, 256], sizes = [8, 128], strides = [1, 1]} : vector<8x512xf32> to vector<8x128xf32>
    %447 = math.tanh %446 : vector<8x128xf32>
    %448 = vector.extract_strided_slice %433 {offsets = [0, 384], sizes = [8, 128], strides = [1, 1]} : vector<8x512xf32> to vector<8x128xf32>
    %449 = arith.negf %448 : vector<8x128xf32>
    %450 = math.exp %449 : vector<8x128xf32>
    %cst_227 = arith.constant 1.000000e+00 : f32
    %451 = vector.broadcast %cst_227 : f32 to vector<8x128xf32>
    %452 = arith.addf %451, %450 : vector<8x128xf32>
    %453 = arith.divf %451, %452 : vector<8x128xf32>
    %454 = arith.mulf %445, %429 : vector<8x128xf32>
    %455 = arith.mulf %439, %447 : vector<8x128xf32>
    %456 = arith.addf %454, %455 : vector<8x128xf32>
    %457 = math.tanh %456 : vector<8x128xf32>
    %458 = arith.mulf %453, %457 : vector<8x128xf32>
    %c0_228 = arith.constant 0 : index
    %c0_229 = arith.constant 0 : index
    %c0_230 = arith.constant 0 : index
    %459 = vector.load %arg7[%c0_228, %c0_229, %c0_230] : memref<2x8x128xf32, #tpu.memory_space<vmem>>, vector<1x8x128xf32>
    %460 = vector.shape_cast %459 : vector<1x8x128xf32> to vector<8x128xf32>
    %461 = vector.shape_cast %458 : vector<8x128xf32> to vector<1x8x128xf32>
    tpu.vector_store %arg7[%c0_228, %c0_229, %c0_230], %461 {strides = array<i32>} : memref<2x8x128xf32, #tpu.memory_space<vmem>>, vector<1x8x128xf32>,
    %c0_231 = arith.constant 0 : index
    %c0_232 = arith.constant 0 : index
    %c0_233 = arith.constant 0 : index
    %462 = vector.load %arg8[%c0_231, %c0_232, %c0_233] : memref<2x8x128xf32, #tpu.memory_space<vmem>>, vector<1x8x128xf32>
    %463 = vector.shape_cast %462 : vector<1x8x128xf32> to vector<8x128xf32>
    %464 = vector.shape_cast %456 : vector<8x128xf32> to vector<1x8x128xf32>
    tpu.vector_store %arg8[%c0_231, %c0_232, %c0_233], %464 {strides = array<i32>} : memref<2x8x128xf32, #tpu.memory_space<vmem>>, vector<1x8x128xf32>,
    %c5_234 = arith.constant 5 : index
    %c0_235 = arith.constant 0 : index
    %c0_236 = arith.constant 0 : index
    %c0_237 = arith.constant 0 : index
    %465 = vector.load %arg6[%c5_234, %c0_235, %c0_236, %c0_237] : memref<8x2x8x128xf32, #tpu.memory_space<vmem>>, vector<1x1x8x128xf32>
    %466 = vector.shape_cast %465 : vector<1x1x8x128xf32> to vector<8x128xf32>
    %467 = vector.shape_cast %458 : vector<8x128xf32> to vector<1x1x8x128xf32>
    tpu.vector_store %arg6[%c5_234, %c0_235, %c0_236, %c0_237], %467 {strides = array<i32>} : memref<8x2x8x128xf32, #tpu.memory_space<vmem>>, vector<1x1x8x128xf32>,
    %c1_238 = arith.constant 1 : index
    %c0_239 = arith.constant 0 : index
    %c0_240 = arith.constant 0 : index
    %468 = vector.load %arg7[%c1_238, %c0_239, %c0_240] : memref<2x8x128xf32, #tpu.memory_space<vmem>>, vector<1x8x128xf32>
    %469 = vector.shape_cast %468 : vector<1x8x128xf32> to vector<8x128xf32>
    %c1_241 = arith.constant 1 : index
    %c0_242 = arith.constant 0 : index
    %c0_243 = arith.constant 0 : index
    %470 = vector.load %arg8[%c1_241, %c0_242, %c0_243] : memref<2x8x128xf32, #tpu.memory_space<vmem>>, vector<1x8x128xf32>
    %471 = vector.shape_cast %470 : vector<1x8x128xf32> to vector<8x128xf32>
    %472 = tpu.concatenate %458, %469 in 1 : vector<8x128xf32>, vector<8x128xf32> -> vector<8x256xf32>
    %cst_244 = arith.constant dense<0.000000e+00> : vector<8x512xf32>
    %473 = tpu.matmul %472, %4, %cst_244 {dimension_numbers = #tpu.dot_dimension_numbers<[1], [0], [0], [1], [0, 0, 1, 1], [], []>} : vector<8x256xf32>, vector<256x512xf32>, vector<8x512xf32> -> vector<8x512xf32>
    %474 = vector.broadcast %5 : vector<1x512xf32> to vector<8x512xf32>
    %475 = arith.addf %473, %474 : vector<8x512xf32>
    %476 = vector.extract_strided_slice %475 {offsets = [0, 0], sizes = [8, 128], strides = [1, 1]} : vector<8x512xf32> to vector<8x128xf32>
    %477 = arith.negf %476 : vector<8x128xf32>
    %478 = math.exp %477 : vector<8x128xf32>
    %cst_245 = arith.constant 1.000000e+00 : f32
    %479 = vector.broadcast %cst_245 : f32 to vector<8x128xf32>
    %480 = arith.addf %479, %478 : vector<8x128xf32>
    %481 = arith.divf %479, %480 : vector<8x128xf32>
    %482 = vector.extract_strided_slice %475 {offsets = [0, 128], sizes = [8, 128], strides = [1, 1]} : vector<8x512xf32> to vector<8x128xf32>
    %483 = arith.negf %482 : vector<8x128xf32>
    %484 = math.exp %483 : vector<8x128xf32>
    %cst_246 = arith.constant 1.000000e+00 : f32
    %485 = vector.broadcast %cst_246 : f32 to vector<8x128xf32>
    %486 = arith.addf %485, %484 : vector<8x128xf32>
    %487 = arith.divf %485, %486 : vector<8x128xf32>
    %488 = vector.extract_strided_slice %475 {offsets = [0, 256], sizes = [8, 128], strides = [1, 1]} : vector<8x512xf32> to vector<8x128xf32>
    %489 = math.tanh %488 : vector<8x128xf32>
    %490 = vector.extract_strided_slice %475 {offsets = [0, 384], sizes = [8, 128], strides = [1, 1]} : vector<8x512xf32> to vector<8x128xf32>
    %491 = arith.negf %490 : vector<8x128xf32>
    %492 = math.exp %491 : vector<8x128xf32>
    %cst_247 = arith.constant 1.000000e+00 : f32
    %493 = vector.broadcast %cst_247 : f32 to vector<8x128xf32>
    %494 = arith.addf %493, %492 : vector<8x128xf32>
    %495 = arith.divf %493, %494 : vector<8x128xf32>
    %496 = arith.mulf %487, %471 : vector<8x128xf32>
    %497 = arith.mulf %481, %489 : vector<8x128xf32>
    %498 = arith.addf %496, %497 : vector<8x128xf32>
    %499 = math.tanh %498 : vector<8x128xf32>
    %500 = arith.mulf %495, %499 : vector<8x128xf32>
    %c1_248 = arith.constant 1 : index
    %c0_249 = arith.constant 0 : index
    %c0_250 = arith.constant 0 : index
    %501 = vector.load %arg7[%c1_248, %c0_249, %c0_250] : memref<2x8x128xf32, #tpu.memory_space<vmem>>, vector<1x8x128xf32>
    %502 = vector.shape_cast %501 : vector<1x8x128xf32> to vector<8x128xf32>
    %503 = vector.shape_cast %500 : vector<8x128xf32> to vector<1x8x128xf32>
    tpu.vector_store %arg7[%c1_248, %c0_249, %c0_250], %503 {strides = array<i32>} : memref<2x8x128xf32, #tpu.memory_space<vmem>>, vector<1x8x128xf32>,
    %c1_251 = arith.constant 1 : index
    %c0_252 = arith.constant 0 : index
    %c0_253 = arith.constant 0 : index
    %504 = vector.load %arg8[%c1_251, %c0_252, %c0_253] : memref<2x8x128xf32, #tpu.memory_space<vmem>>, vector<1x8x128xf32>
    %505 = vector.shape_cast %504 : vector<1x8x128xf32> to vector<8x128xf32>
    %506 = vector.shape_cast %498 : vector<8x128xf32> to vector<1x8x128xf32>
    tpu.vector_store %arg8[%c1_251, %c0_252, %c0_253], %506 {strides = array<i32>} : memref<2x8x128xf32, #tpu.memory_space<vmem>>, vector<1x8x128xf32>,
    %c5_254 = arith.constant 5 : index
    %c1_255 = arith.constant 1 : index
    %c0_256 = arith.constant 0 : index
    %c0_257 = arith.constant 0 : index
    %507 = vector.load %arg6[%c5_254, %c1_255, %c0_256, %c0_257] : memref<8x2x8x128xf32, #tpu.memory_space<vmem>>, vector<1x1x8x128xf32>
    %508 = vector.shape_cast %507 : vector<1x1x8x128xf32> to vector<8x128xf32>
    %509 = vector.shape_cast %500 : vector<8x128xf32> to vector<1x1x8x128xf32>
    tpu.vector_store %arg6[%c5_254, %c1_255, %c0_256, %c0_257], %509 {strides = array<i32>} : memref<8x2x8x128xf32, #tpu.memory_space<vmem>>, vector<1x1x8x128xf32>,
    %c0_258 = arith.constant 0 : index
    %c0_259 = arith.constant 0 : index
    %c0_260 = arith.constant 0 : index
    %510 = vector.load %arg7[%c0_258, %c0_259, %c0_260] : memref<2x8x128xf32, #tpu.memory_space<vmem>>, vector<1x8x128xf32>
    %511 = vector.shape_cast %510 : vector<1x8x128xf32> to vector<8x128xf32>
    %c0_261 = arith.constant 0 : index
    %c0_262 = arith.constant 0 : index
    %c0_263 = arith.constant 0 : index
    %512 = vector.load %arg8[%c0_261, %c0_262, %c0_263] : memref<2x8x128xf32, #tpu.memory_space<vmem>>, vector<1x8x128xf32>
    %513 = vector.shape_cast %512 : vector<1x8x128xf32> to vector<8x128xf32>
    %c6 = arith.constant 6 : index
    %c0_264 = arith.constant 0 : index
    %c0_265 = arith.constant 0 : index
    %514 = vector.load %arg2[%c6, %c0_264, %c0_265] : memref<8x8x512xf32, #tpu.memory_space<vmem>>, vector<1x8x512xf32>
    %515 = vector.shape_cast %514 : vector<1x8x512xf32> to vector<8x512xf32>
    %cst_266 = arith.constant dense<0.000000e+00> : vector<8x512xf32>
    %516 = tpu.matmul %511, %3, %cst_266 {dimension_numbers = #tpu.dot_dimension_numbers<[1], [0], [0], [1], [0, 0, 1, 1], [], []>} : vector<8x128xf32>, vector<128x512xf32>, vector<8x512xf32> -> vector<8x512xf32>
    %517 = arith.addf %515, %516 : vector<8x512xf32>
    %518 = vector.extract_strided_slice %517 {offsets = [0, 0], sizes = [8, 128], strides = [1, 1]} : vector<8x512xf32> to vector<8x128xf32>
    %519 = arith.negf %518 : vector<8x128xf32>
    %520 = math.exp %519 : vector<8x128xf32>
    %cst_267 = arith.constant 1.000000e+00 : f32
    %521 = vector.broadcast %cst_267 : f32 to vector<8x128xf32>
    %522 = arith.addf %521, %520 : vector<8x128xf32>
    %523 = arith.divf %521, %522 : vector<8x128xf32>
    %524 = vector.extract_strided_slice %517 {offsets = [0, 128], sizes = [8, 128], strides = [1, 1]} : vector<8x512xf32> to vector<8x128xf32>
    %525 = arith.negf %524 : vector<8x128xf32>
    %526 = math.exp %525 : vector<8x128xf32>
    %cst_268 = arith.constant 1.000000e+00 : f32
    %527 = vector.broadcast %cst_268 : f32 to vector<8x128xf32>
    %528 = arith.addf %527, %526 : vector<8x128xf32>
    %529 = arith.divf %527, %528 : vector<8x128xf32>
    %530 = vector.extract_strided_slice %517 {offsets = [0, 256], sizes = [8, 128], strides = [1, 1]} : vector<8x512xf32> to vector<8x128xf32>
    %531 = math.tanh %530 : vector<8x128xf32>
    %532 = vector.extract_strided_slice %517 {offsets = [0, 384], sizes = [8, 128], strides = [1, 1]} : vector<8x512xf32> to vector<8x128xf32>
    %533 = arith.negf %532 : vector<8x128xf32>
    %534 = math.exp %533 : vector<8x128xf32>
    %cst_269 = arith.constant 1.000000e+00 : f32
    %535 = vector.broadcast %cst_269 : f32 to vector<8x128xf32>
    %536 = arith.addf %535, %534 : vector<8x128xf32>
    %537 = arith.divf %535, %536 : vector<8x128xf32>
    %538 = arith.mulf %529, %513 : vector<8x128xf32>
    %539 = arith.mulf %523, %531 : vector<8x128xf32>
    %540 = arith.addf %538, %539 : vector<8x128xf32>
    %541 = math.tanh %540 : vector<8x128xf32>
    %542 = arith.mulf %537, %541 : vector<8x128xf32>
    %c0_270 = arith.constant 0 : index
    %c0_271 = arith.constant 0 : index
    %c0_272 = arith.constant 0 : index
    %543 = vector.load %arg7[%c0_270, %c0_271, %c0_272] : memref<2x8x128xf32, #tpu.memory_space<vmem>>, vector<1x8x128xf32>
    %544 = vector.shape_cast %543 : vector<1x8x128xf32> to vector<8x128xf32>
    %545 = vector.shape_cast %542 : vector<8x128xf32> to vector<1x8x128xf32>
    tpu.vector_store %arg7[%c0_270, %c0_271, %c0_272], %545 {strides = array<i32>} : memref<2x8x128xf32, #tpu.memory_space<vmem>>, vector<1x8x128xf32>,
    %c0_273 = arith.constant 0 : index
    %c0_274 = arith.constant 0 : index
    %c0_275 = arith.constant 0 : index
    %546 = vector.load %arg8[%c0_273, %c0_274, %c0_275] : memref<2x8x128xf32, #tpu.memory_space<vmem>>, vector<1x8x128xf32>
    %547 = vector.shape_cast %546 : vector<1x8x128xf32> to vector<8x128xf32>
    %548 = vector.shape_cast %540 : vector<8x128xf32> to vector<1x8x128xf32>
    tpu.vector_store %arg8[%c0_273, %c0_274, %c0_275], %548 {strides = array<i32>} : memref<2x8x128xf32, #tpu.memory_space<vmem>>, vector<1x8x128xf32>,
    %c6_276 = arith.constant 6 : index
    %c0_277 = arith.constant 0 : index
    %c0_278 = arith.constant 0 : index
    %c0_279 = arith.constant 0 : index
    %549 = vector.load %arg6[%c6_276, %c0_277, %c0_278, %c0_279] : memref<8x2x8x128xf32, #tpu.memory_space<vmem>>, vector<1x1x8x128xf32>
    %550 = vector.shape_cast %549 : vector<1x1x8x128xf32> to vector<8x128xf32>
    %551 = vector.shape_cast %542 : vector<8x128xf32> to vector<1x1x8x128xf32>
    tpu.vector_store %arg6[%c6_276, %c0_277, %c0_278, %c0_279], %551 {strides = array<i32>} : memref<8x2x8x128xf32, #tpu.memory_space<vmem>>, vector<1x1x8x128xf32>,
    %c1_280 = arith.constant 1 : index
    %c0_281 = arith.constant 0 : index
    %c0_282 = arith.constant 0 : index
    %552 = vector.load %arg7[%c1_280, %c0_281, %c0_282] : memref<2x8x128xf32, #tpu.memory_space<vmem>>, vector<1x8x128xf32>
    %553 = vector.shape_cast %552 : vector<1x8x128xf32> to vector<8x128xf32>
    %c1_283 = arith.constant 1 : index
    %c0_284 = arith.constant 0 : index
    %c0_285 = arith.constant 0 : index
    %554 = vector.load %arg8[%c1_283, %c0_284, %c0_285] : memref<2x8x128xf32, #tpu.memory_space<vmem>>, vector<1x8x128xf32>
    %555 = vector.shape_cast %554 : vector<1x8x128xf32> to vector<8x128xf32>
    %556 = tpu.concatenate %542, %553 in 1 : vector<8x128xf32>, vector<8x128xf32> -> vector<8x256xf32>
    %cst_286 = arith.constant dense<0.000000e+00> : vector<8x512xf32>
    %557 = tpu.matmul %556, %4, %cst_286 {dimension_numbers = #tpu.dot_dimension_numbers<[1], [0], [0], [1], [0, 0, 1, 1], [], []>} : vector<8x256xf32>, vector<256x512xf32>, vector<8x512xf32> -> vector<8x512xf32>
    %558 = vector.broadcast %5 : vector<1x512xf32> to vector<8x512xf32>
    %559 = arith.addf %557, %558 : vector<8x512xf32>
    %560 = vector.extract_strided_slice %559 {offsets = [0, 0], sizes = [8, 128], strides = [1, 1]} : vector<8x512xf32> to vector<8x128xf32>
    %561 = arith.negf %560 : vector<8x128xf32>
    %562 = math.exp %561 : vector<8x128xf32>
    %cst_287 = arith.constant 1.000000e+00 : f32
    %563 = vector.broadcast %cst_287 : f32 to vector<8x128xf32>
    %564 = arith.addf %563, %562 : vector<8x128xf32>
    %565 = arith.divf %563, %564 : vector<8x128xf32>
    %566 = vector.extract_strided_slice %559 {offsets = [0, 128], sizes = [8, 128], strides = [1, 1]} : vector<8x512xf32> to vector<8x128xf32>
    %567 = arith.negf %566 : vector<8x128xf32>
    %568 = math.exp %567 : vector<8x128xf32>
    %cst_288 = arith.constant 1.000000e+00 : f32
    %569 = vector.broadcast %cst_288 : f32 to vector<8x128xf32>
    %570 = arith.addf %569, %568 : vector<8x128xf32>
    %571 = arith.divf %569, %570 : vector<8x128xf32>
    %572 = vector.extract_strided_slice %559 {offsets = [0, 256], sizes = [8, 128], strides = [1, 1]} : vector<8x512xf32> to vector<8x128xf32>
    %573 = math.tanh %572 : vector<8x128xf32>
    %574 = vector.extract_strided_slice %559 {offsets = [0, 384], sizes = [8, 128], strides = [1, 1]} : vector<8x512xf32> to vector<8x128xf32>
    %575 = arith.negf %574 : vector<8x128xf32>
    %576 = math.exp %575 : vector<8x128xf32>
    %cst_289 = arith.constant 1.000000e+00 : f32
    %577 = vector.broadcast %cst_289 : f32 to vector<8x128xf32>
    %578 = arith.addf %577, %576 : vector<8x128xf32>
    %579 = arith.divf %577, %578 : vector<8x128xf32>
    %580 = arith.mulf %571, %555 : vector<8x128xf32>
    %581 = arith.mulf %565, %573 : vector<8x128xf32>
    %582 = arith.addf %580, %581 : vector<8x128xf32>
    %583 = math.tanh %582 : vector<8x128xf32>
    %584 = arith.mulf %579, %583 : vector<8x128xf32>
    %c1_290 = arith.constant 1 : index
    %c0_291 = arith.constant 0 : index
    %c0_292 = arith.constant 0 : index
    %585 = vector.load %arg7[%c1_290, %c0_291, %c0_292] : memref<2x8x128xf32, #tpu.memory_space<vmem>>, vector<1x8x128xf32>
    %586 = vector.shape_cast %585 : vector<1x8x128xf32> to vector<8x128xf32>
    %587 = vector.shape_cast %584 : vector<8x128xf32> to vector<1x8x128xf32>
    tpu.vector_store %arg7[%c1_290, %c0_291, %c0_292], %587 {strides = array<i32>} : memref<2x8x128xf32, #tpu.memory_space<vmem>>, vector<1x8x128xf32>,
    %c1_293 = arith.constant 1 : index
    %c0_294 = arith.constant 0 : index
    %c0_295 = arith.constant 0 : index
    %588 = vector.load %arg8[%c1_293, %c0_294, %c0_295] : memref<2x8x128xf32, #tpu.memory_space<vmem>>, vector<1x8x128xf32>
    %589 = vector.shape_cast %588 : vector<1x8x128xf32> to vector<8x128xf32>
    %590 = vector.shape_cast %582 : vector<8x128xf32> to vector<1x8x128xf32>
    tpu.vector_store %arg8[%c1_293, %c0_294, %c0_295], %590 {strides = array<i32>} : memref<2x8x128xf32, #tpu.memory_space<vmem>>, vector<1x8x128xf32>,
    %c6_296 = arith.constant 6 : index
    %c1_297 = arith.constant 1 : index
    %c0_298 = arith.constant 0 : index
    %c0_299 = arith.constant 0 : index
    %591 = vector.load %arg6[%c6_296, %c1_297, %c0_298, %c0_299] : memref<8x2x8x128xf32, #tpu.memory_space<vmem>>, vector<1x1x8x128xf32>
    %592 = vector.shape_cast %591 : vector<1x1x8x128xf32> to vector<8x128xf32>
    %593 = vector.shape_cast %584 : vector<8x128xf32> to vector<1x1x8x128xf32>
    tpu.vector_store %arg6[%c6_296, %c1_297, %c0_298, %c0_299], %593 {strides = array<i32>} : memref<8x2x8x128xf32, #tpu.memory_space<vmem>>, vector<1x1x8x128xf32>,
    %c0_300 = arith.constant 0 : index
    %c0_301 = arith.constant 0 : index
    %c0_302 = arith.constant 0 : index
    %594 = vector.load %arg7[%c0_300, %c0_301, %c0_302] : memref<2x8x128xf32, #tpu.memory_space<vmem>>, vector<1x8x128xf32>
    %595 = vector.shape_cast %594 : vector<1x8x128xf32> to vector<8x128xf32>
    %c0_303 = arith.constant 0 : index
    %c0_304 = arith.constant 0 : index
    %c0_305 = arith.constant 0 : index
    %596 = vector.load %arg8[%c0_303, %c0_304, %c0_305] : memref<2x8x128xf32, #tpu.memory_space<vmem>>, vector<1x8x128xf32>
    %597 = vector.shape_cast %596 : vector<1x8x128xf32> to vector<8x128xf32>
    %c7 = arith.constant 7 : index
    %c0_306 = arith.constant 0 : index
    %c0_307 = arith.constant 0 : index
    %598 = vector.load %arg2[%c7, %c0_306, %c0_307] : memref<8x8x512xf32, #tpu.memory_space<vmem>>, vector<1x8x512xf32>
    %599 = vector.shape_cast %598 : vector<1x8x512xf32> to vector<8x512xf32>
    %cst_308 = arith.constant dense<0.000000e+00> : vector<8x512xf32>
    %600 = tpu.matmul %595, %3, %cst_308 {dimension_numbers = #tpu.dot_dimension_numbers<[1], [0], [0], [1], [0, 0, 1, 1], [], []>} : vector<8x128xf32>, vector<128x512xf32>, vector<8x512xf32> -> vector<8x512xf32>
    %601 = arith.addf %599, %600 : vector<8x512xf32>
    %602 = vector.extract_strided_slice %601 {offsets = [0, 0], sizes = [8, 128], strides = [1, 1]} : vector<8x512xf32> to vector<8x128xf32>
    %603 = arith.negf %602 : vector<8x128xf32>
    %604 = math.exp %603 : vector<8x128xf32>
    %cst_309 = arith.constant 1.000000e+00 : f32
    %605 = vector.broadcast %cst_309 : f32 to vector<8x128xf32>
    %606 = arith.addf %605, %604 : vector<8x128xf32>
    %607 = arith.divf %605, %606 : vector<8x128xf32>
    %608 = vector.extract_strided_slice %601 {offsets = [0, 128], sizes = [8, 128], strides = [1, 1]} : vector<8x512xf32> to vector<8x128xf32>
    %609 = arith.negf %608 : vector<8x128xf32>
    %610 = math.exp %609 : vector<8x128xf32>
    %cst_310 = arith.constant 1.000000e+00 : f32
    %611 = vector.broadcast %cst_310 : f32 to vector<8x128xf32>
    %612 = arith.addf %611, %610 : vector<8x128xf32>
    %613 = arith.divf %611, %612 : vector<8x128xf32>
    %614 = vector.extract_strided_slice %601 {offsets = [0, 256], sizes = [8, 128], strides = [1, 1]} : vector<8x512xf32> to vector<8x128xf32>
    %615 = math.tanh %614 : vector<8x128xf32>
    %616 = vector.extract_strided_slice %601 {offsets = [0, 384], sizes = [8, 128], strides = [1, 1]} : vector<8x512xf32> to vector<8x128xf32>
    %617 = arith.negf %616 : vector<8x128xf32>
    %618 = math.exp %617 : vector<8x128xf32>
    %cst_311 = arith.constant 1.000000e+00 : f32
    %619 = vector.broadcast %cst_311 : f32 to vector<8x128xf32>
    %620 = arith.addf %619, %618 : vector<8x128xf32>
    %621 = arith.divf %619, %620 : vector<8x128xf32>
    %622 = arith.mulf %613, %597 : vector<8x128xf32>
    %623 = arith.mulf %607, %615 : vector<8x128xf32>
    %624 = arith.addf %622, %623 : vector<8x128xf32>
    %625 = math.tanh %624 : vector<8x128xf32>
    %626 = arith.mulf %621, %625 : vector<8x128xf32>
    %c0_312 = arith.constant 0 : index
    %c0_313 = arith.constant 0 : index
    %c0_314 = arith.constant 0 : index
    %627 = vector.load %arg7[%c0_312, %c0_313, %c0_314] : memref<2x8x128xf32, #tpu.memory_space<vmem>>, vector<1x8x128xf32>
    %628 = vector.shape_cast %627 : vector<1x8x128xf32> to vector<8x128xf32>
    %629 = vector.shape_cast %626 : vector<8x128xf32> to vector<1x8x128xf32>
    tpu.vector_store %arg7[%c0_312, %c0_313, %c0_314], %629 {strides = array<i32>} : memref<2x8x128xf32, #tpu.memory_space<vmem>>, vector<1x8x128xf32>,
    %c0_315 = arith.constant 0 : index
    %c0_316 = arith.constant 0 : index
    %c0_317 = arith.constant 0 : index
    %630 = vector.load %arg8[%c0_315, %c0_316, %c0_317] : memref<2x8x128xf32, #tpu.memory_space<vmem>>, vector<1x8x128xf32>
    %631 = vector.shape_cast %630 : vector<1x8x128xf32> to vector<8x128xf32>
    %632 = vector.shape_cast %624 : vector<8x128xf32> to vector<1x8x128xf32>
    tpu.vector_store %arg8[%c0_315, %c0_316, %c0_317], %632 {strides = array<i32>} : memref<2x8x128xf32, #tpu.memory_space<vmem>>, vector<1x8x128xf32>,
    %c7_318 = arith.constant 7 : index
    %c0_319 = arith.constant 0 : index
    %c0_320 = arith.constant 0 : index
    %c0_321 = arith.constant 0 : index
    %633 = vector.load %arg6[%c7_318, %c0_319, %c0_320, %c0_321] : memref<8x2x8x128xf32, #tpu.memory_space<vmem>>, vector<1x1x8x128xf32>
    %634 = vector.shape_cast %633 : vector<1x1x8x128xf32> to vector<8x128xf32>
    %635 = vector.shape_cast %626 : vector<8x128xf32> to vector<1x1x8x128xf32>
    tpu.vector_store %arg6[%c7_318, %c0_319, %c0_320, %c0_321], %635 {strides = array<i32>} : memref<8x2x8x128xf32, #tpu.memory_space<vmem>>, vector<1x1x8x128xf32>,
    %c1_322 = arith.constant 1 : index
    %c0_323 = arith.constant 0 : index
    %c0_324 = arith.constant 0 : index
    %636 = vector.load %arg7[%c1_322, %c0_323, %c0_324] : memref<2x8x128xf32, #tpu.memory_space<vmem>>, vector<1x8x128xf32>
    %637 = vector.shape_cast %636 : vector<1x8x128xf32> to vector<8x128xf32>
    %c1_325 = arith.constant 1 : index
    %c0_326 = arith.constant 0 : index
    %c0_327 = arith.constant 0 : index
    %638 = vector.load %arg8[%c1_325, %c0_326, %c0_327] : memref<2x8x128xf32, #tpu.memory_space<vmem>>, vector<1x8x128xf32>
    %639 = vector.shape_cast %638 : vector<1x8x128xf32> to vector<8x128xf32>
    %640 = tpu.concatenate %626, %637 in 1 : vector<8x128xf32>, vector<8x128xf32> -> vector<8x256xf32>
    %cst_328 = arith.constant dense<0.000000e+00> : vector<8x512xf32>
    %641 = tpu.matmul %640, %4, %cst_328 {dimension_numbers = #tpu.dot_dimension_numbers<[1], [0], [0], [1], [0, 0, 1, 1], [], []>} : vector<8x256xf32>, vector<256x512xf32>, vector<8x512xf32> -> vector<8x512xf32>
    %642 = vector.broadcast %5 : vector<1x512xf32> to vector<8x512xf32>
    %643 = arith.addf %641, %642 : vector<8x512xf32>
    %644 = vector.extract_strided_slice %643 {offsets = [0, 0], sizes = [8, 128], strides = [1, 1]} : vector<8x512xf32> to vector<8x128xf32>
    %645 = arith.negf %644 : vector<8x128xf32>
    %646 = math.exp %645 : vector<8x128xf32>
    %cst_329 = arith.constant 1.000000e+00 : f32
    %647 = vector.broadcast %cst_329 : f32 to vector<8x128xf32>
    %648 = arith.addf %647, %646 : vector<8x128xf32>
    %649 = arith.divf %647, %648 : vector<8x128xf32>
    %650 = vector.extract_strided_slice %643 {offsets = [0, 128], sizes = [8, 128], strides = [1, 1]} : vector<8x512xf32> to vector<8x128xf32>
    %651 = arith.negf %650 : vector<8x128xf32>
    %652 = math.exp %651 : vector<8x128xf32>
    %cst_330 = arith.constant 1.000000e+00 : f32
    %653 = vector.broadcast %cst_330 : f32 to vector<8x128xf32>
    %654 = arith.addf %653, %652 : vector<8x128xf32>
    %655 = arith.divf %653, %654 : vector<8x128xf32>
    %656 = vector.extract_strided_slice %643 {offsets = [0, 256], sizes = [8, 128], strides = [1, 1]} : vector<8x512xf32> to vector<8x128xf32>
    %657 = math.tanh %656 : vector<8x128xf32>
    %658 = vector.extract_strided_slice %643 {offsets = [0, 384], sizes = [8, 128], strides = [1, 1]} : vector<8x512xf32> to vector<8x128xf32>
    %659 = arith.negf %658 : vector<8x128xf32>
    %660 = math.exp %659 : vector<8x128xf32>
    %cst_331 = arith.constant 1.000000e+00 : f32
    %661 = vector.broadcast %cst_331 : f32 to vector<8x128xf32>
    %662 = arith.addf %661, %660 : vector<8x128xf32>
    %663 = arith.divf %661, %662 : vector<8x128xf32>
    %664 = arith.mulf %655, %639 : vector<8x128xf32>
    %665 = arith.mulf %649, %657 : vector<8x128xf32>
    %666 = arith.addf %664, %665 : vector<8x128xf32>
    %667 = math.tanh %666 : vector<8x128xf32>
    %668 = arith.mulf %663, %667 : vector<8x128xf32>
    %c1_332 = arith.constant 1 : index
    %c0_333 = arith.constant 0 : index
    %c0_334 = arith.constant 0 : index
    %669 = vector.load %arg7[%c1_332, %c0_333, %c0_334] : memref<2x8x128xf32, #tpu.memory_space<vmem>>, vector<1x8x128xf32>
    %670 = vector.shape_cast %669 : vector<1x8x128xf32> to vector<8x128xf32>
    %671 = vector.shape_cast %668 : vector<8x128xf32> to vector<1x8x128xf32>
    tpu.vector_store %arg7[%c1_332, %c0_333, %c0_334], %671 {strides = array<i32>} : memref<2x8x128xf32, #tpu.memory_space<vmem>>, vector<1x8x128xf32>,
    %c1_335 = arith.constant 1 : index
    %c0_336 = arith.constant 0 : index
    %c0_337 = arith.constant 0 : index
    %672 = vector.load %arg8[%c1_335, %c0_336, %c0_337] : memref<2x8x128xf32, #tpu.memory_space<vmem>>, vector<1x8x128xf32>
    %673 = vector.shape_cast %672 : vector<1x8x128xf32> to vector<8x128xf32>
    %674 = vector.shape_cast %666 : vector<8x128xf32> to vector<1x8x128xf32>
    tpu.vector_store %arg8[%c1_335, %c0_336, %c0_337], %674 {strides = array<i32>} : memref<2x8x128xf32, #tpu.memory_space<vmem>>, vector<1x8x128xf32>,
    %c7_338 = arith.constant 7 : index
    %c1_339 = arith.constant 1 : index
    %c0_340 = arith.constant 0 : index
    %c0_341 = arith.constant 0 : index
    %675 = vector.load %arg6[%c7_338, %c1_339, %c0_340, %c0_341] : memref<8x2x8x128xf32, #tpu.memory_space<vmem>>, vector<1x1x8x128xf32>
    %676 = vector.shape_cast %675 : vector<1x1x8x128xf32> to vector<8x128xf32>
    %677 = vector.shape_cast %668 : vector<8x128xf32> to vector<1x1x8x128xf32>
    tpu.vector_store %arg6[%c7_338, %c1_339, %c0_340, %c0_341], %677 {strides = array<i32>} : memref<8x2x8x128xf32, #tpu.memory_space<vmem>>, vector<1x1x8x128xf32>,
    return
  }
  func.func @transform_0(%arg0: i32, %arg1: i32) -> (i32, i32, i32) {
    %c0_i32 = arith.constant 0 : i32
    %c0_i32_0 = arith.constant 0 : i32
    return %arg1, %arg0, %c0_i32 : i32, i32, i32
  }
  func.func @transform_1(%arg0: i32, %arg1: i32) -> (i32, i32) {
    %c0_i32 = arith.constant 0 : i32
    %c0_i32_0 = arith.constant 0 : i32
    %c0_i32_1 = arith.constant 0 : i32
    return %c0_i32, %c0_i32_0 : i32, i32
  }
  func.func @transform_2(%arg0: i32, %arg1: i32) -> (i32, i32) {
    %c0_i32 = arith.constant 0 : i32
    %c0_i32_0 = arith.constant 0 : i32
    %c0_i32_1 = arith.constant 0 : i32
    return %c0_i32, %c0_i32_0 : i32, i32
  }
  func.func @transform_3(%arg0: i32, %arg1: i32) -> (i32, i32) {
    %c0_i32 = arith.constant 0 : i32
    %c0_i32_0 = arith.constant 0 : i32
    %c0_i32_1 = arith.constant 0 : i32
    return %c0_i32, %c0_i32_0 : i32, i32
  }
  func.func @transform_4(%arg0: i32, %arg1: i32) -> (i32, i32, i32, i32) {
    %c0_i32 = arith.constant 0 : i32
    %c0_i32_0 = arith.constant 0 : i32
    %c0_i32_1 = arith.constant 0 : i32
    return %arg1, %c0_i32, %arg0, %c0_i32_0 : i32, i32, i32, i32
  }
}

</mosaic_0001>

<bundles_post_ra>
// kernel: tpu_custom_call.1
= control target key start
LH: loop header
LB: loop body
LE: loop exit
PB: predicated region body
PF: predicated region fallthrough
CT: control target
= control target key end

     0   :  { %9 = vsyncpa [#allocation5], 0  ;;  %s7994_s0 = inlined_call_operand.hbm [shape: f32[8,8,512], index: 0, kind: input, shape index: {}]   ;;  %s7995_s1 = inlined_call_operand.hbm [shape: f32[128,512], index: 1, kind: input, shape index: {}]   ;;  %s7996_s2 = inlined_call_operand.hbm [shape: f32[256,512], index: 2, kind: input, shape index: {}]   ;;  %s7997_s3 = inlined_call_operand.hbm [shape: f32[1,512], index: 3, kind: input, shape index: {}]   ;;  %s7998_s4 = inlined_call_operand.hbm [shape: f32[8,2,8,128], index: 4, kind: output, shape index: {}]  }
   0x1   :  { %10 = vsyncpa [#allocation8], 0 }
   0x2   :  { %11 = vsyncpa [#allocation11], 0 }
   0x3   :  { %12 = vsyncpa [#allocation6], 0  ;;  %s30_s17 = sshll.u32 %s7995_s1, 4  ;;  %s4434_s18 = smov [#allocation7]   ;;  %s31_s17 = int_to_ptr.hbm [resolvable:$true] %s30_s17 }
   0x4   :  { %s32_s19 = sshll.u32 %s4434_s18, 4  ;;  %s17_s22 = sshll.u32 %s7994_s0, 4  ;;  %s33_s19 = int_to_ptr.vmem [resolvable:$true] %s32_s19  ;;  %s18_s22 = int_to_ptr.hbm [resolvable:$true] %s17_s22 }
   0x5   :  { %s4435_s23 = smov 512   ;;  %s4436_s24 = smov 32  }
   0x6   :  { %38 = dma.hbm_to_vmem [thread:$0]  %s31_s17, 8192, %s33_s19, [#allocation8], %s4435_s23, %s4435_s23, %s4436_s24  }
   0x7   :  { %s4437_s25 = smov [#allocation4]   ;;  %s43_s29 = sshll.u32 %s7996_s2, 4  ;;  %s44_s29 = int_to_ptr.hbm [resolvable:$true] %s43_s29 }
   0x8   :  { %s19_s26 = sshll.u32 %s4437_s25, 4  ;;  %s57_s5 = sshll.u32 %s7997_s3, 4  ;;  %s20_s26 = int_to_ptr.vmem [resolvable:$true] %s19_s26  ;;  %s58_s5 = int_to_ptr.hbm [resolvable:$true] %s57_s5 }
   0x9   :  { %25 = dma.hbm_to_vmem [thread:$0]  %s18_s22, 4096, %s20_s26, [#allocation5], %s4435_s23, %s4435_s23, %s4436_s24  }
   0xa   :  { %s4438_s6 = smov [#allocation9]   ;;  %s4439_s0 = smov [#allocation10]  }
   0xb   :  { %s45_s7 = sshll.u32 %s4438_s6, 4  ;;  %s59_s8 = sshll.u32 %s4439_s0, 4  ;;  %s46_s7 = int_to_ptr.vmem [resolvable:$true] %s45_s7  ;;  %s60_s8 = int_to_ptr.vmem [resolvable:$true] %s59_s8 }
   0xc   :  { %51 = dma.hbm_to_vmem [thread:$0]  %s44_s29, 16384, %s46_s7, [#allocation8], %s4435_s23, %s4435_s23, %s4436_s24  }
   0xd   :  { %62 = dma.hbm_to_vmem [thread:$0]  %s58_s5, 64, %s60_s8, [#allocation11]  }
   0xe   :  { %4426 = dma.done.wait [#allocation5], 4096  }
   0xf   :  { %4427 = vsyncadd [#allocation5], 4294963200 }
  0x10   :  { %4428 = dma.done.wait [#allocation8], 24576  }
  0x11   :  { %4429 = vsyncadd [#allocation8], 4294942720 }
  0x12   :  { %4430 = dma.done.wait [#allocation11], 64  }
  0x13   :  { %4431 = vsyncadd [#allocation11], 4294967232  ;;  %v147_v0 = vld [vmem:[#allocation7 + $0x1e0] sm:$0xff]  ;;  %v4481_v1 = vld [vmem:[#allocation7 + $0x1e8] sm:$0xff]  ;;  %v7999_v61 = vmov 0.0   ;;  %s4441_s2 = smov [#allocation12]  }
  0x14   :  { %v4483_v2 = vld [vmem:[#allocation7 + $0x1f8] sm:$0xff]  ;;  %286 = vmatpush.msra.mxu0 %v147_v0  ;;  %306 = vmatpush.msra.mxu1 %v4481_v1  ;;  %v143_v3 = vld [vmem:[#allocation7 + $0x1c0] sm:$0xff]  ;;  %v4486_v4 = vld [vmem:[#allocation7 + $0x1c8] sm:$0xff]  ;;  %s3389_s3 = sshll.u32 %s4441_s2, 4  ;;  %s3391_s11 = sshll.u32 %s7998_s4, 4  ;;  %s3390_s3 = int_to_ptr.vmem [resolvable:$true] %s3389_s3  ;;  %s3392_s11 = int_to_ptr.hbm [resolvable:$true] %s3391_s11 }
  0x15   :  { %v4488_v5 = vld [vmem:[#allocation7 + $0x1d8] sm:$0xff]  ;;  %346 = vmatpush.msra.mxu3 %v4483_v2  ;;  %v139_v6 = vld [vmem:[#allocation7 + $0x1a0] sm:$0xff]  ;;  %v4491_v7 = vld [vmem:[#allocation7 + $0x1a8] sm:$0xff]  ;;  %s4442_s12 = smov 128   ;;  %s4443_s13 = smov 8  }
  0x16   :  { %287 = vmatpush.msra.mxu0 %v143_v3  ;;  %307 = vmatpush.msra.mxu1 %v4486_v4  ;;  %v4494_v8 = vld [vmem:[#allocation7 + $0x1b8] sm:$0xff]  ;;  %v135_v9 = vld [vmem:[#allocation7 + $0x180] sm:$0xff]  ;;  %v4497_v10 = vld [vmem:[#allocation7 + $0x188] sm:$0xff] }
  0x17   :  { %347 = vmatpush.msra.mxu3 %v4488_v5  ;;  %v4500_v11 = vld [vmem:[#allocation7 + $0x198] sm:$0xff]  ;;  %v131_v12 = vld [vmem:[#allocation7 + $0x160] sm:$0xff]  ;;  %v4503_v13 = vld [vmem:[#allocation7 + $0x168] sm:$0xff] }
  0x18   :  { %288 = vmatpush.msra.mxu0 %v139_v6  ;;  %308 = vmatpush.msra.mxu1 %v4491_v7  ;;  %v4506_v14 = vld [vmem:[#allocation7 + $0x178] sm:$0xff]  ;;  %v127_v15 = vld [vmem:[#allocation7 + $0x140] sm:$0xff]  ;;  %v4509_v16 = vld [vmem:[#allocation7 + $0x148] sm:$0xff] }
  0x19   :  { %348 = vmatpush.msra.mxu3 %v4494_v8  ;;  %v4511_v17 = vld [vmem:[#allocation7 + $0x1f0] sm:$0xff]  ;;  %v4514_v18 = vld [vmem:[#allocation7 + $0x158] sm:$0xff]  ;;  %v123_v20 = vld [vmem:[#allocation7 + $0x120] sm:$0xff] }
  0x1a   :  { %289 = vmatpush.msra.mxu0 %v135_v9  ;;  %309 = vmatpush.msra.mxu1 %v4497_v10  ;;  %8553 = vst [vmem:[#allocation17_spill] sm:$0xff] %v4511_v17  ;;  %v4516_v19 = vld [vmem:[#allocation7 + $0x1d0] sm:$0xff]  ;;  %v4519_v21 = vld [vmem:[#allocation7 + $0x128] sm:$0xff]  ;;  %v4523_v22 = vld [vmem:[#allocation7 + $0x138] sm:$0xff] }
  0x1b   :  { %349 = vmatpush.msra.mxu3 %v4500_v11  ;;  %8554 = vst [vmem:[#allocation18_spill] sm:$0xff] %v4516_v19  ;;  %326 = vmatpush.msra.mxu2 %v4511_v17  ;;  %v4525_v23 = vld [vmem:[#allocation7 + $0x1b0] sm:$0xff]  ;;  %v119_v24 = vld [vmem:[#allocation7 + $0x100] sm:$0xff]  ;;  %v4528_v25 = vld [vmem:[#allocation7 + $0x108] sm:$0xff] }
  0x1c   :  { %290 = vmatpush.msra.mxu0 %v131_v12  ;;  %310 = vmatpush.msra.mxu1 %v4503_v13  ;;  %8555 = vst [vmem:[#allocation19_spill] sm:$0xff] %v4525_v23  ;;  %v4532_v26 = vld [vmem:[#allocation7 + $0x118] sm:$0xff]  ;;  %v4534_v27 = vld [vmem:[#allocation7 + $0x190] sm:$0xff]  ;;  %v115_v28 = vld [vmem:[#allocation7 + $0xe0] sm:$0xff] }
  0x1d   :  { %350 = vmatpush.msra.mxu3 %v4506_v14  ;;  %327 = vmatpush.msra.mxu2 %v4516_v19  ;;  %8556 = vst [vmem:[#allocation20_spill] sm:$0xff] %v4534_v27  ;;  %v4537_v29 = vld [vmem:[#allocation7 + $0xe8] sm:$0xff]  ;;  %v4541_v30 = vld [vmem:[#allocation7 + $0xf8] sm:$0xff]  ;;  %v4543_v31 = vld [vmem:[#allocation7 + $0x170] sm:$0xff] }
  0x1e   :  { %291 = vmatpush.msra.mxu0 %v127_v15  ;;  %311 = vmatpush.msra.mxu1 %v4509_v16  ;;  %8557 = vst [vmem:[#allocation21_spill] sm:$0xff] %v4543_v31  ;;  %v111_v32 = vld [vmem:[#allocation7 + $0xc0] sm:$0xff]  ;;  %v4546_v33 = vld [vmem:[#allocation7 + $0xc8] sm:$0xff]  ;;  %v4550_v34 = vld [vmem:[#allocation7 + $0xd8] sm:$0xff] }
  0x1f   :  { %351 = vmatpush.msra.mxu3 %v4514_v18  ;;  %328 = vmatpush.msra.mxu2 %v4525_v23  ;;  %v4552_v35 = vld [vmem:[#allocation7 + $0x150] sm:$0xff]  ;;  %v4555_v36 = vld [vmem:[#allocation7 + $0xa0] sm:$0xff]  ;;  %v4557_v37 = vld [vmem:[#allocation7 + $0xa8] sm:$0xff] }
  0x20   :  { %292 = vmatpush.msra.mxu0 %v123_v20  ;;  %312 = vmatpush.msra.mxu1 %v4519_v21  ;;  %8558 = vst [vmem:[#allocation22_spill] sm:$0xff] %v4552_v35  ;;  %v4561_v38 = vld [vmem:[#allocation7 + $0xb8] sm:$0xff]  ;;  %v4563_v39 = vld [vmem:[#allocation7 + $0x130] sm:$0xff]  ;;  %v4566_v40 = vld [vmem:[#allocation7 + $0x80] sm:$0xff] }
  0x21   :  { %352 = vmatpush.msra.mxu3 %v4523_v22  ;;  %329 = vmatpush.msra.mxu2 %v4534_v27  ;;  %8559 = vst [vmem:[#allocation23_spill] sm:$0xff] %v4555_v36  ;;  %v4568_v41 = vld [vmem:[#allocation7 + $0x88] sm:$0xff]  ;;  %v4573_v42 = vld [vmem:[#allocation7 + $0x98] sm:$0xff]  ;;  %v4575_v43 = vld [vmem:[#allocation7 + $0x110] sm:$0xff] }
  0x22   :  { %293 = vmatpush.msra.mxu0 %v119_v24  ;;  %313 = vmatpush.msra.mxu1 %v4528_v25  ;;  %8560 = vst [vmem:[#allocation24_spill] sm:$0xff] %v4563_v39  ;;  %v4578_v44 = vld [vmem:[#allocation7 + $0x60] sm:$0xff]  ;;  %v4580_v45 = vld [vmem:[#allocation7 + $0x68] sm:$0xff]  ;;  %v4585_v46 = vld [vmem:[#allocation7 + $0x78] sm:$0xff] }
  0x23   :  { %353 = vmatpush.msra.mxu3 %v4532_v26  ;;  %330 = vmatpush.msra.mxu2 %v4543_v31  ;;  %8561 = vst [vmem:[#allocation25_spill] sm:$0xff] %v4566_v40  ;;  %v4587_v47 = vld [vmem:[#allocation7 + $0xf0] sm:$0xff]  ;;  %v4590_v48 = vld [vmem:[#allocation7 + $0x40] sm:$0xff]  ;;  %v4592_v49 = vld [vmem:[#allocation7 + $0x48] sm:$0xff] }
  0x24   :  { %294 = vmatpush.msra.mxu0 %v115_v28  ;;  %314 = vmatpush.msra.mxu1 %v4537_v29  ;;  %8562 = vst [vmem:[#allocation26_spill] sm:$0xff] %v4575_v43  ;;  %v4597_v50 = vld [vmem:[#allocation7 + $0x58] sm:$0xff]  ;;  %v4599_v51 = vld [vmem:[#allocation7 + $0xd0] sm:$0xff]  ;;  %v4602_v52 = vld [vmem:[#allocation7 + $0x20] sm:$0xff] }
  0x25   :  { %354 = vmatpush.msra.mxu3 %v4541_v30  ;;  %331 = vmatpush.msra.mxu2 %v4552_v35  ;;  %8563 = vst [vmem:[#allocation27_spill] sm:$0xff] %v4578_v44  ;;  %v4604_v53 = vld [vmem:[#allocation7 + $0x28] sm:$0xff]  ;;  %v4609_v54 = vld [vmem:[#allocation7 + $0x38] sm:$0xff]  ;;  %v4611_v55 = vld [vmem:[#allocation7 + $0xb0] sm:$0xff] }
  0x26   :  { %295 = vmatpush.msra.mxu0 %v111_v32  ;;  %315 = vmatpush.msra.mxu1 %v4546_v33  ;;  %8564 = vst [vmem:[#allocation28_spill] sm:$0xff] %v4587_v47  ;;  %v4614_v56 = vld [vmem:[#allocation7] sm:$0xff]  ;;  %v4616_v57 = vld [vmem:[#allocation7 + $0x8] sm:$0xff]  ;;  %v4621_v58 = vld [vmem:[#allocation7 + $0x18] sm:$0xff] }
  0x27   :  { %355 = vmatpush.msra.mxu3 %v4550_v34  ;;  %332 = vmatpush.msra.mxu2 %v4563_v39  ;;  %8565 = vst [vmem:[#allocation29_spill] sm:$0xff] %v4590_v48  ;;  %v4627_v59 = vld [vmem:[#allocation7 + $0x90] sm:$0xff]  ;;  %v4629_v60 = vld [vmem:[#allocation9 + $0x3e0] sm:$0xff]  ;;  %v4633_v62 = vld [vmem:[#allocation9 + $0x3e8] sm:$0xff] }
  0x28   :  { %296 = vmatpush.msra.mxu0 %v4555_v36  ;;  %316 = vmatpush.msra.mxu1 %v4557_v37  ;;  %8566 = vst [vmem:[#allocation30_spill] sm:$0xff] %v4599_v51  ;;  %v4637_v63 = vld [vmem:[#allocation7 + $0x70] sm:$0xff]  ;;  %v4639_v0 = vld [vmem:[#allocation9 + $0x3c0] sm:$0xff]  ;;  %v4645_v6 = vld [vmem:[#allocation9 + $0x3c8] sm:$0xff] }
  0x29   :  { %356 = vmatpush.msra.mxu3 %v4561_v38  ;;  %333 = vmatpush.msra.mxu2 %v4575_v43  ;;  %8567 = vst [vmem:[#allocation31_spill] sm:$0xff] %v4602_v52  ;;  %v4641_v3 = vld [vmem:[#allocation9 + $0x1e0] sm:$0xff]  ;;  %v4649_v12 = vld [vmem:[#allocation7 + $0x50] sm:$0xff]  ;;  %v4657_v20 = vld [vmem:[#allocation9 + $0x3a8] sm:$0xff] }
  0x2a   :  { %297 = vmatpush.msra.mxu0 %v4566_v40  ;;  %317 = vmatpush.msra.mxu1 %v4568_v41  ;;  %8568 = vst [vmem:[#allocation32_spill] sm:$0xff] %v4611_v55  ;;  %v4647_v9 = vld [vmem:[#allocation9 + $0x1c0] sm:$0xff]  ;;  %v4661_v28 = vld [vmem:[#allocation7 + $0x30] sm:$0xff]  ;;  %v4702_v40 = vld [vmem:[#allocation9 + $0x328] sm:$0xff] }
  0x2b   :  { %357 = vmatpush.msra.mxu3 %v4573_v42  ;;  %334 = vmatpush.msra.mxu2 %v4587_v47  ;;  %8569 = vst [vmem:[#allocation33_spill] sm:$0xff] %v4614_v56  ;;  %v4652_v15 = vld [vmem:[#allocation9 + $0x3a0] sm:$0xff]  ;;  %v4714_v36 = vld [vmem:[#allocation9 + $0x308] sm:$0xff] }
  0x2c   :  { %298 = vmatpush.msra.mxu0 %v4578_v44  ;;  %318 = vmatpush.msra.mxu1 %v4580_v45  ;;  %8570 = vst [vmem:[#allocation34_spill] sm:$0xff] %v4627_v59  ;;  %v4659_v24 = vld [vmem:[#allocation9 + $0x1a0] sm:$0xff]  ;;  %v4722_v47 = vld [vmem:[#allocation9 + $0x188] sm:$0xff] }
  0x2d   :  { %358 = vmatpush.msra.mxu3 %v4585_v46  ;;  %335 = vmatpush.msra.mxu2 %v4599_v51  ;;  %8571 = vst [vmem:[#allocation35_spill] sm:$0xff] %v4637_v63  ;;  %v4664_v32 = vld [vmem:[#allocation9 + $0x380] sm:$0xff]  ;;  %v4726_v43 = vld [vmem:[#allocation9 + $0x2e8] sm:$0xff] }
  0x2e   :  { %299 = vmatpush.msra.mxu0 %v4590_v48  ;;  %319 = vmatpush.msra.mxu1 %v4592_v49  ;;  %8572 = vst [vmem:[#allocation36_spill] sm:$0xff] %v4641_v3  ;;  %v4686_v48 = vld [vmem:[#allocation9 + $0x1e8] sm:$0xff]  ;;  %v4697_v44 = vld [vmem:[#allocation9 + $0x320] sm:$0xff] }
  0x2f   :  { %359 = vmatpush.msra.mxu3 %v4597_v50  ;;  %336 = vmatpush.msra.mxu2 %v4611_v55  ;;  %8573 = vst [vmem:[#allocation37_spill] sm:$0xff] %v4647_v9  ;;  %v4710_v55 = vld [vmem:[#allocation9 + $0x1a8] sm:$0xff]  ;;  %v4717_v51 = vld [vmem:[#allocation9 + $0x120] sm:$0xff] }
  0x30   :  { %300 = vmatpush.msra.mxu0 %v4602_v52  ;;  %320 = vmatpush.msra.mxu1 %v4604_v53  ;;  %8574 = vst [vmem:[#allocation38_spill] sm:$0xff] %v4649_v12  ;;  %v4676_v52 = vld [vmem:[#allocation9 + $0x360] sm:$0xff]  ;;  %v4734_v39 = vld [vmem:[#allocation9 + $0x168] sm:$0xff] }
  0x31   :  { %360 = vmatpush.msra.mxu3 %v4609_v54  ;;  %337 = vmatpush.msra.mxu2 %v4627_v59  ;;  %8575 = vst [vmem:[#allocation39_spill] sm:$0xff] %v4659_v24  ;;  %v4699_v59 = vld [vmem:[#allocation9 + $0x1c8] sm:$0xff] }
  0x32   :  { %301 = vmatpush.msra.mxu0 %v4614_v56  ;;  %321 = vmatpush.msra.mxu1 %v4616_v57  ;;  %8576 = vst [vmem:[#allocation40_spill] sm:$0xff] %v4661_v28  ;;  %v4673_v56 = vld [vmem:[#allocation7 + $0x10] sm:$0xff]  ;;  %v4738_v35 = vld [vmem:[#allocation9 + $0x2c8] sm:$0xff] }
  0x33   :  { %361 = vmatpush.msra.mxu3 %v4621_v58  ;;  %302 = vmatmul.f32.vlgmr.msra.gmra.mxu0 %v7999_v61  ;;  %8578 = vst [vmem:[#allocation42_spill] sm:$0xff] %v4673_v56  ;;  %v4746_v31 = vld [vmem:[#allocation9 + $0x148] sm:$0xff] }
  0x34   :  { %322 = vmatmul.f32.vlgmr.msra.gmra.mxu1 %v7999_v61  ;;  %362 = vmatmul.f32.vlgmr.msra.gmra.mxu3 %v7999_v61  ;;  %v4669_v61 = vld [vmem:[#allocation9 + $0x388] sm:$0xff]  ;;  %8579 = vst [vmem:[#allocation43_spill] sm:$0xff] %v4686_v48 }
  0x35   :  { %469 = vmatpush.msrb.mxu1 %v4629_v60  ;;  %509 = vmatpush.msrb.mxu3 %v4633_v62  ;;  %8582 = vst [vmem:[#allocation45_spill] sm:$0xff] %v4699_v59  ;;  %v4750_v27 = vld [vmem:[#allocation9 + $0x2a8] sm:$0xff] }
  0x36   :  { %449 = vmatpush.msrb.mxu0 %v4641_v3  ;;  %338 = vmatpush.msra.mxu2 %v4637_v63  ;;  %v4671_v3 = vld [vmem:[#allocation9 + $0x180] sm:$0xff]  ;;  %v4691_v63 = vld [vmem:[#allocation9 + $0x348] sm:$0xff]  ;;  %8584 = vst [vmem:[#allocation47_spill] sm:$0xff] %v4710_v55 }
  0x37   :  { %470 = vmatpush.msrb.mxu1 %v4639_v0  ;;  %510 = vmatpush.msrb.mxu3 %v4645_v6  ;;  %8577 = vst [vmem:[#allocation41_spill] sm:$0xff] %v4671_v3  ;;  %v4760_v23 = vld [vmem:[#allocation9 + $0x288] sm:$0xff] }
  0x38   :  { %450 = vmatpush.msrb.mxu0 %v4647_v9  ;;  %339 = vmatpush.msra.mxu2 %v4649_v12  ;;  %v4681_v9 = vld [vmem:[#allocation9 + $0x368] sm:$0xff]  ;;  %v4684_v12 = vld [vmem:[#allocation9 + $0x340] sm:$0xff]  ;;  %8585 = vst [vmem:[#allocation48_spill] sm:$0xff] %v4717_v51 }
  0x39   :  { %471 = vmatpush.msrb.mxu1 %v4652_v15  ;;  %511 = vmatpush.msrb.mxu3 %v4657_v20  ;;  %8586 = vst [vmem:[#allocation49_spill] sm:$0xff] %v4722_v47  ;;  %v4766_v19 = vld [vmem:[#allocation9 + $0x108] sm:$0xff] }
  0x3a   :  { %451 = vmatpush.msrb.mxu0 %v4659_v24  ;;  %340 = vmatpush.msra.mxu2 %v4661_v28  ;;  %v4693_v24 = vld [vmem:[#allocation9 + $0x160] sm:$0xff]  ;;  %v8581_v28 = vmov 0.0   ;;  %8588 = vst [vmem:[#allocation51_spill] sm:$0xff] %v4734_v39  ;;  %v4775_v17 = vld [vmem:[#allocation9 + $0xe8] sm:$0xff] }
  0x3b   :  { %472 = vmatpush.msrb.mxu1 %v4664_v32  ;;  %512 = vmatpush.msrb.mxu3 %v4669_v61  ;;  %8580 = vst [vmem:[#allocation44_spill] sm:$0xff] %v4693_v24 }
  0x3c   :  { %452 = vmatpush.msrb.mxu0 %v4671_v3  ;;  %341 = vmatpush.msra.mxu2 %v4673_v56  ;;  %v4705_v3 = vld [vmem:[#allocation9 + $0x140] sm:$0xff]  ;;  %8590 = vst [vmem:[#allocation53_spill] sm:$0xff] %v4746_v31 }
  0x3d   :  { %473 = vmatpush.msrb.mxu1 %v4676_v52  ;;  %342 = vmatmul.f32.vlgmr.msra.gmra.mxu2 %v8581_v28  ;;  %8583 = vst [vmem:[#allocation46_spill] sm:$0xff] %v4705_v3  ;;  %v4708_v56 = vld [vmem:[#allocation9 + $0x300] sm:$0xff] }
  0x3e   :  { %513 = vmatpush.msrb.mxu3 %v4681_v9  ;;  %489 = vmatpush.msrb.mxu2 %v4686_v48  ;;  %v4720_v48 = vld [vmem:[#allocation9 + $0x2e0] sm:$0xff]  ;;  %8591 = vst [vmem:[#allocation54_spill] sm:$0xff] %v4750_v27 }
  0x3f   :  { %474 = vmatpush.msrb.mxu1 %v4684_v12  ;;  %453 = vmatpush.msrb.mxu0 %v4693_v24  ;;  %v4729_v24 = vld [vmem:[#allocation9 + $0x100] sm:$0xff]  ;;  %8594 = vst [vmem:[#allocation57_spill] sm:$0xff] %v4760_v23 }
  0x40   :  { %514 = vmatpush.msrb.mxu3 %v4691_v63  ;;  %490 = vmatpush.msrb.mxu2 %v4699_v59  ;;  %8587 = vst [vmem:[#allocation50_spill] sm:$0xff] %v4729_v24  ;;  %v4732_v59 = vld [vmem:[#allocation9 + $0x2c0] sm:$0xff] }
  0x41   :  { %475 = vmatpush.msrb.mxu1 %v4697_v44  ;;  %454 = vmatpush.msrb.mxu0 %v4705_v3  ;;  %v4741_v3 = vld [vmem:[#allocation9 + $0xe0] sm:$0xff]  ;;  %8596 = vst [vmem:[#allocation59_spill] sm:$0xff] %v4766_v19 }
  0x42   :  { %515 = vmatpush.msrb.mxu3 %v4702_v40  ;;  %491 = vmatpush.msrb.mxu2 %v4710_v55  ;;  %8589 = vst [vmem:[#allocation52_spill] sm:$0xff] %v4741_v3  ;;  %v4744_v55 = vld [vmem:[#allocation9 + $0x2a0] sm:$0xff] }
  0x43   :  { %476 = vmatpush.msrb.mxu1 %v4708_v56  ;;  %455 = vmatpush.msrb.mxu0 %v4717_v51  ;;  %v4754_v51 = vld [vmem:[#allocation9 + $0x280] sm:$0xff]  ;;  %8598 = vst [vmem:[#allocation61_spill] sm:$0xff] %v4775_v17 }
  0x44   :  { %516 = vmatpush.msrb.mxu3 %v4714_v36  ;;  %492 = vmatpush.msrb.mxu2 %v4722_v47  ;;  %8592 = vst [vmem:[#allocation55_spill] sm:$0xff] %v4754_v51  ;;  %v4756_v47 = vld [vmem:[#allocation9 + $0x128] sm:$0xff] }
  0x45   :  { %477 = vmatpush.msrb.mxu1 %v4720_v48  ;;  %456 = vmatpush.msrb.mxu0 %v4729_v24  ;;  %8593 = vst [vmem:[#allocation56_spill] sm:$0xff] %v4756_v47  ;;  %v4764_v24 = vld [vmem:[#allocation9 + $0x260] sm:$0xff] }
  0x46   :  { %517 = vmatpush.msrb.mxu3 %v4726_v43  ;;  %493 = vmatpush.msrb.mxu2 %v4734_v39  ;;  %8595 = vst [vmem:[#allocation58_spill] sm:$0xff] %v4764_v24  ;;  %v4769_v39 = vld [vmem:[#allocation9 + $0x268] sm:$0xff] }
  0x47   :  { %478 = vmatpush.msrb.mxu1 %v4732_v59  ;;  %457 = vmatpush.msrb.mxu0 %v4741_v3  ;;  %v4773_v3 = vld [vmem:[#allocation9 + $0x240] sm:$0xff] }
  0x48   :  { %518 = vmatpush.msrb.mxu3 %v4738_v35  ;;  %494 = vmatpush.msrb.mxu2 %v4746_v31  ;;  %8597 = vst [vmem:[#allocation60_spill] sm:$0xff] %v4773_v3  ;;  %v4778_v31 = vld [vmem:[#allocation9 + $0x248] sm:$0xff] }
  0x49   :  { %479 = vmatpush.msrb.mxu1 %v4744_v55 }
  0x4a   :  { %519 = vmatpush.msrb.mxu3 %v4750_v27  ;;  %495 = vmatpush.msrb.mxu2 %v4756_v47  ;;  %v4782_v27 = vld [vmem:[#allocation9 + $0x220] sm:$0xff] }
  0x4b   :  { %480 = vmatpush.msrb.mxu1 %v4754_v51  ;;  %8599 = vst [vmem:[#allocation62_spill] sm:$0xff] %v4782_v27  ;;  %v4785_v51 = vld [vmem:[#allocation9 + $0x228] sm:$0xff]  ;;  %v4789_v47 = vld [vmem:[#allocation9 + $0x200] sm:$0xff] }
  0x4c   :  { %520 = vmatpush.msrb.mxu3 %v4760_v23  ;;  %496 = vmatpush.msrb.mxu2 %v4766_v19  ;;  %8600 = vst [vmem:[#allocation63_spill] sm:$0xff] %v4785_v51  ;;  %v4794_v23 = vld [vmem:[#allocation9 + $0x3f0] sm:$0xff]  ;;  %v4797_v19 = vld [vmem:[#allocation9 + $0x3f8] sm:$0xff] }
  0x4d   :  { %481 = vmatpush.msrb.mxu1 %v4764_v24  ;;  %8601 = vst [vmem:[#allocation64_spill] sm:$0xff] %v4789_v47  ;;  %v4792_v24 = vld [vmem:[#allocation9 + $0x208] sm:$0xff] }
  0x4e   :  { %521 = vmatpush.msrb.mxu3 %v4769_v39  ;;  %497 = vmatpush.msrb.mxu2 %v4775_v17  ;;  %8602 = vst [vmem:[#allocation65_spill] sm:$0xff] %v4792_v24  ;;  %v4804_v17 = vld [vmem:[#allocation9 + $0x3d8] sm:$0xff] }
  0x4f   :  { %482 = vmatpush.msrb.mxu1 %v4773_v3  ;;  %8603 = vst [vmem:[#allocation66_spill] sm:$0xff] %v4794_v23  ;;  %v4800_v3 = vld [vmem:[#allocation9 + $0x3d0] sm:$0xff] }
  0x50   :  { %522 = vmatpush.msrb.mxu3 %v4778_v31  ;;  %8604 = vst [vmem:[#allocation67_spill] sm:$0xff] %v4797_v19 }
  0x51   :  { %483 = vmatpush.msrb.mxu1 %v4782_v27  ;;  %8605 = vst [vmem:[#allocation68_spill] sm:$0xff] %v4800_v3  ;;  %v4807_v27 = vld [vmem:[#allocation9 + $0x3b0] sm:$0xff] }
  0x52   :  { %523 = vmatpush.msrb.mxu3 %v4785_v51  ;;  %8606 = vst [vmem:[#allocation69_spill] sm:$0xff] %v4804_v17  ;;  %v4811_v51 = vld [vmem:[#allocation9 + $0x3b8] sm:$0xff] }
  0x53   :  { %484 = vmatpush.msrb.mxu1 %v4789_v47  ;;  %8607 = vst [vmem:[#allocation70_spill] sm:$0xff] %v4807_v27  ;;  %v4815_v47 = vld [vmem:[#allocation9 + $0x390] sm:$0xff] }
  0x54   :  { %524 = vmatpush.msrb.mxu3 %v4792_v24  ;;  %485 = vmatmul.f32.vlgmr.msrb.gmra.mxu1 %v8581_v28  ;;  %8608 = vst [vmem:[#allocation71_spill] sm:$0xff] %v4811_v51  ;;  %v4824_v24 = vld [vmem:[#allocation9 + $0x378] sm:$0xff] }
  0x55   :  { %549 = vmatpush.msra.mxu1 %v4794_v23  ;;  %525 = vmatmul.f32.vlgmr.msrb.gmra.mxu3 %v8581_v28  ;;  %8609 = vst [vmem:[#allocation72_spill] sm:$0xff] %v4815_v47  ;;  %v4818_v23 = vld [vmem:[#allocation9 + $0x398] sm:$0xff] }
  0x56   :  { %589 = vmatpush.msra.mxu3 %v4797_v19  ;;  %8610 = vst [vmem:[#allocation73_spill] sm:$0xff] %v4818_v23  ;;  %v4821_v19 = vld [vmem:[#allocation9 + $0x370] sm:$0xff] }
  0x57   :  { %550 = vmatpush.msra.mxu1 %v4800_v3  ;;  %8611 = vst [vmem:[#allocation74_spill] sm:$0xff] %v4821_v19  ;;  %v4827_v3 = vld [vmem:[#allocation9 + $0x350] sm:$0xff] }
  0x58   :  { %590 = vmatpush.msra.mxu3 %v4804_v17  ;;  %8612 = vst [vmem:[#allocation75_spill] sm:$0xff] %v4824_v24  ;;  %v4830_v17 = vld [vmem:[#allocation9 + $0x358] sm:$0xff] }
  0x59   :  { %551 = vmatpush.msra.mxu1 %v4807_v27  ;;  %8613 = vst [vmem:[#allocation76_spill] sm:$0xff] %v4827_v3  ;;  %v4833_v27 = vld [vmem:[#allocation9 + $0x330] sm:$0xff] }
  0x5a   :  { %591 = vmatpush.msra.mxu3 %v4811_v51  ;;  %8614 = vst [vmem:[#allocation77_spill] sm:$0xff] %v4830_v17  ;;  %v4836_v51 = vld [vmem:[#allocation9 + $0x338] sm:$0xff] }
  0x5b   :  { %552 = vmatpush.msra.mxu1 %v4815_v47  ;;  %8615 = vst [vmem:[#allocation78_spill] sm:$0xff] %v4833_v27  ;;  %v4839_v47 = vld [vmem:[#allocation9 + $0x310] sm:$0xff] }
  0x5c   :  { %592 = vmatpush.msra.mxu3 %v4818_v23  ;;  %8616 = vst [vmem:[#allocation79_spill] sm:$0xff] %v4836_v51  ;;  %v4842_v23 = vld [vmem:[#allocation9 + $0x318] sm:$0xff] }
  0x5d   :  { %553 = vmatpush.msra.mxu1 %v4821_v19  ;;  %8617 = vst [vmem:[#allocation80_spill] sm:$0xff] %v4839_v47  ;;  %v4845_v19 = vld [vmem:[#allocation9 + $0x2f0] sm:$0xff] }
  0x5e   :  { %593 = vmatpush.msra.mxu3 %v4824_v24  ;;  %8618 = vst [vmem:[#allocation81_spill] sm:$0xff] %v4842_v23  ;;  %v4848_v24 = vld [vmem:[#allocation9 + $0x2f8] sm:$0xff] }
  0x5f   :  { %554 = vmatpush.msra.mxu1 %v4827_v3  ;;  %8619 = vst [vmem:[#allocation82_spill] sm:$0xff] %v4845_v19  ;;  %v4855_v3 = vld [vmem:[#allocation9 + $0xc8] sm:$0xff] }
  0x60   :  { %594 = vmatpush.msra.mxu3 %v4830_v17  ;;  %8620 = vst [vmem:[#allocation83_spill] sm:$0xff] %v4848_v24  ;;  %v4853_v17 = vld [vmem:[#allocation9 + $0xc0] sm:$0xff]  ;;  %498 = vmatpush.msrb.mxu2 %v4855_v3 }
  0x61   :  { %555 = vmatpush.msra.mxu1 %v4833_v27  ;;  %8621 = vst [vmem:[#allocation84_spill] sm:$0xff] %v4853_v17  ;;  %v4857_v27 = vld [vmem:[#allocation9 + $0x2d0] sm:$0xff]  ;;  %458 = vmatpush.msrb.mxu0 %v4853_v17  ;;  %v4879_v17 = vld [vmem:[#allocation9 + $0x88] sm:$0xff] }
  0x62   :  { %595 = vmatpush.msra.mxu3 %v4836_v51  ;;  %8622 = vst [vmem:[#allocation85_spill] sm:$0xff] %v4855_v3  ;;  %v4861_v51 = vld [vmem:[#allocation9 + $0x2d8] sm:$0xff]  ;;  %v4877_v3 = vld [vmem:[#allocation9 + $0x80] sm:$0xff] }
  0x63   :  { %556 = vmatpush.msra.mxu1 %v4839_v47  ;;  %8623 = vst [vmem:[#allocation86_spill] sm:$0xff] %v4857_v27  ;;  %v4873_v47 = vld [vmem:[#allocation9 + $0x2b8] sm:$0xff] }
  0x64   :  { %596 = vmatpush.msra.mxu3 %v4842_v23  ;;  %8624 = vst [vmem:[#allocation87_spill] sm:$0xff] %v4861_v51  ;;  %v4865_v23 = vld [vmem:[#allocation9 + $0xa0] sm:$0xff] }
  0x65   :  { %557 = vmatpush.msra.mxu1 %v4845_v19  ;;  %8625 = vst [vmem:[#allocation88_spill] sm:$0xff] %v4865_v23  ;;  %v4867_v19 = vld [vmem:[#allocation9 + $0xa8] sm:$0xff]  ;;  %459 = vmatpush.msrb.mxu0 %v4865_v23 }
  0x66   :  { %597 = vmatpush.msra.mxu3 %v4848_v24  ;;  %8626 = vst [vmem:[#allocation89_spill] sm:$0xff] %v4867_v19  ;;  %v4869_v24 = vld [vmem:[#allocation9 + $0x2b0] sm:$0xff]  ;;  %499 = vmatpush.msrb.mxu2 %v4867_v19  ;;  %v4889_v19 = vld [vmem:[#allocation9 + $0x60] sm:$0xff]  ;;  %v4891_v23 = vld [vmem:[#allocation9 + $0x68] sm:$0xff] }
  0x67   :  { %558 = vmatpush.msra.mxu1 %v4857_v27  ;;  %8627 = vst [vmem:[#allocation90_spill] sm:$0xff] %v4869_v24  ;;  %460 = vmatpush.msrb.mxu0 %v4877_v3  ;;  %v4885_v27 = vld [vmem:[#allocation9 + $0x298] sm:$0xff] }
  0x68   :  { %598 = vmatpush.msra.mxu3 %v4861_v51  ;;  %8628 = vst [vmem:[#allocation91_spill] sm:$0xff] %v4873_v47  ;;  %v4881_v51 = vld [vmem:[#allocation9 + $0x290] sm:$0xff]  ;;  %500 = vmatpush.msrb.mxu2 %v4879_v17 }
  0x69   :  { %559 = vmatpush.msra.mxu1 %v4869_v24  ;;  %8629 = vst [vmem:[#allocation92_spill] sm:$0xff] %v4877_v3  ;;  %461 = vmatpush.msrb.mxu0 %v4889_v19  ;;  %v4897_v24 = vld [vmem:[#allocation9 + $0x278] sm:$0xff]  ;;  %v4903_v3 = vld [vmem:[#allocation9 + $0x48] sm:$0xff] }
  0x6a   :  { %599 = vmatpush.msra.mxu3 %v4873_v47  ;;  %8630 = vst [vmem:[#allocation93_spill] sm:$0xff] %v4879_v17  ;;  %v4893_v47 = vld [vmem:[#allocation9 + $0x270] sm:$0xff]  ;;  %501 = vmatpush.msrb.mxu2 %v4891_v23  ;;  %v4901_v17 = vld [vmem:[#allocation9 + $0x40] sm:$0xff] }
  0x6b   :  { %8631 = vst [vmem:[#allocation94_spill] sm:$0xff] %v4881_v51  ;;  %560 = vmatpush.msra.mxu1 %v4881_v51  ;;  %462 = vmatpush.msrb.mxu0 %v4901_v17  ;;  %v4909_v51 = vld [vmem:[#allocation9 + $0x258] sm:$0xff] }
  0x6c   :  { %8632 = vst [vmem:[#allocation95_spill] sm:$0xff] %v4885_v27  ;;  %600 = vmatpush.msra.mxu3 %v4885_v27  ;;  %v4905_v27 = vld [vmem:[#allocation9 + $0x250] sm:$0xff]  ;;  %502 = vmatpush.msrb.mxu2 %v4903_v3 }
  0x6d   :  { %8633 = vst [vmem:[#allocation96_spill] sm:$0xff] %v4889_v19  ;;  %561 = vmatpush.msra.mxu1 %v4893_v47  ;;  %v4915_v19 = vld [vmem:[#allocation9 + $0x28] sm:$0xff] }
  0x6e   :  { %8634 = vst [vmem:[#allocation97_spill] sm:$0xff] %v4891_v23  ;;  %601 = vmatpush.msra.mxu3 %v4897_v24  ;;  %v4913_v23 = vld [vmem:[#allocation9 + $0x20] sm:$0xff]  ;;  %503 = vmatpush.msrb.mxu2 %v4915_v19 }
  0x6f   :  { %8635 = vst [vmem:[#allocation98_spill] sm:$0xff] %v4893_v47  ;;  %562 = vmatpush.msra.mxu1 %v4905_v27  ;;  %463 = vmatpush.msrb.mxu0 %v4913_v23  ;;  %v4921_v47 = vld [vmem:[#allocation9 + $0x238] sm:$0xff] }
  0x70   :  { %8636 = vst [vmem:[#allocation99_spill] sm:$0xff] %v4897_v24  ;;  %602 = vmatpush.msra.mxu3 %v4909_v51  ;;  %v4917_v24 = vld [vmem:[#allocation9 + $0x230] sm:$0xff] }
  0x71   :  { %8637 = vst [vmem:[#allocation100_spill] sm:$0xff] %v4901_v17  ;;  %563 = vmatpush.msra.mxu1 %v4917_v24  ;;  %v4927_v17 = vld [vmem:[#allocation9 + $0x8] sm:$0xff] }
  0x72   :  { %8638 = vst [vmem:[#allocation101_spill] sm:$0xff] %v4903_v3  ;;  %603 = vmatpush.msra.mxu3 %v4921_v47  ;;  %v4925_v3 = vld [vmem:[#allocation9] sm:$0xff]  ;;  %504 = vmatpush.msrb.mxu2 %v4927_v17 }
  0x73   :  { %8639 = vst [vmem:[#allocation102_spill] sm:$0xff] %v4905_v27  ;;  %464 = vmatpush.msrb.mxu0 %v4925_v3  ;;  %v4933_v27 = vld [vmem:[#allocation9 + $0x218] sm:$0xff] }
  0x74   :  { %8640 = vst [vmem:[#allocation103_spill] sm:$0xff] %v4909_v51  ;;  %v4929_v51 = vld [vmem:[#allocation9 + $0x210] sm:$0xff]  ;;  %604 = vmatpush.msra.mxu3 %v4933_v27 }
  0x75   :  { %8641 = vst [vmem:[#allocation104_spill] sm:$0xff] %v4913_v23  ;;  %v4935_v23 = vld [vmem:[#allocation9 + $0x1f0] sm:$0xff]  ;;  %564 = vmatpush.msra.mxu1 %v4929_v51  ;;  %605 = vmatmul.f32.vlgmr.msra.gmra.mxu3 %v8581_v28 }
  0x76   :  { %8642 = vst [vmem:[#allocation105_spill] sm:$0xff] %v4915_v19  ;;  %v4937_v19 = vld [vmem:[#allocation9 + $0x1f8] sm:$0xff]  ;;  %529 = vmatpush.msra.mxu0 %v4935_v23  ;;  %743 = vmatpush.msrb.mxu3 %v4483_v2  ;;  %v4969_v2 = vld [vmem:[#allocation9 + $0x170] sm:$0xff] }
  0x77   :  { %8643 = vst [vmem:[#allocation106_spill] sm:$0xff] %v4917_v24  ;;  %569 = vmatpush.msra.mxu2 %v4937_v19  ;;  %v4945_v24 = vld [vmem:[#allocation9 + $0x1d8] sm:$0xff]  ;;  %703 = vmatpush.msrb.mxu1 %v4481_v1 }
  0x78   :  { %8644 = vst [vmem:[#allocation107_spill] sm:$0xff] %v4921_v47  ;;  %v4943_v47 = vld [vmem:[#allocation9 + $0x1d0] sm:$0xff]  ;;  %744 = vmatpush.msrb.mxu3 %v4488_v5  ;;  %v4961_v1 = vld [vmem:[#allocation9 + $0x198] sm:$0xff]  ;;  %565 = vmatmul.f32.vlgmr.msra.gmra.mxu1 %v8581_v28 }
  0x79   :  { %8645 = vst [vmem:[#allocation108_spill] sm:$0xff] %v4925_v3  ;;  %530 = vmatpush.msra.mxu0 %v4943_v47  ;;  %570 = vmatpush.msra.mxu2 %v4945_v24  ;;  %v4953_v3 = vld [vmem:[#allocation9 + $0x1b8] sm:$0xff]  ;;  %v4977_v5 = vld [vmem:[#allocation9 + $0x150] sm:$0xff] }
  0x7a   :  { %8646 = vst [vmem:[#allocation109_spill] sm:$0xff] %v4927_v17  ;;  %v4951_v17 = vld [vmem:[#allocation9 + $0x1b0] sm:$0xff]  ;;  %704 = vmatpush.msrb.mxu1 %v4486_v4  ;;  %745 = vmatpush.msrb.mxu3 %v4494_v8  ;;  %v4971_v4 = vld [vmem:[#allocation9 + $0x178] sm:$0xff] }
  0x7b   :  { %8647 = vst [vmem:[#allocation110_spill] sm:$0xff] %v4937_v19  ;;  %531 = vmatpush.msra.mxu0 %v4951_v17  ;;  %571 = vmatpush.msra.mxu2 %v4953_v3  ;;  %v4959_v19 = vld [vmem:[#allocation9 + $0x190] sm:$0xff]  ;;  %v5051_v28 = vld [vmem:[#allocation9 + $0x38] sm:$0xff] }
  0x7c   :  { %705 = vmatpush.msrb.mxu1 %v4491_v7  ;;  %746 = vmatpush.msrb.mxu3 %v4500_v11  ;;  %v4979_v7 = vld [vmem:[#allocation9 + $0x158] sm:$0xff]  ;;  %v4985_v8 = vld [vmem:[#allocation9 + $0x130] sm:$0xff] }
  0x7d   :  { %532 = vmatpush.msra.mxu0 %v4959_v19  ;;  %572 = vmatpush.msra.mxu2 %v4961_v1  ;;  %v4993_v11 = vld [vmem:[#allocation9 + $0x110] sm:$0xff] }
  0x7e   :  { %706 = vmatpush.msrb.mxu1 %v4497_v10  ;;  %747 = vmatpush.msrb.mxu3 %v4506_v14  ;;  %v4987_v10 = vld [vmem:[#allocation9 + $0x138] sm:$0xff]  ;;  %8649 = vst [vmem:[#allocation112_spill] sm:$0xff] %v4993_v11  ;;  %v282_v14 = vld [vmem:[#allocation4] sm:$0xff] }
  0x7f   :  { %533 = vmatpush.msra.mxu0 %v4969_v2  ;;  %573 = vmatpush.msra.mxu2 %v4971_v4  ;;  %8648 = vst [vmem:[#allocation111_spill] sm:$0xff] %v4987_v10 }
  0x80   :  { %707 = vmatpush.msrb.mxu1 %v4503_v13  ;;  %748 = vmatpush.msrb.mxu3 %v4514_v18  ;;  %v4995_v13 = vld [vmem:[#allocation9 + $0x118] sm:$0xff] }
  0x81   :  { %534 = vmatpush.msra.mxu0 %v4977_v5  ;;  %574 = vmatpush.msra.mxu2 %v4979_v7  ;;  %8650 = vst [vmem:[#allocation113_spill] sm:$0xff] %v4995_v13  ;;  %v5003_v18 = vld [vmem:[#allocation9 + $0xf8] sm:$0xff] }
  0x82   :  { %708 = vmatpush.msrb.mxu1 %v4509_v16  ;;  %749 = vmatpush.msrb.mxu3 %v4523_v22  ;;  %v5001_v16 = vld [vmem:[#allocation9 + $0xf0] sm:$0xff]  ;;  %8651 = vst [vmem:[#allocation114_spill] sm:$0xff] %v5003_v18 }
  0x83   :  { %535 = vmatpush.msra.mxu0 %v4985_v8  ;;  %575 = vmatpush.msra.mxu2 %v4987_v10 }
  0x84   :  { %709 = vmatpush.msrb.mxu1 %v4519_v21  ;;  %750 = vmatpush.msrb.mxu3 %v4532_v26  ;;  %v283_v21 = vld [vmem:[#allocation4 + $0x8] sm:$0xff] }
  0x85   :  { %536 = vmatpush.msra.mxu0 %v4993_v11  ;;  %576 = vmatpush.msra.mxu2 %v4995_v13  ;;  %v5009_v13 = vld [vmem:[#allocation9 + $0xd0] sm:$0xff]  ;;  %v5011_v11 = vld [vmem:[#allocation9 + $0xd8] sm:$0xff] }
  0x86   :  { %710 = vmatpush.msrb.mxu1 %v4528_v25  ;;  %751 = vmatpush.msrb.mxu3 %v4541_v30 }
  0x87   :  { %537 = vmatpush.msra.mxu0 %v5001_v16  ;;  %577 = vmatpush.msra.mxu2 %v5003_v18  ;;  %v5017_v18 = vld [vmem:[#allocation9 + $0xb0] sm:$0xff] }
  0x88   :  { %711 = vmatpush.msrb.mxu1 %v4537_v29  ;;  %752 = vmatpush.msrb.mxu3 %v4550_v34  ;;  %v5019_v29 = vld [vmem:[#allocation9 + $0xb8] sm:$0xff]  ;;  %v5033_v34 = vld [vmem:[#allocation9 + $0x70] sm:$0xff] }
  0x89   :  { %538 = vmatpush.msra.mxu0 %v5009_v13  ;;  %578 = vmatpush.msra.mxu2 %v5011_v11 }
  0x8a   :  { %712 = vmatpush.msrb.mxu1 %v4546_v33  ;;  %753 = vmatpush.msrb.mxu3 %v4561_v38  ;;  %v285_v33 = vld [vmem:[#allocation4 + $0x18] sm:$0xff] }
  0x8b   :  { %539 = vmatpush.msra.mxu0 %v5017_v18  ;;  %579 = vmatpush.msra.mxu2 %v5019_v29 }
  0x8c   :  { %713 = vmatpush.msrb.mxu1 %v4557_v37  ;;  %754 = vmatpush.msrb.mxu3 %v4573_v42  ;;  %v5035_v37 = vld [vmem:[#allocation9 + $0x78] sm:$0xff]  ;;  %v5049_v42 = vld [vmem:[#allocation9 + $0x30] sm:$0xff] }
  0x8e   :  { %714 = vmatpush.msrb.mxu1 %v4568_v41  ;;  %755 = vmatpush.msrb.mxu3 %v4585_v46  ;;  %v5059_v46 = vld [vmem:[#allocation9 + $0x18] sm:$0xff] }
  0x90   :  { %715 = vmatpush.msrb.mxu1 %v4580_v45  ;;  %756 = vmatpush.msrb.mxu3 %v4597_v50  ;;  %v5057_v45 = vld [vmem:[#allocation9 + $0x10] sm:$0xff] }
  0x92   :  { %716 = vmatpush.msrb.mxu1 %v4592_v49  ;;  %757 = vmatpush.msrb.mxu3 %v4609_v54  ;;  %v284_v49 = vld [vmem:[#allocation4 + $0x10] sm:$0xff] }
  0x94   :  { %717 = vmatpush.msrb.mxu1 %v4604_v53  ;;  %758 = vmatpush.msrb.mxu3 %v4621_v58 }
  0x96   :  { %718 = vmatpush.msrb.mxu1 %v4616_v57  ;;  %896 = vmatpush.msra.mxu3 %v4633_v62 }
  0x98   :  { %856 = vmatpush.msra.mxu1 %v4629_v60  ;;  %897 = vmatpush.msra.mxu3 %v4645_v6 }
  0x9a   :  { %857 = vmatpush.msra.mxu1 %v4639_v0  ;;  %898 = vmatpush.msra.mxu3 %v4657_v20 }
  0x9c   :  { %858 = vmatpush.msra.mxu1 %v4652_v15  ;;  %899 = vmatpush.msra.mxu3 %v4669_v61 }
  0x9e   :  { %859 = vmatpush.msra.mxu1 %v4664_v32  ;;  %900 = vmatpush.msra.mxu3 %v4681_v9 }
  0xa0   :  { %860 = vmatpush.msra.mxu1 %v4676_v52  ;;  %901 = vmatpush.msra.mxu3 %v4691_v63 }
  0xa2   :  { %861 = vmatpush.msra.mxu1 %v4684_v12  ;;  %902 = vmatpush.msra.mxu3 %v4702_v40 }
  0xa4   :  { %862 = vmatpush.msra.mxu1 %v4697_v44  ;;  %903 = vmatpush.msra.mxu3 %v4714_v36  ;;  %v8652_v36 = vld [vmem:[#allocation54_spill] sm:$0xff] }
  0xa6   :  { %863 = vmatpush.msra.mxu1 %v4708_v56  ;;  %904 = vmatpush.msra.mxu3 %v4726_v43 }
  0xa8   :  { %864 = vmatpush.msra.mxu1 %v4720_v48  ;;  %905 = vmatpush.msra.mxu3 %v4738_v35  ;;  %v8653_v48 = vld [vmem:[#allocation55_spill] sm:$0xff] }
  0xaa   :  { %865 = vmatpush.msra.mxu1 %v4732_v59  ;;  %906 = vmatpush.msra.mxu3 %v8652_v36  ;;  %v8654_v59 = vld [vmem:[#allocation57_spill] sm:$0xff]  ;;  %v8673_v36 = vld [vmem:[#allocation72_spill] sm:$0xff] }
  0xac   :  { %866 = vmatpush.msra.mxu1 %v4744_v55  ;;  %907 = vmatpush.msra.mxu3 %v8654_v59  ;;  %v5155_v59 = vld [vmem:[#allocation7 + $0x100] sm:$0xff] }
  0xae   :  { %867 = vmatpush.msra.mxu1 %v8653_v48  ;;  %908 = vmatpush.msra.mxu3 %v4769_v39  ;;  %v5113_v39 = vld [vmem:[#allocation7 + $0x1e0] sm:$0xff] }
  0xaf   :  { %v8675_v48 = vld [vmem:[#allocation73_spill] sm:$0xff] }
  0xb0   :  { %v303_v22 = vpop.f32.mrf.mxu0  ;;  %909 = vmatpush.msra.mxu3 %v4778_v31  ;;  %v5119_v31 = vld [vmem:[#allocation7 + $0x1c0] sm:$0xff] }
  0xb1   :  { %v366_v25 = vadd.f32 %v303_v22, %v282_v14  ;;  %v323_v26 = vpop.f32.mrf.mxu1  ;;  %v5025_v22 = vld [vmem:[#allocation9 + $0x90] sm:$0xff] }
  0xb2   :  { %v367_v10 = vadd.f32 %v323_v26, %v283_v21  ;;  %v5027_v21 = vld [vmem:[#allocation9 + $0x98] sm:$0xff]  ;;  %540 = vmatpush.msra.mxu0 %v5025_v22 }
  0xb3   :  { %v3406_v30 = vmul.f32 -1.442695, %v366_v25  ;;  %580 = vmatpush.msra.mxu2 %v5027_v21  ;;  %v5041_v25 = vld [vmem:[#allocation9 + $0x50] sm:$0xff]  ;;  %v5043_v26 = vld [vmem:[#allocation9 + $0x58] sm:$0xff] }
  0xb4   :  { %v3407_v14 = vmul.f32 -1.442695, %v367_v10  ;;  %541 = vmatpush.msra.mxu0 %v5033_v34 }
  0xb5   :  { %3464 = vpow2.f32 %v3406_v30  ;;  %581 = vmatpush.msra.mxu2 %v5035_v37 }
  0xb6   :  { %3466 = vpow2.f32 %v3407_v14  ;;  %542 = vmatpush.msra.mxu0 %v5041_v25 }
  0xb7   :  { %v363_v38 = vpop.f32.mrf.mxu3  ;;  %582 = vmatpush.msra.mxu2 %v5043_v26 }
  0xb8   :  { %v369_v10 = vadd.f32 %v363_v38, %v285_v33  ;;  %543 = vmatpush.msra.mxu0 %v5049_v42 }
  0xb9   :  { %583 = vmatpush.msra.mxu2 %v5051_v28 }
  0xba   :  { %v3408_v41 = vmul.f32 -1.442695, %v369_v10  ;;  %544 = vmatpush.msra.mxu0 %v5057_v45 }
  0xbb   :  { %v3465_v30 = vpop.eup %3464  ;;  %584 = vmatpush.msra.mxu2 %v5059_v46 }
  0xbc   :  { %v3467_v14 = vpop.eup %3466  ;;  %v373_v33 = vadd.f32 1.0, %v3465_v30  ;;  %3468 = vpow2.f32 %v3408_v41 }
  0xbd   :  { %v392_v38 = vadd.f32 1.0, %v3467_v14 }
  0xbe   :  { %3470 = vrcp.f32 %v373_v33  ;;  %v385_v6 = vand.u32 2147483648, %v373_v33  ;;  %v383_v20 = vand.u32 2147483647, %v373_v33  ;;  %vm379_vm2 = vweird.f32 %v373_v33 }
  0xbf   :  { %3472 = vrcp.f32 %v392_v38  ;;  %v404_v15 = vand.u32 2147483648, %v392_v38  ;;  %vm398_vm3 = vweird.f32 %v392_v38 }
  0xc0   :  { %v343_v50 = vpop.f32.mrf.mxu2  ;;  %v386_v9 = vor.u32 1.1754944e-38, %v385_v6  ;;  %vm384_vm5 = vcmp.eq.f32.partialorder %v383_v20, 8.507059e+37  ;;  %v8658_v20 = vld [vmem:[#allocation63_spill] sm:$0xff] }
  0xc1   :  { %v368_v53 = vadd.f32 %v343_v50, %v284_v49  ;;  %v402_v49 = vand.u32 2147483647, %v392_v38  ;;  %910 = vmatpush.msra.mxu3 %v8658_v20  ;;  %v5167_v20 = vld [vmem:[#allocation7 + $0xc0] sm:$0xff] }
  0xc2   :  { %v3469_v10 = vpop.eup %3468 }
  0xc3   :  { %v5071_v54 = vadd.f32 1.0, %v3469_v10  ;;  %vm403_vm7 = vcmp.eq.f32.partialorder %v402_v49, 8.507059e+37  ;;  %v8660_v49 = vld [vmem:[#allocation64_spill] sm:$0xff] }
  0xc4   :  { %v3471_v41 = vpop.eup %3470 }
  0xc5   :  { %v3473_v57 = vpop.eup %3472  ;;  %v375_v58 = vmul.f32 %v3471_v41, %v373_v33  ;;  %3474 = vrcp.f32 %v5071_v54  ;;  %vm380_vm0 = vweird.f32 %v3471_v41  ;;  %v424_v56 = vand.u32 2147483648, %v5071_v54 }
  0xc6   :  { %v394_v60 = vmul.f32 %v3473_v57, %v392_v38  ;;  %3476 = vtanh.f32 %v368_v53  ;;  %vm399_vm1 = vweird.f32 %v3473_v57  ;;  %vm381_vm4 = vmor %vm379_vm2, %vm380_vm0  ;;  %v405_v53 = vor.u32 1.1754944e-38, %v404_v15  ;;  %v8656_v15 = vld [vmem:[#allocation60_spill] sm:$0xff] }
  0xc7   :  { %v376_v62 = vsub.f32 1.0, %v375_v58  ;;  %vm400_vm6 = vmor %vm398_vm3, %vm399_vm1  ;;  %vm418_vm9 = vweird.f32 %v5071_v54  ;;  %v422_v43 = vand.u32 2147483647, %v5071_v54 }
  0xc8   :  { %v395_v0 = vsub.f32 1.0, %v394_v60 }
  0xc9   :  { %v377_v30 = vmul.f32 %v3471_v41, %v376_v62  ;;  %vm423_vm11 = vcmp.eq.f32.partialorder %v422_v43, 8.507059e+37  ;;  %v8674_v43 = vld [vmem:[#allocation24_spill] sm:$0xff] }
  0xca   :  { %v396_v14 = vmul.f32 %v3473_v57, %v395_v0 }
  0xcb   :  { %v3475_v32 = vpop.eup %3474  ;;  %v378_v61 = vadd.f32 %v3471_v41, %v377_v30 }
  0xcc   :  { %v3477_v50 = vpop.eup %3476  ;;  %v414_v52 = vmul.f32 %v3475_v32, %v5071_v54  ;;  %v397_v10 = vadd.f32 %v3473_v57, %v396_v14  ;;  %vm419_vm8 = vweird.f32 %v3475_v32  ;;  %v8657_v54 = vld [vmem:[#allocation62_spill] sm:$0xff]  ;;  %v8659_v14 = vld [vmem:[#allocation17_spill] sm:$0xff] }
  0xcd   :  { %v382_v58 = vsel %vm381_vm4, %v3471_v41, %v378_v61  ;;  %vm420_vm10 = vmor %vm418_vm9, %vm419_vm8  ;;  %v425_v41 = vor.u32 1.1754944e-38, %v424_v56  ;;  %v8662_v61 = vld [vmem:[#allocation65_spill] sm:$0xff] }
  0xce   :  { %v415_v63 = vsub.f32 1.0, %v414_v52  ;;  %v387_v12 = vsel %vm384_vm5, %v386_v9, %v382_v58  ;;  %v401_v60 = vsel %vm400_vm6, %v3473_v57, %v397_v10  ;;  %v8655_v57 = vld [vmem:[#allocation58_spill] sm:$0xff]  ;;  %911 = vmatpush.msra.mxu3 %v8662_v61  ;;  %v8664_v9 = vld [vmem:[#allocation19_spill] sm:$0xff]  ;;  %v8666_v58 = vld [vmem:[#allocation68_spill] sm:$0xff] }
  0xcf   :  { %v406_v33 = vsel %vm403_vm7, %v405_v53, %v401_v60  ;;  %v429_v38 = vmul.f32 %v3477_v50, %v387_v12  ;;  %868 = vmatpush.msra.mxu1 %v8655_v57  ;;  %v5125_v50 = vld [vmem:[#allocation7 + $0x1a0] sm:$0xff]  ;;  %v8663_v52 = vld [vmem:[#allocation66_spill] sm:$0xff]  ;;  %v8665_v10 = vld [vmem:[#allocation67_spill] sm:$0xff] }
  0xd0   :  { %v416_v62 = vmul.f32 %v3475_v32, %v415_v63  ;;  %v428_v0 = vmul.f32 0.0, %v406_v33  ;;  %v5131_v53 = vld [vmem:[#allocation7 + $0x180] sm:$0xff]  ;;  %v8678_v57 = vld [vmem:[#allocation75_spill] sm:$0xff] }
  0xd1   :  { %869 = vmatpush.msra.mxu1 %v8656_v15  ;;  %v8667_v63 = vld [vmem:[#allocation20_spill] sm:$0xff]  ;;  %v8668_v60 = vld [vmem:[#allocation21_spill] sm:$0xff]  ;;  %v8685_v61 = vld [vmem:[#allocation23_spill] sm:$0xff] }
  0xd2   :  { %v5090_v40 = vadd.f32 %v429_v38, %v428_v0  ;;  %v417_v44 = vadd.f32 %v3475_v32, %v416_v62  ;;  %v5138_v12 = vld [vmem:[#allocation7 + $0x160] sm:$0xff]  ;;  %v8670_v62 = vld [vmem:[#allocation70_spill] sm:$0xff] }
  0xd3   :  { %870 = vmatpush.msra.mxu1 %v8657_v54  ;;  %v8669_v33 = vld [vmem:[#allocation69_spill] sm:$0xff]  ;;  %v8671_v0 = vld [vmem:[#allocation22_spill] sm:$0xff]  ;;  %v8680_v15 = vld [vmem:[#allocation28_spill] sm:$0xff] }
  0xd4   :  { %3478 = vtanh.f32 %v5090_v40  ;;  %v421_v35 = vsel %vm420_vm10, %v3475_v32, %v417_v44  ;;  %v8661_v32 = vld [vmem:[#allocation18_spill] sm:$0xff]  ;;  %v5143_v38 = vld [vmem:[#allocation7 + $0x140] sm:$0xff]  ;;  %v8672_v44 = vld [vmem:[#allocation71_spill] sm:$0xff] }
  0xd5   :  { %v426_v55 = vsel %vm423_vm11, %v425_v41, %v421_v35  ;;  %871 = vmatpush.msra.mxu1 %v8660_v49  ;;  %v5149_v56 = vld [vmem:[#allocation7 + $0x120] sm:$0xff]  ;;  %v8676_v35 = vld [vmem:[#allocation74_spill] sm:$0xff] }
  0xd6   :  { %v8677_v41 = vld [vmem:[#allocation26_spill] sm:$0xff]  ;;  %v8681_v54 = vld [vmem:[#allocation77_spill] sm:$0xff] }
  0xd7   :  { %v8683_v49 = vld [vmem:[#allocation30_spill] sm:$0xff] }
  0xda   :  { %v3479_v6 = vpop.eup %3478 }
  0xdb   :  { %v5106_v30 = vmul.f32 %v3479_v6, %v426_v55  ;;  %v5161_v6 = vld [vmem:[#allocation7 + $0xe0] sm:$0xff] }
  0xdc   :  { %v8679_v55 = vld [vmem:[#allocation76_spill] sm:$0xff] }
  0xdd   :  { %435 = vst [vmem:[#allocation12] sm:$0xff] %v5106_v30  ;;  %465 = vmatmul.f32.vlgmr.msrb.gmra.mxu0 %v5106_v30  ;;  %505 = vmatmul.f32.vlgmr.msrb.gmra.mxu2 %v5106_v30 }
  0xde   :  { %683 = vmatpush.msrb.mxu0 %v5113_v39  ;;  %719 = vmatmul.f32.vlgmr.msrb.gmra.mxu1 %v5106_v30 }
  0xdf   :  { %723 = vmatpush.msrb.mxu2 %v8659_v14  ;;  %759 = vmatmul.f32.vlgmr.msrb.gmra.mxu3 %v5106_v30  ;;  %v8682_v14 = vld [vmem:[#allocation78_spill] sm:$0xff] }
  0xe0   :  { %684 = vmatpush.msrb.mxu0 %v5119_v31  ;;  %936 = vmatpush.msrb.mxu1 %v8663_v52  ;;  %v8686_v52 = vld [vmem:[#allocation80_spill] sm:$0xff] }
  0xe1   :  { %724 = vmatpush.msrb.mxu2 %v8661_v32  ;;  %976 = vmatpush.msrb.mxu3 %v8665_v10  ;;  %v8684_v32 = vld [vmem:[#allocation79_spill] sm:$0xff]  ;;  %v8688_v10 = vld [vmem:[#allocation81_spill] sm:$0xff] }
  0xe2   :  { %685 = vmatpush.msrb.mxu0 %v5125_v50  ;;  %937 = vmatpush.msrb.mxu1 %v8666_v58  ;;  %v8689_v58 = vld [vmem:[#allocation25_spill] sm:$0xff] }
  0xe3   :  { %725 = vmatpush.msrb.mxu2 %v8664_v9  ;;  %977 = vmatpush.msrb.mxu3 %v8669_v33  ;;  %v8687_v9 = vld [vmem:[#allocation32_spill] sm:$0xff]  ;;  %v8692_v33 = vld [vmem:[#allocation83_spill] sm:$0xff] }
  0xe4   :  { %686 = vmatpush.msrb.mxu0 %v5131_v53  ;;  %938 = vmatpush.msrb.mxu1 %v8670_v62  ;;  %v8693_v62 = vld [vmem:[#allocation27_spill] sm:$0xff] }
  0xe5   :  { %726 = vmatpush.msrb.mxu2 %v8667_v63  ;;  %545 = vmatmul.f32.vlgmr.msra.gmra.mxu0 %v5106_v30  ;;  %v8690_v63 = vld [vmem:[#allocation82_spill] sm:$0xff] }
  0xe6   :  { %585 = vmatmul.f32.vlgmr.msra.gmra.mxu2 %v5106_v30  ;;  %687 = vmatpush.msrb.mxu0 %v5138_v12 }
  0xe7   :  { %727 = vmatpush.msrb.mxu2 %v8668_v60  ;;  %978 = vmatpush.msrb.mxu3 %v8672_v44  ;;  %v8691_v60 = vld [vmem:[#allocation34_spill] sm:$0xff]  ;;  %v8695_v44 = vld [vmem:[#allocation35_spill] sm:$0xff] }
  0xe8   :  { %688 = vmatpush.msrb.mxu0 %v5143_v38  ;;  %939 = vmatpush.msrb.mxu1 %v8673_v36  ;;  %v8696_v36 = vld [vmem:[#allocation87_spill] sm:$0xff] }
  0xe9   :  { %728 = vmatpush.msrb.mxu2 %v8671_v0  ;;  %979 = vmatpush.msrb.mxu3 %v8675_v48  ;;  %v8694_v0 = vld [vmem:[#allocation86_spill] sm:$0xff] }
  0xea   :  { %689 = vmatpush.msrb.mxu0 %v5149_v56  ;;  %940 = vmatpush.msrb.mxu1 %v8676_v35  ;;  %v8698_v48 = vld [vmem:[#allocation90_spill] sm:$0xff] }
  0xeb   :  { %729 = vmatpush.msrb.mxu2 %v8674_v43  ;;  %980 = vmatpush.msrb.mxu3 %v8678_v57  ;;  %v8697_v43 = vld [vmem:[#allocation29_spill] sm:$0xff]  ;;  %v8699_v35 = vld [vmem:[#allocation38_spill] sm:$0xff]  ;;  %v8701_v57 = vld [vmem:[#allocation31_spill] sm:$0xff] }
  0xec   :  { %690 = vmatpush.msrb.mxu0 %v5155_v59  ;;  %941 = vmatpush.msrb.mxu1 %v8679_v55  ;;  %v8702_v55 = vld [vmem:[#allocation94_spill] sm:$0xff] }
  0xed   :  { %730 = vmatpush.msrb.mxu2 %v8677_v41  ;;  %981 = vmatpush.msrb.mxu3 %v8681_v54  ;;  %v8700_v41 = vld [vmem:[#allocation91_spill] sm:$0xff] }
  0xee   :  { %691 = vmatpush.msrb.mxu0 %v5161_v6  ;;  %942 = vmatpush.msrb.mxu1 %v8682_v14  ;;  %v8704_v54 = vld [vmem:[#allocation95_spill] sm:$0xff]  ;;  %v8705_v14 = vld [vmem:[#allocation33_spill] sm:$0xff] }
  0xef   :  { %731 = vmatpush.msrb.mxu2 %v8680_v15  ;;  %982 = vmatpush.msrb.mxu3 %v8684_v32  ;;  %v8703_v15 = vld [vmem:[#allocation40_spill] sm:$0xff]  ;;  %v8707_v32 = vld [vmem:[#allocation42_spill] sm:$0xff] }
  0xf0   :  { %692 = vmatpush.msrb.mxu0 %v5167_v20  ;;  %943 = vmatpush.msrb.mxu1 %v8686_v52  ;;  %v8709_v52 = vld [vmem:[#allocation43_spill] sm:$0xff] }
  0xf1   :  { %732 = vmatpush.msrb.mxu2 %v8683_v49  ;;  %983 = vmatpush.msrb.mxu3 %v8688_v10  ;;  %v8706_v49 = vld [vmem:[#allocation98_spill] sm:$0xff]  ;;  %v8711_v10 = vld [vmem:[#allocation37_spill] sm:$0xff] }
  0xf2   :  { %693 = vmatpush.msrb.mxu0 %v8685_v61  ;;  %944 = vmatpush.msrb.mxu1 %v8690_v63  ;;  %v8708_v61 = vld [vmem:[#allocation36_spill] sm:$0xff]  ;;  %v8713_v63 = vld [vmem:[#allocation45_spill] sm:$0xff] }
  0xf3   :  { %733 = vmatpush.msrb.mxu2 %v8687_v9  ;;  %984 = vmatpush.msrb.mxu3 %v8692_v33  ;;  %v8710_v9 = vld [vmem:[#allocation99_spill] sm:$0xff] }
  0xf4   :  { %694 = vmatpush.msrb.mxu0 %v8689_v58  ;;  %945 = vmatpush.msrb.mxu1 %v8694_v0  ;;  %v8712_v58 = vld [vmem:[#allocation102_spill] sm:$0xff]  ;;  %v8715_v33 = vld [vmem:[#allocation39_spill] sm:$0xff] }
  0xf5   :  { %734 = vmatpush.msrb.mxu2 %v8691_v60  ;;  %985 = vmatpush.msrb.mxu3 %v8696_v36  ;;  %v8714_v60 = vld [vmem:[#allocation103_spill] sm:$0xff]  ;;  %v8720_v36 = vld [vmem:[#allocation49_spill] sm:$0xff] }
  0xf6   :  { %695 = vmatpush.msrb.mxu0 %v8693_v62  ;;  %946 = vmatpush.msrb.mxu1 %v8698_v48  ;;  %v8716_v62 = vld [vmem:[#allocation106_spill] sm:$0xff]  ;;  %v8717_v0 = vld [vmem:[#allocation47_spill] sm:$0xff] }
  0xf7   :  { %735 = vmatpush.msrb.mxu2 %v8695_v44  ;;  %986 = vmatpush.msrb.mxu3 %v8700_v41  ;;  %v8719_v44 = vld [vmem:[#allocation41_spill] sm:$0xff]  ;;  %v8722_v48 = vld [vmem:[#allocation51_spill] sm:$0xff] }
  0xf8   :  { %696 = vmatpush.msrb.mxu0 %v8697_v43  ;;  %947 = vmatpush.msrb.mxu1 %v8702_v55  ;;  %v8721_v43 = vld [vmem:[#allocation44_spill] sm:$0xff]  ;;  %v8724_v41 = vld [vmem:[#allocation53_spill] sm:$0xff] }
  0xf9   :  { %736 = vmatpush.msrb.mxu2 %v8699_v35  ;;  %987 = vmatpush.msrb.mxu3 %v8704_v54  ;;  %v8723_v35 = vld [vmem:[#allocation46_spill] sm:$0xff]  ;;  %v8726_v55 = vld [vmem:[#allocation56_spill] sm:$0xff]  ;;  %v8728_v54 = vld [vmem:[#allocation59_spill] sm:$0xff] }
  0xfa   :  { %697 = vmatpush.msrb.mxu0 %v8701_v57  ;;  %948 = vmatpush.msrb.mxu1 %v8706_v49  ;;  %v8725_v57 = vld [vmem:[#allocation48_spill] sm:$0xff]  ;;  %v8732_v49 = vld [vmem:[#allocation85_spill] sm:$0xff] }
  0xfb   :  { %737 = vmatpush.msrb.mxu2 %v8703_v15  ;;  %988 = vmatpush.msrb.mxu3 %v8710_v9  ;;  %v8727_v15 = vld [vmem:[#allocation50_spill] sm:$0xff]  ;;  %v8736_v9 = vld [vmem:[#allocation93_spill] sm:$0xff] }
  0xfc   :  { %698 = vmatpush.msrb.mxu0 %v8705_v14  ;;  %949 = vmatpush.msrb.mxu1 %v8712_v58  ;;  %v8730_v14 = vld [vmem:[#allocation61_spill] sm:$0xff] }
  0xfd   :  { %738 = vmatpush.msrb.mxu2 %v8707_v32  ;;  %699 = vmatmul.f32.vlgmr.msrb.gmra.mxu0 %v5106_v30  ;;  %v8733_v32 = vld [vmem:[#allocation88_spill] sm:$0xff]  ;;  %v8738_v58 = vld [vmem:[#allocation97_spill] sm:$0xff] }
  0xfe   :  { %739 = vmatmul.f32.vlgmr.msrb.gmra.mxu2 %v5106_v30  ;;  %836 = vmatpush.msra.mxu0 %v8708_v61  ;;  %v8718_v30 = vld [vmem:[#allocation107_spill] sm:$0xff]  ;;  %v8734_v61 = vld [vmem:[#allocation89_spill] sm:$0xff] }
  0xff   :  { %876 = vmatpush.msra.mxu2 %v8709_v52  ;;  %989 = vmatpush.msrb.mxu3 %v8714_v60  ;;  %v8735_v52 = vld [vmem:[#allocation92_spill] sm:$0xff]  ;;  %v8740_v60 = vld [vmem:[#allocation101_spill] sm:$0xff] }
 0x100   :  { %837 = vmatpush.msra.mxu0 %v8711_v10  ;;  %950 = vmatpush.msrb.mxu1 %v8716_v62  ;;  %v8737_v10 = vld [vmem:[#allocation96_spill] sm:$0xff]  ;;  %v8742_v62 = vld [vmem:[#allocation105_spill] sm:$0xff] }
 0x101   :  { %877 = vmatpush.msra.mxu2 %v8713_v63  ;;  %990 = vmatpush.msrb.mxu3 %v8718_v30  ;;  %v8739_v63 = vld [vmem:[#allocation100_spill] sm:$0xff]  ;;  %v8744_v30 = vld [vmem:[#allocation109_spill] sm:$0xff] }
 0x102   :  { %838 = vmatpush.msra.mxu0 %v8715_v33  ;;  %951 = vmatpush.msrb.mxu1 %v4929_v51  ;;  %v8729_v51 = vld [vmem:[#allocation52_spill] sm:$0xff] }
 0x103   :  { %878 = vmatpush.msra.mxu2 %v8717_v0  ;;  %991 = vmatpush.msrb.mxu3 %v4933_v27  ;;  %v8731_v27 = vld [vmem:[#allocation84_spill] sm:$0xff] }
 0x104   :  { %839 = vmatpush.msra.mxu0 %v8719_v44  ;;  %v8741_v33 = vld [vmem:[#allocation104_spill] sm:$0xff]  ;;  %v8745_v44 = vld [vmem:[#allocation110_spill] sm:$0xff] }
 0x105   :  { %879 = vmatpush.msra.mxu2 %v8720_v36  ;;  %v8743_v0 = vld [vmem:[#allocation108_spill] sm:$0xff] }
 0x106   :  { %840 = vmatpush.msra.mxu0 %v8721_v43 }
 0x107   :  { %880 = vmatpush.msra.mxu2 %v8722_v48  ;;  %v682_v48 = vld [vmem:[#allocation4 + $0x38] sm:$0xff] }
 0x108   :  { %841 = vmatpush.msra.mxu0 %v8723_v35 }
 0x109   :  { %881 = vmatpush.msra.mxu2 %v8724_v41 }
 0x10a   :  { %842 = vmatpush.msra.mxu0 %v8725_v57 }
 0x10b   :  { %882 = vmatpush.msra.mxu2 %v8726_v55 }
 0x10c   :  { %843 = vmatpush.msra.mxu0 %v8727_v15 }
 0x10d   :  { %883 = vmatpush.msra.mxu2 %v8728_v54 }
 0x10e   :  { %844 = vmatpush.msra.mxu0 %v8729_v51 }
 0x10f   :  { %884 = vmatpush.msra.mxu2 %v8730_v14 }
 0x110   :  { %845 = vmatpush.msra.mxu0 %v8731_v27 }
 0x111   :  { %885 = vmatpush.msra.mxu2 %v8732_v49 }
 0x112   :  { %846 = vmatpush.msra.mxu0 %v8733_v32 }
 0x113   :  { %886 = vmatpush.msra.mxu2 %v8734_v61 }
 0x114   :  { %847 = vmatpush.msra.mxu0 %v8735_v52 }
 0x115   :  { %887 = vmatpush.msra.mxu2 %v8736_v9 }
 0x116   :  { %848 = vmatpush.msra.mxu0 %v8737_v10 }
 0x117   :  { %888 = vmatpush.msra.mxu2 %v8738_v58 }
 0x118   :  { %849 = vmatpush.msra.mxu0 %v8739_v63 }
 0x119   :  { %889 = vmatpush.msra.mxu2 %v8740_v60 }
 0x11a   :  { %850 = vmatpush.msra.mxu0 %v8741_v33 }
 0x11b   :  { %890 = vmatpush.msra.mxu2 %v8742_v62 }
 0x11c   :  { %851 = vmatpush.msra.mxu0 %v8743_v0  ;;  %v679_v0 = vld [vmem:[#allocation4 + $0x20] sm:$0xff] }
 0x11d   :  { %891 = vmatpush.msra.mxu2 %v8744_v30 }
 0x11e   :  { %916 = vmatpush.msrb.mxu0 %v4935_v23  ;;  %v8746_v23 = vld [vmem:[#allocation111_spill] sm:$0xff] }
 0x11f   :  { %956 = vmatpush.msrb.mxu2 %v8745_v44 }
 0x120   :  { %917 = vmatpush.msrb.mxu0 %v4943_v47  ;;  %v8747_v47 = vld [vmem:[#allocation112_spill] sm:$0xff] }
 0x121   :  { %957 = vmatpush.msrb.mxu2 %v4945_v24  ;;  %v279_v24 = vld [vmem:[#allocation10] sm:$0xf] }
 0x122   :  { %918 = vmatpush.msrb.mxu0 %v4951_v17  ;;  %v8748_v17 = vld [vmem:[#allocation113_spill] sm:$0xff]  ;;  %v5278_v55 = vperm.slane %v279_v24, 2 }
 0x123   :  { %958 = vmatpush.msrb.mxu2 %v4953_v3  ;;  %v486_v3 = vpop.f32.mrf.mxu1 }
 0x124   :  { %919 = vmatpush.msrb.mxu0 %v4959_v19  ;;  %v8749_v19 = vld [vmem:[#allocation114_spill] sm:$0xff]  ;;  %8753 = vst [vmem:[#allocation58_spill] sm:$0xff] %v5278_v55 }
 0x125   :  { %959 = vmatpush.msrb.mxu2 %v4961_v1 }
 0x126   :  { %920 = vmatpush.msrb.mxu0 %v4969_v2  ;;  %v5269_v2 = vperm.slane %v279_v24, 0 }
 0x127   :  { %960 = vmatpush.msrb.mxu2 %v4971_v4  ;;  %v526_v4 = vpop.f32.mrf.mxu3 }
 0x128   :  { %921 = vmatpush.msrb.mxu0 %v4977_v5  ;;  %8750 = vst [vmem:[#allocation54_spill] sm:$0xff] %v5269_v2 }
 0x129   :  { %961 = vmatpush.msrb.mxu2 %v4979_v7 }
 0x12a   :  { %922 = vmatpush.msrb.mxu0 %v4985_v8 }
 0x12b   :  { %962 = vmatpush.msrb.mxu2 %v8746_v23  ;;  %v566_v1 = vpop.f32.mrf.mxu1 }
 0x12c   :  { %923 = vmatpush.msrb.mxu0 %v8747_v47 }
 0x12d   :  { %963 = vmatpush.msrb.mxu2 %v8748_v17  ;;  %v5315_v17 = vld [vmem:[#allocation7 + $0x1f8] sm:$0xff] }
 0x12e   :  { %924 = vmatpush.msrb.mxu0 %v5001_v16 }
 0x12f   :  { %964 = vmatpush.msrb.mxu2 %v8749_v19 }
 0x130   :  { %925 = vmatpush.msrb.mxu0 %v5009_v13 }
 0x131   :  { %965 = vmatpush.msrb.mxu2 %v5011_v11  ;;  %v5272_v11 = vperm.slane %v279_v24, 1 }
 0x132   :  { %926 = vmatpush.msrb.mxu0 %v5017_v18  ;;  %v680_v18 = vld [vmem:[#allocation4 + $0x28] sm:$0xff] }
 0x133   :  { %966 = vmatpush.msrb.mxu2 %v5019_v29  ;;  %8751 = vst [vmem:[#allocation55_spill] sm:$0xff] %v5272_v11 }
 0x134   :  { %927 = vmatpush.msrb.mxu0 %v5025_v22 }
 0x135   :  { %967 = vmatpush.msrb.mxu2 %v5027_v21  ;;  %v606_v21 = vpop.f32.mrf.mxu3 }
 0x136   :  { %928 = vmatpush.msrb.mxu0 %v5033_v34 }
 0x137   :  { %968 = vmatpush.msrb.mxu2 %v5035_v37 }
 0x138   :  { %929 = vmatpush.msrb.mxu0 %v5041_v25 }
 0x139   :  { %969 = vmatpush.msrb.mxu2 %v5043_v26 }
 0x13a   :  { %930 = vmatpush.msrb.mxu0 %v5049_v42  ;;  %v5275_v42 = vperm.slane %v279_v24, 3 }
 0x13b   :  { %970 = vmatpush.msrb.mxu2 %v5051_v28 }
 0x13c   :  { %931 = vmatpush.msrb.mxu0 %v5057_v45  ;;  %8752 = vst [vmem:[#allocation57_spill] sm:$0xff] %v5275_v42 }
 0x13d   :  { %971 = vmatpush.msrb.mxu2 %v5059_v46 }
 0x15a   :  { %v466_v5 = vpop.f32.mrf.mxu0 }
 0x15b   :  { %v467_v7 = vadd.f32 %v466_v5, %v5269_v2  ;;  %v720_v29 = vpop.f32.mrf.mxu1 }
 0x15c   :  { %v764_v37 = vadd.f32 %v720_v29, %v680_v18 }
 0x15d   :  { %v487_v8 = vadd.f32 %v486_v3, %v467_v7 }
 0x15e   :  { %v3413_v45 = vmul.f32 -1.442695, %v764_v37 }
 0x15f   :  { %v3409_v13 = vmul.f32 -1.442695, %v487_v8 }
 0x160   :  { %v506_v16 = vpop.f32.mrf.mxu2 }
 0x161   :  { %3480 = vpow2.f32 %v3409_v13  ;;  %v507_v22 = vadd.f32 %v506_v16, %v5272_v11 }
 0x162   :  { %v760_v35 = vpop.f32.mrf.mxu3  ;;  %v546_v15 = vpop.f32.mrf.mxu0 }
 0x163   :  { %v527_v34 = vadd.f32 %v526_v4, %v507_v22  ;;  %v766_v14 = vadd.f32 %v760_v35, %v682_v48  ;;  %v547_v32 = vadd.f32 %v546_v15, %v5278_v55 }
 0x165   :  { %v3410_v25 = vmul.f32 -1.442695, %v527_v34  ;;  %v3414_v52 = vmul.f32 -1.442695, %v766_v14  ;;  %v567_v63 = vadd.f32 %v566_v1, %v547_v32 }
 0x167   :  { %v3481_v26 = vpop.eup %3480  ;;  %3482 = vpow2.f32 %v3410_v25 }
 0x168   :  { %v612_v28 = vadd.f32 1.0, %v3481_v26 }
 0x169   :  { %v586_v46 = vpop.f32.mrf.mxu2 }
 0x16a   :  { %3484 = vrcp.f32 %v612_v28  ;;  %v587_v36 = vadd.f32 %v586_v46, %v5275_v42  ;;  %v624_v62 = vand.u32 2147483648, %v612_v28  ;;  %vm618_vm13 = vweird.f32 %v612_v28 }
 0x16b   :  { %3486 = vpow2.f32 %v3413_v45  ;;  %v622_v23 = vand.u32 2147483647, %v612_v28 }
 0x16c   :  { %v607_v41 = vadd.f32 %v606_v21, %v587_v36  ;;  %v625_v7 = vor.u32 1.1754944e-38, %v624_v62 }
 0x16d   :  { %v3483_v43 = vpop.eup %3482  ;;  %vm623_vm1 = vcmp.eq.f32.partialorder %v622_v23, 8.507059e+37 }
 0x16e   :  { %v631_v57 = vadd.f32 1.0, %v3483_v43  ;;  %v3411_v54 = vmul.f32 -1.442695, %v607_v41 }
 0x170   :  { %v3485_v51 = vpop.eup %3484  ;;  %3488 = vrcp.f32 %v631_v57  ;;  %v643_v47 = vand.u32 2147483648, %v631_v57  ;;  %v641_v19 = vand.u32 2147483647, %v631_v57  ;;  %vm637_vm0 = vweird.f32 %v631_v57 }
 0x171   :  { %v614_v27 = vmul.f32 %v3485_v51, %v612_v28  ;;  %v3487_v49 = vpop.eup %3486  ;;  %3490 = vpow2.f32 %v3411_v54  ;;  %vm619_vm12 = vweird.f32 %v3485_v51 }
 0x172   :  { %v5281_v9 = vadd.f32 1.0, %v3487_v49  ;;  %3492 = vpow2.f32 %v3414_v52  ;;  %vm5284_vm14 = vmor %vm618_vm13, %vm619_vm12  ;;  %v644_v18 = vor.u32 1.1754944e-38, %v643_v47  ;;  %vm642_vm3 = vcmp.eq.f32.partialorder %v641_v19, 8.507059e+37  ;;  %v5312_v47 = vld [vmem:[#allocation7 + $0x1e8] sm:$0xff] }
 0x173   :  { %v615_v61 = vsub.f32 1.0, %v614_v27 }
 0x174   :  { %3494 = vrcp.f32 %v5281_v9  ;;  %vm795_vm9 = vweird.f32 %v5281_v9 }
 0x175   :  { %v616_v10 = vmul.f32 %v3485_v51, %v615_v61  ;;  %3496 = vtanh.f32 %v567_v63  ;;  %v681_v61 = vld [vmem:[#allocation4 + $0x30] sm:$0xff] }
 0x176   :  { %v3489_v58 = vpop.eup %3488 }
 0x177   :  { %v633_v60 = vmul.f32 %v3489_v58, %v631_v57  ;;  %v617_v33 = vadd.f32 %v3485_v51, %v616_v10  ;;  %v3491_v30 = vpop.eup %3490  ;;  %vm638_vm15 = vweird.f32 %v3489_v58 }
 0x178   :  { %v651_v3 = vadd.f32 1.0, %v3491_v30  ;;  %v3493_v16 = vpop.eup %3492  ;;  %vm639_vm2 = vmor %vm637_vm0, %vm638_vm15 }
 0x179   :  { %v634_v44 = vsub.f32 1.0, %v633_v60  ;;  %v621_v4 = vsel %vm5284_vm14, %v3485_v51, %v617_v33  ;;  %v5292_v45 = vadd.f32 1.0, %v3493_v16 }
 0x17a   :  { %v700_v24 = vpop.f32.mrf.mxu0  ;;  %3498 = vrcp.f32 %v651_v3  ;;  %v626_v29 = vsel %vm623_vm1, %v625_v7, %v621_v4  ;;  %v5290_v22 = vpop.eup %3494  ;;  %v663_v41 = vand.u32 2147483648, %v651_v3  ;;  %v661_v51 = vand.u32 2147483647, %v651_v3  ;;  %v5327_v4 = vld [vmem:[#allocation7 + $0x1c8] sm:$0xff] }
 0x17b   :  { %v635_v1 = vmul.f32 %v3489_v58, %v634_v44  ;;  %v763_v5 = vadd.f32 %v700_v24, %v679_v0  ;;  %v3497_v34 = vpop.eup %3496  ;;  %v791_v46 = vmul.f32 %v5290_v22, %v5281_v9  ;;  %vm657_vm5 = vweird.f32 %v651_v3  ;;  %v5415_v24 = vld [vmem:[#allocation7 + $0x1f0] sm:$0xff] }
 0x17c   :  { %v668_v26 = vmul.f32 %v3497_v34, %v626_v29  ;;  %v664_v27 = vor.u32 1.1754944e-38, %v663_v41  ;;  %vm662_vm7 = vcmp.eq.f32.partialorder %v661_v51, 8.507059e+37  ;;  %vm796_vm8 = vweird.f32 %v5290_v22  ;;  %v5340_v29 = vld [vmem:[#allocation7 + $0x1b8] sm:$0xff] }
 0x17d   :  { %v636_v8 = vadd.f32 %v3489_v58, %v635_v1  ;;  %v3412_v13 = vmul.f32 -1.442695, %v763_v5  ;;  %v792_v15 = vsub.f32 1.0, %v791_v46  ;;  %v801_v44 = vand.u32 2147483648, %v5281_v9  ;;  %vm5322_vm10 = vmor %vm795_vm9, %vm796_vm8  ;;  %v5330_v5 = vld [vmem:[#allocation7 + $0x1d8] sm:$0xff] }
 0x17e   :  { %vm815_vm1 = vweird.f32 %v5292_v45 }
 0x17f   :  { %v640_v21 = vsel %vm639_vm2, %v3489_v58, %v636_v8  ;;  %3500 = vpow2.f32 %v3412_v13  ;;  %v793_v32 = vmul.f32 %v5290_v22, %v792_v15  ;;  %v802_v13 = vor.u32 1.1754944e-38, %v801_v44  ;;  %v5358_v15 = vld [vmem:[#allocation7 + $0x148] sm:$0xff] }
 0x180   :  { %v645_v37 = vsel %vm642_vm3, %v644_v18, %v640_v21  ;;  %v3499_v28 = vpop.eup %3498  ;;  %v5337_v18 = vld [vmem:[#allocation7 + $0x1a8] sm:$0xff] }
 0x181   :  { %v667_v25 = vmul.f32 0.0, %v645_v37  ;;  %v653_v43 = vmul.f32 %v3499_v28, %v651_v3  ;;  %vm658_vm4 = vweird.f32 %v3499_v28  ;;  %v740_v52 = vpop.f32.mrf.mxu2  ;;  %v794_v30 = vadd.f32 %v5290_v22, %v793_v32  ;;  %v5399_v44 = vld [vmem:[#allocation7 + $0xa8] sm:$0xff] }
 0x182   :  { %vm659_vm6 = vmor %vm657_vm5, %vm658_vm4  ;;  %v765_v62 = vadd.f32 %v740_v52, %v681_v61  ;;  %v799_v3 = vand.u32 2147483647, %v5281_v9  ;;  %v819_v32 = vand.u32 2147483647, %v5292_v45  ;;  %v5378_v61 = vld [vmem:[#allocation7 + $0x108] sm:$0xff]  ;;  %v5381_v52 = vld [vmem:[#allocation7 + $0x118] sm:$0xff] }
 0x183   :  { %v5296_v36 = vadd.f32 %v668_v26, %v667_v25  ;;  %v654_v35 = vsub.f32 1.0, %v653_v43  ;;  %v798_v8 = vsel %vm5322_vm10, %v5290_v22, %v794_v30  ;;  %v5344_v25 = vld [vmem:[#allocation7 + $0x188] sm:$0xff]  ;;  %v5347_v22 = vld [vmem:[#allocation7 + $0x198] sm:$0xff] }
 0x184   :  { %vm800_vm13 = vcmp.eq.f32.partialorder %v799_v3, 8.507059e+37  ;;  %vm820_vm3 = vcmp.eq.f32.partialorder %v819_v32, 8.507059e+37  ;;  %v5409_v3 = vld [vmem:[#allocation7 + $0x98] sm:$0xff]  ;;  %v5506_v32 = vld [vmem:[#allocation7 + $0xd0] sm:$0xff] }
 0x185   :  { %v3501_v48 = vpop.eup %3500  ;;  %3502 = vtanh.f32 %v5296_v36  ;;  %v655_v54 = vmul.f32 %v3499_v28, %v654_v35  ;;  %v803_v37 = vsel %vm800_vm13, %v802_v13, %v798_v8  ;;  %v5354_v35 = vld [vmem:[#allocation7 + $0x178] sm:$0xff]  ;;  %v5428_v8 = vld [vmem:[#allocation7 + $0x48] sm:$0xff]  ;;  %v5435_v13 = vld [vmem:[#allocation7 + $0x1b0] sm:$0xff]  ;;  %8772 = vst [vmem:[#allocation70_spill] sm:$0xff] %v5506_v32 }
 0x186   :  { %3504 = vrcp.f32 %v5292_v45  ;;  %v5300_v57 = vadd.f32 1.0, %v3501_v48  ;;  %v5351_v48 = vld [vmem:[#allocation7 + $0x168] sm:$0xff]  ;;  %v825_v41 = vmul.f32 %v803_v37, %v5090_v40  ;;  %v5371_v40 = vld [vmem:[#allocation7 + $0x138] sm:$0xff]  ;;  %v5463_v37 = vld [vmem:[#allocation9 + $0x3e0] sm:$0xff] }
 0x187   :  { %v656_v14 = vadd.f32 %v3499_v28, %v655_v54  ;;  %v5361_v54 = vld [vmem:[#allocation7 + $0x158] sm:$0xff]  ;;  %8759 = vst [vmem:[#allocation62_spill] sm:$0xff] %v5463_v37 }
 0x188   :  { %3506 = vrcp.f32 %v5300_v57  ;;  %v782_v1 = vand.u32 2147483648, %v5300_v57  ;;  %v780_v9 = vand.u32 2147483647, %v5300_v57  ;;  %vm776_vm12 = vweird.f32 %v5300_v57 }
 0x189   :  { %v660_v10 = vsel %vm659_vm6, %v3499_v28, %v656_v14  ;;  %3508 = vtanh.f32 %v765_v62  ;;  %v5394_v62 = vld [vmem:[#allocation7 + $0xd8] sm:$0xff] }
 0x18a   :  { %v665_v63 = vsel %vm662_vm7, %v664_v27, %v660_v10  ;;  %v783_v34 = vor.u32 1.1754944e-38, %v782_v1  ;;  %vm781_vm15 = vcmp.eq.f32.partialorder %v780_v9, 8.507059e+37  ;;  %v5368_v27 = vld [vmem:[#allocation7 + $0x128] sm:$0xff]  ;;  %v5425_v9 = vld [vmem:[#allocation7 + $0x1d0] sm:$0xff] }
 0x18b   :  { %v3503_v49 = vpop.eup %3502  ;;  %v5418_v1 = vld [vmem:[#allocation7 + $0x68] sm:$0xff] }
 0x18c   :  { %v5304_v58 = vpop.eup %3504  ;;  %v671_v60 = vmul.f32 %v3503_v49, %v665_v63  ;;  %v821_v49 = vand.u32 2147483648, %v5292_v45  ;;  %v5385_v63 = vld [vmem:[#allocation7 + $0xe8] sm:$0xff] }
 0x18d   :  { %v811_v23 = vmul.f32 %v5304_v58, %v5292_v45  ;;  %vm816_vm0 = vweird.f32 %v5304_v58 }
 0x18e   :  { %v3507_v33 = vpop.eup %3506  ;;  %675 = vst [vmem:[#allocation12 + $0x8] sm:$0xff] %v671_v60  ;;  %872 = vmatmul.f32.vlgmr.msra.gmra.mxu1 %v671_v60  ;;  %912 = vmatmul.f32.vlgmr.msra.gmra.mxu3 %v671_v60  ;;  %vm817_vm2 = vmor %vm815_vm1, %vm816_vm0  ;;  %v822_v45 = vor.u32 1.1754944e-38, %v821_v49  ;;  %v5503_v49 = vld [vmem:[#allocation9 + $0x360] sm:$0xff] }
 0x18f   :  { %v772_v0 = vmul.f32 %v3507_v33, %v5300_v57  ;;  %1090 = vmatpush.msra.mxu1 %v5312_v47  ;;  %1130 = vmatpush.msra.mxu3 %v5315_v17  ;;  %vm777_vm11 = vweird.f32 %v3507_v33  ;;  %v812_v16 = vsub.f32 1.0, %v811_v23  ;;  %v3509_v28 = vpop.eup %3508  ;;  %v5402_v23 = vld [vmem:[#allocation7 + $0xb8] sm:$0xff]  ;;  %8771 = vst [vmem:[#allocation69_spill] sm:$0xff] %v5503_v49 }
 0x190   :  { %vm778_vm14 = vmor %vm776_vm12, %vm777_vm11 }
 0x191   :  { %v773_v19 = vsub.f32 1.0, %v772_v0  ;;  %1091 = vmatpush.msra.mxu1 %v5327_v4  ;;  %1131 = vmatpush.msra.mxu3 %v5330_v5  ;;  %v813_v46 = vmul.f32 %v5304_v58, %v812_v16  ;;  %v5438_v16 = vld [vmem:[#allocation7 + $0x28] sm:$0xff] }
 0x193   :  { %v774_v7 = vmul.f32 %v3507_v33, %v773_v19  ;;  %1092 = vmatpush.msra.mxu1 %v5337_v18  ;;  %1132 = vmatpush.msra.mxu3 %v5340_v29  ;;  %v814_v14 = vadd.f32 %v5304_v58, %v813_v46  ;;  %v5406_v19 = vld [vmem:[#allocation7 + $0x88] sm:$0xff]  ;;  %v5476_v46 = vld [vmem:[#allocation7 + $0x130] sm:$0xff] }
 0x194   :  { %8763 = vst [vmem:[#allocation18_spill] sm:$0xff] %v5476_v46 }
 0x195   :  { %v775_v21 = vadd.f32 %v3507_v33, %v774_v7  ;;  %1093 = vmatpush.msra.mxu1 %v5344_v25  ;;  %1133 = vmatpush.msra.mxu3 %v5347_v22  ;;  %v818_v10 = vsel %vm817_vm2, %v5304_v58, %v814_v14  ;;  %v5421_v7 = vld [vmem:[#allocation7 + $0x78] sm:$0xff]  ;;  %v5496_v14 = vld [vmem:[#allocation7 + $0xf0] sm:$0xff] }
 0x196   :  { %952 = vmatmul.f32.vlgmr.msrb.gmra.mxu1 %v671_v60  ;;  %992 = vmatmul.f32.vlgmr.msrb.gmra.mxu3 %v671_v60  ;;  %v5388_v60 = vld [vmem:[#allocation7 + $0xf8] sm:$0xff]  ;;  %v823_v58 = vsel %vm820_vm3, %v822_v45, %v818_v10  ;;  %8769 = vst [vmem:[#allocation20_spill] sm:$0xff] %v5496_v14  ;;  %v5512_v10 = vld [vmem:[#allocation7 + $0xa0] sm:$0xff] }
 0x197   :  { %v779_v26 = vsel %vm778_vm14, %v3507_v33, %v775_v21  ;;  %1094 = vmatpush.msra.mxu1 %v5351_v48  ;;  %1134 = vmatpush.msra.mxu3 %v5354_v35  ;;  %v5391_v33 = vld [vmem:[#allocation7 + $0xc8] sm:$0xff]  ;;  %v5445_v21 = vld [vmem:[#allocation7 + $0x190] sm:$0xff]  ;;  %8774 = vst [vmem:[#allocation71_spill] sm:$0xff] %v5512_v10  ;;  %v5515_v45 = vld [vmem:[#allocation9 + $0x340] sm:$0xff] }
 0x198   :  { %v784_v43 = vsel %vm781_vm15, %v783_v34, %v779_v26  ;;  %v5448_v34 = vld [vmem:[#allocation7 + $0x8] sm:$0xff]  ;;  %v5466_v26 = vld [vmem:[#allocation7 + $0x150] sm:$0xff]  ;;  %8775 = vst [vmem:[#allocation72_spill] sm:$0xff] %v5515_v45 }
 0x199   :  { %v826_v57 = vmul.f32 %v3509_v28, %v784_v43  ;;  %1095 = vmatpush.msra.mxu1 %v5358_v15  ;;  %1135 = vmatpush.msra.mxu3 %v5361_v54  ;;  %8760 = vst [vmem:[#allocation63_spill] sm:$0xff] %v5466_v26  ;;  %v5469_v28 = vld [vmem:[#allocation9 + $0x3e8] sm:$0xff]  ;;  %v5483_v43 = vld [vmem:[#allocation9 + $0x3a0] sm:$0xff] }
 0x19a   :  { %8761 = vst [vmem:[#allocation17_spill] sm:$0xff] %v5469_v28 }
 0x19b   :  { %v5364_v51 = vadd.f32 %v826_v57, %v825_v41  ;;  %1096 = vmatpush.msra.mxu1 %v5368_v27  ;;  %1136 = vmatpush.msra.mxu3 %v5371_v40  ;;  %8765 = vst [vmem:[#allocation66_spill] sm:$0xff] %v5483_v43  ;;  %v5486_v41 = vld [vmem:[#allocation7 + $0x110] sm:$0xff]  ;;  %v5493_v57 = vld [vmem:[#allocation9 + $0x380] sm:$0xff] }
 0x19c   :  { %8766 = vst [vmem:[#allocation19_spill] sm:$0xff] %v5486_v41 }
 0x19d   :  { %3510 = vtanh.f32 %v5364_v51  ;;  %1097 = vmatpush.msra.mxu1 %v5378_v61  ;;  %1137 = vmatpush.msra.mxu3 %v5381_v52  ;;  %8768 = vst [vmem:[#allocation68_spill] sm:$0xff] %v5493_v57 }
 0x19f   :  { %1098 = vmatpush.msra.mxu1 %v5385_v63  ;;  %1138 = vmatpush.msra.mxu3 %v5388_v60 }
 0x1a1   :  { %1099 = vmatpush.msra.mxu1 %v5391_v33  ;;  %1139 = vmatpush.msra.mxu3 %v5394_v62 }
 0x1a3   :  { %v3511_v0 = vpop.eup %3510  ;;  %1100 = vmatpush.msra.mxu1 %v5399_v44  ;;  %1140 = vmatpush.msra.mxu3 %v5402_v23 }
 0x1a4   :  { %v5397_v30 = vmul.f32 %v3511_v0, %v823_v58  ;;  %v5521_v0 = vld [vmem:[#allocation9 + $0x348] sm:$0xff]  ;;  %v5524_v58 = vld [vmem:[#allocation7 + $0x80] sm:$0xff] }
 0x1a5   :  { %1101 = vmatpush.msra.mxu1 %v5406_v19  ;;  %1141 = vmatpush.msra.mxu3 %v5409_v3  ;;  %8777 = vst [vmem:[#allocation73_spill] sm:$0xff] %v5521_v0 }
 0x1a6   :  { %833 = vst [vmem:[#allocation12 + $0x10] sm:$0xff] %v5397_v30  ;;  %852 = vmatmul.f32.vlgmr.msra.gmra.mxu0 %v5397_v30  ;;  %892 = vmatmul.f32.vlgmr.msra.gmra.mxu2 %v5397_v30 }
 0x1a7   :  { %1070 = vmatpush.msra.mxu0 %v5113_v39  ;;  %1110 = vmatpush.msra.mxu2 %v5415_v24  ;;  %v5431_v39 = vld [vmem:[#allocation7 + $0x58] sm:$0xff]  ;;  %8778 = vst [vmem:[#allocation74_spill] sm:$0xff] %v5524_v58 }
 0x1a8   :  { %1102 = vmatpush.msra.mxu1 %v5418_v1  ;;  %1142 = vmatpush.msra.mxu3 %v5421_v7 }
 0x1a9   :  { %1071 = vmatpush.msra.mxu0 %v5119_v31  ;;  %1111 = vmatpush.msra.mxu2 %v5425_v9  ;;  %v5441_v31 = vld [vmem:[#allocation7 + $0x38] sm:$0xff] }
 0x1aa   :  { %1103 = vmatpush.msra.mxu1 %v5428_v8  ;;  %1143 = vmatpush.msra.mxu3 %v5431_v39 }
 0x1ab   :  { %1072 = vmatpush.msra.mxu0 %v5125_v50  ;;  %1112 = vmatpush.msra.mxu2 %v5435_v13  ;;  %v5451_v50 = vld [vmem:[#allocation7 + $0x18] sm:$0xff] }
 0x1ac   :  { %1104 = vmatpush.msra.mxu1 %v5438_v16  ;;  %1144 = vmatpush.msra.mxu3 %v5441_v31 }
 0x1ad   :  { %1073 = vmatpush.msra.mxu0 %v5131_v53  ;;  %1113 = vmatpush.msra.mxu2 %v5445_v21  ;;  %v5458_v53 = vld [vmem:[#allocation7 + $0x170] sm:$0xff] }
 0x1ae   :  { %1105 = vmatpush.msra.mxu1 %v5448_v34  ;;  %1145 = vmatpush.msra.mxu3 %v5451_v50  ;;  %8758 = vst [vmem:[#allocation60_spill] sm:$0xff] %v5458_v53 }
 0x1af   :  { %932 = vmatmul.f32.vlgmr.msrb.gmra.mxu0 %v5397_v30  ;;  %972 = vmatmul.f32.vlgmr.msrb.gmra.mxu2 %v5397_v30 }
 0x1b0   :  { %1074 = vmatpush.msra.mxu0 %v5138_v12  ;;  %1106 = vmatmul.f32.vlgmr.msra.gmra.mxu1 %v5397_v30  ;;  %v5473_v12 = vld [vmem:[#allocation9 + $0x3c0] sm:$0xff] }
 0x1b1   :  { %1114 = vmatpush.msra.mxu2 %v5458_v53  ;;  %1146 = vmatmul.f32.vlgmr.msra.gmra.mxu3 %v5397_v30  ;;  %8762 = vst [vmem:[#allocation64_spill] sm:$0xff] %v5473_v12 }
 0x1b2   :  { %1075 = vmatpush.msra.mxu0 %v5143_v38  ;;  %1243 = vmatpush.msrb.mxu1 %v5463_v37  ;;  %v5479_v38 = vld [vmem:[#allocation9 + $0x3c8] sm:$0xff] }
 0x1b3   :  { %1115 = vmatpush.msra.mxu2 %v5466_v26  ;;  %1283 = vmatpush.msrb.mxu3 %v5469_v28  ;;  %8764 = vst [vmem:[#allocation65_spill] sm:$0xff] %v5479_v38 }
 0x1b4   :  { %1076 = vmatpush.msra.mxu0 %v5149_v56  ;;  %1244 = vmatpush.msrb.mxu1 %v5473_v12  ;;  %v5489_v56 = vld [vmem:[#allocation9 + $0x3a8] sm:$0xff] }
 0x1b5   :  { %1116 = vmatpush.msra.mxu2 %v5476_v46  ;;  %1284 = vmatpush.msrb.mxu3 %v5479_v38  ;;  %8767 = vst [vmem:[#allocation67_spill] sm:$0xff] %v5489_v56 }
 0x1b6   :  { %1077 = vmatpush.msra.mxu0 %v5155_v59  ;;  %1245 = vmatpush.msrb.mxu1 %v5483_v43  ;;  %v5499_v59 = vld [vmem:[#allocation9 + $0x388] sm:$0xff] }
 0x1b7   :  { %1117 = vmatpush.msra.mxu2 %v5486_v41  ;;  %1285 = vmatpush.msrb.mxu3 %v5489_v56  ;;  %8770 = vst [vmem:[#allocation21_spill] sm:$0xff] %v5499_v59  ;;  %v1067_v56 = vld [vmem:[#allocation4 + $0x48] sm:$0xff] }
 0x1b8   :  { %1078 = vmatpush.msra.mxu0 %v5161_v6  ;;  %1246 = vmatpush.msrb.mxu1 %v5493_v57  ;;  %v5509_v6 = vld [vmem:[#allocation9 + $0x368] sm:$0xff] }
 0x1b9   :  { %1118 = vmatpush.msra.mxu2 %v5496_v14  ;;  %1286 = vmatpush.msrb.mxu3 %v5499_v59  ;;  %8773 = vst [vmem:[#allocation22_spill] sm:$0xff] %v5509_v6 }
 0x1ba   :  { %1079 = vmatpush.msra.mxu0 %v5167_v20  ;;  %1247 = vmatpush.msrb.mxu1 %v5503_v49  ;;  %v5518_v20 = vld [vmem:[#allocation7 + $0xb0] sm:$0xff] }
 0x1bb   :  { %1119 = vmatpush.msra.mxu2 %v5506_v32  ;;  %1287 = vmatpush.msrb.mxu3 %v5509_v6  ;;  %8776 = vst [vmem:[#allocation24_spill] sm:$0xff] %v5518_v20  ;;  %v5527_v6 = vld [vmem:[#allocation9 + $0x320] sm:$0xff] }
 0x1bc   :  { %1080 = vmatpush.msra.mxu0 %v5512_v10  ;;  %1248 = vmatpush.msrb.mxu1 %v5515_v45  ;;  %8779 = vst [vmem:[#allocation26_spill] sm:$0xff] %v5527_v6  ;;  %v5530_v10 = vld [vmem:[#allocation7 + $0x90] sm:$0xff]  ;;  %v5533_v45 = vld [vmem:[#allocation9 + $0x328] sm:$0xff] }
 0x1bd   :  { %1120 = vmatpush.msra.mxu2 %v5518_v20  ;;  %1288 = vmatpush.msrb.mxu3 %v5521_v0  ;;  %8780 = vst [vmem:[#allocation75_spill] sm:$0xff] %v5530_v10  ;;  %v5536_v20 = vld [vmem:[#allocation7 + $0x60] sm:$0xff] }
 0x1be   :  { %1081 = vmatpush.msra.mxu0 %v5524_v58  ;;  %1249 = vmatpush.msrb.mxu1 %v5527_v6  ;;  %8781 = vst [vmem:[#allocation76_spill] sm:$0xff] %v5533_v45  ;;  %v5539_v0 = vld [vmem:[#allocation9 + $0x300] sm:$0xff]  ;;  %v5542_v58 = vld [vmem:[#allocation7 + $0x70] sm:$0xff]  ;;  %v5545_v6 = vld [vmem:[#allocation9 + $0x308] sm:$0xff] }
 0x1bf   :  { %1121 = vmatpush.msra.mxu2 %v5530_v10  ;;  %1289 = vmatpush.msrb.mxu3 %v5533_v45  ;;  %8782 = vst [vmem:[#allocation28_spill] sm:$0xff] %v5536_v20  ;;  %v5548_v10 = vld [vmem:[#allocation7 + $0x40] sm:$0xff] }
 0x1c0   :  { %1082 = vmatpush.msra.mxu0 %v5536_v20  ;;  %8783 = vst [vmem:[#allocation77_spill] sm:$0xff] %v5539_v0  ;;  %1250 = vmatpush.msrb.mxu1 %v5539_v0  ;;  %v5551_v45 = vld [vmem:[#allocation9 + $0x2e0] sm:$0xff]  ;;  %v5554_v20 = vld [vmem:[#allocation7 + $0x50] sm:$0xff]  ;;  %v5557_v0 = vld [vmem:[#allocation9 + $0x2e8] sm:$0xff] }
 0x1c1   :  { %8784 = vst [vmem:[#allocation78_spill] sm:$0xff] %v5542_v58  ;;  %1122 = vmatpush.msra.mxu2 %v5542_v58  ;;  %1290 = vmatpush.msrb.mxu3 %v5545_v6  ;;  %v5560_v58 = vld [vmem:[#allocation7 + $0x20] sm:$0xff] }
 0x1c2   :  { %8785 = vst [vmem:[#allocation30_spill] sm:$0xff] %v5545_v6  ;;  %1083 = vmatpush.msra.mxu0 %v5548_v10  ;;  %1251 = vmatpush.msrb.mxu1 %v5551_v45  ;;  %v5563_v6 = vld [vmem:[#allocation9 + $0x2c0] sm:$0xff] }
 0x1c3   :  { %8786 = vst [vmem:[#allocation79_spill] sm:$0xff] %v5548_v10  ;;  %1123 = vmatpush.msra.mxu2 %v5554_v20  ;;  %1291 = vmatpush.msrb.mxu3 %v5557_v0  ;;  %v5566_v10 = vld [vmem:[#allocation7 + $0x30] sm:$0xff] }
 0x1c4   :  { %8787 = vst [vmem:[#allocation23_spill] sm:$0xff] %v5551_v45  ;;  %1084 = vmatpush.msra.mxu0 %v5560_v58  ;;  %1252 = vmatpush.msrb.mxu1 %v5563_v6  ;;  %v5569_v45 = vld [vmem:[#allocation9 + $0x2c8] sm:$0xff] }
 0x1c5   :  { %8788 = vst [vmem:[#allocation80_spill] sm:$0xff] %v5554_v20  ;;  %1124 = vmatpush.msra.mxu2 %v5566_v10  ;;  %1292 = vmatpush.msrb.mxu3 %v5569_v45  ;;  %v5572_v20 = vld [vmem:[#allocation7] sm:$0xff] }
 0x1c6   :  { %8789 = vst [vmem:[#allocation32_spill] sm:$0xff] %v5557_v0  ;;  %1085 = vmatpush.msra.mxu0 %v5572_v20  ;;  %v5575_v0 = vld [vmem:[#allocation9 + $0x2a0] sm:$0xff] }
 0x1c7   :  { %8790 = vst [vmem:[#allocation81_spill] sm:$0xff] %v5560_v58  ;;  %1253 = vmatpush.msrb.mxu1 %v5575_v0  ;;  %v5578_v58 = vld [vmem:[#allocation7 + $0x10] sm:$0xff]  ;;  %1086 = vmatmul.f32.vlgmr.msra.gmra.mxu0 %v5397_v30 }
 0x1c8   :  { %8791 = vst [vmem:[#allocation25_spill] sm:$0xff] %v5563_v6  ;;  %1125 = vmatpush.msra.mxu2 %v5578_v58 }
 0x1c9   :  { %8792 = vst [vmem:[#allocation82_spill] sm:$0xff] %v5566_v10  ;;  %1126 = vmatmul.f32.vlgmr.msra.gmra.mxu2 %v5397_v30  ;;  %v5583_v10 = vld [vmem:[#allocation9 + $0x2a8] sm:$0xff]  ;;  %v5598_v30 = vld [vmem:[#allocation9 + $0x260] sm:$0xff] }
 0x1ca   :  { %8793 = vst [vmem:[#allocation34_spill] sm:$0xff] %v5569_v45  ;;  %1293 = vmatpush.msrb.mxu3 %v5583_v10  ;;  %v5586_v45 = vld [vmem:[#allocation9 + $0x280] sm:$0xff] }
 0x1cb   :  { %8794 = vst [vmem:[#allocation83_spill] sm:$0xff] %v5572_v20  ;;  %1254 = vmatpush.msrb.mxu1 %v5586_v45  ;;  %v5589_v20 = vld [vmem:[#allocation9 + $0x1e0] sm:$0xff] }
 0x1cc   :  { %8795 = vst [vmem:[#allocation27_spill] sm:$0xff] %v5575_v0  ;;  %1223 = vmatpush.msrb.mxu0 %v5589_v20  ;;  %v5592_v0 = vld [vmem:[#allocation9 + $0x288] sm:$0xff] }
 0x1cd   :  { %8796 = vst [vmem:[#allocation86_spill] sm:$0xff] %v5578_v58  ;;  %1294 = vmatpush.msrb.mxu3 %v5592_v0  ;;  %v5595_v58 = vld [vmem:[#allocation9 + $0x1e8] sm:$0xff]  ;;  %1255 = vmatpush.msrb.mxu1 %v5598_v30 }
 0x1ce   :  { %8797 = vst [vmem:[#allocation35_spill] sm:$0xff] %v5583_v10  ;;  %1263 = vmatpush.msrb.mxu2 %v5595_v58  ;;  %v5601_v10 = vld [vmem:[#allocation9 + $0x1c0] sm:$0xff] }
 0x1cf   :  { %8798 = vst [vmem:[#allocation87_spill] sm:$0xff] %v5586_v45  ;;  %1224 = vmatpush.msrb.mxu0 %v5601_v10  ;;  %v5604_v45 = vld [vmem:[#allocation9 + $0x268] sm:$0xff] }
 0x1d0   :  { %8799 = vst [vmem:[#allocation29_spill] sm:$0xff] %v5589_v20  ;;  %1295 = vmatpush.msrb.mxu3 %v5604_v45  ;;  %v5607_v20 = vld [vmem:[#allocation9 + $0x1c8] sm:$0xff] }
 0x1d1   :  { %8800 = vst [vmem:[#allocation90_spill] sm:$0xff] %v5592_v0  ;;  %1264 = vmatpush.msrb.mxu2 %v5607_v20  ;;  %v5610_v0 = vld [vmem:[#allocation9 + $0x240] sm:$0xff] }
 0x1d2   :  { %8801 = vst [vmem:[#allocation38_spill] sm:$0xff] %v5595_v58  ;;  %1256 = vmatpush.msrb.mxu1 %v5610_v0  ;;  %v5613_v58 = vld [vmem:[#allocation9 + $0x1a0] sm:$0xff] }
 0x1d3   :  { %8802 = vst [vmem:[#allocation91_spill] sm:$0xff] %v5598_v30  ;;  %1225 = vmatpush.msrb.mxu0 %v5613_v58  ;;  %v5616_v30 = vld [vmem:[#allocation9 + $0x248] sm:$0xff] }
 0x1d4   :  { %8803 = vst [vmem:[#allocation31_spill] sm:$0xff] %v5601_v10  ;;  %1296 = vmatpush.msrb.mxu3 %v5616_v30  ;;  %v5619_v10 = vld [vmem:[#allocation9 + $0x1a8] sm:$0xff] }
 0x1d5   :  { %8804 = vst [vmem:[#allocation94_spill] sm:$0xff] %v5604_v45  ;;  %1265 = vmatpush.msrb.mxu2 %v5619_v10  ;;  %v5622_v45 = vld [vmem:[#allocation9 + $0x220] sm:$0xff] }
 0x1d6   :  { %8805 = vst [vmem:[#allocation40_spill] sm:$0xff] %v5607_v20  ;;  %1257 = vmatpush.msrb.mxu1 %v5622_v45  ;;  %v5625_v20 = vld [vmem:[#allocation9 + $0x180] sm:$0xff] }
 0x1d7   :  { %8806 = vst [vmem:[#allocation95_spill] sm:$0xff] %v5610_v0  ;;  %1226 = vmatpush.msrb.mxu0 %v5625_v20  ;;  %v5628_v0 = vld [vmem:[#allocation9 + $0x228] sm:$0xff] }
 0x1d8   :  { %8807 = vst [vmem:[#allocation33_spill] sm:$0xff] %v5613_v58  ;;  %1297 = vmatpush.msrb.mxu3 %v5628_v0  ;;  %v5631_v58 = vld [vmem:[#allocation9 + $0x188] sm:$0xff] }
 0x1d9   :  { %8808 = vst [vmem:[#allocation98_spill] sm:$0xff] %v5616_v30  ;;  %1266 = vmatpush.msrb.mxu2 %v5631_v58  ;;  %v5634_v30 = vld [vmem:[#allocation9 + $0x200] sm:$0xff] }
 0x1da   :  { %8809 = vst [vmem:[#allocation42_spill] sm:$0xff] %v5619_v10  ;;  %1258 = vmatpush.msrb.mxu1 %v5634_v30  ;;  %v5637_v10 = vld [vmem:[#allocation9 + $0x160] sm:$0xff] }
 0x1db   :  { %8810 = vst [vmem:[#allocation36_spill] sm:$0xff] %v5622_v45  ;;  %1227 = vmatpush.msrb.mxu0 %v5637_v10  ;;  %v5640_v45 = vld [vmem:[#allocation9 + $0x208] sm:$0xff] }
 0x1dc   :  { %8811 = vst [vmem:[#allocation43_spill] sm:$0xff] %v5625_v20  ;;  %1298 = vmatpush.msrb.mxu3 %v5640_v45  ;;  %v5643_v20 = vld [vmem:[#allocation9 + $0x168] sm:$0xff] }
 0x1dd   :  { %8812 = vst [vmem:[#allocation99_spill] sm:$0xff] %v5628_v0  ;;  %1267 = vmatpush.msrb.mxu2 %v5643_v20  ;;  %v5646_v0 = vld [vmem:[#allocation9 + $0x3f0] sm:$0xff] }
 0x1de   :  { %8813 = vst [vmem:[#allocation37_spill] sm:$0xff] %v5631_v58  ;;  %1323 = vmatpush.msra.mxu1 %v5646_v0  ;;  %v5649_v58 = vld [vmem:[#allocation9 + $0x3f8] sm:$0xff] }
 0x1df   :  { %8814 = vst [vmem:[#allocation102_spill] sm:$0xff] %v5634_v30  ;;  %1363 = vmatpush.msra.mxu3 %v5649_v58  ;;  %v5652_v30 = vld [vmem:[#allocation9 + $0x140] sm:$0xff] }
 0x1e0   :  { %8815 = vst [vmem:[#allocation45_spill] sm:$0xff] %v5637_v10  ;;  %1228 = vmatpush.msrb.mxu0 %v5652_v30  ;;  %v5655_v10 = vld [vmem:[#allocation9 + $0x148] sm:$0xff] }
 0x1e1   :  { %8816 = vst [vmem:[#allocation103_spill] sm:$0xff] %v5640_v45  ;;  %1268 = vmatpush.msrb.mxu2 %v5655_v10  ;;  %v5658_v45 = vld [vmem:[#allocation9 + $0x3d0] sm:$0xff] }
 0x1e2   :  { %8817 = vst [vmem:[#allocation39_spill] sm:$0xff] %v5643_v20  ;;  %1324 = vmatpush.msra.mxu1 %v5658_v45  ;;  %v5661_v20 = vld [vmem:[#allocation9 + $0x3d8] sm:$0xff] }
 0x1e3   :  { %8818 = vst [vmem:[#allocation106_spill] sm:$0xff] %v5646_v0  ;;  %1364 = vmatpush.msra.mxu3 %v5661_v20  ;;  %v5664_v0 = vld [vmem:[#allocation9 + $0x120] sm:$0xff] }
 0x1e4   :  { %8819 = vst [vmem:[#allocation47_spill] sm:$0xff] %v5649_v58  ;;  %1229 = vmatpush.msrb.mxu0 %v5664_v0  ;;  %v5667_v58 = vld [vmem:[#allocation9 + $0x128] sm:$0xff] }
 0x1e5   :  { %8820 = vst [vmem:[#allocation107_spill] sm:$0xff] %v5652_v30  ;;  %1269 = vmatpush.msrb.mxu2 %v5667_v58  ;;  %v5670_v30 = vld [vmem:[#allocation9 + $0x3b0] sm:$0xff] }
 0x1e6   :  { %8821 = vst [vmem:[#allocation41_spill] sm:$0xff] %v5655_v10  ;;  %1325 = vmatpush.msra.mxu1 %v5670_v30  ;;  %v5673_v10 = vld [vmem:[#allocation9 + $0x3b8] sm:$0xff] }
 0x1e7   :  { %8822 = vst [vmem:[#allocation49_spill] sm:$0xff] %v5658_v45  ;;  %1365 = vmatpush.msra.mxu3 %v5673_v10  ;;  %v5676_v45 = vld [vmem:[#allocation9 + $0x100] sm:$0xff] }
 0x1e8   :  { %8823 = vst [vmem:[#allocation44_spill] sm:$0xff] %v5661_v20  ;;  %1230 = vmatpush.msrb.mxu0 %v5676_v45  ;;  %v5679_v20 = vld [vmem:[#allocation9 + $0x108] sm:$0xff] }
 0x1e9   :  { %8824 = vst [vmem:[#allocation51_spill] sm:$0xff] %v5664_v0  ;;  %1270 = vmatpush.msrb.mxu2 %v5679_v20  ;;  %v5682_v0 = vld [vmem:[#allocation9 + $0x390] sm:$0xff] }
 0x1ea   :  { %8825 = vst [vmem:[#allocation46_spill] sm:$0xff] %v5667_v58  ;;  %1326 = vmatpush.msra.mxu1 %v5682_v0  ;;  %v5685_v58 = vld [vmem:[#allocation9 + $0x398] sm:$0xff] }
 0x1eb   :  { %8826 = vst [vmem:[#allocation53_spill] sm:$0xff] %v5670_v30  ;;  %1366 = vmatpush.msra.mxu3 %v5685_v58  ;;  %v5688_v30 = vld [vmem:[#allocation9 + $0xe0] sm:$0xff] }
 0x1ec   :  { %8827 = vst [vmem:[#allocation48_spill] sm:$0xff] %v5673_v10  ;;  %1231 = vmatpush.msrb.mxu0 %v5688_v30  ;;  %v5691_v10 = vld [vmem:[#allocation9 + $0xe8] sm:$0xff] }
 0x1ed   :  { %8828 = vst [vmem:[#allocation56_spill] sm:$0xff] %v5676_v45  ;;  %1271 = vmatpush.msrb.mxu2 %v5691_v10  ;;  %v5694_v45 = vld [vmem:[#allocation9 + $0x370] sm:$0xff] }
 0x1ee   :  { %8829 = vst [vmem:[#allocation50_spill] sm:$0xff] %v5679_v20  ;;  %1327 = vmatpush.msra.mxu1 %v5694_v45  ;;  %v5697_v20 = vld [vmem:[#allocation9 + $0x378] sm:$0xff] }
 0x1ef   :  { %8830 = vst [vmem:[#allocation59_spill] sm:$0xff] %v5682_v0  ;;  %1367 = vmatpush.msra.mxu3 %v5697_v20  ;;  %v5700_v0 = vld [vmem:[#allocation9 + $0xc0] sm:$0xff] }
 0x1f0   :  { %8831 = vst [vmem:[#allocation52_spill] sm:$0xff] %v5685_v58  ;;  %1232 = vmatpush.msrb.mxu0 %v5700_v0  ;;  %v5703_v58 = vld [vmem:[#allocation9 + $0xc8] sm:$0xff] }
 0x1f1   :  { %8832 = vst [vmem:[#allocation61_spill] sm:$0xff] %v5688_v30  ;;  %1272 = vmatpush.msrb.mxu2 %v5703_v58  ;;  %v5706_v30 = vld [vmem:[#allocation9 + $0x350] sm:$0xff] }
 0x1f2   :  { %8833 = vst [vmem:[#allocation84_spill] sm:$0xff] %v5691_v10  ;;  %1328 = vmatpush.msra.mxu1 %v5706_v30  ;;  %v5709_v10 = vld [vmem:[#allocation9 + $0x358] sm:$0xff] }
 0x1f3   :  { %8834 = vst [vmem:[#allocation85_spill] sm:$0xff] %v5694_v45  ;;  %1368 = vmatpush.msra.mxu3 %v5709_v10  ;;  %v5712_v45 = vld [vmem:[#allocation9 + $0xa0] sm:$0xff] }
 0x1f4   :  { %8835 = vst [vmem:[#allocation88_spill] sm:$0xff] %v5697_v20  ;;  %1233 = vmatpush.msrb.mxu0 %v5712_v45  ;;  %v5715_v20 = vld [vmem:[#allocation9 + $0xa8] sm:$0xff] }
 0x1f5   :  { %8836 = vst [vmem:[#allocation89_spill] sm:$0xff] %v5700_v0  ;;  %1273 = vmatpush.msrb.mxu2 %v5715_v20  ;;  %v5718_v0 = vld [vmem:[#allocation9 + $0x330] sm:$0xff] }
 0x1f6   :  { %8837 = vst [vmem:[#allocation92_spill] sm:$0xff] %v5703_v58  ;;  %1329 = vmatpush.msra.mxu1 %v5718_v0  ;;  %v5721_v58 = vld [vmem:[#allocation9 + $0x338] sm:$0xff] }
 0x1f7   :  { %8838 = vst [vmem:[#allocation93_spill] sm:$0xff] %v5706_v30  ;;  %1369 = vmatpush.msra.mxu3 %v5721_v58  ;;  %v5724_v30 = vld [vmem:[#allocation9 + $0x80] sm:$0xff] }
 0x1f8   :  { %8839 = vst [vmem:[#allocation96_spill] sm:$0xff] %v5709_v10  ;;  %1234 = vmatpush.msrb.mxu0 %v5724_v30  ;;  %v5727_v10 = vld [vmem:[#allocation9 + $0x88] sm:$0xff] }
 0x1f9   :  { %8840 = vst [vmem:[#allocation97_spill] sm:$0xff] %v5712_v45  ;;  %1274 = vmatpush.msrb.mxu2 %v5727_v10  ;;  %v5730_v45 = vld [vmem:[#allocation9 + $0x310] sm:$0xff] }
 0x1fa   :  { %8841 = vst [vmem:[#allocation100_spill] sm:$0xff] %v5715_v20  ;;  %1330 = vmatpush.msra.mxu1 %v5730_v45  ;;  %v5733_v20 = vld [vmem:[#allocation9 + $0x318] sm:$0xff] }
 0x1fb   :  { %8842 = vst [vmem:[#allocation101_spill] sm:$0xff] %v5718_v0  ;;  %1370 = vmatpush.msra.mxu3 %v5733_v20  ;;  %v5736_v0 = vld [vmem:[#allocation9 + $0x60] sm:$0xff] }
 0x1fc   :  { %8843 = vst [vmem:[#allocation104_spill] sm:$0xff] %v5721_v58  ;;  %1235 = vmatpush.msrb.mxu0 %v5736_v0  ;;  %v5739_v58 = vld [vmem:[#allocation9 + $0x68] sm:$0xff] }
 0x1fd   :  { %8844 = vst [vmem:[#allocation105_spill] sm:$0xff] %v5724_v30  ;;  %1275 = vmatpush.msrb.mxu2 %v5739_v58  ;;  %v5742_v30 = vld [vmem:[#allocation9 + $0x2f0] sm:$0xff] }
 0x1fe   :  { %8845 = vst [vmem:[#allocation108_spill] sm:$0xff] %v5727_v10  ;;  %1331 = vmatpush.msra.mxu1 %v5742_v30  ;;  %v5745_v10 = vld [vmem:[#allocation9 + $0x2f8] sm:$0xff] }
 0x1ff   :  { %8846 = vst [vmem:[#allocation109_spill] sm:$0xff] %v5730_v45  ;;  %1371 = vmatpush.msra.mxu3 %v5745_v10  ;;  %v5748_v45 = vld [vmem:[#allocation9 + $0x40] sm:$0xff] }
 0x200   :  { %8847 = vst [vmem:[#allocation110_spill] sm:$0xff] %v5733_v20  ;;  %1236 = vmatpush.msrb.mxu0 %v5748_v45  ;;  %v5751_v20 = vld [vmem:[#allocation9 + $0x48] sm:$0xff] }
 0x201   :  { %8848 = vst [vmem:[#allocation111_spill] sm:$0xff] %v5736_v0  ;;  %1276 = vmatpush.msrb.mxu2 %v5751_v20  ;;  %v5754_v0 = vld [vmem:[#allocation9 + $0x2d0] sm:$0xff] }
 0x202   :  { %8849 = vst [vmem:[#allocation112_spill] sm:$0xff] %v5739_v58  ;;  %1332 = vmatpush.msra.mxu1 %v5754_v0  ;;  %v5757_v58 = vld [vmem:[#allocation9 + $0x2d8] sm:$0xff] }
 0x203   :  { %8850 = vst [vmem:[#allocation113_spill] sm:$0xff] %v5742_v30  ;;  %1372 = vmatpush.msra.mxu3 %v5757_v58  ;;  %v5760_v30 = vld [vmem:[#allocation9 + $0x20] sm:$0xff] }
 0x204   :  { %8851 = vst [vmem:[#allocation114_spill] sm:$0xff] %v5745_v10  ;;  %1237 = vmatpush.msrb.mxu0 %v5760_v30  ;;  %v5763_v10 = vld [vmem:[#allocation9 + $0x28] sm:$0xff] }
 0x205   :  { %8852 = vst [vmem:[#allocation115_spill] sm:$0xff] %v5748_v45  ;;  %1277 = vmatpush.msrb.mxu2 %v5763_v10  ;;  %v5766_v45 = vld [vmem:[#allocation9 + $0x2b0] sm:$0xff] }
 0x206   :  { %8853 = vst [vmem:[#allocation116_spill] sm:$0xff] %v5751_v20  ;;  %1333 = vmatpush.msra.mxu1 %v5766_v45  ;;  %v5769_v20 = vld [vmem:[#allocation9 + $0x2b8] sm:$0xff] }
 0x207   :  { %8854 = vst [vmem:[#allocation117_spill] sm:$0xff] %v5754_v0  ;;  %1373 = vmatpush.msra.mxu3 %v5769_v20  ;;  %v5772_v0 = vld [vmem:[#allocation9] sm:$0xff] }
 0x208   :  { %8855 = vst [vmem:[#allocation118_spill] sm:$0xff] %v5757_v58  ;;  %1238 = vmatpush.msrb.mxu0 %v5772_v0  ;;  %v5775_v58 = vld [vmem:[#allocation9 + $0x8] sm:$0xff] }
 0x209   :  { %8856 = vst [vmem:[#allocation119_spill] sm:$0xff] %v5760_v30  ;;  %1278 = vmatpush.msrb.mxu2 %v5775_v58  ;;  %v5778_v30 = vld [vmem:[#allocation9 + $0x290] sm:$0xff] }
 0x20a   :  { %8857 = vst [vmem:[#allocation120_spill] sm:$0xff] %v5763_v10  ;;  %1334 = vmatpush.msra.mxu1 %v5778_v30  ;;  %v5781_v10 = vld [vmem:[#allocation9 + $0x298] sm:$0xff] }
 0x20b   :  { %8858 = vst [vmem:[#allocation121_spill] sm:$0xff] %v5766_v45  ;;  %1374 = vmatpush.msra.mxu3 %v5781_v10  ;;  %v5784_v45 = vld [vmem:[#allocation9 + $0x1f0] sm:$0xff] }
 0x20c   :  { %8859 = vst [vmem:[#allocation122_spill] sm:$0xff] %v5769_v20  ;;  %1303 = vmatpush.msra.mxu0 %v5784_v45  ;;  %v5787_v20 = vld [vmem:[#allocation9 + $0x1f8] sm:$0xff] }
 0x20d   :  { %8860 = vst [vmem:[#allocation123_spill] sm:$0xff] %v5772_v0  ;;  %1343 = vmatpush.msra.mxu2 %v5787_v20  ;;  %v5790_v0 = vld [vmem:[#allocation9 + $0x270] sm:$0xff] }
 0x20e   :  { %8861 = vst [vmem:[#allocation124_spill] sm:$0xff] %v5775_v58  ;;  %1335 = vmatpush.msra.mxu1 %v5790_v0  ;;  %v5793_v58 = vld [vmem:[#allocation9 + $0x278] sm:$0xff] }
 0x20f   :  { %8862 = vst [vmem:[#allocation125_spill] sm:$0xff] %v5778_v30  ;;  %1375 = vmatpush.msra.mxu3 %v5793_v58  ;;  %v5796_v30 = vld [vmem:[#allocation9 + $0x1d0] sm:$0xff] }
 0x210   :  { %8863 = vst [vmem:[#allocation126_spill] sm:$0xff] %v5781_v10  ;;  %1304 = vmatpush.msra.mxu0 %v5796_v30  ;;  %v5799_v10 = vld [vmem:[#allocation9 + $0x1d8] sm:$0xff] }
 0x211   :  { %8864 = vst [vmem:[#allocation127_spill] sm:$0xff] %v5784_v45  ;;  %1344 = vmatpush.msra.mxu2 %v5799_v10  ;;  %v5802_v45 = vld [vmem:[#allocation9 + $0x250] sm:$0xff]  ;;  %v913_v32 = vpop.f32.mrf.mxu3 }
 0x212   :  { %8865 = vst [vmem:[#allocation128_spill] sm:$0xff] %v5787_v20  ;;  %1336 = vmatpush.msra.mxu1 %v5802_v45  ;;  %v5805_v20 = vld [vmem:[#allocation9 + $0x258] sm:$0xff] }
 0x213   :  { %8866 = vst [vmem:[#allocation129_spill] sm:$0xff] %v5790_v0  ;;  %1376 = vmatpush.msra.mxu3 %v5805_v20  ;;  %v5808_v0 = vld [vmem:[#allocation9 + $0x1b0] sm:$0xff] }
 0x214   :  { %8867 = vst [vmem:[#allocation130_spill] sm:$0xff] %v5793_v58  ;;  %1305 = vmatpush.msra.mxu0 %v5808_v0  ;;  %v5811_v58 = vld [vmem:[#allocation9 + $0x1b8] sm:$0xff] }
 0x215   :  { %8868 = vst [vmem:[#allocation131_spill] sm:$0xff] %v5796_v30  ;;  %1345 = vmatpush.msra.mxu2 %v5811_v58  ;;  %v5814_v30 = vld [vmem:[#allocation9 + $0x230] sm:$0xff] }
 0x216   :  { %8869 = vst [vmem:[#allocation132_spill] sm:$0xff] %v5799_v10  ;;  %1337 = vmatpush.msra.mxu1 %v5814_v30  ;;  %v5817_v10 = vld [vmem:[#allocation9 + $0x238] sm:$0xff] }
 0x217   :  { %8870 = vst [vmem:[#allocation133_spill] sm:$0xff] %v5802_v45  ;;  %1377 = vmatpush.msra.mxu3 %v5817_v10  ;;  %v5820_v45 = vld [vmem:[#allocation9 + $0x190] sm:$0xff] }
 0x218   :  { %8871 = vst [vmem:[#allocation134_spill] sm:$0xff] %v5805_v20  ;;  %1306 = vmatpush.msra.mxu0 %v5820_v45  ;;  %v5823_v20 = vld [vmem:[#allocation9 + $0x198] sm:$0xff] }
 0x219   :  { %8872 = vst [vmem:[#allocation135_spill] sm:$0xff] %v5808_v0  ;;  %1346 = vmatpush.msra.mxu2 %v5823_v20  ;;  %v5826_v0 = vld [vmem:[#allocation9 + $0x210] sm:$0xff]  ;;  %v993_v43 = vpop.f32.mrf.mxu3 }
 0x21a   :  { %8873 = vst [vmem:[#allocation136_spill] sm:$0xff] %v5811_v58  ;;  %1338 = vmatpush.msra.mxu1 %v5826_v0  ;;  %v5829_v58 = vld [vmem:[#allocation9 + $0x218] sm:$0xff] }
 0x21b   :  { %8874 = vst [vmem:[#allocation137_spill] sm:$0xff] %v5814_v30  ;;  %1378 = vmatpush.msra.mxu3 %v5829_v58  ;;  %v5832_v30 = vld [vmem:[#allocation9 + $0x170] sm:$0xff] }
 0x21c   :  { %8875 = vst [vmem:[#allocation138_spill] sm:$0xff] %v5817_v10  ;;  %1307 = vmatpush.msra.mxu0 %v5832_v30  ;;  %v5835_v10 = vld [vmem:[#allocation9 + $0x178] sm:$0xff] }
 0x21d   :  { %8876 = vst [vmem:[#allocation139_spill] sm:$0xff] %v5820_v45  ;;  %1347 = vmatpush.msra.mxu2 %v5835_v10  ;;  %v5838_v45 = vld [vmem:[#allocation9 + $0x150] sm:$0xff] }
 0x21e   :  { %8877 = vst [vmem:[#allocation140_spill] sm:$0xff] %v5823_v20  ;;  %1308 = vmatpush.msra.mxu0 %v5838_v45  ;;  %v5841_v20 = vld [vmem:[#allocation9 + $0x158] sm:$0xff] }
 0x21f   :  { %8878 = vst [vmem:[#allocation141_spill] sm:$0xff] %v5826_v0  ;;  %1348 = vmatpush.msra.mxu2 %v5841_v20  ;;  %v5844_v0 = vld [vmem:[#allocation9 + $0x130] sm:$0xff] }
 0x220   :  { %8879 = vst [vmem:[#allocation142_spill] sm:$0xff] %v5829_v58  ;;  %1309 = vmatpush.msra.mxu0 %v5844_v0  ;;  %v5847_v58 = vld [vmem:[#allocation9 + $0x138] sm:$0xff] }
 0x221   :  { %8880 = vst [vmem:[#allocation143_spill] sm:$0xff] %v5832_v30  ;;  %1349 = vmatpush.msra.mxu2 %v5847_v58  ;;  %v5850_v30 = vld [vmem:[#allocation9 + $0x110] sm:$0xff] }
 0x222   :  { %8881 = vst [vmem:[#allocation144_spill] sm:$0xff] %v5835_v10  ;;  %1310 = vmatpush.msra.mxu0 %v5850_v30  ;;  %v5853_v10 = vld [vmem:[#allocation9 + $0x118] sm:$0xff] }
 0x223   :  { %8882 = vst [vmem:[#allocation145_spill] sm:$0xff] %v5838_v45  ;;  %1350 = vmatpush.msra.mxu2 %v5853_v10  ;;  %v5856_v45 = vld [vmem:[#allocation9 + $0xf0] sm:$0xff]  ;;  %v853_v6 = vpop.f32.mrf.mxu0 }
 0x224   :  { %8883 = vst [vmem:[#allocation146_spill] sm:$0xff] %v5841_v20  ;;  %1311 = vmatpush.msra.mxu0 %v5856_v45  ;;  %v5859_v20 = vld [vmem:[#allocation9 + $0xf8] sm:$0xff] }
 0x225   :  { %8884 = vst [vmem:[#allocation147_spill] sm:$0xff] %v5844_v0  ;;  %1351 = vmatpush.msra.mxu2 %v5859_v20  ;;  %v5862_v0 = vld [vmem:[#allocation9 + $0xd0] sm:$0xff] }
 0x226   :  { %8885 = vst [vmem:[#allocation148_spill] sm:$0xff] %v5847_v58  ;;  %1312 = vmatpush.msra.mxu0 %v5862_v0  ;;  %v5865_v58 = vld [vmem:[#allocation9 + $0xd8] sm:$0xff] }
 0x227   :  { %8886 = vst [vmem:[#allocation149_spill] sm:$0xff] %v5850_v30  ;;  %1352 = vmatpush.msra.mxu2 %v5865_v58  ;;  %v5868_v30 = vld [vmem:[#allocation9 + $0xb0] sm:$0xff] }
 0x228   :  { %8887 = vst [vmem:[#allocation150_spill] sm:$0xff] %v5853_v10  ;;  %1313 = vmatpush.msra.mxu0 %v5868_v30  ;;  %v5871_v10 = vld [vmem:[#allocation9 + $0xb8] sm:$0xff] }
 0x229   :  { %8888 = vst [vmem:[#allocation151_spill] sm:$0xff] %v5856_v45  ;;  %1353 = vmatpush.msra.mxu2 %v5871_v10  ;;  %v5874_v45 = vld [vmem:[#allocation9 + $0x90] sm:$0xff]  ;;  %v893_v14 = vpop.f32.mrf.mxu2 }
 0x22a   :  { %8889 = vst [vmem:[#allocation152_spill] sm:$0xff] %v5859_v20  ;;  %1314 = vmatpush.msra.mxu0 %v5874_v45  ;;  %v5877_v20 = vld [vmem:[#allocation9 + $0x98] sm:$0xff] }
 0x22b   :  { %8890 = vst [vmem:[#allocation153_spill] sm:$0xff] %v5862_v0  ;;  %1354 = vmatpush.msra.mxu2 %v5877_v20  ;;  %v5880_v0 = vld [vmem:[#allocation9 + $0x70] sm:$0xff] }
 0x22c   :  { %8891 = vst [vmem:[#allocation154_spill] sm:$0xff] %v5865_v58  ;;  %1315 = vmatpush.msra.mxu0 %v5880_v0  ;;  %v5883_v58 = vld [vmem:[#allocation9 + $0x78] sm:$0xff] }
 0x22d   :  { %8892 = vst [vmem:[#allocation155_spill] sm:$0xff] %v5868_v30  ;;  %1355 = vmatpush.msra.mxu2 %v5883_v58  ;;  %v5886_v30 = vld [vmem:[#allocation9 + $0x50] sm:$0xff] }
 0x22e   :  { %8893 = vst [vmem:[#allocation156_spill] sm:$0xff] %v5871_v10  ;;  %1316 = vmatpush.msra.mxu0 %v5886_v30  ;;  %v5889_v10 = vld [vmem:[#allocation9 + $0x58] sm:$0xff] }
 0x22f   :  { %8894 = vst [vmem:[#allocation157_spill] sm:$0xff] %v5874_v45  ;;  %1356 = vmatpush.msra.mxu2 %v5889_v10  ;;  %v5892_v45 = vld [vmem:[#allocation9 + $0x30] sm:$0xff] }
 0x230   :  { %8895 = vst [vmem:[#allocation158_spill] sm:$0xff] %v5877_v20  ;;  %1317 = vmatpush.msra.mxu0 %v5892_v45  ;;  %v5895_v20 = vld [vmem:[#allocation9 + $0x38] sm:$0xff] }
 0x231   :  { %8896 = vst [vmem:[#allocation159_spill] sm:$0xff] %v5880_v0  ;;  %1357 = vmatpush.msra.mxu2 %v5895_v20  ;;  %v5898_v0 = vld [vmem:[#allocation9 + $0x10] sm:$0xff] }
 0x232   :  { %8897 = vst [vmem:[#allocation160_spill] sm:$0xff] %v5883_v58  ;;  %1318 = vmatpush.msra.mxu0 %v5898_v0  ;;  %v5901_v58 = vld [vmem:[#allocation9 + $0x18] sm:$0xff]  ;;  %v973_v12 = vpop.f32.mrf.mxu2 }
 0x233   :  { %8898 = vst [vmem:[#allocation161_spill] sm:$0xff] %v5886_v30  ;;  %1358 = vmatpush.msra.mxu2 %v5901_v58  ;;  %v873_v30 = vpop.f32.mrf.mxu1 }
 0x234   :  { %8899 = vst [vmem:[#allocation162_spill] sm:$0xff] %v5889_v10  ;;  %v854_v10 = vadd.f32 %v853_v6, %v5269_v2  ;;  %v974_v2 = vadd.f32 %v973_v12, %v5275_v42 }
 0x235   :  { %8900 = vst [vmem:[#allocation163_spill] sm:$0xff] %v5892_v45 }
 0x236   :  { %8901 = vst [vmem:[#allocation164_spill] sm:$0xff] %v5895_v20  ;;  %v874_v59 = vadd.f32 %v873_v30, %v854_v10  ;;  %v894_v20 = vadd.f32 %v893_v14, %v5272_v11  ;;  %v994_v30 = vadd.f32 %v993_v43, %v974_v2  ;;  %v1069_v14 = vld [vmem:[#allocation4 + $0x58] sm:$0xff] }
 0x237   :  { %8902 = vst [vmem:[#allocation165_spill] sm:$0xff] %v5898_v0 }
 0x238   :  { %8903 = vst [vmem:[#allocation166_spill] sm:$0xff] %v5901_v58  ;;  %v3415_v45 = vmul.f32 -1.442695, %v874_v59  ;;  %v914_v57 = vadd.f32 %v913_v32, %v894_v20  ;;  %v933_v59 = vpop.f32.mrf.mxu0  ;;  %v1147_v32 = vpop.f32.mrf.mxu3  ;;  %v3417_v20 = vmul.f32 -1.442695, %v994_v30 }
 0x23a   :  { %3512 = vpow2.f32 %v3415_v45  ;;  %v3416_v0 = vmul.f32 -1.442695, %v914_v57 }
 0x23b   :  { %v953_v49 = vpop.f32.mrf.mxu1 }
 0x23c   :  { %3514 = vpow2.f32 %v3416_v0 }
 0x240   :  { %v3513_v46 = vpop.eup %3512 }
 0x241   :  { %v999_v58 = vadd.f32 1.0, %v3513_v46  ;;  %v1153_v46 = vadd.f32 %v1147_v32, %v1069_v14 }
 0x242   :  { %v3515_v10 = vpop.eup %3514 }
 0x243   :  { %v1107_v41 = vpop.f32.mrf.mxu1  ;;  %3516 = vrcp.f32 %v999_v58  ;;  %v1018_v45 = vadd.f32 1.0, %v3515_v10  ;;  %v3420_v12 = vmul.f32 -1.442695, %v1153_v46  ;;  %v1011_v10 = vand.u32 2147483648, %v999_v58 }
 0x244   :  { %v1151_v38 = vadd.f32 %v1107_v41, %v1067_v56  ;;  %v934_v41 = vadd.f32 %v933_v59, %v5278_v55  ;;  %vm1005_vm5 = vweird.f32 %v999_v58  ;;  %v1009_v59 = vand.u32 2147483647, %v999_v58 }
 0x245   :  { %v1030_v14 = vand.u32 2147483648, %v1018_v45  ;;  %vm1024_vm8 = vweird.f32 %v1018_v45 }
 0x246   :  { %v3419_v6 = vmul.f32 -1.442695, %v1151_v38  ;;  %v954_v38 = vadd.f32 %v953_v49, %v934_v41  ;;  %v1028_v49 = vand.u32 2147483647, %v1018_v45  ;;  %vm1010_vm9 = vcmp.eq.f32.partialorder %v1009_v59, 8.507059e+37 }
 0x248   :  { %3518 = vpow2.f32 %v3419_v6  ;;  %vm1029_vm11 = vcmp.eq.f32.partialorder %v1028_v49, 8.507059e+37 }
 0x249   :  { %v3517_v11 = vpop.eup %3516  ;;  %3520 = vrcp.f32 %v1018_v45 }
 0x24a   :  { %v1001_v56 = vmul.f32 %v3517_v11, %v999_v58  ;;  %3522 = vpow2.f32 %v3417_v20  ;;  %vm1006_vm4 = vweird.f32 %v3517_v11  ;;  %v1066_v20 = vld [vmem:[#allocation4 + $0x40] sm:$0xff] }
 0x24b   :  { %3524 = vtanh.f32 %v954_v38  ;;  %vm5910_vm6 = vmor %vm1005_vm5, %vm1006_vm4 }
 0x24c   :  { %v1002_v57 = vsub.f32 1.0, %v1001_v56  ;;  %3526 = vpow2.f32 %v3420_v12  ;;  %v1012_v56 = vor.u32 1.1754944e-38, %v1011_v10 }
 0x24e   :  { %v3519_v0 = vpop.eup %3518  ;;  %v1003_v28 = vmul.f32 %v3517_v11, %v1002_v57 }
 0x24f   :  { %v3521_v42 = vpop.eup %3520  ;;  %v5908_v6 = vadd.f32 1.0, %v3519_v0  ;;  %v1031_v0 = vor.u32 1.1754944e-38, %v1030_v14 }
 0x250   :  { %v3523_v26 = vpop.eup %3522  ;;  %v1020_v2 = vmul.f32 %v3521_v42, %v1018_v45  ;;  %v1004_v43 = vadd.f32 %v3517_v11, %v1003_v28  ;;  %vm1025_vm7 = vweird.f32 %v3521_v42 }
 0x251   :  { %v1038_v30 = vadd.f32 1.0, %v3523_v26  ;;  %v1087_v26 = vpop.f32.mrf.mxu0  ;;  %v3525_v57 = vpop.eup %3524  ;;  %vm1026_vm10 = vmor %vm1024_vm8, %vm1025_vm7  ;;  %vm1182_vm1 = vweird.f32 %v5908_v6 }
 0x252   :  { %v1021_v37 = vsub.f32 1.0, %v1020_v2  ;;  %v1008_v28 = vsel %vm5910_vm6, %v3517_v11, %v1004_v43  ;;  %v1150_v46 = vadd.f32 %v1087_v26, %v1066_v20  ;;  %v3527_v12 = vpop.eup %3526 }
 0x253   :  { %3528 = vrcp.f32 %v1038_v30  ;;  %v1013_v38 = vsel %vm1010_vm9, %v1012_v56, %v1008_v28  ;;  %v5924_v20 = vadd.f32 1.0, %v3527_v12  ;;  %v1050_v49 = vand.u32 2147483648, %v1038_v30  ;;  %v1068_v12 = vld [vmem:[#allocation4 + $0x50] sm:$0xff] }
 0x254   :  { %v1022_v41 = vmul.f32 %v3521_v42, %v1021_v37  ;;  %3530 = vrcp.f32 %v5908_v6  ;;  %v3418_v37 = vmul.f32 -1.442695, %v1150_v46  ;;  %v1055_v43 = vmul.f32 %v3525_v57, %v1013_v38 }
 0x255   :  { %vm1044_vm13 = vweird.f32 %v1038_v30  ;;  %vm1202_vm9 = vweird.f32 %v5924_v20 }
 0x256   :  { %v1023_v58 = vadd.f32 %v3521_v42, %v1022_v41  ;;  %3532 = vpow2.f32 %v3418_v37  ;;  %v1048_v41 = vand.u32 2147483647, %v1038_v30 }
 0x258   :  { %v1027_v2 = vsel %vm1026_vm10, %v3521_v42, %v1023_v58  ;;  %v1051_v58 = vor.u32 1.1754944e-38, %v1050_v49  ;;  %vm1049_vm15 = vcmp.eq.f32.partialorder %v1048_v41, 8.507059e+37 }
 0x259   :  { %v3529_v55 = vpop.eup %3528  ;;  %v1032_v53 = vsel %vm1029_vm11, %v1031_v0, %v1027_v2  ;;  %v1127_v2 = vpop.f32.mrf.mxu2 }
 0x25a   :  { %v5917_v32 = vpop.eup %3530  ;;  %v1054_v11 = vmul.f32 %v1032_v53, %v5296_v36  ;;  %v1040_v10 = vmul.f32 %v3529_v55, %v1038_v30  ;;  %vm1045_vm12 = vweird.f32 %v3529_v55  ;;  %v1152_v37 = vadd.f32 %v1127_v2, %v1068_v12  ;;  %v8925_v12 = vld [vmem:[#allocation72_spill] sm:$0xff] }
 0x25b   :  { %v1178_v14 = vmul.f32 %v5917_v32, %v5908_v6  ;;  %vm1046_vm14 = vmor %vm1044_vm13, %vm1045_vm12  ;;  %vm1183_vm0 = vweird.f32 %v5917_v32  ;;  %v8926_v2 = vld [vmem:[#allocation24_spill] sm:$0xff] }
 0x25c   :  { %v5920_v45 = vadd.f32 %v1055_v43, %v1054_v11  ;;  %v1041_v59 = vsub.f32 1.0, %v1040_v10  ;;  %v3533_v28 = vpop.eup %3532  ;;  %v1188_v10 = vand.u32 2147483648, %v5908_v6  ;;  %vm5944_vm2 = vmor %vm1182_vm1, %vm1183_vm0 }
 0x25d   :  { %v1157_v53 = vadd.f32 1.0, %v3533_v28  ;;  %v1179_v26 = vsub.f32 1.0, %v1178_v14  ;;  %v8936_v14 = vld [vmem:[#allocation79_spill] sm:$0xff] }
 0x25e   :  { %3534 = vtanh.f32 %v5920_v45  ;;  %v1042_v42 = vmul.f32 %v3529_v55, %v1041_v59 }
 0x25f   :  { %3536 = vrcp.f32 %v5924_v20  ;;  %v1180_v38 = vmul.f32 %v5917_v32, %v1179_v26  ;;  %vm1163_vm4 = vweird.f32 %v1157_v53 }
 0x260   :  { %v1043_v36 = vadd.f32 %v3529_v55, %v1042_v42  ;;  %3538 = vrcp.f32 %v1157_v53  ;;  %v1167_v42 = vand.u32 2147483647, %v1157_v53 }
 0x261   :  { %v1181_v43 = vadd.f32 %v5917_v32, %v1180_v38  ;;  %3540 = vtanh.f32 %v1152_v37  ;;  %v8924_v38 = vld [vmem:[#allocation71_spill] sm:$0xff]  ;;  %v8929_v37 = vld [vmem:[#allocation26_spill] sm:$0xff] }
 0x262   :  { %v1047_v56 = vsel %vm1046_vm14, %v3529_v55, %v1043_v36  ;;  %vm1168_vm7 = vcmp.eq.f32.partialorder %v1167_v42, 8.507059e+37  ;;  %v8939_v42 = vld [vmem:[#allocation32_spill] sm:$0xff] }
 0x263   :  { %v1052_v57 = vsel %vm1049_vm15, %v1051_v58, %v1047_v56  ;;  %v1185_v49 = vsel %vm5944_vm2, %v5917_v32, %v1181_v43  ;;  %v8920_v56 = vld [vmem:[#allocation21_spill] sm:$0xff]  ;;  %v8931_v43 = vld [vmem:[#allocation76_spill] sm:$0xff] }
 0x264   :  { %v3535_v46 = vpop.eup %3534  ;;  %v6041_v58 = vld [vmem:[#allocation7 + $0xc0] sm:$0xff] }
 0x265   :  { %v1058_v0 = vmul.f32 %v3535_v46, %v1052_v57  ;;  %v5929_v30 = vpop.eup %3536  ;;  %v8921_v46 = vld [vmem:[#allocation69_spill] sm:$0xff]  ;;  %v8922_v57 = vld [vmem:[#allocation70_spill] sm:$0xff] }
 0x266   :  { %v3539_v55 = vpop.eup %3538  ;;  %v1198_v59 = vmul.f32 %v5929_v30, %v5924_v20  ;;  %vm1203_vm8 = vweird.f32 %v5929_v30 }
 0x267   :  { %1062 = vst [vmem:[#allocation12 + $0x18] sm:$0xff] %v1058_v0  ;;  %1259 = vmatmul.f32.vlgmr.msrb.gmra.mxu1 %v1058_v0  ;;  %1299 = vmatmul.f32.vlgmr.msrb.gmra.mxu3 %v1058_v0  ;;  %v1159_v11 = vmul.f32 %v3539_v55, %v1157_v53  ;;  %vm1164_vm3 = vweird.f32 %v3539_v55  ;;  %vm1204_vm10 = vmor %vm1202_vm9, %vm1203_vm8 }
 0x268   :  { %1477 = vmatpush.msrb.mxu1 %v5312_v47  ;;  %1517 = vmatpush.msrb.mxu3 %v5315_v17  ;;  %v1186_v17 = vand.u32 2147483647, %v5908_v6  ;;  %v1199_v6 = vsub.f32 1.0, %v1198_v59  ;;  %vm1165_vm6 = vmor %vm1163_vm4, %vm1164_vm3  ;;  %v8933_v59 = vld [vmem:[#allocation77_spill] sm:$0xff] }
 0x269   :  { %v1160_v47 = vsub.f32 1.0, %v1159_v11  ;;  %v8930_v11 = vld [vmem:[#allocation75_spill] sm:$0xff] }
 0x26a   :  { %1478 = vmatpush.msrb.mxu1 %v5327_v4  ;;  %1518 = vmatpush.msrb.mxu3 %v5330_v5  ;;  %v1169_v4 = vand.u32 2147483648, %v1157_v53  ;;  %vm1187_vm5 = vcmp.eq.f32.partialorder %v1186_v17, 8.507059e+37  ;;  %v8935_v17 = vld [vmem:[#allocation30_spill] sm:$0xff] }
 0x26b   :  { %v1161_v5 = vmul.f32 %v3539_v55, %v1160_v47  ;;  %v8934_v47 = vld [vmem:[#allocation78_spill] sm:$0xff] }
 0x26c   :  { %1479 = vmatpush.msrb.mxu1 %v5337_v18  ;;  %1519 = vmatpush.msrb.mxu3 %v5340_v29  ;;  %v1189_v18 = vor.u32 1.1754944e-38, %v1188_v10  ;;  %v1170_v41 = vor.u32 1.1754944e-38, %v1169_v4  ;;  %v8932_v10 = vld [vmem:[#allocation28_spill] sm:$0xff]  ;;  %v8937_v4 = vld [vmem:[#allocation23_spill] sm:$0xff] }
 0x26d   :  { %v1162_v29 = vadd.f32 %v3539_v55, %v1161_v5  ;;  %v8938_v5 = vld [vmem:[#allocation80_spill] sm:$0xff] }
 0x26e   :  { %1480 = vmatpush.msrb.mxu1 %v5344_v25  ;;  %1520 = vmatpush.msrb.mxu3 %v5347_v22  ;;  %v1190_v28 = vsel %vm1187_vm5, %v1189_v18, %v1185_v49  ;;  %v3541_v25 = vpop.eup %3540  ;;  %v1200_v22 = vmul.f32 %v5929_v30, %v1199_v6  ;;  %v8940_v49 = vld [vmem:[#allocation81_spill] sm:$0xff]  ;;  %v8942_v6 = vld [vmem:[#allocation82_spill] sm:$0xff] }
 0x26f   :  { %1339 = vmatmul.f32.vlgmr.msra.gmra.mxu1 %v1058_v0  ;;  %1379 = vmatmul.f32.vlgmr.msra.gmra.mxu3 %v1058_v0  ;;  %v1166_v36 = vsel %vm1165_vm6, %v3539_v55, %v1162_v29  ;;  %v1212_v53 = vmul.f32 %v1190_v28, %v5364_v51  ;;  %v8923_v0 = vld [vmem:[#allocation22_spill] sm:$0xff]  ;;  %v8941_v18 = vld [vmem:[#allocation25_spill] sm:$0xff]  ;;  %v8945_v28 = vld [vmem:[#allocation27_spill] sm:$0xff] }
 0x270   :  { %1481 = vmatpush.msrb.mxu1 %v5351_v48  ;;  %1521 = vmatpush.msrb.mxu3 %v5354_v35  ;;  %v1171_v32 = vsel %vm1168_vm7, %v1170_v41, %v1166_v36  ;;  %v1201_v35 = vadd.f32 %v5929_v30, %v1200_v22  ;;  %v8928_v55 = vld [vmem:[#allocation74_spill] sm:$0xff]  ;;  %v8944_v41 = vld [vmem:[#allocation83_spill] sm:$0xff] }
 0x271   :  { %v1213_v26 = vmul.f32 %v3541_v25, %v1171_v32  ;;  %v8943_v29 = vld [vmem:[#allocation34_spill] sm:$0xff]  ;;  %v8947_v25 = vld [vmem:[#allocation35_spill] sm:$0xff]  ;;  %v8949_v32 = vld [vmem:[#allocation29_spill] sm:$0xff] }
 0x272   :  { %1482 = vmatpush.msrb.mxu1 %v5358_v15  ;;  %1522 = vmatpush.msrb.mxu3 %v5361_v54  ;;  %v1208_v15 = vand.u32 2147483648, %v5924_v20  ;;  %v1206_v54 = vand.u32 2147483647, %v5924_v20  ;;  %v1205_v51 = vsel %vm1204_vm10, %v5929_v30, %v1201_v35  ;;  %v8919_v20 = vld [vmem:[#allocation20_spill] sm:$0xff]  ;;  %v8927_v30 = vld [vmem:[#allocation73_spill] sm:$0xff]  ;;  %v8946_v36 = vld [vmem:[#allocation86_spill] sm:$0xff] }
 0x273   :  { %v5961_v48 = vadd.f32 %v1213_v26, %v1212_v53  ;;  %v8948_v22 = vld [vmem:[#allocation87_spill] sm:$0xff]  ;;  %v8950_v53 = vld [vmem:[#allocation90_spill] sm:$0xff] }
 0x274   :  { %1483 = vmatpush.msrb.mxu1 %v5368_v27  ;;  %1523 = vmatpush.msrb.mxu3 %v5371_v40  ;;  %v1209_v27 = vor.u32 1.1754944e-38, %v1208_v15  ;;  %vm1207_vm11 = vcmp.eq.f32.partialorder %v1206_v54, 8.507059e+37  ;;  %v8951_v26 = vld [vmem:[#allocation38_spill] sm:$0xff]  ;;  %v8952_v35 = vld [vmem:[#allocation91_spill] sm:$0xff] }
 0x275   :  { %3542 = vtanh.f32 %v5961_v48  ;;  %v8953_v15 = vld [vmem:[#allocation31_spill] sm:$0xff]  ;;  %v8954_v54 = vld [vmem:[#allocation94_spill] sm:$0xff] }
 0x276   :  { %1484 = vmatpush.msrb.mxu1 %v5378_v61  ;;  %1524 = vmatpush.msrb.mxu3 %v5381_v52  ;;  %v1210_v61 = vsel %vm1207_vm11, %v1209_v27, %v1205_v51  ;;  %v8955_v51 = vld [vmem:[#allocation40_spill] sm:$0xff]  ;;  %v8956_v27 = vld [vmem:[#allocation95_spill] sm:$0xff] }
 0x278   :  { %1485 = vmatpush.msrb.mxu1 %v5385_v63  ;;  %1525 = vmatpush.msrb.mxu3 %v5388_v60  ;;  %v5987_v63 = vld [vmem:[#allocation7 + $0x1e0] sm:$0xff] }
 0x279   :  { %v5993_v60 = vld [vmem:[#allocation7 + $0x1c0] sm:$0xff] }
 0x27a   :  { %1486 = vmatpush.msrb.mxu1 %v5391_v33  ;;  %1526 = vmatpush.msrb.mxu3 %v5394_v62  ;;  %v5999_v33 = vld [vmem:[#allocation7 + $0x1a0] sm:$0xff] }
 0x27b   :  { %v3543_v40 = vpop.eup %3542  ;;  %v6005_v62 = vld [vmem:[#allocation7 + $0x180] sm:$0xff] }
 0x27c   :  { %1487 = vmatpush.msrb.mxu1 %v5399_v44  ;;  %1527 = vmatpush.msrb.mxu3 %v5402_v23  ;;  %v5980_v52 = vmul.f32 %v3543_v40, %v1210_v61  ;;  %v6011_v44 = vld [vmem:[#allocation7 + $0x160] sm:$0xff]  ;;  %v8958_v61 = vld [vmem:[#allocation98_spill] sm:$0xff] }
 0x27d   :  { %v8908_v23 = vld [vmem:[#allocation60_spill] sm:$0xff]  ;;  %v8957_v40 = vld [vmem:[#allocation33_spill] sm:$0xff] }
 0x27e   :  { %1488 = vmatpush.msrb.mxu1 %v5406_v19  ;;  %1528 = vmatpush.msrb.mxu3 %v5409_v3  ;;  %1220 = vst [vmem:[#allocation12 + $0x20] sm:$0xff] %v5980_v52  ;;  %v6017_v19 = vld [vmem:[#allocation7 + $0x140] sm:$0xff]  ;;  %v8909_v3 = vld [vmem:[#allocation62_spill] sm:$0xff] }
 0x27f   :  { %1239 = vmatmul.f32.vlgmr.msrb.gmra.mxu0 %v5980_v52  ;;  %1279 = vmatmul.f32.vlgmr.msrb.gmra.mxu2 %v5980_v52 }
 0x280   :  { %1489 = vmatpush.msrb.mxu1 %v5418_v1  ;;  %1529 = vmatpush.msrb.mxu3 %v5421_v7  ;;  %v8911_v1 = vld [vmem:[#allocation17_spill] sm:$0xff] }
 0x281   :  { %1457 = vmatpush.msrb.mxu0 %v5987_v63  ;;  %1497 = vmatpush.msrb.mxu2 %v5415_v24  ;;  %v8910_v24 = vld [vmem:[#allocation63_spill] sm:$0xff]  ;;  %v6023_v7 = vld [vmem:[#allocation7 + $0x120] sm:$0xff] }
 0x282   :  { %1490 = vmatpush.msrb.mxu1 %v5428_v8  ;;  %1530 = vmatpush.msrb.mxu3 %v5431_v39  ;;  %v8913_v8 = vld [vmem:[#allocation18_spill] sm:$0xff]  ;;  %v8914_v39 = vld [vmem:[#allocation65_spill] sm:$0xff] }
 0x283   :  { %1458 = vmatpush.msrb.mxu0 %v5993_v60  ;;  %1498 = vmatpush.msrb.mxu2 %v5425_v9  ;;  %v8912_v9 = vld [vmem:[#allocation64_spill] sm:$0xff] }
 0x284   :  { %1491 = vmatpush.msrb.mxu1 %v5438_v16  ;;  %1531 = vmatpush.msrb.mxu3 %v5441_v31  ;;  %v8915_v16 = vld [vmem:[#allocation66_spill] sm:$0xff]  ;;  %v8916_v31 = vld [vmem:[#allocation19_spill] sm:$0xff] }
 0x285   :  { %1459 = vmatpush.msrb.mxu0 %v5999_v33  ;;  %1499 = vmatpush.msrb.mxu2 %v5435_v13  ;;  %v6029_v13 = vld [vmem:[#allocation7 + $0x100] sm:$0xff] }
 0x286   :  { %1492 = vmatpush.msrb.mxu1 %v5448_v34  ;;  %1532 = vmatpush.msrb.mxu3 %v5451_v50  ;;  %v6035_v34 = vld [vmem:[#allocation7 + $0xe0] sm:$0xff] }
 0x287   :  { %1460 = vmatpush.msrb.mxu0 %v6005_v62  ;;  %1500 = vmatpush.msrb.mxu2 %v5445_v21  ;;  %v8917_v21 = vld [vmem:[#allocation67_spill] sm:$0xff]  ;;  %v8918_v50 = vld [vmem:[#allocation68_spill] sm:$0xff] }
 0x288   :  { %1319 = vmatmul.f32.vlgmr.msra.gmra.mxu0 %v5980_v52  ;;  %1359 = vmatmul.f32.vlgmr.msra.gmra.mxu2 %v5980_v52 }
 0x289   :  { %1461 = vmatpush.msrb.mxu0 %v6011_v44  ;;  %1493 = vmatmul.f32.vlgmr.msrb.gmra.mxu1 %v5980_v52 }
 0x28a   :  { %1501 = vmatpush.msrb.mxu2 %v8908_v23  ;;  %1533 = vmatmul.f32.vlgmr.msrb.gmra.mxu3 %v5980_v52  ;;  %v8960_v23 = vld [vmem:[#allocation36_spill] sm:$0xff] }
 0x28b   :  { %1462 = vmatpush.msrb.mxu0 %v6017_v19  ;;  %1630 = vmatpush.msra.mxu1 %v8909_v3  ;;  %v8961_v3 = vld [vmem:[#allocation43_spill] sm:$0xff] }
 0x28c   :  { %1502 = vmatpush.msrb.mxu2 %v8910_v24  ;;  %1670 = vmatpush.msra.mxu3 %v8911_v1  ;;  %v8962_v24 = vld [vmem:[#allocation99_spill] sm:$0xff]  ;;  %v8963_v1 = vld [vmem:[#allocation37_spill] sm:$0xff] }
 0x28d   :  { %1463 = vmatpush.msrb.mxu0 %v6023_v7  ;;  %1631 = vmatpush.msra.mxu1 %v8912_v9  ;;  %v8964_v9 = vld [vmem:[#allocation102_spill] sm:$0xff] }
 0x28e   :  { %1503 = vmatpush.msrb.mxu2 %v8913_v8  ;;  %1671 = vmatpush.msra.mxu3 %v8914_v39  ;;  %v8965_v8 = vld [vmem:[#allocation45_spill] sm:$0xff]  ;;  %v8966_v39 = vld [vmem:[#allocation103_spill] sm:$0xff] }
 0x28f   :  { %1464 = vmatpush.msrb.mxu0 %v6029_v13  ;;  %1632 = vmatpush.msra.mxu1 %v8915_v16  ;;  %v8967_v16 = vld [vmem:[#allocation39_spill] sm:$0xff] }
 0x290   :  { %1504 = vmatpush.msrb.mxu2 %v8916_v31  ;;  %1672 = vmatpush.msra.mxu3 %v8917_v21  ;;  %v8968_v31 = vld [vmem:[#allocation106_spill] sm:$0xff]  ;;  %v8969_v21 = vld [vmem:[#allocation47_spill] sm:$0xff] }
 0x291   :  { %1465 = vmatpush.msrb.mxu0 %v6035_v34  ;;  %1633 = vmatpush.msra.mxu1 %v8918_v50  ;;  %v8970_v50 = vld [vmem:[#allocation107_spill] sm:$0xff] }
 0x292   :  { %1505 = vmatpush.msrb.mxu2 %v8919_v20  ;;  %1673 = vmatpush.msra.mxu3 %v8920_v56  ;;  %v8971_v20 = vld [vmem:[#allocation41_spill] sm:$0xff] }
 0x293   :  { %1466 = vmatpush.msrb.mxu0 %v6041_v58  ;;  %1634 = vmatpush.msra.mxu1 %v8921_v46  ;;  %v8972_v56 = vld [vmem:[#allocation49_spill] sm:$0xff]  ;;  %v8973_v46 = vld [vmem:[#allocation44_spill] sm:$0xff] }
 0x294   :  { %1506 = vmatpush.msrb.mxu2 %v8922_v57  ;;  %1674 = vmatpush.msra.mxu3 %v8923_v0  ;;  %v8974_v57 = vld [vmem:[#allocation51_spill] sm:$0xff]  ;;  %v8975_v0 = vld [vmem:[#allocation46_spill] sm:$0xff] }
 0x295   :  { %1467 = vmatpush.msrb.mxu0 %v8924_v38  ;;  %1635 = vmatpush.msra.mxu1 %v8925_v12  ;;  %v8976_v38 = vld [vmem:[#allocation53_spill] sm:$0xff]  ;;  %v8977_v12 = vld [vmem:[#allocation48_spill] sm:$0xff] }
 0x296   :  { %1507 = vmatpush.msrb.mxu2 %v8926_v2  ;;  %1675 = vmatpush.msra.mxu3 %v8927_v30  ;;  %v8978_v2 = vld [vmem:[#allocation56_spill] sm:$0xff]  ;;  %v8979_v30 = vld [vmem:[#allocation50_spill] sm:$0xff] }
 0x297   :  { %1468 = vmatpush.msrb.mxu0 %v8928_v55  ;;  %1636 = vmatpush.msra.mxu1 %v8929_v37  ;;  %v8980_v55 = vld [vmem:[#allocation59_spill] sm:$0xff]  ;;  %v8981_v37 = vld [vmem:[#allocation52_spill] sm:$0xff] }
 0x298   :  { %1508 = vmatpush.msrb.mxu2 %v8930_v11  ;;  %1676 = vmatpush.msra.mxu3 %v8931_v43  ;;  %v8982_v11 = vld [vmem:[#allocation61_spill] sm:$0xff]  ;;  %v8983_v43 = vld [vmem:[#allocation84_spill] sm:$0xff] }
 0x299   :  { %1469 = vmatpush.msrb.mxu0 %v8932_v10  ;;  %1637 = vmatpush.msra.mxu1 %v8933_v59  ;;  %v8984_v10 = vld [vmem:[#allocation85_spill] sm:$0xff]  ;;  %v8985_v59 = vld [vmem:[#allocation88_spill] sm:$0xff] }
 0x29a   :  { %1509 = vmatpush.msrb.mxu2 %v8934_v47  ;;  %1677 = vmatpush.msra.mxu3 %v8935_v17  ;;  %v8986_v47 = vld [vmem:[#allocation89_spill] sm:$0xff]  ;;  %v8987_v17 = vld [vmem:[#allocation92_spill] sm:$0xff] }
 0x29b   :  { %1470 = vmatpush.msrb.mxu0 %v8936_v14  ;;  %1638 = vmatpush.msra.mxu1 %v8937_v4  ;;  %v8988_v14 = vld [vmem:[#allocation93_spill] sm:$0xff]  ;;  %v8989_v4 = vld [vmem:[#allocation96_spill] sm:$0xff] }
 0x29c   :  { %1510 = vmatpush.msrb.mxu2 %v8938_v5  ;;  %1678 = vmatpush.msra.mxu3 %v8939_v42  ;;  %v8990_v5 = vld [vmem:[#allocation97_spill] sm:$0xff]  ;;  %v8991_v42 = vld [vmem:[#allocation100_spill] sm:$0xff] }
 0x29d   :  { %1471 = vmatpush.msrb.mxu0 %v8940_v49  ;;  %1639 = vmatpush.msra.mxu1 %v8941_v18  ;;  %v8992_v49 = vld [vmem:[#allocation101_spill] sm:$0xff]  ;;  %v8993_v18 = vld [vmem:[#allocation104_spill] sm:$0xff] }
 0x29e   :  { %1511 = vmatpush.msrb.mxu2 %v8942_v6  ;;  %1679 = vmatpush.msra.mxu3 %v8943_v29  ;;  %v8994_v6 = vld [vmem:[#allocation105_spill] sm:$0xff]  ;;  %v8995_v29 = vld [vmem:[#allocation108_spill] sm:$0xff] }
 0x29f   :  { %1472 = vmatpush.msrb.mxu0 %v8944_v41  ;;  %1640 = vmatpush.msra.mxu1 %v8945_v28  ;;  %v8996_v41 = vld [vmem:[#allocation109_spill] sm:$0xff]  ;;  %v8997_v28 = vld [vmem:[#allocation110_spill] sm:$0xff] }
 0x2a0   :  { %1512 = vmatpush.msrb.mxu2 %v8946_v36  ;;  %1473 = vmatmul.f32.vlgmr.msrb.gmra.mxu0 %v5980_v52  ;;  %v8998_v36 = vld [vmem:[#allocation111_spill] sm:$0xff] }
 0x2a1   :  { %1513 = vmatmul.f32.vlgmr.msrb.gmra.mxu2 %v5980_v52  ;;  %1680 = vmatpush.msra.mxu3 %v8947_v25  ;;  %v8959_v52 = vld [vmem:[#allocation42_spill] sm:$0xff]  ;;  %v8999_v25 = vld [vmem:[#allocation112_spill] sm:$0xff] }
 0x2a2   :  { %1641 = vmatpush.msra.mxu1 %v8948_v22  ;;  %1610 = vmatpush.msra.mxu0 %v8949_v32  ;;  %v9000_v22 = vld [vmem:[#allocation113_spill] sm:$0xff]  ;;  %v9001_v32 = vld [vmem:[#allocation114_spill] sm:$0xff] }
 0x2a3   :  { %1681 = vmatpush.msra.mxu3 %v8950_v53  ;;  %1650 = vmatpush.msra.mxu2 %v8951_v26  ;;  %v9002_v53 = vld [vmem:[#allocation115_spill] sm:$0xff]  ;;  %v9003_v26 = vld [vmem:[#allocation116_spill] sm:$0xff] }
 0x2a4   :  { %1642 = vmatpush.msra.mxu1 %v8952_v35  ;;  %1611 = vmatpush.msra.mxu0 %v8953_v15  ;;  %v9004_v35 = vld [vmem:[#allocation117_spill] sm:$0xff]  ;;  %v9005_v15 = vld [vmem:[#allocation118_spill] sm:$0xff] }
 0x2a5   :  { %1682 = vmatpush.msra.mxu3 %v8954_v54  ;;  %1651 = vmatpush.msra.mxu2 %v8955_v51  ;;  %v9006_v54 = vld [vmem:[#allocation119_spill] sm:$0xff]  ;;  %v9007_v51 = vld [vmem:[#allocation120_spill] sm:$0xff] }
 0x2a6   :  { %1643 = vmatpush.msra.mxu1 %v8956_v27  ;;  %1612 = vmatpush.msra.mxu0 %v8957_v40  ;;  %v9008_v27 = vld [vmem:[#allocation121_spill] sm:$0xff]  ;;  %v9009_v40 = vld [vmem:[#allocation122_spill] sm:$0xff] }
 0x2a7   :  { %1683 = vmatpush.msra.mxu3 %v8958_v61  ;;  %1652 = vmatpush.msra.mxu2 %v8959_v52  ;;  %v9010_v61 = vld [vmem:[#allocation123_spill] sm:$0xff]  ;;  %v9011_v52 = vld [vmem:[#allocation124_spill] sm:$0xff] }
 0x2a8   :  { %1644 = vmatpush.msra.mxu1 %v8960_v23  ;;  %1613 = vmatpush.msra.mxu0 %v8961_v3  ;;  %v9012_v23 = vld [vmem:[#allocation125_spill] sm:$0xff]  ;;  %v9013_v3 = vld [vmem:[#allocation126_spill] sm:$0xff] }
 0x2a9   :  { %1684 = vmatpush.msra.mxu3 %v8962_v24  ;;  %1653 = vmatpush.msra.mxu2 %v8963_v1  ;;  %v9014_v24 = vld [vmem:[#allocation127_spill] sm:$0xff]  ;;  %v9015_v1 = vld [vmem:[#allocation128_spill] sm:$0xff] }
 0x2aa   :  { %1645 = vmatpush.msra.mxu1 %v8964_v9  ;;  %1614 = vmatpush.msra.mxu0 %v8965_v8  ;;  %v9016_v9 = vld [vmem:[#allocation129_spill] sm:$0xff]  ;;  %v9017_v8 = vld [vmem:[#allocation130_spill] sm:$0xff] }
 0x2ab   :  { %1685 = vmatpush.msra.mxu3 %v8966_v39  ;;  %1654 = vmatpush.msra.mxu2 %v8967_v16  ;;  %v9018_v39 = vld [vmem:[#allocation131_spill] sm:$0xff]  ;;  %v9019_v16 = vld [vmem:[#allocation132_spill] sm:$0xff] }
 0x2ac   :  { %1710 = vmatpush.msrb.mxu1 %v8968_v31  ;;  %1615 = vmatpush.msra.mxu0 %v8970_v50  ;;  %v9020_v31 = vld [vmem:[#allocation133_spill] sm:$0xff]  ;;  %v9022_v50 = vld [vmem:[#allocation135_spill] sm:$0xff] }
 0x2ad   :  { %1750 = vmatpush.msrb.mxu3 %v8969_v21  ;;  %1655 = vmatpush.msra.mxu2 %v8971_v20  ;;  %v9021_v21 = vld [vmem:[#allocation134_spill] sm:$0xff]  ;;  %v9023_v20 = vld [vmem:[#allocation136_spill] sm:$0xff] }
 0x2ae   :  { %1711 = vmatpush.msrb.mxu1 %v8972_v56  ;;  %1616 = vmatpush.msra.mxu0 %v8974_v57  ;;  %v9024_v56 = vld [vmem:[#allocation137_spill] sm:$0xff]  ;;  %v9026_v57 = vld [vmem:[#allocation139_spill] sm:$0xff] }
 0x2af   :  { %1751 = vmatpush.msrb.mxu3 %v8973_v46  ;;  %1656 = vmatpush.msra.mxu2 %v8975_v0  ;;  %v9025_v46 = vld [vmem:[#allocation138_spill] sm:$0xff]  ;;  %v9027_v0 = vld [vmem:[#allocation140_spill] sm:$0xff] }
 0x2b0   :  { %1712 = vmatpush.msrb.mxu1 %v8976_v38  ;;  %1617 = vmatpush.msra.mxu0 %v8978_v2  ;;  %v9028_v38 = vld [vmem:[#allocation141_spill] sm:$0xff]  ;;  %v9030_v2 = vld [vmem:[#allocation143_spill] sm:$0xff] }
 0x2b1   :  { %1752 = vmatpush.msrb.mxu3 %v8977_v12  ;;  %1657 = vmatpush.msra.mxu2 %v8979_v30  ;;  %v9029_v12 = vld [vmem:[#allocation142_spill] sm:$0xff]  ;;  %v9031_v30 = vld [vmem:[#allocation144_spill] sm:$0xff] }
 0x2b2   :  { %1713 = vmatpush.msrb.mxu1 %v8980_v55  ;;  %1618 = vmatpush.msra.mxu0 %v8982_v11  ;;  %v9032_v55 = vld [vmem:[#allocation145_spill] sm:$0xff]  ;;  %v9034_v11 = vld [vmem:[#allocation147_spill] sm:$0xff] }
 0x2b3   :  { %1753 = vmatpush.msrb.mxu3 %v8981_v37  ;;  %1658 = vmatpush.msra.mxu2 %v8983_v43  ;;  %v9033_v37 = vld [vmem:[#allocation146_spill] sm:$0xff]  ;;  %v9035_v43 = vld [vmem:[#allocation148_spill] sm:$0xff] }
 0x2b4   :  { %1714 = vmatpush.msrb.mxu1 %v8984_v10  ;;  %1619 = vmatpush.msra.mxu0 %v8986_v47  ;;  %v9036_v10 = vld [vmem:[#allocation149_spill] sm:$0xff]  ;;  %v9038_v47 = vld [vmem:[#allocation151_spill] sm:$0xff] }
 0x2b5   :  { %1754 = vmatpush.msrb.mxu3 %v8985_v59  ;;  %1659 = vmatpush.msra.mxu2 %v8987_v17  ;;  %v9037_v59 = vld [vmem:[#allocation150_spill] sm:$0xff]  ;;  %v9039_v17 = vld [vmem:[#allocation152_spill] sm:$0xff] }
 0x2b6   :  { %1715 = vmatpush.msrb.mxu1 %v8988_v14  ;;  %1620 = vmatpush.msra.mxu0 %v8990_v5  ;;  %v9040_v14 = vld [vmem:[#allocation153_spill] sm:$0xff]  ;;  %v9042_v5 = vld [vmem:[#allocation155_spill] sm:$0xff] }
 0x2b7   :  { %1755 = vmatpush.msrb.mxu3 %v8989_v4  ;;  %1660 = vmatpush.msra.mxu2 %v8991_v42  ;;  %v9041_v4 = vld [vmem:[#allocation154_spill] sm:$0xff]  ;;  %v9043_v42 = vld [vmem:[#allocation156_spill] sm:$0xff] }
 0x2b8   :  { %1716 = vmatpush.msrb.mxu1 %v8992_v49  ;;  %1621 = vmatpush.msra.mxu0 %v8994_v6  ;;  %v9044_v49 = vld [vmem:[#allocation157_spill] sm:$0xff]  ;;  %v9046_v6 = vld [vmem:[#allocation159_spill] sm:$0xff] }
 0x2b9   :  { %1756 = vmatpush.msrb.mxu3 %v8993_v18  ;;  %1661 = vmatpush.msra.mxu2 %v8995_v29  ;;  %v9045_v18 = vld [vmem:[#allocation158_spill] sm:$0xff]  ;;  %v9047_v29 = vld [vmem:[#allocation160_spill] sm:$0xff] }
 0x2ba   :  { %1717 = vmatpush.msrb.mxu1 %v8996_v41  ;;  %1622 = vmatpush.msra.mxu0 %v8998_v36  ;;  %v9048_v41 = vld [vmem:[#allocation161_spill] sm:$0xff]  ;;  %v9050_v36 = vld [vmem:[#allocation163_spill] sm:$0xff] }
 0x2bb   :  { %1757 = vmatpush.msrb.mxu3 %v8997_v28  ;;  %1662 = vmatpush.msra.mxu2 %v8999_v25  ;;  %v9049_v28 = vld [vmem:[#allocation162_spill] sm:$0xff]  ;;  %v9051_v25 = vld [vmem:[#allocation164_spill] sm:$0xff] }
 0x2bc   :  { %1718 = vmatpush.msrb.mxu1 %v9000_v22  ;;  %1623 = vmatpush.msra.mxu0 %v9002_v53  ;;  %v9052_v22 = vld [vmem:[#allocation165_spill] sm:$0xff] }
 0x2bd   :  { %1758 = vmatpush.msrb.mxu3 %v9001_v32  ;;  %1663 = vmatpush.msra.mxu2 %v9003_v26  ;;  %v9053_v32 = vld [vmem:[#allocation166_spill] sm:$0xff] }
 0x2be   :  { %1719 = vmatpush.msrb.mxu1 %v9004_v35  ;;  %1624 = vmatpush.msra.mxu0 %v9006_v54 }
 0x2bf   :  { %1759 = vmatpush.msrb.mxu3 %v9005_v15  ;;  %1664 = vmatpush.msra.mxu2 %v9007_v51  ;;  %v9054_v15 = vld [vmem:[#allocation54_spill] sm:$0xff] }
 0x2c0   :  { %1720 = vmatpush.msrb.mxu1 %v9008_v27  ;;  %1625 = vmatpush.msra.mxu0 %v9010_v61 }
 0x2c1   :  { %1760 = vmatpush.msrb.mxu3 %v9009_v40  ;;  %1665 = vmatpush.msra.mxu2 %v9011_v52  ;;  %v9055_v52 = vld [vmem:[#allocation55_spill] sm:$0xff] }
 0x2c2   :  { %1721 = vmatpush.msrb.mxu1 %v9012_v23  ;;  %1690 = vmatpush.msrb.mxu0 %v9014_v24  ;;  %v1454_v24 = vld [vmem:[#allocation4 + $0x68] sm:$0xff] }
 0x2c3   :  { %1761 = vmatpush.msrb.mxu3 %v9013_v3  ;;  %1730 = vmatpush.msrb.mxu2 %v9015_v1 }
 0x2c4   :  { %1722 = vmatpush.msrb.mxu1 %v9016_v9  ;;  %1691 = vmatpush.msrb.mxu0 %v9018_v39 }
 0x2c5   :  { %1762 = vmatpush.msrb.mxu3 %v9017_v8  ;;  %1731 = vmatpush.msrb.mxu2 %v9019_v16 }
 0x2c6   :  { %1723 = vmatpush.msrb.mxu1 %v9020_v31  ;;  %1692 = vmatpush.msrb.mxu0 %v9022_v50  ;;  %v9056_v50 = vld [vmem:[#allocation57_spill] sm:$0xff] }
 0x2c7   :  { %1763 = vmatpush.msrb.mxu3 %v9021_v21  ;;  %1732 = vmatpush.msrb.mxu2 %v9023_v20 }
 0x2c8   :  { %1724 = vmatpush.msrb.mxu1 %v9024_v56  ;;  %1693 = vmatpush.msrb.mxu0 %v9026_v57 }
 0x2c9   :  { %1764 = vmatpush.msrb.mxu3 %v9025_v46  ;;  %1733 = vmatpush.msrb.mxu2 %v9027_v0 }
 0x2ca   :  { %1725 = vmatpush.msrb.mxu1 %v9028_v38  ;;  %1694 = vmatpush.msrb.mxu0 %v9030_v2  ;;  %v1456_v2 = vld [vmem:[#allocation4 + $0x78] sm:$0xff] }
 0x2cb   :  { %1765 = vmatpush.msrb.mxu3 %v9029_v12  ;;  %1734 = vmatpush.msrb.mxu2 %v9031_v30 }
 0x2cc   :  { %1695 = vmatpush.msrb.mxu0 %v9032_v55 }
 0x2cd   :  { %1735 = vmatpush.msrb.mxu2 %v9033_v37 }
 0x2ce   :  { %1696 = vmatpush.msrb.mxu0 %v9034_v11  ;;  %v9057_v11 = vld [vmem:[#allocation58_spill] sm:$0xff] }
 0x2cf   :  { %1736 = vmatpush.msrb.mxu2 %v9035_v43 }
 0x2d0   :  { %1697 = vmatpush.msrb.mxu0 %v9036_v10 }
 0x2d1   :  { %1737 = vmatpush.msrb.mxu2 %v9037_v59 }
 0x2d2   :  { %1698 = vmatpush.msrb.mxu0 %v9038_v47 }
 0x2d3   :  { %1738 = vmatpush.msrb.mxu2 %v9039_v17 }
 0x2d4   :  { %1699 = vmatpush.msrb.mxu0 %v9040_v14 }
 0x2d5   :  { %1739 = vmatpush.msrb.mxu2 %v9041_v4 }
 0x2d6   :  { %1700 = vmatpush.msrb.mxu0 %v9042_v5 }
 0x2d7   :  { %1740 = vmatpush.msrb.mxu2 %v9043_v42 }
 0x2d8   :  { %1701 = vmatpush.msrb.mxu0 %v9044_v49 }
 0x2d9   :  { %1741 = vmatpush.msrb.mxu2 %v9045_v18 }
 0x2da   :  { %1702 = vmatpush.msrb.mxu0 %v9046_v6 }
 0x2db   :  { %1742 = vmatpush.msrb.mxu2 %v9047_v29 }
 0x2dc   :  { %1703 = vmatpush.msrb.mxu0 %v9048_v41 }
 0x2dd   :  { %1743 = vmatpush.msrb.mxu2 %v9049_v28 }
 0x2de   :  { %1704 = vmatpush.msrb.mxu0 %v9050_v36 }
 0x2df   :  { %1744 = vmatpush.msrb.mxu2 %v9051_v25  ;;  %v1453_v25 = vld [vmem:[#allocation4 + $0x60] sm:$0xff] }
 0x2e0   :  { %1705 = vmatpush.msrb.mxu0 %v9052_v22 }
 0x2e1   :  { %1745 = vmatpush.msrb.mxu2 %v9053_v32  ;;  %v6221_v32 = vld [vmem:[#allocation7 + $0x1c8] sm:$0xff] }
 0x2e4   :  { %v1260_v53 = vpop.f32.mrf.mxu1 }
 0x2ea   :  { %v1300_v51 = vpop.f32.mrf.mxu3 }
 0x2ec   :  { %v1340_v35 = vpop.f32.mrf.mxu1 }
 0x2f2   :  { %v1380_v16 = vpop.f32.mrf.mxu3 }
 0x2fc   :  { %v1240_v26 = vpop.f32.mrf.mxu0 }
 0x2fd   :  { %v1241_v54 = vadd.f32 %v1240_v26, %v9054_v15 }
 0x2ff   :  { %v1261_v27 = vadd.f32 %v1260_v53, %v1241_v54 }
 0x301   :  { %v3421_v40 = vmul.f32 -1.442695, %v1261_v27 }
 0x302   :  { %v1280_v61 = vpop.f32.mrf.mxu2 }
 0x303   :  { %3544 = vpow2.f32 %v3421_v40  ;;  %v1281_v23 = vadd.f32 %v1280_v61, %v9055_v52 }
 0x305   :  { %v1301_v3 = vadd.f32 %v1300_v51, %v1281_v23  ;;  %v1320_v12 = vpop.f32.mrf.mxu0 }
 0x306   :  { %v1494_v1 = vpop.f32.mrf.mxu1  ;;  %v1321_v43 = vadd.f32 %v1320_v12, %v9057_v11 }
 0x307   :  { %v3422_v9 = vmul.f32 -1.442695, %v1301_v3  ;;  %v1538_v8 = vadd.f32 %v1494_v1, %v1454_v24 }
 0x308   :  { %v1341_v14 = vadd.f32 %v1340_v35, %v1321_v43 }
 0x309   :  { %v3545_v39 = vpop.eup %3544  ;;  %3546 = vpow2.f32 %v3422_v9  ;;  %v3425_v56 = vmul.f32 -1.442695, %v1538_v8 }
 0x30a   :  { %v1386_v31 = vadd.f32 1.0, %v3545_v39 }
 0x30b   :  { %v1360_v21 = vpop.f32.mrf.mxu2 }
 0x30c   :  { %v1361_v20 = vadd.f32 %v1360_v21, %v9056_v50  ;;  %3548 = vrcp.f32 %v1386_v31  ;;  %v1398_v41 = vand.u32 2147483648, %v1386_v31  ;;  %vm1392_vm13 = vweird.f32 %v1386_v31 }
 0x30d   :  { %3550 = vpow2.f32 %v3425_v56  ;;  %v1534_v30 = vpop.f32.mrf.mxu3  ;;  %v1396_v36 = vand.u32 2147483647, %v1386_v31 }
 0x30e   :  { %v1381_v46 = vadd.f32 %v1380_v16, %v1361_v20  ;;  %v1540_v10 = vadd.f32 %v1534_v30, %v1456_v2  ;;  %v1399_v51 = vor.u32 1.1754944e-38, %v1398_v41  ;;  %v6212_v41 = vld [vmem:[#allocation7 + $0x1f8] sm:$0xff] }
 0x30f   :  { %v3547_v57 = vpop.eup %3546  ;;  %vm1397_vm1 = vcmp.eq.f32.partialorder %v1396_v36, 8.507059e+37 }
 0x310   :  { %v3423_v0 = vmul.f32 -1.442695, %v1381_v46  ;;  %v1405_v38 = vadd.f32 1.0, %v3547_v57  ;;  %v3426_v49 = vmul.f32 -1.442695, %v1540_v10 }
 0x312   :  { %3552 = vpow2.f32 %v3423_v0  ;;  %v3549_v55 = vpop.eup %3548  ;;  %v1417_v22 = vand.u32 2147483648, %v1405_v38  ;;  %v1415_v53 = vand.u32 2147483647, %v1405_v38  ;;  %vm1411_vm0 = vweird.f32 %v1405_v38 }
 0x313   :  { %3554 = vrcp.f32 %v1405_v38  ;;  %v1388_v37 = vmul.f32 %v3549_v55, %v1386_v31  ;;  %v3551_v47 = vpop.eup %3550  ;;  %vm1393_vm12 = vweird.f32 %v3549_v55 }
 0x314   :  { %v6183_v29 = vadd.f32 1.0, %v3551_v47  ;;  %vm6185_vm14 = vmor %vm1392_vm13, %vm1393_vm12  ;;  %v1418_v23 = vor.u32 1.1754944e-38, %v1417_v22  ;;  %vm1416_vm3 = vcmp.eq.f32.partialorder %v1415_v53, 8.507059e+37  ;;  %v6224_v53 = vld [vmem:[#allocation7 + $0x1d8] sm:$0xff] }
 0x315   :  { %v1389_v59 = vsub.f32 1.0, %v1388_v37 }
 0x316   :  { %vm1569_vm9 = vweird.f32 %v6183_v29 }
 0x317   :  { %v1390_v4 = vmul.f32 %v3549_v55, %v1389_v59 }
 0x318   :  { %v3553_v17 = vpop.eup %3552 }
 0x319   :  { %v3555_v5 = vpop.eup %3554  ;;  %v1425_v42 = vadd.f32 1.0, %v3553_v17  ;;  %v1391_v6 = vadd.f32 %v3549_v55, %v1390_v4 }
 0x31a   :  { %v1407_v18 = vmul.f32 %v3555_v5, %v1405_v38  ;;  %vm1412_vm15 = vweird.f32 %v3555_v5 }
 0x31b   :  { %3556 = vrcp.f32 %v1425_v42  ;;  %v1395_v54 = vsel %vm6185_vm14, %v3549_v55, %v1391_v6  ;;  %vm1413_vm2 = vmor %vm1411_vm0, %vm1412_vm15  ;;  %v1437_v12 = vand.u32 2147483648, %v1425_v42  ;;  %vm1431_vm5 = vweird.f32 %v1425_v42  ;;  %v6209_v6 = vld [vmem:[#allocation7 + $0x1e8] sm:$0xff] }
 0x31c   :  { %v1408_v28 = vsub.f32 1.0, %v1407_v18  ;;  %3558 = vtanh.f32 %v1341_v14  ;;  %v1400_v3 = vsel %vm1397_vm1, %v1399_v51, %v1395_v54  ;;  %v1435_v55 = vand.u32 2147483647, %v1425_v42  ;;  %v1455_v14 = vld [vmem:[#allocation4 + $0x70] sm:$0xff] }
 0x31d   :  { %3560 = vpow2.f32 %v3426_v49  ;;  %v1474_v26 = vpop.f32.mrf.mxu0  ;;  %v1438_v10 = vor.u32 1.1754944e-38, %v1437_v12  ;;  %v6258_v12 = vld [vmem:[#allocation7 + $0x148] sm:$0xff]  ;;  %v6316_v54 = vld [vmem:[#allocation7 + $0x1f0] sm:$0xff] }
 0x31e   :  { %v1409_v35 = vmul.f32 %v3555_v5, %v1408_v28  ;;  %3562 = vrcp.f32 %v6183_v29  ;;  %v1537_v27 = vadd.f32 %v1474_v26, %v1453_v25  ;;  %vm1436_vm7 = vcmp.eq.f32.partialorder %v1435_v55, 8.507059e+37 }
 0x31f   :  { %v1575_v25 = vand.u32 2147483648, %v6183_v29 }
 0x320   :  { %v1410_v40 = vadd.f32 %v3555_v5, %v1409_v35  ;;  %v3424_v24 = vmul.f32 -1.442695, %v1537_v27  ;;  %v1573_v35 = vand.u32 2147483647, %v6183_v29  ;;  %v6234_v27 = vld [vmem:[#allocation7 + $0x1a8] sm:$0xff] }
 0x321   :  { %v3557_v61 = vpop.eup %3556 }
 0x322   :  { %v3559_v1 = vpop.eup %3558  ;;  %v1414_v9 = vsel %vm1413_vm2, %v3555_v5, %v1410_v40  ;;  %v1427_v8 = vmul.f32 %v3557_v61, %v1425_v42  ;;  %3564 = vpow2.f32 %v3424_v24  ;;  %vm1432_vm4 = vweird.f32 %v3557_v61  ;;  %v6237_v40 = vld [vmem:[#allocation7 + $0x1b8] sm:$0xff] }
 0x323   :  { %v3561_v39 = vpop.eup %3560  ;;  %v1419_v16 = vsel %vm1416_vm3, %v1418_v23, %v1414_v9  ;;  %v1442_v20 = vmul.f32 %v3559_v1, %v1400_v3  ;;  %vm1433_vm6 = vmor %vm1431_vm5, %vm1432_vm4  ;;  %v1576_v3 = vor.u32 1.1754944e-38, %v1575_v25  ;;  %v6244_v1 = vld [vmem:[#allocation7 + $0x188] sm:$0xff]  ;;  %v6247_v9 = vld [vmem:[#allocation7 + $0x198] sm:$0xff]  ;;  %vm1574_vm13 = vcmp.eq.f32.partialorder %v1573_v35, 8.507059e+37 }
 0x324   :  { %v6192_v31 = vpop.eup %3562  ;;  %v1441_v21 = vmul.f32 %v1419_v16, %v5920_v45  ;;  %v1428_v56 = vsub.f32 1.0, %v1427_v8  ;;  %v6199_v38 = vadd.f32 1.0, %v3561_v39  ;;  %v1514_v4 = vpop.f32.mrf.mxu2  ;;  %v6309_v35 = vld [vmem:[#allocation7 + $0x98] sm:$0xff] }
 0x325   :  { %v1565_v0 = vmul.f32 %v6192_v31, %v6183_v29  ;;  %v1539_v18 = vadd.f32 %v1514_v4, %v1455_v14  ;;  %vm1570_vm8 = vweird.f32 %v6192_v31  ;;  %v6285_v14 = vld [vmem:[#allocation7 + $0xe8] sm:$0xff]  ;;  %v6288_v4 = vld [vmem:[#allocation7 + $0xf8] sm:$0xff] }
 0x326   :  { %v6195_v46 = vadd.f32 %v1442_v20, %v1441_v21  ;;  %v1429_v57 = vmul.f32 %v3557_v61, %v1428_v56  ;;  %vm6229_vm10 = vmor %vm1569_vm9, %vm1570_vm8  ;;  %v6254_v21 = vld [vmem:[#allocation7 + $0x178] sm:$0xff]  ;;  %vm1589_vm1 = vweird.f32 %v6199_v38 }
 0x327   :  { %v1566_v45 = vsub.f32 1.0, %v1565_v0 }
 0x328   :  { %3566 = vtanh.f32 %v6195_v46  ;;  %v1430_v2 = vadd.f32 %v3557_v61, %v1429_v57  ;;  %v3565_v30 = vpop.eup %3564 }
 0x329   :  { %v6202_v37 = vadd.f32 1.0, %v3565_v30  ;;  %3568 = vrcp.f32 %v6199_v38  ;;  %v1567_v17 = vmul.f32 %v6192_v31, %v1566_v45  ;;  %v6268_v45 = vld [vmem:[#allocation7 + $0x138] sm:$0xff] }
 0x32a   :  { %v1434_v43 = vsel %vm1433_vm6, %v3557_v61, %v1430_v2  ;;  %v6261_v2 = vld [vmem:[#allocation7 + $0x158] sm:$0xff] }
 0x32b   :  { %3570 = vrcp.f32 %v6202_v37  ;;  %v1439_v47 = vsel %vm1436_vm7, %v1438_v10, %v1434_v43  ;;  %v1568_v36 = vadd.f32 %v6192_v31, %v1567_v17  ;;  %v1556_v51 = vand.u32 2147483648, %v6202_v37 }
 0x32c   :  { %3572 = vtanh.f32 %v1539_v18  ;;  %v1554_v23 = vand.u32 2147483647, %v6202_v37  ;;  %vm1550_vm12 = vweird.f32 %v6202_v37  ;;  %v1593_v17 = vand.u32 2147483647, %v6199_v38  ;;  %v6295_v18 = vld [vmem:[#allocation7 + $0xd8] sm:$0xff] }
 0x32d   :  { %v1572_v29 = vsel %vm6229_vm10, %v6192_v31, %v1568_v36  ;;  %v1557_v39 = vor.u32 1.1754944e-38, %v1556_v51  ;;  %v6251_v31 = vld [vmem:[#allocation7 + $0x168] sm:$0xff]  ;;  %v6301_v36 = vld [vmem:[#allocation7 + $0xb8] sm:$0xff] }
 0x32e   :  { %v3567_v59 = vpop.eup %3566  ;;  %v1577_v16 = vsel %vm1574_vm13, %v1576_v3, %v1572_v29  ;;  %vm1555_vm15 = vcmp.eq.f32.partialorder %v1554_v23, 8.507059e+37  ;;  %vm1594_vm3 = vcmp.eq.f32.partialorder %v1593_v17, 8.507059e+37  ;;  %v6319_v51 = vld [vmem:[#allocation7 + $0x68] sm:$0xff]  ;;  %v6326_v23 = vld [vmem:[#allocation7 + $0x1d0] sm:$0xff] }
 0x32f   :  { %v1445_v5 = vmul.f32 %v3567_v59, %v1439_v47  ;;  %v6207_v49 = vpop.eup %3568  ;;  %v1599_v30 = vmul.f32 %v1577_v16, %v5961_v48  ;;  %v6275_v59 = vld [vmem:[#allocation7 + $0x108] sm:$0xff]  ;;  %v6278_v48 = vld [vmem:[#allocation7 + $0x118] sm:$0xff]  ;;  %v1595_v47 = vand.u32 2147483648, %v6199_v38  ;;  %v6336_v3 = vld [vmem:[#allocation7 + $0x1b0] sm:$0xff] }
 0x330   :  { %v1585_v22 = vmul.f32 %v6207_v49, %v6199_v38  ;;  %vm1590_vm0 = vweird.f32 %v6207_v49  ;;  %v6329_v29 = vld [vmem:[#allocation7 + $0x48] sm:$0xff]  ;;  %v6364_v16 = vld [vmem:[#allocation9 + $0x3e0] sm:$0xff]  ;;  %v6407_v17 = vld [vmem:[#allocation7 + $0xd0] sm:$0xff] }
 0x331   :  { %1449 = vst [vmem:[#allocation12 + $0x28] sm:$0xff] %v1445_v5  ;;  %1646 = vmatmul.f32.vlgmr.msra.gmra.mxu1 %v1445_v5  ;;  %1686 = vmatmul.f32.vlgmr.msra.gmra.mxu3 %v1445_v5  ;;  %v3571_v42 = vpop.eup %3570  ;;  %vm1591_vm2 = vmor %vm1589_vm1, %vm1590_vm0  ;;  %v1596_v38 = vor.u32 1.1754944e-38, %v1595_v47  ;;  %v6404_v47 = vld [vmem:[#allocation9 + $0x360] sm:$0xff] }
 0x332   :  { %1864 = vmatpush.msra.mxu1 %v6209_v6  ;;  %1904 = vmatpush.msra.mxu3 %v6212_v41  ;;  %v1546_v28 = vmul.f32 %v3571_v42, %v6202_v37  ;;  %vm1551_vm11 = vweird.f32 %v3571_v42  ;;  %v1586_v24 = vsub.f32 1.0, %v1585_v22  ;;  %v3573_v56 = vpop.eup %3572  ;;  %v6265_v37 = vld [vmem:[#allocation7 + $0x128] sm:$0xff]  ;;  %9063 = vst [vmem:[#allocation62_spill] sm:$0xff] %v6364_v16 }
 0x333   :  { %vm1552_vm14 = vmor %vm1550_vm12, %vm1551_vm11  ;;  %9075 = vst [vmem:[#allocation69_spill] sm:$0xff] %v6404_v47 }
 0x334   :  { %1865 = vmatpush.msra.mxu1 %v6221_v32  ;;  %1905 = vmatpush.msra.mxu3 %v6224_v53  ;;  %v1547_v26 = vsub.f32 1.0, %v1546_v28  ;;  %v1587_v57 = vmul.f32 %v6207_v49, %v1586_v24  ;;  %v6298_v28 = vld [vmem:[#allocation7 + $0xa8] sm:$0xff]  ;;  %9076 = vst [vmem:[#allocation70_spill] sm:$0xff] %v6407_v17 }
 0x335   :  { %v6339_v24 = vld [vmem:[#allocation7 + $0x28] sm:$0xff] }
 0x336   :  { %1866 = vmatpush.msra.mxu1 %v6234_v27  ;;  %1906 = vmatpush.msra.mxu3 %v6237_v40  ;;  %v1548_v61 = vmul.f32 %v3571_v42, %v1547_v26  ;;  %v1588_v10 = vadd.f32 %v6207_v49, %v1587_v57  ;;  %v6306_v26 = vld [vmem:[#allocation7 + $0x88] sm:$0xff]  ;;  %v6377_v57 = vld [vmem:[#allocation7 + $0x130] sm:$0xff] }
 0x337   :  { %9067 = vst [vmem:[#allocation18_spill] sm:$0xff] %v6377_v57 }
 0x338   :  { %1867 = vmatpush.msra.mxu1 %v6244_v1  ;;  %1907 = vmatpush.msra.mxu3 %v6247_v9  ;;  %v1549_v8 = vadd.f32 %v3571_v42, %v1548_v61  ;;  %v6322_v61 = vld [vmem:[#allocation7 + $0x78] sm:$0xff] }
 0x339   :  { %1726 = vmatmul.f32.vlgmr.msrb.gmra.mxu1 %v1445_v5  ;;  %1766 = vmatmul.f32.vlgmr.msrb.gmra.mxu3 %v1445_v5  ;;  %v1592_v5 = vsel %vm1591_vm2, %v6207_v49, %v1588_v10  ;;  %v6397_v10 = vld [vmem:[#allocation7 + $0xf0] sm:$0xff] }
 0x33a   :  { %1868 = vmatpush.msra.mxu1 %v6251_v31  ;;  %1908 = vmatpush.msra.mxu3 %v6254_v21  ;;  %v1553_v20 = vsel %vm1552_vm14, %v3571_v42, %v1549_v8  ;;  %v6292_v42 = vld [vmem:[#allocation7 + $0xc8] sm:$0xff]  ;;  %v1597_v49 = vsel %vm1594_vm3, %v1596_v38, %v1592_v5  ;;  %v6346_v8 = vld [vmem:[#allocation7 + $0x190] sm:$0xff]  ;;  %9073 = vst [vmem:[#allocation20_spill] sm:$0xff] %v6397_v10  ;;  %v6413_v5 = vld [vmem:[#allocation7 + $0xa0] sm:$0xff] }
 0x33b   :  { %v1558_v0 = vsel %vm1555_vm15, %v1557_v39, %v1553_v20  ;;  %v6349_v39 = vld [vmem:[#allocation7 + $0x8] sm:$0xff]  ;;  %v6367_v20 = vld [vmem:[#allocation7 + $0x150] sm:$0xff]  ;;  %9078 = vst [vmem:[#allocation71_spill] sm:$0xff] %v6413_v5  ;;  %v6416_v38 = vld [vmem:[#allocation9 + $0x340] sm:$0xff] }
 0x33c   :  { %1869 = vmatpush.msra.mxu1 %v6258_v12  ;;  %1909 = vmatpush.msra.mxu3 %v6261_v2  ;;  %v1600_v55 = vmul.f32 %v3573_v56, %v1558_v0  ;;  %9064 = vst [vmem:[#allocation63_spill] sm:$0xff] %v6367_v20  ;;  %v6370_v56 = vld [vmem:[#allocation9 + $0x3e8] sm:$0xff]  ;;  %v6384_v0 = vld [vmem:[#allocation9 + $0x3a0] sm:$0xff] }
 0x33d   :  { %9065 = vst [vmem:[#allocation17_spill] sm:$0xff] %v6370_v56 }
 0x33e   :  { %1870 = vmatpush.msra.mxu1 %v6265_v37  ;;  %1910 = vmatpush.msra.mxu3 %v6268_v45  ;;  %v6271_v43 = vadd.f32 %v1600_v55, %v1599_v30  ;;  %9069 = vst [vmem:[#allocation66_spill] sm:$0xff] %v6384_v0  ;;  %v6387_v30 = vld [vmem:[#allocation7 + $0x110] sm:$0xff]  ;;  %v6394_v55 = vld [vmem:[#allocation9 + $0x380] sm:$0xff] }
 0x33f   :  { %9070 = vst [vmem:[#allocation19_spill] sm:$0xff] %v6387_v30 }
 0x340   :  { %1871 = vmatpush.msra.mxu1 %v6275_v59  ;;  %1911 = vmatpush.msra.mxu3 %v6278_v48  ;;  %3574 = vtanh.f32 %v6271_v43  ;;  %9072 = vst [vmem:[#allocation68_spill] sm:$0xff] %v6394_v55 }
 0x341   :  { %9079 = vst [vmem:[#allocation72_spill] sm:$0xff] %v6416_v38 }
 0x342   :  { %1872 = vmatpush.msra.mxu1 %v6285_v14  ;;  %1912 = vmatpush.msra.mxu3 %v6288_v4 }
 0x344   :  { %1873 = vmatpush.msra.mxu1 %v6292_v42  ;;  %1913 = vmatpush.msra.mxu3 %v6295_v18 }
 0x346   :  { %1874 = vmatpush.msra.mxu1 %v6298_v28  ;;  %1914 = vmatpush.msra.mxu3 %v6301_v36  ;;  %v3575_v25 = vpop.eup %3574 }
 0x347   :  { %v6304_v22 = vmul.f32 %v3575_v25, %v1597_v49  ;;  %v6422_v25 = vld [vmem:[#allocation9 + $0x348] sm:$0xff]  ;;  %v6425_v49 = vld [vmem:[#allocation7 + $0x80] sm:$0xff] }
 0x348   :  { %1875 = vmatpush.msra.mxu1 %v6306_v26  ;;  %1915 = vmatpush.msra.mxu3 %v6309_v35  ;;  %9081 = vst [vmem:[#allocation73_spill] sm:$0xff] %v6422_v25 }
 0x349   :  { %1607 = vst [vmem:[#allocation12 + $0x30] sm:$0xff] %v6304_v22  ;;  %1626 = vmatmul.f32.vlgmr.msra.gmra.mxu0 %v6304_v22  ;;  %1666 = vmatmul.f32.vlgmr.msra.gmra.mxu2 %v6304_v22 }
 0x34a   :  { %1844 = vmatpush.msra.mxu0 %v5987_v63  ;;  %1884 = vmatpush.msra.mxu2 %v6316_v54  ;;  %v6332_v63 = vld [vmem:[#allocation7 + $0x58] sm:$0xff]  ;;  %9082 = vst [vmem:[#allocation74_spill] sm:$0xff] %v6425_v49 }
 0x34b   :  { %1876 = vmatpush.msra.mxu1 %v6319_v51  ;;  %1916 = vmatpush.msra.mxu3 %v6322_v61 }
 0x34c   :  { %1845 = vmatpush.msra.mxu0 %v5993_v60  ;;  %1885 = vmatpush.msra.mxu2 %v6326_v23  ;;  %v6342_v60 = vld [vmem:[#allocation7 + $0x38] sm:$0xff] }
 0x34d   :  { %1877 = vmatpush.msra.mxu1 %v6329_v29  ;;  %1917 = vmatpush.msra.mxu3 %v6332_v63 }
 0x34e   :  { %1846 = vmatpush.msra.mxu0 %v5999_v33  ;;  %1886 = vmatpush.msra.mxu2 %v6336_v3  ;;  %v6352_v33 = vld [vmem:[#allocation7 + $0x18] sm:$0xff] }
 0x34f   :  { %1878 = vmatpush.msra.mxu1 %v6339_v24  ;;  %1918 = vmatpush.msra.mxu3 %v6342_v60 }
 0x350   :  { %1847 = vmatpush.msra.mxu0 %v6005_v62  ;;  %1887 = vmatpush.msra.mxu2 %v6346_v8  ;;  %v6359_v62 = vld [vmem:[#allocation7 + $0x170] sm:$0xff] }
 0x351   :  { %1879 = vmatpush.msra.mxu1 %v6349_v39  ;;  %1919 = vmatpush.msra.mxu3 %v6352_v33  ;;  %9062 = vst [vmem:[#allocation60_spill] sm:$0xff] %v6359_v62 }
 0x352   :  { %1706 = vmatmul.f32.vlgmr.msrb.gmra.mxu0 %v6304_v22  ;;  %1746 = vmatmul.f32.vlgmr.msrb.gmra.mxu2 %v6304_v22 }
 0x353   :  { %1848 = vmatpush.msra.mxu0 %v6011_v44  ;;  %1880 = vmatmul.f32.vlgmr.msra.gmra.mxu1 %v6304_v22  ;;  %v6374_v44 = vld [vmem:[#allocation9 + $0x3c0] sm:$0xff] }
 0x354   :  { %1888 = vmatpush.msra.mxu2 %v6359_v62  ;;  %1920 = vmatmul.f32.vlgmr.msra.gmra.mxu3 %v6304_v22  ;;  %9066 = vst [vmem:[#allocation64_spill] sm:$0xff] %v6374_v44 }
 0x355   :  { %1849 = vmatpush.msra.mxu0 %v6017_v19  ;;  %2017 = vmatpush.msrb.mxu1 %v6364_v16  ;;  %v6380_v19 = vld [vmem:[#allocation9 + $0x3c8] sm:$0xff] }
 0x356   :  { %1889 = vmatpush.msra.mxu2 %v6367_v20  ;;  %2057 = vmatpush.msrb.mxu3 %v6370_v56  ;;  %9068 = vst [vmem:[#allocation65_spill] sm:$0xff] %v6380_v19 }
 0x357   :  { %1850 = vmatpush.msra.mxu0 %v6023_v7  ;;  %2018 = vmatpush.msrb.mxu1 %v6374_v44  ;;  %v6390_v7 = vld [vmem:[#allocation9 + $0x3a8] sm:$0xff] }
 0x358   :  { %1890 = vmatpush.msra.mxu2 %v6377_v57  ;;  %2058 = vmatpush.msrb.mxu3 %v6380_v19  ;;  %9071 = vst [vmem:[#allocation67_spill] sm:$0xff] %v6390_v7 }
 0x359   :  { %1851 = vmatpush.msra.mxu0 %v6029_v13  ;;  %2019 = vmatpush.msrb.mxu1 %v6384_v0  ;;  %v6400_v13 = vld [vmem:[#allocation9 + $0x388] sm:$0xff] }
 0x35a   :  { %1891 = vmatpush.msra.mxu2 %v6387_v30  ;;  %2059 = vmatpush.msrb.mxu3 %v6390_v7  ;;  %9074 = vst [vmem:[#allocation21_spill] sm:$0xff] %v6400_v13  ;;  %v1841_v7 = vld [vmem:[#allocation4 + $0x88] sm:$0xff] }
 0x35b   :  { %1852 = vmatpush.msra.mxu0 %v6035_v34  ;;  %2020 = vmatpush.msrb.mxu1 %v6394_v55  ;;  %v6410_v34 = vld [vmem:[#allocation9 + $0x368] sm:$0xff] }
 0x35c   :  { %1892 = vmatpush.msra.mxu2 %v6397_v10  ;;  %2060 = vmatpush.msrb.mxu3 %v6400_v13  ;;  %9077 = vst [vmem:[#allocation22_spill] sm:$0xff] %v6410_v34 }
 0x35d   :  { %1853 = vmatpush.msra.mxu0 %v6041_v58  ;;  %2021 = vmatpush.msrb.mxu1 %v6404_v47  ;;  %v6419_v58 = vld [vmem:[#allocation7 + $0xb0] sm:$0xff] }
 0x35e   :  { %1893 = vmatpush.msra.mxu2 %v6407_v17  ;;  %2061 = vmatpush.msrb.mxu3 %v6410_v34  ;;  %9080 = vst [vmem:[#allocation24_spill] sm:$0xff] %v6419_v58  ;;  %v6428_v34 = vld [vmem:[#allocation9 + $0x320] sm:$0xff] }
 0x35f   :  { %1854 = vmatpush.msra.mxu0 %v6413_v5  ;;  %2022 = vmatpush.msrb.mxu1 %v6416_v38  ;;  %9083 = vst [vmem:[#allocation26_spill] sm:$0xff] %v6428_v34  ;;  %v6431_v5 = vld [vmem:[#allocation7 + $0x90] sm:$0xff]  ;;  %v6434_v38 = vld [vmem:[#allocation9 + $0x328] sm:$0xff] }
 0x360   :  { %1894 = vmatpush.msra.mxu2 %v6419_v58  ;;  %2062 = vmatpush.msrb.mxu3 %v6422_v25  ;;  %9084 = vst [vmem:[#allocation75_spill] sm:$0xff] %v6431_v5  ;;  %v6437_v58 = vld [vmem:[#allocation7 + $0x60] sm:$0xff] }
 0x361   :  { %1855 = vmatpush.msra.mxu0 %v6425_v49  ;;  %2023 = vmatpush.msrb.mxu1 %v6428_v34  ;;  %9085 = vst [vmem:[#allocation76_spill] sm:$0xff] %v6434_v38  ;;  %v6440_v25 = vld [vmem:[#allocation9 + $0x300] sm:$0xff]  ;;  %v6443_v49 = vld [vmem:[#allocation7 + $0x70] sm:$0xff]  ;;  %v6446_v34 = vld [vmem:[#allocation9 + $0x308] sm:$0xff] }
 0x362   :  { %1895 = vmatpush.msra.mxu2 %v6431_v5  ;;  %2063 = vmatpush.msrb.mxu3 %v6434_v38  ;;  %9086 = vst [vmem:[#allocation28_spill] sm:$0xff] %v6437_v58  ;;  %v6449_v5 = vld [vmem:[#allocation7 + $0x40] sm:$0xff] }
 0x363   :  { %1856 = vmatpush.msra.mxu0 %v6437_v58  ;;  %9087 = vst [vmem:[#allocation77_spill] sm:$0xff] %v6440_v25  ;;  %2024 = vmatpush.msrb.mxu1 %v6440_v25  ;;  %v6452_v38 = vld [vmem:[#allocation9 + $0x2e0] sm:$0xff]  ;;  %v6455_v58 = vld [vmem:[#allocation7 + $0x50] sm:$0xff]  ;;  %v6458_v25 = vld [vmem:[#allocation9 + $0x2e8] sm:$0xff] }
 0x364   :  { %9088 = vst [vmem:[#allocation78_spill] sm:$0xff] %v6443_v49  ;;  %1896 = vmatpush.msra.mxu2 %v6443_v49  ;;  %2064 = vmatpush.msrb.mxu3 %v6446_v34  ;;  %v6461_v49 = vld [vmem:[#allocation7 + $0x20] sm:$0xff] }
 0x365   :  { %9089 = vst [vmem:[#allocation30_spill] sm:$0xff] %v6446_v34  ;;  %1857 = vmatpush.msra.mxu0 %v6449_v5  ;;  %2025 = vmatpush.msrb.mxu1 %v6452_v38  ;;  %v6464_v34 = vld [vmem:[#allocation9 + $0x2c0] sm:$0xff] }
 0x366   :  { %9090 = vst [vmem:[#allocation79_spill] sm:$0xff] %v6449_v5  ;;  %1897 = vmatpush.msra.mxu2 %v6455_v58  ;;  %2065 = vmatpush.msrb.mxu3 %v6458_v25  ;;  %v6467_v5 = vld [vmem:[#allocation7 + $0x30] sm:$0xff] }
 0x367   :  { %9091 = vst [vmem:[#allocation23_spill] sm:$0xff] %v6452_v38  ;;  %1858 = vmatpush.msra.mxu0 %v6461_v49  ;;  %2026 = vmatpush.msrb.mxu1 %v6464_v34  ;;  %v6470_v38 = vld [vmem:[#allocation9 + $0x2c8] sm:$0xff] }
 0x368   :  { %9092 = vst [vmem:[#allocation80_spill] sm:$0xff] %v6455_v58  ;;  %1898 = vmatpush.msra.mxu2 %v6467_v5  ;;  %2066 = vmatpush.msrb.mxu3 %v6470_v38  ;;  %v6473_v58 = vld [vmem:[#allocation7] sm:$0xff] }
 0x369   :  { %9093 = vst [vmem:[#allocation32_spill] sm:$0xff] %v6458_v25  ;;  %1859 = vmatpush.msra.mxu0 %v6473_v58  ;;  %v6476_v25 = vld [vmem:[#allocation9 + $0x2a0] sm:$0xff] }
 0x36a   :  { %9094 = vst [vmem:[#allocation81_spill] sm:$0xff] %v6461_v49  ;;  %2027 = vmatpush.msrb.mxu1 %v6476_v25  ;;  %v6479_v49 = vld [vmem:[#allocation7 + $0x10] sm:$0xff]  ;;  %1860 = vmatmul.f32.vlgmr.msra.gmra.mxu0 %v6304_v22 }
 0x36b   :  { %9095 = vst [vmem:[#allocation25_spill] sm:$0xff] %v6464_v34  ;;  %1899 = vmatpush.msra.mxu2 %v6479_v49 }
 0x36c   :  { %9096 = vst [vmem:[#allocation82_spill] sm:$0xff] %v6467_v5  ;;  %1900 = vmatmul.f32.vlgmr.msra.gmra.mxu2 %v6304_v22  ;;  %v6484_v5 = vld [vmem:[#allocation9 + $0x2a8] sm:$0xff]  ;;  %v6499_v22 = vld [vmem:[#allocation9 + $0x260] sm:$0xff] }
 0x36d   :  { %9097 = vst [vmem:[#allocation34_spill] sm:$0xff] %v6470_v38  ;;  %2067 = vmatpush.msrb.mxu3 %v6484_v5  ;;  %v6487_v38 = vld [vmem:[#allocation9 + $0x280] sm:$0xff] }
 0x36e   :  { %9098 = vst [vmem:[#allocation83_spill] sm:$0xff] %v6473_v58  ;;  %2028 = vmatpush.msrb.mxu1 %v6487_v38  ;;  %v6490_v58 = vld [vmem:[#allocation9 + $0x1e0] sm:$0xff] }
 0x36f   :  { %9099 = vst [vmem:[#allocation27_spill] sm:$0xff] %v6476_v25  ;;  %1997 = vmatpush.msrb.mxu0 %v6490_v58  ;;  %v6493_v25 = vld [vmem:[#allocation9 + $0x288] sm:$0xff] }
 0x370   :  { %9100 = vst [vmem:[#allocation86_spill] sm:$0xff] %v6479_v49  ;;  %2068 = vmatpush.msrb.mxu3 %v6493_v25  ;;  %v6496_v49 = vld [vmem:[#allocation9 + $0x1e8] sm:$0xff]  ;;  %2029 = vmatpush.msrb.mxu1 %v6499_v22 }
 0x371   :  { %9101 = vst [vmem:[#allocation35_spill] sm:$0xff] %v6484_v5  ;;  %2037 = vmatpush.msrb.mxu2 %v6496_v49  ;;  %v6502_v5 = vld [vmem:[#allocation9 + $0x1c0] sm:$0xff] }
 0x372   :  { %9102 = vst [vmem:[#allocation87_spill] sm:$0xff] %v6487_v38  ;;  %1998 = vmatpush.msrb.mxu0 %v6502_v5  ;;  %v6505_v38 = vld [vmem:[#allocation9 + $0x268] sm:$0xff] }
 0x373   :  { %9103 = vst [vmem:[#allocation29_spill] sm:$0xff] %v6490_v58  ;;  %2069 = vmatpush.msrb.mxu3 %v6505_v38  ;;  %v6508_v58 = vld [vmem:[#allocation9 + $0x1c8] sm:$0xff] }
 0x374   :  { %9104 = vst [vmem:[#allocation90_spill] sm:$0xff] %v6493_v25  ;;  %2038 = vmatpush.msrb.mxu2 %v6508_v58  ;;  %v6511_v25 = vld [vmem:[#allocation9 + $0x240] sm:$0xff] }
 0x375   :  { %9105 = vst [vmem:[#allocation38_spill] sm:$0xff] %v6496_v49  ;;  %2030 = vmatpush.msrb.mxu1 %v6511_v25  ;;  %v6514_v49 = vld [vmem:[#allocation9 + $0x1a0] sm:$0xff] }
 0x376   :  { %9106 = vst [vmem:[#allocation91_spill] sm:$0xff] %v6499_v22  ;;  %1999 = vmatpush.msrb.mxu0 %v6514_v49  ;;  %v6517_v22 = vld [vmem:[#allocation9 + $0x248] sm:$0xff] }
 0x377   :  { %9107 = vst [vmem:[#allocation31_spill] sm:$0xff] %v6502_v5  ;;  %2070 = vmatpush.msrb.mxu3 %v6517_v22  ;;  %v6520_v5 = vld [vmem:[#allocation9 + $0x1a8] sm:$0xff] }
 0x378   :  { %9108 = vst [vmem:[#allocation94_spill] sm:$0xff] %v6505_v38  ;;  %2039 = vmatpush.msrb.mxu2 %v6520_v5  ;;  %v6523_v38 = vld [vmem:[#allocation9 + $0x220] sm:$0xff] }
 0x379   :  { %9109 = vst [vmem:[#allocation40_spill] sm:$0xff] %v6508_v58  ;;  %2031 = vmatpush.msrb.mxu1 %v6523_v38  ;;  %v6526_v58 = vld [vmem:[#allocation9 + $0x180] sm:$0xff] }
 0x37a   :  { %9110 = vst [vmem:[#allocation95_spill] sm:$0xff] %v6511_v25  ;;  %2000 = vmatpush.msrb.mxu0 %v6526_v58  ;;  %v6529_v25 = vld [vmem:[#allocation9 + $0x228] sm:$0xff] }
 0x37b   :  { %9111 = vst [vmem:[#allocation33_spill] sm:$0xff] %v6514_v49  ;;  %2071 = vmatpush.msrb.mxu3 %v6529_v25  ;;  %v6532_v49 = vld [vmem:[#allocation9 + $0x188] sm:$0xff] }
 0x37c   :  { %9112 = vst [vmem:[#allocation98_spill] sm:$0xff] %v6517_v22  ;;  %2040 = vmatpush.msrb.mxu2 %v6532_v49  ;;  %v6535_v22 = vld [vmem:[#allocation9 + $0x200] sm:$0xff] }
 0x37d   :  { %9113 = vst [vmem:[#allocation42_spill] sm:$0xff] %v6520_v5  ;;  %2032 = vmatpush.msrb.mxu1 %v6535_v22  ;;  %v6538_v5 = vld [vmem:[#allocation9 + $0x160] sm:$0xff] }
 0x37e   :  { %9114 = vst [vmem:[#allocation36_spill] sm:$0xff] %v6523_v38  ;;  %2001 = vmatpush.msrb.mxu0 %v6538_v5  ;;  %v6541_v38 = vld [vmem:[#allocation9 + $0x208] sm:$0xff] }
 0x37f   :  { %9115 = vst [vmem:[#allocation43_spill] sm:$0xff] %v6526_v58  ;;  %2072 = vmatpush.msrb.mxu3 %v6541_v38  ;;  %v6544_v58 = vld [vmem:[#allocation9 + $0x168] sm:$0xff] }
 0x380   :  { %9116 = vst [vmem:[#allocation99_spill] sm:$0xff] %v6529_v25  ;;  %2041 = vmatpush.msrb.mxu2 %v6544_v58  ;;  %v6547_v25 = vld [vmem:[#allocation9 + $0x3f0] sm:$0xff] }
 0x381   :  { %9117 = vst [vmem:[#allocation37_spill] sm:$0xff] %v6532_v49  ;;  %2097 = vmatpush.msra.mxu1 %v6547_v25  ;;  %v6550_v49 = vld [vmem:[#allocation9 + $0x3f8] sm:$0xff] }
 0x382   :  { %9118 = vst [vmem:[#allocation102_spill] sm:$0xff] %v6535_v22  ;;  %2137 = vmatpush.msra.mxu3 %v6550_v49  ;;  %v6553_v22 = vld [vmem:[#allocation9 + $0x140] sm:$0xff] }
 0x383   :  { %9119 = vst [vmem:[#allocation45_spill] sm:$0xff] %v6538_v5  ;;  %2002 = vmatpush.msrb.mxu0 %v6553_v22  ;;  %v6556_v5 = vld [vmem:[#allocation9 + $0x148] sm:$0xff] }
 0x384   :  { %9120 = vst [vmem:[#allocation103_spill] sm:$0xff] %v6541_v38  ;;  %2042 = vmatpush.msrb.mxu2 %v6556_v5  ;;  %v6559_v38 = vld [vmem:[#allocation9 + $0x3d0] sm:$0xff] }
 0x385   :  { %9121 = vst [vmem:[#allocation39_spill] sm:$0xff] %v6544_v58  ;;  %2098 = vmatpush.msra.mxu1 %v6559_v38  ;;  %v6562_v58 = vld [vmem:[#allocation9 + $0x3d8] sm:$0xff] }
 0x386   :  { %9122 = vst [vmem:[#allocation106_spill] sm:$0xff] %v6547_v25  ;;  %2138 = vmatpush.msra.mxu3 %v6562_v58  ;;  %v6565_v25 = vld [vmem:[#allocation9 + $0x120] sm:$0xff] }
 0x387   :  { %9123 = vst [vmem:[#allocation47_spill] sm:$0xff] %v6550_v49  ;;  %2003 = vmatpush.msrb.mxu0 %v6565_v25  ;;  %v6568_v49 = vld [vmem:[#allocation9 + $0x128] sm:$0xff] }
 0x388   :  { %9124 = vst [vmem:[#allocation107_spill] sm:$0xff] %v6553_v22  ;;  %2043 = vmatpush.msrb.mxu2 %v6568_v49  ;;  %v6571_v22 = vld [vmem:[#allocation9 + $0x3b0] sm:$0xff] }
 0x389   :  { %9125 = vst [vmem:[#allocation41_spill] sm:$0xff] %v6556_v5  ;;  %2099 = vmatpush.msra.mxu1 %v6571_v22  ;;  %v6574_v5 = vld [vmem:[#allocation9 + $0x3b8] sm:$0xff] }
 0x38a   :  { %9126 = vst [vmem:[#allocation49_spill] sm:$0xff] %v6559_v38  ;;  %2139 = vmatpush.msra.mxu3 %v6574_v5  ;;  %v6577_v38 = vld [vmem:[#allocation9 + $0x100] sm:$0xff] }
 0x38b   :  { %9127 = vst [vmem:[#allocation44_spill] sm:$0xff] %v6562_v58  ;;  %2004 = vmatpush.msrb.mxu0 %v6577_v38  ;;  %v6580_v58 = vld [vmem:[#allocation9 + $0x108] sm:$0xff] }
 0x38c   :  { %9128 = vst [vmem:[#allocation51_spill] sm:$0xff] %v6565_v25  ;;  %2044 = vmatpush.msrb.mxu2 %v6580_v58  ;;  %v6583_v25 = vld [vmem:[#allocation9 + $0x390] sm:$0xff] }
 0x38d   :  { %9129 = vst [vmem:[#allocation46_spill] sm:$0xff] %v6568_v49  ;;  %2100 = vmatpush.msra.mxu1 %v6583_v25  ;;  %v6586_v49 = vld [vmem:[#allocation9 + $0x398] sm:$0xff] }
 0x38e   :  { %9130 = vst [vmem:[#allocation53_spill] sm:$0xff] %v6571_v22  ;;  %2140 = vmatpush.msra.mxu3 %v6586_v49  ;;  %v6589_v22 = vld [vmem:[#allocation9 + $0xe0] sm:$0xff] }
 0x38f   :  { %9131 = vst [vmem:[#allocation48_spill] sm:$0xff] %v6574_v5  ;;  %2005 = vmatpush.msrb.mxu0 %v6589_v22  ;;  %v6592_v5 = vld [vmem:[#allocation9 + $0xe8] sm:$0xff] }
 0x390   :  { %9132 = vst [vmem:[#allocation56_spill] sm:$0xff] %v6577_v38  ;;  %2045 = vmatpush.msrb.mxu2 %v6592_v5  ;;  %v6595_v38 = vld [vmem:[#allocation9 + $0x370] sm:$0xff] }
 0x391   :  { %9133 = vst [vmem:[#allocation50_spill] sm:$0xff] %v6580_v58  ;;  %2101 = vmatpush.msra.mxu1 %v6595_v38  ;;  %v6598_v58 = vld [vmem:[#allocation9 + $0x378] sm:$0xff] }
 0x392   :  { %9134 = vst [vmem:[#allocation59_spill] sm:$0xff] %v6583_v25  ;;  %2141 = vmatpush.msra.mxu3 %v6598_v58  ;;  %v6601_v25 = vld [vmem:[#allocation9 + $0xc0] sm:$0xff] }
 0x393   :  { %9135 = vst [vmem:[#allocation52_spill] sm:$0xff] %v6586_v49  ;;  %2006 = vmatpush.msrb.mxu0 %v6601_v25  ;;  %v6604_v49 = vld [vmem:[#allocation9 + $0xc8] sm:$0xff] }
 0x394   :  { %9136 = vst [vmem:[#allocation61_spill] sm:$0xff] %v6589_v22  ;;  %2046 = vmatpush.msrb.mxu2 %v6604_v49  ;;  %v6607_v22 = vld [vmem:[#allocation9 + $0x350] sm:$0xff] }
 0x395   :  { %9137 = vst [vmem:[#allocation84_spill] sm:$0xff] %v6592_v5  ;;  %2102 = vmatpush.msra.mxu1 %v6607_v22  ;;  %v6610_v5 = vld [vmem:[#allocation9 + $0x358] sm:$0xff] }
 0x396   :  { %9138 = vst [vmem:[#allocation85_spill] sm:$0xff] %v6595_v38  ;;  %2142 = vmatpush.msra.mxu3 %v6610_v5  ;;  %v6613_v38 = vld [vmem:[#allocation9 + $0xa0] sm:$0xff] }
 0x397   :  { %9139 = vst [vmem:[#allocation88_spill] sm:$0xff] %v6598_v58  ;;  %2007 = vmatpush.msrb.mxu0 %v6613_v38  ;;  %v6616_v58 = vld [vmem:[#allocation9 + $0xa8] sm:$0xff] }
 0x398   :  { %9140 = vst [vmem:[#allocation89_spill] sm:$0xff] %v6601_v25  ;;  %2047 = vmatpush.msrb.mxu2 %v6616_v58  ;;  %v6619_v25 = vld [vmem:[#allocation9 + $0x330] sm:$0xff] }
 0x399   :  { %9141 = vst [vmem:[#allocation92_spill] sm:$0xff] %v6604_v49  ;;  %2103 = vmatpush.msra.mxu1 %v6619_v25  ;;  %v6622_v49 = vld [vmem:[#allocation9 + $0x338] sm:$0xff] }
 0x39a   :  { %9142 = vst [vmem:[#allocation93_spill] sm:$0xff] %v6607_v22  ;;  %2143 = vmatpush.msra.mxu3 %v6622_v49  ;;  %v6625_v22 = vld [vmem:[#allocation9 + $0x80] sm:$0xff] }
 0x39b   :  { %9143 = vst [vmem:[#allocation96_spill] sm:$0xff] %v6610_v5  ;;  %2008 = vmatpush.msrb.mxu0 %v6625_v22  ;;  %v6628_v5 = vld [vmem:[#allocation9 + $0x88] sm:$0xff] }
 0x39c   :  { %9144 = vst [vmem:[#allocation97_spill] sm:$0xff] %v6613_v38  ;;  %2048 = vmatpush.msrb.mxu2 %v6628_v5  ;;  %v6631_v38 = vld [vmem:[#allocation9 + $0x310] sm:$0xff] }
 0x39d   :  { %9145 = vst [vmem:[#allocation100_spill] sm:$0xff] %v6616_v58  ;;  %2104 = vmatpush.msra.mxu1 %v6631_v38  ;;  %v6634_v58 = vld [vmem:[#allocation9 + $0x318] sm:$0xff] }
 0x39e   :  { %9146 = vst [vmem:[#allocation101_spill] sm:$0xff] %v6619_v25  ;;  %2144 = vmatpush.msra.mxu3 %v6634_v58  ;;  %v6637_v25 = vld [vmem:[#allocation9 + $0x60] sm:$0xff] }
 0x39f   :  { %9147 = vst [vmem:[#allocation104_spill] sm:$0xff] %v6622_v49  ;;  %2009 = vmatpush.msrb.mxu0 %v6637_v25  ;;  %v6640_v49 = vld [vmem:[#allocation9 + $0x68] sm:$0xff] }
 0x3a0   :  { %9148 = vst [vmem:[#allocation105_spill] sm:$0xff] %v6625_v22  ;;  %2049 = vmatpush.msrb.mxu2 %v6640_v49  ;;  %v6643_v22 = vld [vmem:[#allocation9 + $0x2f0] sm:$0xff] }
 0x3a1   :  { %9149 = vst [vmem:[#allocation108_spill] sm:$0xff] %v6628_v5  ;;  %2105 = vmatpush.msra.mxu1 %v6643_v22  ;;  %v6646_v5 = vld [vmem:[#allocation9 + $0x2f8] sm:$0xff] }
 0x3a2   :  { %9150 = vst [vmem:[#allocation109_spill] sm:$0xff] %v6631_v38  ;;  %2145 = vmatpush.msra.mxu3 %v6646_v5  ;;  %v6649_v38 = vld [vmem:[#allocation9 + $0x40] sm:$0xff] }
 0x3a3   :  { %9151 = vst [vmem:[#allocation110_spill] sm:$0xff] %v6634_v58  ;;  %2010 = vmatpush.msrb.mxu0 %v6649_v38  ;;  %v6652_v58 = vld [vmem:[#allocation9 + $0x48] sm:$0xff] }
 0x3a4   :  { %9152 = vst [vmem:[#allocation111_spill] sm:$0xff] %v6637_v25  ;;  %2050 = vmatpush.msrb.mxu2 %v6652_v58  ;;  %v6655_v25 = vld [vmem:[#allocation9 + $0x2d0] sm:$0xff] }
 0x3a5   :  { %9153 = vst [vmem:[#allocation112_spill] sm:$0xff] %v6640_v49  ;;  %2106 = vmatpush.msra.mxu1 %v6655_v25  ;;  %v6658_v49 = vld [vmem:[#allocation9 + $0x2d8] sm:$0xff] }
 0x3a6   :  { %9154 = vst [vmem:[#allocation113_spill] sm:$0xff] %v6643_v22  ;;  %2146 = vmatpush.msra.mxu3 %v6658_v49  ;;  %v6661_v22 = vld [vmem:[#allocation9 + $0x20] sm:$0xff] }
 0x3a7   :  { %9155 = vst [vmem:[#allocation114_spill] sm:$0xff] %v6646_v5  ;;  %2011 = vmatpush.msrb.mxu0 %v6661_v22  ;;  %v6664_v5 = vld [vmem:[#allocation9 + $0x28] sm:$0xff] }
 0x3a8   :  { %9156 = vst [vmem:[#allocation115_spill] sm:$0xff] %v6649_v38  ;;  %2051 = vmatpush.msrb.mxu2 %v6664_v5  ;;  %v6667_v38 = vld [vmem:[#allocation9 + $0x2b0] sm:$0xff] }
 0x3a9   :  { %9157 = vst [vmem:[#allocation116_spill] sm:$0xff] %v6652_v58  ;;  %2107 = vmatpush.msra.mxu1 %v6667_v38  ;;  %v6670_v58 = vld [vmem:[#allocation9 + $0x2b8] sm:$0xff] }
 0x3aa   :  { %9158 = vst [vmem:[#allocation117_spill] sm:$0xff] %v6655_v25  ;;  %2147 = vmatpush.msra.mxu3 %v6670_v58  ;;  %v6673_v25 = vld [vmem:[#allocation9] sm:$0xff] }
 0x3ab   :  { %9159 = vst [vmem:[#allocation118_spill] sm:$0xff] %v6658_v49  ;;  %2012 = vmatpush.msrb.mxu0 %v6673_v25  ;;  %v6676_v49 = vld [vmem:[#allocation9 + $0x8] sm:$0xff] }
 0x3ac   :  { %9160 = vst [vmem:[#allocation119_spill] sm:$0xff] %v6661_v22  ;;  %2052 = vmatpush.msrb.mxu2 %v6676_v49  ;;  %v6679_v22 = vld [vmem:[#allocation9 + $0x290] sm:$0xff] }
 0x3ad   :  { %9161 = vst [vmem:[#allocation120_spill] sm:$0xff] %v6664_v5  ;;  %2108 = vmatpush.msra.mxu1 %v6679_v22  ;;  %v6682_v5 = vld [vmem:[#allocation9 + $0x298] sm:$0xff] }
 0x3ae   :  { %9162 = vst [vmem:[#allocation121_spill] sm:$0xff] %v6667_v38  ;;  %2148 = vmatpush.msra.mxu3 %v6682_v5  ;;  %v6685_v38 = vld [vmem:[#allocation9 + $0x1f0] sm:$0xff] }
 0x3af   :  { %9163 = vst [vmem:[#allocation122_spill] sm:$0xff] %v6670_v58  ;;  %2077 = vmatpush.msra.mxu0 %v6685_v38  ;;  %v6688_v58 = vld [vmem:[#allocation9 + $0x1f8] sm:$0xff] }
 0x3b0   :  { %9164 = vst [vmem:[#allocation123_spill] sm:$0xff] %v6673_v25  ;;  %2117 = vmatpush.msra.mxu2 %v6688_v58  ;;  %v6691_v25 = vld [vmem:[#allocation9 + $0x270] sm:$0xff] }
 0x3b1   :  { %9165 = vst [vmem:[#allocation124_spill] sm:$0xff] %v6676_v49  ;;  %2109 = vmatpush.msra.mxu1 %v6691_v25  ;;  %v6694_v49 = vld [vmem:[#allocation9 + $0x278] sm:$0xff] }
 0x3b2   :  { %9166 = vst [vmem:[#allocation125_spill] sm:$0xff] %v6679_v22  ;;  %2149 = vmatpush.msra.mxu3 %v6694_v49  ;;  %v6697_v22 = vld [vmem:[#allocation9 + $0x1d0] sm:$0xff] }
 0x3b3   :  { %9167 = vst [vmem:[#allocation126_spill] sm:$0xff] %v6682_v5  ;;  %2078 = vmatpush.msra.mxu0 %v6697_v22  ;;  %v6700_v5 = vld [vmem:[#allocation9 + $0x1d8] sm:$0xff] }
 0x3b4   :  { %9168 = vst [vmem:[#allocation127_spill] sm:$0xff] %v6685_v38  ;;  %2118 = vmatpush.msra.mxu2 %v6700_v5  ;;  %v6703_v38 = vld [vmem:[#allocation9 + $0x250] sm:$0xff]  ;;  %v1687_v17 = vpop.f32.mrf.mxu3 }
 0x3b5   :  { %9169 = vst [vmem:[#allocation128_spill] sm:$0xff] %v6688_v58  ;;  %2110 = vmatpush.msra.mxu1 %v6703_v38  ;;  %v6706_v58 = vld [vmem:[#allocation9 + $0x258] sm:$0xff] }
 0x3b6   :  { %9170 = vst [vmem:[#allocation129_spill] sm:$0xff] %v6691_v25  ;;  %2150 = vmatpush.msra.mxu3 %v6706_v58  ;;  %v6709_v25 = vld [vmem:[#allocation9 + $0x1b0] sm:$0xff] }
 0x3b7   :  { %9171 = vst [vmem:[#allocation130_spill] sm:$0xff] %v6694_v49  ;;  %2079 = vmatpush.msra.mxu0 %v6709_v25  ;;  %v6712_v49 = vld [vmem:[#allocation9 + $0x1b8] sm:$0xff] }
 0x3b8   :  { %9172 = vst [vmem:[#allocation131_spill] sm:$0xff] %v6697_v22  ;;  %2119 = vmatpush.msra.mxu2 %v6712_v49  ;;  %v6715_v22 = vld [vmem:[#allocation9 + $0x230] sm:$0xff] }
 0x3b9   :  { %9173 = vst [vmem:[#allocation132_spill] sm:$0xff] %v6700_v5  ;;  %2111 = vmatpush.msra.mxu1 %v6715_v22  ;;  %v6718_v5 = vld [vmem:[#allocation9 + $0x238] sm:$0xff] }
 0x3ba   :  { %9174 = vst [vmem:[#allocation133_spill] sm:$0xff] %v6703_v38  ;;  %2151 = vmatpush.msra.mxu3 %v6718_v5  ;;  %v6721_v38 = vld [vmem:[#allocation9 + $0x190] sm:$0xff] }
 0x3bb   :  { %9175 = vst [vmem:[#allocation134_spill] sm:$0xff] %v6706_v58  ;;  %2080 = vmatpush.msra.mxu0 %v6721_v38  ;;  %v6724_v58 = vld [vmem:[#allocation9 + $0x198] sm:$0xff] }
 0x3bc   :  { %9176 = vst [vmem:[#allocation135_spill] sm:$0xff] %v6709_v25  ;;  %2120 = vmatpush.msra.mxu2 %v6724_v58  ;;  %v6727_v25 = vld [vmem:[#allocation9 + $0x210] sm:$0xff]  ;;  %v1767_v0 = vpop.f32.mrf.mxu3 }
 0x3bd   :  { %9177 = vst [vmem:[#allocation136_spill] sm:$0xff] %v6712_v49  ;;  %2112 = vmatpush.msra.mxu1 %v6727_v25  ;;  %v6730_v49 = vld [vmem:[#allocation9 + $0x218] sm:$0xff] }
 0x3be   :  { %9178 = vst [vmem:[#allocation137_spill] sm:$0xff] %v6715_v22  ;;  %2152 = vmatpush.msra.mxu3 %v6730_v49  ;;  %v6733_v22 = vld [vmem:[#allocation9 + $0x170] sm:$0xff] }
 0x3bf   :  { %9179 = vst [vmem:[#allocation138_spill] sm:$0xff] %v6718_v5  ;;  %2081 = vmatpush.msra.mxu0 %v6733_v22  ;;  %v6736_v5 = vld [vmem:[#allocation9 + $0x178] sm:$0xff] }
 0x3c0   :  { %9180 = vst [vmem:[#allocation139_spill] sm:$0xff] %v6721_v38  ;;  %2121 = vmatpush.msra.mxu2 %v6736_v5  ;;  %v6739_v38 = vld [vmem:[#allocation9 + $0x150] sm:$0xff] }
 0x3c1   :  { %9181 = vst [vmem:[#allocation140_spill] sm:$0xff] %v6724_v58  ;;  %2082 = vmatpush.msra.mxu0 %v6739_v38  ;;  %v6742_v58 = vld [vmem:[#allocation9 + $0x158] sm:$0xff] }
 0x3c2   :  { %9182 = vst [vmem:[#allocation141_spill] sm:$0xff] %v6727_v25  ;;  %2122 = vmatpush.msra.mxu2 %v6742_v58  ;;  %v6745_v25 = vld [vmem:[#allocation9 + $0x130] sm:$0xff] }
 0x3c3   :  { %9183 = vst [vmem:[#allocation142_spill] sm:$0xff] %v6730_v49  ;;  %2083 = vmatpush.msra.mxu0 %v6745_v25  ;;  %v6748_v49 = vld [vmem:[#allocation9 + $0x138] sm:$0xff] }
 0x3c4   :  { %9184 = vst [vmem:[#allocation143_spill] sm:$0xff] %v6733_v22  ;;  %2123 = vmatpush.msra.mxu2 %v6748_v49  ;;  %v6751_v22 = vld [vmem:[#allocation9 + $0x110] sm:$0xff] }
 0x3c5   :  { %9185 = vst [vmem:[#allocation144_spill] sm:$0xff] %v6736_v5  ;;  %2084 = vmatpush.msra.mxu0 %v6751_v22  ;;  %v6754_v5 = vld [vmem:[#allocation9 + $0x118] sm:$0xff] }
 0x3c6   :  { %9186 = vst [vmem:[#allocation145_spill] sm:$0xff] %v6739_v38  ;;  %2124 = vmatpush.msra.mxu2 %v6754_v5  ;;  %v6757_v38 = vld [vmem:[#allocation9 + $0xf0] sm:$0xff]  ;;  %v1627_v34 = vpop.f32.mrf.mxu0 }
 0x3c7   :  { %9187 = vst [vmem:[#allocation146_spill] sm:$0xff] %v6742_v58  ;;  %2085 = vmatpush.msra.mxu0 %v6757_v38  ;;  %v6760_v58 = vld [vmem:[#allocation9 + $0xf8] sm:$0xff] }
 0x3c8   :  { %9188 = vst [vmem:[#allocation147_spill] sm:$0xff] %v6745_v25  ;;  %2125 = vmatpush.msra.mxu2 %v6760_v58  ;;  %v6763_v25 = vld [vmem:[#allocation9 + $0xd0] sm:$0xff] }
 0x3c9   :  { %9189 = vst [vmem:[#allocation148_spill] sm:$0xff] %v6748_v49  ;;  %2086 = vmatpush.msra.mxu0 %v6763_v25  ;;  %v6766_v49 = vld [vmem:[#allocation9 + $0xd8] sm:$0xff] }
 0x3ca   :  { %9190 = vst [vmem:[#allocation149_spill] sm:$0xff] %v6751_v22  ;;  %2126 = vmatpush.msra.mxu2 %v6766_v49  ;;  %v6769_v22 = vld [vmem:[#allocation9 + $0xb0] sm:$0xff] }
 0x3cb   :  { %9191 = vst [vmem:[#allocation150_spill] sm:$0xff] %v6754_v5  ;;  %2087 = vmatpush.msra.mxu0 %v6769_v22  ;;  %v6772_v5 = vld [vmem:[#allocation9 + $0xb8] sm:$0xff] }
 0x3cc   :  { %9192 = vst [vmem:[#allocation151_spill] sm:$0xff] %v6757_v38  ;;  %2127 = vmatpush.msra.mxu2 %v6772_v5  ;;  %v6775_v38 = vld [vmem:[#allocation9 + $0x90] sm:$0xff]  ;;  %v1667_v10 = vpop.f32.mrf.mxu2 }
 0x3cd   :  { %9193 = vst [vmem:[#allocation152_spill] sm:$0xff] %v6760_v58  ;;  %2088 = vmatpush.msra.mxu0 %v6775_v38  ;;  %v6778_v58 = vld [vmem:[#allocation9 + $0x98] sm:$0xff] }
 0x3ce   :  { %9194 = vst [vmem:[#allocation153_spill] sm:$0xff] %v6763_v25  ;;  %2128 = vmatpush.msra.mxu2 %v6778_v58  ;;  %v6781_v25 = vld [vmem:[#allocation9 + $0x70] sm:$0xff] }
 0x3cf   :  { %9195 = vst [vmem:[#allocation154_spill] sm:$0xff] %v6766_v49  ;;  %2089 = vmatpush.msra.mxu0 %v6781_v25  ;;  %v6784_v49 = vld [vmem:[#allocation9 + $0x78] sm:$0xff] }
 0x3d0   :  { %9196 = vst [vmem:[#allocation155_spill] sm:$0xff] %v6769_v22  ;;  %2129 = vmatpush.msra.mxu2 %v6784_v49  ;;  %v6787_v22 = vld [vmem:[#allocation9 + $0x50] sm:$0xff] }
 0x3d1   :  { %9197 = vst [vmem:[#allocation156_spill] sm:$0xff] %v6772_v5  ;;  %2090 = vmatpush.msra.mxu0 %v6787_v22  ;;  %v6790_v5 = vld [vmem:[#allocation9 + $0x58] sm:$0xff] }
 0x3d2   :  { %9198 = vst [vmem:[#allocation157_spill] sm:$0xff] %v6775_v38  ;;  %2130 = vmatpush.msra.mxu2 %v6790_v5  ;;  %v6793_v38 = vld [vmem:[#allocation9 + $0x30] sm:$0xff] }
 0x3d3   :  { %9199 = vst [vmem:[#allocation158_spill] sm:$0xff] %v6778_v58  ;;  %2091 = vmatpush.msra.mxu0 %v6793_v38  ;;  %v6796_v58 = vld [vmem:[#allocation9 + $0x38] sm:$0xff] }
 0x3d4   :  { %9200 = vst [vmem:[#allocation159_spill] sm:$0xff] %v6781_v25  ;;  %2131 = vmatpush.msra.mxu2 %v6796_v58  ;;  %v6799_v25 = vld [vmem:[#allocation9 + $0x10] sm:$0xff] }
 0x3d5   :  { %9201 = vst [vmem:[#allocation160_spill] sm:$0xff] %v6784_v49  ;;  %2092 = vmatpush.msra.mxu0 %v6799_v25  ;;  %v6802_v49 = vld [vmem:[#allocation9 + $0x18] sm:$0xff]  ;;  %v1747_v44 = vpop.f32.mrf.mxu2 }
 0x3d6   :  { %9202 = vst [vmem:[#allocation161_spill] sm:$0xff] %v6787_v22  ;;  %2132 = vmatpush.msra.mxu2 %v6802_v49  ;;  %v1647_v22 = vpop.f32.mrf.mxu1 }
 0x3d7   :  { %9203 = vst [vmem:[#allocation162_spill] sm:$0xff] %v6790_v5  ;;  %v1628_v5 = vadd.f32 %v1627_v34, %v9054_v15  ;;  %v1748_v15 = vadd.f32 %v1747_v44, %v9056_v50 }
 0x3d8   :  { %9204 = vst [vmem:[#allocation163_spill] sm:$0xff] %v6793_v38 }
 0x3d9   :  { %9205 = vst [vmem:[#allocation164_spill] sm:$0xff] %v6796_v58  ;;  %v1648_v13 = vadd.f32 %v1647_v22, %v1628_v5  ;;  %v1668_v58 = vadd.f32 %v1667_v10, %v9055_v52  ;;  %v1768_v22 = vadd.f32 %v1767_v0, %v1748_v15  ;;  %v1843_v10 = vld [vmem:[#allocation4 + $0x98] sm:$0xff] }
 0x3da   :  { %9206 = vst [vmem:[#allocation165_spill] sm:$0xff] %v6799_v25 }
 0x3db   :  { %9207 = vst [vmem:[#allocation166_spill] sm:$0xff] %v6802_v49  ;;  %v3427_v38 = vmul.f32 -1.442695, %v1648_v13  ;;  %v1688_v55 = vadd.f32 %v1687_v17, %v1668_v58  ;;  %v1707_v13 = vpop.f32.mrf.mxu0  ;;  %v1921_v17 = vpop.f32.mrf.mxu3  ;;  %v3429_v58 = vmul.f32 -1.442695, %v1768_v22 }
 0x3dd   :  { %3576 = vpow2.f32 %v3427_v38  ;;  %v3428_v25 = vmul.f32 -1.442695, %v1688_v55 }
 0x3de   :  { %v1727_v47 = vpop.f32.mrf.mxu1 }
 0x3df   :  { %3578 = vpow2.f32 %v3428_v25 }
 0x3e3   :  { %v3577_v57 = vpop.eup %3576 }
 0x3e4   :  { %v1773_v49 = vadd.f32 1.0, %v3577_v57  ;;  %v1927_v57 = vadd.f32 %v1921_v17, %v1843_v10 }
 0x3e5   :  { %v3579_v5 = vpop.eup %3578 }
 0x3e6   :  { %v1881_v30 = vpop.f32.mrf.mxu1  ;;  %3580 = vrcp.f32 %v1773_v49  ;;  %v1792_v38 = vadd.f32 1.0, %v3579_v5  ;;  %v3432_v44 = vmul.f32 -1.442695, %v1927_v57  ;;  %v1785_v5 = vand.u32 2147483648, %v1773_v49 }
 0x3e7   :  { %v1925_v19 = vadd.f32 %v1881_v30, %v1841_v7  ;;  %v1708_v30 = vadd.f32 %v1707_v13, %v9057_v11  ;;  %vm1779_vm5 = vweird.f32 %v1773_v49  ;;  %v1783_v13 = vand.u32 2147483647, %v1773_v49 }
 0x3e8   :  { %v1804_v10 = vand.u32 2147483648, %v1792_v38  ;;  %vm1798_vm8 = vweird.f32 %v1792_v38 }
 0x3e9   :  { %v3431_v34 = vmul.f32 -1.442695, %v1925_v19  ;;  %v1728_v19 = vadd.f32 %v1727_v47, %v1708_v30  ;;  %v1802_v47 = vand.u32 2147483647, %v1792_v38  ;;  %vm1784_vm9 = vcmp.eq.f32.partialorder %v1783_v13, 8.507059e+37 }
 0x3eb   :  { %3582 = vpow2.f32 %v3431_v34  ;;  %vm1803_vm11 = vcmp.eq.f32.partialorder %v1802_v47, 8.507059e+37 }
 0x3ec   :  { %v3581_v52 = vpop.eup %3580  ;;  %3584 = vrcp.f32 %v1792_v38 }
 0x3ed   :  { %v1775_v7 = vmul.f32 %v3581_v52, %v1773_v49  ;;  %3586 = vpow2.f32 %v3429_v58  ;;  %vm1780_vm4 = vweird.f32 %v3581_v52  ;;  %v1840_v58 = vld [vmem:[#allocation4 + $0x80] sm:$0xff] }
 0x3ee   :  { %3588 = vtanh.f32 %v1728_v19  ;;  %vm6811_vm6 = vmor %vm1779_vm5, %vm1780_vm4 }
 0x3ef   :  { %v1776_v55 = vsub.f32 1.0, %v1775_v7  ;;  %3590 = vpow2.f32 %v3432_v44  ;;  %v1786_v7 = vor.u32 1.1754944e-38, %v1785_v5 }
 0x3f1   :  { %v3583_v25 = vpop.eup %3582  ;;  %v1777_v56 = vmul.f32 %v3581_v52, %v1776_v55 }
 0x3f2   :  { %v3585_v50 = vpop.eup %3584  ;;  %v6809_v34 = vadd.f32 1.0, %v3583_v25  ;;  %v1805_v25 = vor.u32 1.1754944e-38, %v1804_v10 }
 0x3f3   :  { %v3587_v20 = vpop.eup %3586  ;;  %v1794_v15 = vmul.f32 %v3585_v50, %v1792_v38  ;;  %v1778_v0 = vadd.f32 %v3581_v52, %v1777_v56  ;;  %vm1799_vm7 = vweird.f32 %v3585_v50 }
 0x3f4   :  { %v1812_v22 = vadd.f32 1.0, %v3587_v20  ;;  %v1861_v20 = vpop.f32.mrf.mxu0  ;;  %v3589_v55 = vpop.eup %3588  ;;  %vm1800_vm10 = vmor %vm1798_vm8, %vm1799_vm7  ;;  %vm1956_vm1 = vweird.f32 %v6809_v34 }
 0x3f5   :  { %v1795_v16 = vsub.f32 1.0, %v1794_v15  ;;  %v1782_v56 = vsel %vm6811_vm6, %v3581_v52, %v1778_v0  ;;  %v1924_v57 = vadd.f32 %v1861_v20, %v1840_v58  ;;  %v3591_v44 = vpop.eup %3590 }
 0x3f6   :  { %3592 = vrcp.f32 %v1812_v22  ;;  %v1787_v19 = vsel %vm1784_vm9, %v1786_v7, %v1782_v56  ;;  %v6825_v58 = vadd.f32 1.0, %v3591_v44  ;;  %v1824_v47 = vand.u32 2147483648, %v1812_v22  ;;  %v1842_v44 = vld [vmem:[#allocation4 + $0x90] sm:$0xff] }
 0x3f7   :  { %v1796_v30 = vmul.f32 %v3585_v50, %v1795_v16  ;;  %3594 = vrcp.f32 %v6809_v34  ;;  %v3430_v16 = vmul.f32 -1.442695, %v1924_v57  ;;  %v1829_v0 = vmul.f32 %v3589_v55, %v1787_v19 }
 0x3f8   :  { %vm1818_vm13 = vweird.f32 %v1812_v22  ;;  %vm1976_vm9 = vweird.f32 %v6825_v58 }
 0x3f9   :  { %v1797_v49 = vadd.f32 %v3585_v50, %v1796_v30  ;;  %3596 = vpow2.f32 %v3430_v16  ;;  %v1822_v30 = vand.u32 2147483647, %v1812_v22 }
 0x3fb   :  { %v1801_v15 = vsel %vm1800_vm10, %v3585_v50, %v1797_v49  ;;  %v1825_v49 = vor.u32 1.1754944e-38, %v1824_v47  ;;  %vm1823_vm15 = vcmp.eq.f32.partialorder %v1822_v30, 8.507059e+37 }
 0x3fc   :  { %v3593_v11 = vpop.eup %3592  ;;  %v1806_v62 = vsel %vm1803_vm11, %v1805_v25, %v1801_v15  ;;  %v1901_v15 = vpop.f32.mrf.mxu2 }
 0x3fd   :  { %v6818_v17 = vpop.eup %3594  ;;  %v1828_v52 = vmul.f32 %v1806_v62, %v6195_v46  ;;  %v1814_v5 = vmul.f32 %v3593_v11, %v1812_v22  ;;  %vm1819_vm12 = vweird.f32 %v3593_v11  ;;  %v1926_v16 = vadd.f32 %v1901_v15, %v1842_v44  ;;  %v9229_v44 = vld [vmem:[#allocation72_spill] sm:$0xff] }
 0x3fe   :  { %v1952_v10 = vmul.f32 %v6818_v17, %v6809_v34  ;;  %vm1820_vm14 = vmor %vm1818_vm13, %vm1819_vm12  ;;  %vm1957_vm0 = vweird.f32 %v6818_v17  ;;  %v9230_v15 = vld [vmem:[#allocation24_spill] sm:$0xff] }
 0x3ff   :  { %v6821_v38 = vadd.f32 %v1829_v0, %v1828_v52  ;;  %v1815_v13 = vsub.f32 1.0, %v1814_v5  ;;  %v3597_v56 = vpop.eup %3596  ;;  %v1962_v5 = vand.u32 2147483648, %v6809_v34  ;;  %vm6845_vm2 = vmor %vm1956_vm1, %vm1957_vm0 }
 0x400   :  { %v1931_v62 = vadd.f32 1.0, %v3597_v56  ;;  %v1953_v20 = vsub.f32 1.0, %v1952_v10  ;;  %v9240_v10 = vld [vmem:[#allocation79_spill] sm:$0xff] }
 0x401   :  { %3598 = vtanh.f32 %v6821_v38  ;;  %v1816_v50 = vmul.f32 %v3593_v11, %v1815_v13 }
 0x402   :  { %3600 = vrcp.f32 %v6825_v58  ;;  %v1954_v19 = vmul.f32 %v6818_v17, %v1953_v20  ;;  %vm1937_vm4 = vweird.f32 %v1931_v62 }
 0x403   :  { %v1817_v46 = vadd.f32 %v3593_v11, %v1816_v50  ;;  %3602 = vrcp.f32 %v1931_v62  ;;  %v1941_v50 = vand.u32 2147483647, %v1931_v62 }
 0x404   :  { %v1955_v0 = vadd.f32 %v6818_v17, %v1954_v19  ;;  %3604 = vtanh.f32 %v1926_v16  ;;  %v9228_v19 = vld [vmem:[#allocation71_spill] sm:$0xff]  ;;  %v9233_v16 = vld [vmem:[#allocation26_spill] sm:$0xff] }
 0x405   :  { %v1821_v7 = vsel %vm1820_vm14, %v3593_v11, %v1817_v46  ;;  %vm1942_vm7 = vcmp.eq.f32.partialorder %v1941_v50, 8.507059e+37  ;;  %v9243_v50 = vld [vmem:[#allocation32_spill] sm:$0xff] }
 0x406   :  { %v1826_v55 = vsel %vm1823_vm15, %v1825_v49, %v1821_v7  ;;  %v1959_v47 = vsel %vm6845_vm2, %v6818_v17, %v1955_v0  ;;  %v9224_v7 = vld [vmem:[#allocation21_spill] sm:$0xff]  ;;  %v9235_v0 = vld [vmem:[#allocation76_spill] sm:$0xff] }
 0x407   :  { %v3599_v57 = vpop.eup %3598  ;;  %v6942_v49 = vld [vmem:[#allocation7 + $0xc0] sm:$0xff] }
 0x408   :  { %v1832_v25 = vmul.f32 %v3599_v57, %v1826_v55  ;;  %v6830_v22 = vpop.eup %3600  ;;  %v9225_v57 = vld [vmem:[#allocation69_spill] sm:$0xff]  ;;  %v9226_v55 = vld [vmem:[#allocation70_spill] sm:$0xff] }
 0x409   :  { %v3603_v11 = vpop.eup %3602  ;;  %v1972_v13 = vmul.f32 %v6830_v22, %v6825_v58  ;;  %vm1977_vm8 = vweird.f32 %v6830_v22 }
 0x40a   :  { %1836 = vst [vmem:[#allocation12 + $0x38] sm:$0xff] %v1832_v25  ;;  %2033 = vmatmul.f32.vlgmr.msrb.gmra.mxu1 %v1832_v25  ;;  %2073 = vmatmul.f32.vlgmr.msrb.gmra.mxu3 %v1832_v25  ;;  %v1933_v52 = vmul.f32 %v3603_v11, %v1931_v62  ;;  %vm1938_vm3 = vweird.f32 %v3603_v11  ;;  %vm1978_vm10 = vmor %vm1976_vm9, %vm1977_vm8 }
 0x40b   :  { %2251 = vmatpush.msrb.mxu1 %v6209_v6  ;;  %2291 = vmatpush.msrb.mxu3 %v6212_v41  ;;  %v1960_v41 = vand.u32 2147483647, %v6809_v34  ;;  %v1973_v34 = vsub.f32 1.0, %v1972_v13  ;;  %vm1939_vm6 = vmor %vm1937_vm4, %vm1938_vm3  ;;  %v9237_v13 = vld [vmem:[#allocation77_spill] sm:$0xff] }
 0x40c   :  { %v1934_v6 = vsub.f32 1.0, %v1933_v52  ;;  %v9234_v52 = vld [vmem:[#allocation75_spill] sm:$0xff] }
 0x40d   :  { %2252 = vmatpush.msrb.mxu1 %v6221_v32  ;;  %2292 = vmatpush.msrb.mxu3 %v6224_v53  ;;  %v1943_v32 = vand.u32 2147483648, %v1931_v62  ;;  %vm1961_vm5 = vcmp.eq.f32.partialorder %v1960_v41, 8.507059e+37  ;;  %v9239_v41 = vld [vmem:[#allocation30_spill] sm:$0xff] }
 0x40e   :  { %v1935_v53 = vmul.f32 %v3603_v11, %v1934_v6  ;;  %v9238_v6 = vld [vmem:[#allocation78_spill] sm:$0xff] }
 0x40f   :  { %2253 = vmatpush.msrb.mxu1 %v6234_v27  ;;  %2293 = vmatpush.msrb.mxu3 %v6237_v40  ;;  %v1963_v27 = vor.u32 1.1754944e-38, %v1962_v5  ;;  %v1944_v30 = vor.u32 1.1754944e-38, %v1943_v32  ;;  %v9236_v5 = vld [vmem:[#allocation28_spill] sm:$0xff]  ;;  %v9241_v32 = vld [vmem:[#allocation23_spill] sm:$0xff] }
 0x410   :  { %v1936_v40 = vadd.f32 %v3603_v11, %v1935_v53  ;;  %v9242_v53 = vld [vmem:[#allocation80_spill] sm:$0xff] }
 0x411   :  { %2254 = vmatpush.msrb.mxu1 %v6244_v1  ;;  %2294 = vmatpush.msrb.mxu3 %v6247_v9  ;;  %v1964_v56 = vsel %vm1961_vm5, %v1963_v27, %v1959_v47  ;;  %v3605_v1 = vpop.eup %3604  ;;  %v1974_v9 = vmul.f32 %v6830_v22, %v1973_v34  ;;  %v9244_v47 = vld [vmem:[#allocation81_spill] sm:$0xff]  ;;  %v9246_v34 = vld [vmem:[#allocation82_spill] sm:$0xff] }
 0x412   :  { %2113 = vmatmul.f32.vlgmr.msra.gmra.mxu1 %v1832_v25  ;;  %2153 = vmatmul.f32.vlgmr.msra.gmra.mxu3 %v1832_v25  ;;  %v1940_v46 = vsel %vm1939_vm6, %v3603_v11, %v1936_v40  ;;  %v1986_v62 = vmul.f32 %v1964_v56, %v6271_v43  ;;  %v9227_v25 = vld [vmem:[#allocation22_spill] sm:$0xff]  ;;  %v9245_v27 = vld [vmem:[#allocation25_spill] sm:$0xff]  ;;  %v9249_v56 = vld [vmem:[#allocation27_spill] sm:$0xff] }
 0x413   :  { %2255 = vmatpush.msrb.mxu1 %v6251_v31  ;;  %2295 = vmatpush.msrb.mxu3 %v6254_v21  ;;  %v1945_v17 = vsel %vm1942_vm7, %v1944_v30, %v1940_v46  ;;  %v1975_v21 = vadd.f32 %v6830_v22, %v1974_v9  ;;  %v9232_v11 = vld [vmem:[#allocation74_spill] sm:$0xff]  ;;  %v9248_v30 = vld [vmem:[#allocation83_spill] sm:$0xff] }
 0x414   :  { %v1987_v20 = vmul.f32 %v3605_v1, %v1945_v17  ;;  %v9247_v40 = vld [vmem:[#allocation34_spill] sm:$0xff]  ;;  %v9251_v1 = vld [vmem:[#allocation35_spill] sm:$0xff]  ;;  %v9253_v17 = vld [vmem:[#allocation29_spill] sm:$0xff] }
 0x415   :  { %2256 = vmatpush.msrb.mxu1 %v6258_v12  ;;  %2296 = vmatpush.msrb.mxu3 %v6261_v2  ;;  %v1982_v12 = vand.u32 2147483648, %v6825_v58  ;;  %v1980_v2 = vand.u32 2147483647, %v6825_v58  ;;  %v9223_v58 = vld [vmem:[#allocation20_spill] sm:$0xff]  ;;  %v9250_v46 = vld [vmem:[#allocation86_spill] sm:$0xff]  ;;  %v9252_v9 = vld [vmem:[#allocation87_spill] sm:$0xff] }
 0x416   :  { %v6862_v31 = vadd.f32 %v1987_v20, %v1986_v62  ;;  %v9254_v62 = vld [vmem:[#allocation90_spill] sm:$0xff] }
 0x417   :  { %2257 = vmatpush.msrb.mxu1 %v6265_v37  ;;  %2297 = vmatpush.msrb.mxu3 %v6268_v45  ;;  %v1979_v37 = vsel %vm1978_vm10, %v6830_v22, %v1975_v21  ;;  %v1983_v45 = vor.u32 1.1754944e-38, %v1982_v12  ;;  %vm1981_vm11 = vcmp.eq.f32.partialorder %v1980_v2, 8.507059e+37  ;;  %v9231_v22 = vld [vmem:[#allocation73_spill] sm:$0xff]  ;;  %v9255_v20 = vld [vmem:[#allocation38_spill] sm:$0xff]  ;;  %v9256_v21 = vld [vmem:[#allocation91_spill] sm:$0xff] }
 0x418   :  { %3606 = vtanh.f32 %v6862_v31  ;;  %v9257_v12 = vld [vmem:[#allocation31_spill] sm:$0xff]  ;;  %v9258_v2 = vld [vmem:[#allocation94_spill] sm:$0xff] }
 0x419   :  { %2258 = vmatpush.msrb.mxu1 %v6275_v59  ;;  %2298 = vmatpush.msrb.mxu3 %v6278_v48  ;;  %v1984_v59 = vsel %vm1981_vm11, %v1983_v45, %v1979_v37  ;;  %v9259_v37 = vld [vmem:[#allocation40_spill] sm:$0xff]  ;;  %v9260_v45 = vld [vmem:[#allocation95_spill] sm:$0xff] }
 0x41b   :  { %2259 = vmatpush.msrb.mxu1 %v6285_v14  ;;  %2299 = vmatpush.msrb.mxu3 %v6288_v4  ;;  %v6888_v14 = vld [vmem:[#allocation7 + $0x1e0] sm:$0xff] }
 0x41c   :  { %v6894_v4 = vld [vmem:[#allocation7 + $0x1c0] sm:$0xff] }
 0x41d   :  { %2260 = vmatpush.msrb.mxu1 %v6292_v42  ;;  %2300 = vmatpush.msrb.mxu3 %v6295_v18  ;;  %v6900_v42 = vld [vmem:[#allocation7 + $0x1a0] sm:$0xff] }
 0x41e   :  { %v3607_v43 = vpop.eup %3606  ;;  %v6906_v18 = vld [vmem:[#allocation7 + $0x180] sm:$0xff] }
 0x41f   :  { %2261 = vmatpush.msrb.mxu1 %v6298_v28  ;;  %2301 = vmatpush.msrb.mxu3 %v6301_v36  ;;  %v6881_v48 = vmul.f32 %v3607_v43, %v1984_v59  ;;  %v6912_v28 = vld [vmem:[#allocation7 + $0x160] sm:$0xff]  ;;  %v9262_v59 = vld [vmem:[#allocation98_spill] sm:$0xff] }
 0x420   :  { %v9212_v36 = vld [vmem:[#allocation60_spill] sm:$0xff]  ;;  %v9261_v43 = vld [vmem:[#allocation33_spill] sm:$0xff] }
 0x421   :  { %2262 = vmatpush.msrb.mxu1 %v6306_v26  ;;  %2302 = vmatpush.msrb.mxu3 %v6309_v35  ;;  %1994 = vst [vmem:[#allocation12 + $0x40] sm:$0xff] %v6881_v48  ;;  %v6918_v26 = vld [vmem:[#allocation7 + $0x140] sm:$0xff]  ;;  %v9213_v35 = vld [vmem:[#allocation62_spill] sm:$0xff] }
 0x422   :  { %2013 = vmatmul.f32.vlgmr.msrb.gmra.mxu0 %v6881_v48  ;;  %2053 = vmatmul.f32.vlgmr.msrb.gmra.mxu2 %v6881_v48 }
 0x423   :  { %2263 = vmatpush.msrb.mxu1 %v6319_v51  ;;  %2303 = vmatpush.msrb.mxu3 %v6322_v61  ;;  %v9215_v51 = vld [vmem:[#allocation17_spill] sm:$0xff] }
 0x424   :  { %2231 = vmatpush.msrb.mxu0 %v6888_v14  ;;  %2271 = vmatpush.msrb.mxu2 %v6316_v54  ;;  %v9214_v54 = vld [vmem:[#allocation63_spill] sm:$0xff]  ;;  %v6924_v61 = vld [vmem:[#allocation7 + $0x120] sm:$0xff] }
 0x425   :  { %2264 = vmatpush.msrb.mxu1 %v6329_v29  ;;  %2304 = vmatpush.msrb.mxu3 %v6332_v63  ;;  %v9217_v29 = vld [vmem:[#allocation18_spill] sm:$0xff]  ;;  %v9218_v63 = vld [vmem:[#allocation65_spill] sm:$0xff] }
 0x426   :  { %2232 = vmatpush.msrb.mxu0 %v6894_v4  ;;  %2272 = vmatpush.msrb.mxu2 %v6326_v23  ;;  %v9216_v23 = vld [vmem:[#allocation64_spill] sm:$0xff] }
 0x427   :  { %2265 = vmatpush.msrb.mxu1 %v6339_v24  ;;  %2305 = vmatpush.msrb.mxu3 %v6342_v60  ;;  %v9219_v24 = vld [vmem:[#allocation66_spill] sm:$0xff]  ;;  %v9220_v60 = vld [vmem:[#allocation19_spill] sm:$0xff] }
 0x428   :  { %2233 = vmatpush.msrb.mxu0 %v6900_v42  ;;  %2273 = vmatpush.msrb.mxu2 %v6336_v3  ;;  %v6930_v3 = vld [vmem:[#allocation7 + $0x100] sm:$0xff] }
 0x429   :  { %2266 = vmatpush.msrb.mxu1 %v6349_v39  ;;  %2306 = vmatpush.msrb.mxu3 %v6352_v33  ;;  %v6936_v39 = vld [vmem:[#allocation7 + $0xe0] sm:$0xff] }
 0x42a   :  { %2234 = vmatpush.msrb.mxu0 %v6906_v18  ;;  %2274 = vmatpush.msrb.mxu2 %v6346_v8  ;;  %v9221_v8 = vld [vmem:[#allocation67_spill] sm:$0xff]  ;;  %v9222_v33 = vld [vmem:[#allocation68_spill] sm:$0xff] }
 0x42b   :  { %2093 = vmatmul.f32.vlgmr.msra.gmra.mxu0 %v6881_v48  ;;  %2133 = vmatmul.f32.vlgmr.msra.gmra.mxu2 %v6881_v48 }
 0x42c   :  { %2235 = vmatpush.msrb.mxu0 %v6912_v28  ;;  %2267 = vmatmul.f32.vlgmr.msrb.gmra.mxu1 %v6881_v48 }
 0x42d   :  { %2275 = vmatpush.msrb.mxu2 %v9212_v36  ;;  %2307 = vmatmul.f32.vlgmr.msrb.gmra.mxu3 %v6881_v48  ;;  %v9264_v36 = vld [vmem:[#allocation36_spill] sm:$0xff] }
 0x42e   :  { %2236 = vmatpush.msrb.mxu0 %v6918_v26  ;;  %2404 = vmatpush.msra.mxu1 %v9213_v35  ;;  %v9265_v35 = vld [vmem:[#allocation43_spill] sm:$0xff] }
 0x42f   :  { %2276 = vmatpush.msrb.mxu2 %v9214_v54  ;;  %2444 = vmatpush.msra.mxu3 %v9215_v51  ;;  %v9266_v54 = vld [vmem:[#allocation99_spill] sm:$0xff]  ;;  %v9267_v51 = vld [vmem:[#allocation37_spill] sm:$0xff] }
 0x430   :  { %2237 = vmatpush.msrb.mxu0 %v6924_v61  ;;  %2405 = vmatpush.msra.mxu1 %v9216_v23  ;;  %v9268_v23 = vld [vmem:[#allocation102_spill] sm:$0xff] }
 0x431   :  { %2277 = vmatpush.msrb.mxu2 %v9217_v29  ;;  %2445 = vmatpush.msra.mxu3 %v9218_v63  ;;  %v9269_v29 = vld [vmem:[#allocation45_spill] sm:$0xff]  ;;  %v9270_v63 = vld [vmem:[#allocation103_spill] sm:$0xff] }
 0x432   :  { %2238 = vmatpush.msrb.mxu0 %v6930_v3  ;;  %2406 = vmatpush.msra.mxu1 %v9219_v24  ;;  %v9271_v24 = vld [vmem:[#allocation39_spill] sm:$0xff] }
 0x433   :  { %2278 = vmatpush.msrb.mxu2 %v9220_v60  ;;  %2446 = vmatpush.msra.mxu3 %v9221_v8  ;;  %v9272_v60 = vld [vmem:[#allocation106_spill] sm:$0xff]  ;;  %v9273_v8 = vld [vmem:[#allocation47_spill] sm:$0xff] }
 0x434   :  { %2239 = vmatpush.msrb.mxu0 %v6936_v39  ;;  %2407 = vmatpush.msra.mxu1 %v9222_v33  ;;  %v9274_v33 = vld [vmem:[#allocation107_spill] sm:$0xff] }
 0x435   :  { %2279 = vmatpush.msrb.mxu2 %v9223_v58  ;;  %2447 = vmatpush.msra.mxu3 %v9224_v7  ;;  %v9275_v58 = vld [vmem:[#allocation41_spill] sm:$0xff] }
 0x436   :  { %2240 = vmatpush.msrb.mxu0 %v6942_v49  ;;  %2408 = vmatpush.msra.mxu1 %v9225_v57  ;;  %v9276_v7 = vld [vmem:[#allocation49_spill] sm:$0xff]  ;;  %v9277_v57 = vld [vmem:[#allocation44_spill] sm:$0xff] }
 0x437   :  { %2280 = vmatpush.msrb.mxu2 %v9226_v55  ;;  %2448 = vmatpush.msra.mxu3 %v9227_v25  ;;  %v9278_v55 = vld [vmem:[#allocation51_spill] sm:$0xff]  ;;  %v9279_v25 = vld [vmem:[#allocation46_spill] sm:$0xff] }
 0x438   :  { %2241 = vmatpush.msrb.mxu0 %v9228_v19  ;;  %2409 = vmatpush.msra.mxu1 %v9229_v44  ;;  %v9280_v19 = vld [vmem:[#allocation53_spill] sm:$0xff]  ;;  %v9281_v44 = vld [vmem:[#allocation48_spill] sm:$0xff] }
 0x439   :  { %2281 = vmatpush.msrb.mxu2 %v9230_v15  ;;  %2449 = vmatpush.msra.mxu3 %v9231_v22  ;;  %v9282_v15 = vld [vmem:[#allocation56_spill] sm:$0xff]  ;;  %v9283_v22 = vld [vmem:[#allocation50_spill] sm:$0xff] }
 0x43a   :  { %2242 = vmatpush.msrb.mxu0 %v9232_v11  ;;  %2410 = vmatpush.msra.mxu1 %v9233_v16  ;;  %v9284_v11 = vld [vmem:[#allocation59_spill] sm:$0xff]  ;;  %v9285_v16 = vld [vmem:[#allocation52_spill] sm:$0xff] }
 0x43b   :  { %2282 = vmatpush.msrb.mxu2 %v9234_v52  ;;  %2450 = vmatpush.msra.mxu3 %v9235_v0  ;;  %v9286_v52 = vld [vmem:[#allocation61_spill] sm:$0xff]  ;;  %v9287_v0 = vld [vmem:[#allocation84_spill] sm:$0xff] }
 0x43c   :  { %2243 = vmatpush.msrb.mxu0 %v9236_v5  ;;  %2411 = vmatpush.msra.mxu1 %v9237_v13  ;;  %v9288_v5 = vld [vmem:[#allocation85_spill] sm:$0xff]  ;;  %v9289_v13 = vld [vmem:[#allocation88_spill] sm:$0xff] }
 0x43d   :  { %2283 = vmatpush.msrb.mxu2 %v9238_v6  ;;  %2451 = vmatpush.msra.mxu3 %v9239_v41  ;;  %v9290_v6 = vld [vmem:[#allocation89_spill] sm:$0xff]  ;;  %v9291_v41 = vld [vmem:[#allocation92_spill] sm:$0xff] }
 0x43e   :  { %2244 = vmatpush.msrb.mxu0 %v9240_v10  ;;  %2412 = vmatpush.msra.mxu1 %v9241_v32  ;;  %v9292_v10 = vld [vmem:[#allocation93_spill] sm:$0xff]  ;;  %v9293_v32 = vld [vmem:[#allocation96_spill] sm:$0xff] }
 0x43f   :  { %2284 = vmatpush.msrb.mxu2 %v9242_v53  ;;  %2452 = vmatpush.msra.mxu3 %v9243_v50  ;;  %v9294_v53 = vld [vmem:[#allocation97_spill] sm:$0xff]  ;;  %v9295_v50 = vld [vmem:[#allocation100_spill] sm:$0xff] }
 0x440   :  { %2245 = vmatpush.msrb.mxu0 %v9244_v47  ;;  %2413 = vmatpush.msra.mxu1 %v9245_v27  ;;  %v9296_v47 = vld [vmem:[#allocation101_spill] sm:$0xff]  ;;  %v9297_v27 = vld [vmem:[#allocation104_spill] sm:$0xff] }
 0x441   :  { %2285 = vmatpush.msrb.mxu2 %v9246_v34  ;;  %2453 = vmatpush.msra.mxu3 %v9247_v40  ;;  %v9298_v34 = vld [vmem:[#allocation105_spill] sm:$0xff]  ;;  %v9299_v40 = vld [vmem:[#allocation108_spill] sm:$0xff] }
 0x442   :  { %2246 = vmatpush.msrb.mxu0 %v9248_v30  ;;  %2414 = vmatpush.msra.mxu1 %v9249_v56  ;;  %v9300_v30 = vld [vmem:[#allocation109_spill] sm:$0xff]  ;;  %v9301_v56 = vld [vmem:[#allocation110_spill] sm:$0xff] }
 0x443   :  { %2286 = vmatpush.msrb.mxu2 %v9250_v46  ;;  %2247 = vmatmul.f32.vlgmr.msrb.gmra.mxu0 %v6881_v48  ;;  %v9302_v46 = vld [vmem:[#allocation111_spill] sm:$0xff] }
 0x444   :  { %2287 = vmatmul.f32.vlgmr.msrb.gmra.mxu2 %v6881_v48  ;;  %2454 = vmatpush.msra.mxu3 %v9251_v1  ;;  %v9263_v48 = vld [vmem:[#allocation42_spill] sm:$0xff]  ;;  %v9303_v1 = vld [vmem:[#allocation112_spill] sm:$0xff] }
 0x445   :  { %2415 = vmatpush.msra.mxu1 %v9252_v9  ;;  %2384 = vmatpush.msra.mxu0 %v9253_v17  ;;  %v9304_v9 = vld [vmem:[#allocation113_spill] sm:$0xff]  ;;  %v9305_v17 = vld [vmem:[#allocation114_spill] sm:$0xff] }
 0x446   :  { %2455 = vmatpush.msra.mxu3 %v9254_v62  ;;  %2424 = vmatpush.msra.mxu2 %v9255_v20  ;;  %v9306_v62 = vld [vmem:[#allocation115_spill] sm:$0xff]  ;;  %v9307_v20 = vld [vmem:[#allocation116_spill] sm:$0xff] }
 0x447   :  { %2416 = vmatpush.msra.mxu1 %v9256_v21  ;;  %2385 = vmatpush.msra.mxu0 %v9257_v12  ;;  %v9308_v21 = vld [vmem:[#allocation117_spill] sm:$0xff]  ;;  %v9309_v12 = vld [vmem:[#allocation118_spill] sm:$0xff] }
 0x448   :  { %2456 = vmatpush.msra.mxu3 %v9258_v2  ;;  %2425 = vmatpush.msra.mxu2 %v9259_v37  ;;  %v9310_v2 = vld [vmem:[#allocation119_spill] sm:$0xff]  ;;  %v9311_v37 = vld [vmem:[#allocation120_spill] sm:$0xff] }
 0x449   :  { %2417 = vmatpush.msra.mxu1 %v9260_v45  ;;  %2386 = vmatpush.msra.mxu0 %v9261_v43  ;;  %v9312_v45 = vld [vmem:[#allocation121_spill] sm:$0xff]  ;;  %v9313_v43 = vld [vmem:[#allocation122_spill] sm:$0xff] }
 0x44a   :  { %2457 = vmatpush.msra.mxu3 %v9262_v59  ;;  %2426 = vmatpush.msra.mxu2 %v9263_v48  ;;  %v9314_v59 = vld [vmem:[#allocation123_spill] sm:$0xff]  ;;  %v9315_v48 = vld [vmem:[#allocation124_spill] sm:$0xff] }
 0x44b   :  { %2418 = vmatpush.msra.mxu1 %v9264_v36  ;;  %2387 = vmatpush.msra.mxu0 %v9265_v35  ;;  %v9316_v36 = vld [vmem:[#allocation125_spill] sm:$0xff]  ;;  %v9317_v35 = vld [vmem:[#allocation126_spill] sm:$0xff] }
 0x44c   :  { %2458 = vmatpush.msra.mxu3 %v9266_v54  ;;  %2427 = vmatpush.msra.mxu2 %v9267_v51  ;;  %v9318_v54 = vld [vmem:[#allocation127_spill] sm:$0xff]  ;;  %v9319_v51 = vld [vmem:[#allocation128_spill] sm:$0xff] }
 0x44d   :  { %2419 = vmatpush.msra.mxu1 %v9268_v23  ;;  %2388 = vmatpush.msra.mxu0 %v9269_v29  ;;  %v9320_v23 = vld [vmem:[#allocation129_spill] sm:$0xff]  ;;  %v9321_v29 = vld [vmem:[#allocation130_spill] sm:$0xff] }
 0x44e   :  { %2459 = vmatpush.msra.mxu3 %v9270_v63  ;;  %2428 = vmatpush.msra.mxu2 %v9271_v24  ;;  %v9322_v63 = vld [vmem:[#allocation131_spill] sm:$0xff]  ;;  %v9323_v24 = vld [vmem:[#allocation132_spill] sm:$0xff] }
 0x44f   :  { %2484 = vmatpush.msrb.mxu1 %v9272_v60  ;;  %2389 = vmatpush.msra.mxu0 %v9274_v33  ;;  %v9324_v60 = vld [vmem:[#allocation133_spill] sm:$0xff]  ;;  %v9326_v33 = vld [vmem:[#allocation135_spill] sm:$0xff] }
 0x450   :  { %2524 = vmatpush.msrb.mxu3 %v9273_v8  ;;  %2429 = vmatpush.msra.mxu2 %v9275_v58  ;;  %v9325_v8 = vld [vmem:[#allocation134_spill] sm:$0xff]  ;;  %v9327_v58 = vld [vmem:[#allocation136_spill] sm:$0xff] }
 0x451   :  { %2485 = vmatpush.msrb.mxu1 %v9276_v7  ;;  %2390 = vmatpush.msra.mxu0 %v9278_v55  ;;  %v9328_v7 = vld [vmem:[#allocation137_spill] sm:$0xff]  ;;  %v9330_v55 = vld [vmem:[#allocation139_spill] sm:$0xff] }
 0x452   :  { %2525 = vmatpush.msrb.mxu3 %v9277_v57  ;;  %2430 = vmatpush.msra.mxu2 %v9279_v25  ;;  %v9329_v57 = vld [vmem:[#allocation138_spill] sm:$0xff]  ;;  %v9331_v25 = vld [vmem:[#allocation140_spill] sm:$0xff] }
 0x453   :  { %2486 = vmatpush.msrb.mxu1 %v9280_v19  ;;  %2391 = vmatpush.msra.mxu0 %v9282_v15  ;;  %v9332_v19 = vld [vmem:[#allocation141_spill] sm:$0xff]  ;;  %v9334_v15 = vld [vmem:[#allocation143_spill] sm:$0xff] }
 0x454   :  { %2526 = vmatpush.msrb.mxu3 %v9281_v44  ;;  %2431 = vmatpush.msra.mxu2 %v9283_v22  ;;  %v9333_v44 = vld [vmem:[#allocation142_spill] sm:$0xff]  ;;  %v9335_v22 = vld [vmem:[#allocation144_spill] sm:$0xff] }
 0x455   :  { %2487 = vmatpush.msrb.mxu1 %v9284_v11  ;;  %2392 = vmatpush.msra.mxu0 %v9286_v52  ;;  %v9336_v11 = vld [vmem:[#allocation145_spill] sm:$0xff]  ;;  %v9338_v52 = vld [vmem:[#allocation147_spill] sm:$0xff] }
 0x456   :  { %2527 = vmatpush.msrb.mxu3 %v9285_v16  ;;  %2432 = vmatpush.msra.mxu2 %v9287_v0  ;;  %v9337_v16 = vld [vmem:[#allocation146_spill] sm:$0xff]  ;;  %v9339_v0 = vld [vmem:[#allocation148_spill] sm:$0xff] }
 0x457   :  { %2488 = vmatpush.msrb.mxu1 %v9288_v5  ;;  %2393 = vmatpush.msra.mxu0 %v9290_v6  ;;  %v9340_v5 = vld [vmem:[#allocation149_spill] sm:$0xff]  ;;  %v9342_v6 = vld [vmem:[#allocation151_spill] sm:$0xff] }
 0x458   :  { %2528 = vmatpush.msrb.mxu3 %v9289_v13  ;;  %2433 = vmatpush.msra.mxu2 %v9291_v41  ;;  %v9341_v13 = vld [vmem:[#allocation150_spill] sm:$0xff]  ;;  %v9343_v41 = vld [vmem:[#allocation152_spill] sm:$0xff] }
 0x459   :  { %2489 = vmatpush.msrb.mxu1 %v9292_v10  ;;  %2394 = vmatpush.msra.mxu0 %v9294_v53  ;;  %v9344_v10 = vld [vmem:[#allocation153_spill] sm:$0xff]  ;;  %v9346_v53 = vld [vmem:[#allocation155_spill] sm:$0xff] }
 0x45a   :  { %2529 = vmatpush.msrb.mxu3 %v9293_v32  ;;  %2434 = vmatpush.msra.mxu2 %v9295_v50  ;;  %v9345_v32 = vld [vmem:[#allocation154_spill] sm:$0xff]  ;;  %v9347_v50 = vld [vmem:[#allocation156_spill] sm:$0xff] }
 0x45b   :  { %2490 = vmatpush.msrb.mxu1 %v9296_v47  ;;  %2395 = vmatpush.msra.mxu0 %v9298_v34  ;;  %v9348_v47 = vld [vmem:[#allocation157_spill] sm:$0xff]  ;;  %v9350_v34 = vld [vmem:[#allocation159_spill] sm:$0xff] }
 0x45c   :  { %2530 = vmatpush.msrb.mxu3 %v9297_v27  ;;  %2435 = vmatpush.msra.mxu2 %v9299_v40  ;;  %v9349_v27 = vld [vmem:[#allocation158_spill] sm:$0xff]  ;;  %v9351_v40 = vld [vmem:[#allocation160_spill] sm:$0xff] }
 0x45d   :  { %2491 = vmatpush.msrb.mxu1 %v9300_v30  ;;  %2396 = vmatpush.msra.mxu0 %v9302_v46  ;;  %v9352_v30 = vld [vmem:[#allocation161_spill] sm:$0xff]  ;;  %v9354_v46 = vld [vmem:[#allocation163_spill] sm:$0xff] }
 0x45e   :  { %2531 = vmatpush.msrb.mxu3 %v9301_v56  ;;  %2436 = vmatpush.msra.mxu2 %v9303_v1  ;;  %v9353_v56 = vld [vmem:[#allocation162_spill] sm:$0xff]  ;;  %v9355_v1 = vld [vmem:[#allocation164_spill] sm:$0xff] }
 0x45f   :  { %2492 = vmatpush.msrb.mxu1 %v9304_v9  ;;  %2397 = vmatpush.msra.mxu0 %v9306_v62  ;;  %v9356_v9 = vld [vmem:[#allocation165_spill] sm:$0xff] }
 0x460   :  { %2532 = vmatpush.msrb.mxu3 %v9305_v17  ;;  %2437 = vmatpush.msra.mxu2 %v9307_v20  ;;  %v9357_v17 = vld [vmem:[#allocation166_spill] sm:$0xff] }
 0x461   :  { %2493 = vmatpush.msrb.mxu1 %v9308_v21  ;;  %2398 = vmatpush.msra.mxu0 %v9310_v2 }
 0x462   :  { %2533 = vmatpush.msrb.mxu3 %v9309_v12  ;;  %2438 = vmatpush.msra.mxu2 %v9311_v37  ;;  %v9358_v12 = vld [vmem:[#allocation54_spill] sm:$0xff] }
 0x463   :  { %2494 = vmatpush.msrb.mxu1 %v9312_v45  ;;  %2399 = vmatpush.msra.mxu0 %v9314_v59 }
 0x464   :  { %2534 = vmatpush.msrb.mxu3 %v9313_v43  ;;  %2439 = vmatpush.msra.mxu2 %v9315_v48  ;;  %v9359_v48 = vld [vmem:[#allocation55_spill] sm:$0xff] }
 0x465   :  { %2495 = vmatpush.msrb.mxu1 %v9316_v36  ;;  %2464 = vmatpush.msrb.mxu0 %v9318_v54  ;;  %v2228_v54 = vld [vmem:[#allocation4 + $0xa8] sm:$0xff] }
 0x466   :  { %2535 = vmatpush.msrb.mxu3 %v9317_v35  ;;  %2504 = vmatpush.msrb.mxu2 %v9319_v51 }
 0x467   :  { %2496 = vmatpush.msrb.mxu1 %v9320_v23  ;;  %2465 = vmatpush.msrb.mxu0 %v9322_v63 }
 0x468   :  { %2536 = vmatpush.msrb.mxu3 %v9321_v29  ;;  %2505 = vmatpush.msrb.mxu2 %v9323_v24 }
 0x469   :  { %2497 = vmatpush.msrb.mxu1 %v9324_v60  ;;  %2466 = vmatpush.msrb.mxu0 %v9326_v33  ;;  %v9360_v33 = vld [vmem:[#allocation57_spill] sm:$0xff] }
 0x46a   :  { %2537 = vmatpush.msrb.mxu3 %v9325_v8  ;;  %2506 = vmatpush.msrb.mxu2 %v9327_v58 }
 0x46b   :  { %2498 = vmatpush.msrb.mxu1 %v9328_v7  ;;  %2467 = vmatpush.msrb.mxu0 %v9330_v55 }
 0x46c   :  { %2538 = vmatpush.msrb.mxu3 %v9329_v57  ;;  %2507 = vmatpush.msrb.mxu2 %v9331_v25 }
 0x46d   :  { %2499 = vmatpush.msrb.mxu1 %v9332_v19  ;;  %2468 = vmatpush.msrb.mxu0 %v9334_v15  ;;  %v2230_v15 = vld [vmem:[#allocation4 + $0xb8] sm:$0xff] }
 0x46e   :  { %2539 = vmatpush.msrb.mxu3 %v9333_v44  ;;  %2508 = vmatpush.msrb.mxu2 %v9335_v22 }
 0x46f   :  { %2469 = vmatpush.msrb.mxu0 %v9336_v11 }
 0x470   :  { %2509 = vmatpush.msrb.mxu2 %v9337_v16 }
 0x471   :  { %2470 = vmatpush.msrb.mxu0 %v9338_v52  ;;  %v9361_v52 = vld [vmem:[#allocation58_spill] sm:$0xff] }
 0x472   :  { %2510 = vmatpush.msrb.mxu2 %v9339_v0 }
 0x473   :  { %2471 = vmatpush.msrb.mxu0 %v9340_v5 }
 0x474   :  { %2511 = vmatpush.msrb.mxu2 %v9341_v13 }
 0x475   :  { %2472 = vmatpush.msrb.mxu0 %v9342_v6 }
 0x476   :  { %2512 = vmatpush.msrb.mxu2 %v9343_v41 }
 0x477   :  { %2473 = vmatpush.msrb.mxu0 %v9344_v10 }
 0x478   :  { %2513 = vmatpush.msrb.mxu2 %v9345_v32 }
 0x479   :  { %2474 = vmatpush.msrb.mxu0 %v9346_v53 }
 0x47a   :  { %2514 = vmatpush.msrb.mxu2 %v9347_v50 }
 0x47b   :  { %2475 = vmatpush.msrb.mxu0 %v9348_v47 }
 0x47c   :  { %2515 = vmatpush.msrb.mxu2 %v9349_v27 }
 0x47d   :  { %2476 = vmatpush.msrb.mxu0 %v9350_v34 }
 0x47e   :  { %2516 = vmatpush.msrb.mxu2 %v9351_v40 }
 0x47f   :  { %2477 = vmatpush.msrb.mxu0 %v9352_v30 }
 0x480   :  { %2517 = vmatpush.msrb.mxu2 %v9353_v56 }
 0x481   :  { %2478 = vmatpush.msrb.mxu0 %v9354_v46 }
 0x482   :  { %2518 = vmatpush.msrb.mxu2 %v9355_v1  ;;  %v2227_v1 = vld [vmem:[#allocation4 + $0xa0] sm:$0xff] }
 0x483   :  { %2479 = vmatpush.msrb.mxu0 %v9356_v9 }
 0x484   :  { %2519 = vmatpush.msrb.mxu2 %v9357_v17  ;;  %v7122_v17 = vld [vmem:[#allocation7 + $0x1c8] sm:$0xff] }
 0x487   :  { %v2034_v62 = vpop.f32.mrf.mxu1 }
 0x48d   :  { %v2074_v37 = vpop.f32.mrf.mxu3 }
 0x48f   :  { %v2114_v21 = vpop.f32.mrf.mxu1 }
 0x495   :  { %v2154_v24 = vpop.f32.mrf.mxu3 }
 0x49f   :  { %v2014_v20 = vpop.f32.mrf.mxu0 }
 0x4a0   :  { %v2015_v2 = vadd.f32 %v2014_v20, %v9358_v12 }
 0x4a2   :  { %v2035_v45 = vadd.f32 %v2034_v62, %v2015_v2 }
 0x4a4   :  { %v3433_v43 = vmul.f32 -1.442695, %v2035_v45 }
 0x4a5   :  { %v2054_v59 = vpop.f32.mrf.mxu2 }
 0x4a6   :  { %3608 = vpow2.f32 %v3433_v43  ;;  %v2055_v36 = vadd.f32 %v2054_v59, %v9359_v48 }
 0x4a8   :  { %v2075_v35 = vadd.f32 %v2074_v37, %v2055_v36  ;;  %v2094_v44 = vpop.f32.mrf.mxu0 }
 0x4a9   :  { %v2268_v51 = vpop.f32.mrf.mxu1  ;;  %v2095_v0 = vadd.f32 %v2094_v44, %v9361_v52 }
 0x4aa   :  { %v3434_v23 = vmul.f32 -1.442695, %v2075_v35  ;;  %v2312_v29 = vadd.f32 %v2268_v51, %v2228_v54 }
 0x4ab   :  { %v2115_v10 = vadd.f32 %v2114_v21, %v2095_v0 }
 0x4ac   :  { %v3609_v63 = vpop.eup %3608  ;;  %3610 = vpow2.f32 %v3434_v23  ;;  %v3437_v7 = vmul.f32 -1.442695, %v2312_v29 }
 0x4ad   :  { %v2160_v60 = vadd.f32 1.0, %v3609_v63 }
 0x4ae   :  { %v2134_v8 = vpop.f32.mrf.mxu2 }
 0x4af   :  { %v2135_v58 = vadd.f32 %v2134_v8, %v9360_v33  ;;  %3612 = vrcp.f32 %v2160_v60  ;;  %v2172_v30 = vand.u32 2147483648, %v2160_v60  ;;  %vm2166_vm13 = vweird.f32 %v2160_v60 }
 0x4b0   :  { %3614 = vpow2.f32 %v3437_v7  ;;  %v2308_v22 = vpop.f32.mrf.mxu3  ;;  %v2170_v46 = vand.u32 2147483647, %v2160_v60 }
 0x4b1   :  { %v2155_v57 = vadd.f32 %v2154_v24, %v2135_v58  ;;  %v2314_v5 = vadd.f32 %v2308_v22, %v2230_v15  ;;  %v2173_v37 = vor.u32 1.1754944e-38, %v2172_v30  ;;  %v7113_v30 = vld [vmem:[#allocation7 + $0x1f8] sm:$0xff] }
 0x4b2   :  { %v3611_v55 = vpop.eup %3610  ;;  %vm2171_vm1 = vcmp.eq.f32.partialorder %v2170_v46, 8.507059e+37 }
 0x4b3   :  { %v3435_v25 = vmul.f32 -1.442695, %v2155_v57  ;;  %v2179_v19 = vadd.f32 1.0, %v3611_v55  ;;  %v3438_v47 = vmul.f32 -1.442695, %v2314_v5 }
 0x4b5   :  { %3616 = vpow2.f32 %v3435_v25  ;;  %v3613_v11 = vpop.eup %3612  ;;  %v2191_v9 = vand.u32 2147483648, %v2179_v19  ;;  %v2189_v62 = vand.u32 2147483647, %v2179_v19  ;;  %vm2185_vm0 = vweird.f32 %v2179_v19 }
 0x4b6   :  { %3618 = vrcp.f32 %v2179_v19  ;;  %v2162_v16 = vmul.f32 %v3613_v11, %v2160_v60  ;;  %v3615_v6 = vpop.eup %3614  ;;  %vm2167_vm12 = vweird.f32 %v3613_v11 }
 0x4b7   :  { %v7084_v40 = vadd.f32 1.0, %v3615_v6  ;;  %vm7086_vm14 = vmor %vm2166_vm13, %vm2167_vm12  ;;  %v2192_v36 = vor.u32 1.1754944e-38, %v2191_v9  ;;  %vm2190_vm3 = vcmp.eq.f32.partialorder %v2189_v62, 8.507059e+37  ;;  %v7125_v62 = vld [vmem:[#allocation7 + $0x1d8] sm:$0xff] }
 0x4b8   :  { %v2163_v13 = vsub.f32 1.0, %v2162_v16 }
 0x4b9   :  { %vm2343_vm9 = vweird.f32 %v7084_v40 }
 0x4ba   :  { %v2164_v32 = vmul.f32 %v3613_v11, %v2163_v13 }
 0x4bb   :  { %v3617_v41 = vpop.eup %3616 }
 0x4bc   :  { %v3619_v53 = vpop.eup %3618  ;;  %v2199_v50 = vadd.f32 1.0, %v3617_v41  ;;  %v2165_v34 = vadd.f32 %v3613_v11, %v2164_v32 }
 0x4bd   :  { %v2181_v27 = vmul.f32 %v3619_v53, %v2179_v19  ;;  %vm2186_vm15 = vweird.f32 %v3619_v53 }
 0x4be   :  { %3620 = vrcp.f32 %v2199_v50  ;;  %v2169_v2 = vsel %vm7086_vm14, %v3613_v11, %v2165_v34  ;;  %vm2187_vm2 = vmor %vm2185_vm0, %vm2186_vm15  ;;  %v2211_v44 = vand.u32 2147483648, %v2199_v50  ;;  %vm2205_vm5 = vweird.f32 %v2199_v50  ;;  %v7110_v34 = vld [vmem:[#allocation7 + $0x1e8] sm:$0xff] }
 0x4bf   :  { %v2182_v56 = vsub.f32 1.0, %v2181_v27  ;;  %3622 = vtanh.f32 %v2115_v10  ;;  %v2174_v35 = vsel %vm2171_vm1, %v2173_v37, %v2169_v2  ;;  %v2209_v11 = vand.u32 2147483647, %v2199_v50  ;;  %v2229_v10 = vld [vmem:[#allocation4 + $0xb0] sm:$0xff] }
 0x4c0   :  { %3624 = vpow2.f32 %v3438_v47  ;;  %v2248_v20 = vpop.f32.mrf.mxu0  ;;  %v2212_v5 = vor.u32 1.1754944e-38, %v2211_v44  ;;  %v7159_v44 = vld [vmem:[#allocation7 + $0x148] sm:$0xff]  ;;  %v7217_v2 = vld [vmem:[#allocation7 + $0x1f0] sm:$0xff] }
 0x4c1   :  { %v2183_v21 = vmul.f32 %v3619_v53, %v2182_v56  ;;  %3626 = vrcp.f32 %v7084_v40  ;;  %v2311_v45 = vadd.f32 %v2248_v20, %v2227_v1  ;;  %vm2210_vm7 = vcmp.eq.f32.partialorder %v2209_v11, 8.507059e+37 }
 0x4c2   :  { %v2349_v1 = vand.u32 2147483648, %v7084_v40 }
 0x4c3   :  { %v2184_v43 = vadd.f32 %v3619_v53, %v2183_v21  ;;  %v3436_v54 = vmul.f32 -1.442695, %v2311_v45  ;;  %v2347_v21 = vand.u32 2147483647, %v7084_v40  ;;  %v7135_v45 = vld [vmem:[#allocation7 + $0x1a8] sm:$0xff] }
 0x4c4   :  { %v3621_v59 = vpop.eup %3620 }
 0x4c5   :  { %v3623_v51 = vpop.eup %3622  ;;  %v2188_v23 = vsel %vm2187_vm2, %v3619_v53, %v2184_v43  ;;  %v2201_v29 = vmul.f32 %v3621_v59, %v2199_v50  ;;  %3628 = vpow2.f32 %v3436_v54  ;;  %vm2206_vm4 = vweird.f32 %v3621_v59  ;;  %v7138_v43 = vld [vmem:[#allocation7 + $0x1b8] sm:$0xff] }
 0x4c6   :  { %v3625_v63 = vpop.eup %3624  ;;  %v2193_v24 = vsel %vm2190_vm3, %v2192_v36, %v2188_v23  ;;  %v2216_v58 = vmul.f32 %v3623_v51, %v2174_v35  ;;  %vm2207_vm6 = vmor %vm2205_vm5, %vm2206_vm4  ;;  %v2350_v35 = vor.u32 1.1754944e-38, %v2349_v1  ;;  %v7145_v51 = vld [vmem:[#allocation7 + $0x188] sm:$0xff]  ;;  %v7148_v23 = vld [vmem:[#allocation7 + $0x198] sm:$0xff]  ;;  %vm2348_vm13 = vcmp.eq.f32.partialorder %v2347_v21, 8.507059e+37 }
 0x4c7   :  { %v7093_v60 = vpop.eup %3626  ;;  %v2215_v8 = vmul.f32 %v2193_v24, %v6821_v38  ;;  %v2202_v7 = vsub.f32 1.0, %v2201_v29  ;;  %v7100_v19 = vadd.f32 1.0, %v3625_v63  ;;  %v2288_v32 = vpop.f32.mrf.mxu2  ;;  %v7210_v21 = vld [vmem:[#allocation7 + $0x98] sm:$0xff] }
 0x4c8   :  { %v2339_v25 = vmul.f32 %v7093_v60, %v7084_v40  ;;  %v2313_v27 = vadd.f32 %v2288_v32, %v2229_v10  ;;  %vm2344_vm8 = vweird.f32 %v7093_v60  ;;  %v7186_v10 = vld [vmem:[#allocation7 + $0xe8] sm:$0xff]  ;;  %v7189_v32 = vld [vmem:[#allocation7 + $0xf8] sm:$0xff] }
 0x4c9   :  { %v7096_v57 = vadd.f32 %v2216_v58, %v2215_v8  ;;  %v2203_v55 = vmul.f32 %v3621_v59, %v2202_v7  ;;  %vm7130_vm10 = vmor %vm2343_vm9, %vm2344_vm8  ;;  %v7155_v8 = vld [vmem:[#allocation7 + $0x178] sm:$0xff]  ;;  %vm2363_vm1 = vweird.f32 %v7100_v19 }
 0x4ca   :  { %v2340_v38 = vsub.f32 1.0, %v2339_v25 }
 0x4cb   :  { %3630 = vtanh.f32 %v7096_v57  ;;  %v2204_v15 = vadd.f32 %v3621_v59, %v2203_v55  ;;  %v3629_v22 = vpop.eup %3628 }
 0x4cc   :  { %v7103_v16 = vadd.f32 1.0, %v3629_v22  ;;  %3632 = vrcp.f32 %v7100_v19  ;;  %v2341_v41 = vmul.f32 %v7093_v60, %v2340_v38  ;;  %v7169_v38 = vld [vmem:[#allocation7 + $0x138] sm:$0xff] }
 0x4cd   :  { %v2208_v0 = vsel %vm2207_vm6, %v3621_v59, %v2204_v15  ;;  %v7162_v15 = vld [vmem:[#allocation7 + $0x158] sm:$0xff] }
 0x4ce   :  { %3634 = vrcp.f32 %v7103_v16  ;;  %v2213_v6 = vsel %vm2210_vm7, %v2212_v5, %v2208_v0  ;;  %v2342_v46 = vadd.f32 %v7093_v60, %v2341_v41  ;;  %v2330_v37 = vand.u32 2147483648, %v7103_v16 }
 0x4cf   :  { %3636 = vtanh.f32 %v2313_v27  ;;  %v2328_v36 = vand.u32 2147483647, %v7103_v16  ;;  %vm2324_vm12 = vweird.f32 %v7103_v16  ;;  %v2367_v41 = vand.u32 2147483647, %v7100_v19  ;;  %v7196_v27 = vld [vmem:[#allocation7 + $0xd8] sm:$0xff] }
 0x4d0   :  { %v2346_v40 = vsel %vm7130_vm10, %v7093_v60, %v2342_v46  ;;  %v2331_v63 = vor.u32 1.1754944e-38, %v2330_v37  ;;  %v7152_v60 = vld [vmem:[#allocation7 + $0x168] sm:$0xff]  ;;  %v7202_v46 = vld [vmem:[#allocation7 + $0xb8] sm:$0xff] }
 0x4d1   :  { %v3631_v13 = vpop.eup %3630  ;;  %v2351_v24 = vsel %vm2348_vm13, %v2350_v35, %v2346_v40  ;;  %vm2329_vm15 = vcmp.eq.f32.partialorder %v2328_v36, 8.507059e+37  ;;  %vm2368_vm3 = vcmp.eq.f32.partialorder %v2367_v41, 8.507059e+37  ;;  %v7220_v37 = vld [vmem:[#allocation7 + $0x68] sm:$0xff]  ;;  %v7227_v36 = vld [vmem:[#allocation7 + $0x1d0] sm:$0xff] }
 0x4d2   :  { %v2219_v53 = vmul.f32 %v3631_v13, %v2213_v6  ;;  %v7108_v47 = vpop.eup %3632  ;;  %v2373_v22 = vmul.f32 %v2351_v24, %v6862_v31  ;;  %v7176_v13 = vld [vmem:[#allocation7 + $0x108] sm:$0xff]  ;;  %v7179_v31 = vld [vmem:[#allocation7 + $0x118] sm:$0xff]  ;;  %v2369_v6 = vand.u32 2147483648, %v7100_v19  ;;  %v7237_v35 = vld [vmem:[#allocation7 + $0x1b0] sm:$0xff] }
 0x4d3   :  { %v2359_v9 = vmul.f32 %v7108_v47, %v7100_v19  ;;  %vm2364_vm0 = vweird.f32 %v7108_v47  ;;  %v7230_v40 = vld [vmem:[#allocation7 + $0x48] sm:$0xff]  ;;  %v7265_v24 = vld [vmem:[#allocation9 + $0x3e0] sm:$0xff]  ;;  %v7308_v41 = vld [vmem:[#allocation7 + $0xd0] sm:$0xff] }
 0x4d4   :  { %2223 = vst [vmem:[#allocation12 + $0x48] sm:$0xff] %v2219_v53  ;;  %2420 = vmatmul.f32.vlgmr.msra.gmra.mxu1 %v2219_v53  ;;  %2460 = vmatmul.f32.vlgmr.msra.gmra.mxu3 %v2219_v53  ;;  %v3635_v50 = vpop.eup %3634  ;;  %vm2365_vm2 = vmor %vm2363_vm1, %vm2364_vm0  ;;  %v2370_v19 = vor.u32 1.1754944e-38, %v2369_v6  ;;  %v7305_v6 = vld [vmem:[#allocation9 + $0x360] sm:$0xff] }
 0x4d5   :  { %2638 = vmatpush.msra.mxu1 %v7110_v34  ;;  %2678 = vmatpush.msra.mxu3 %v7113_v30  ;;  %v2320_v56 = vmul.f32 %v3635_v50, %v7103_v16  ;;  %vm2325_vm11 = vweird.f32 %v3635_v50  ;;  %v2360_v54 = vsub.f32 1.0, %v2359_v9  ;;  %v3637_v7 = vpop.eup %3636  ;;  %v7166_v16 = vld [vmem:[#allocation7 + $0x128] sm:$0xff]  ;;  %9367 = vst [vmem:[#allocation62_spill] sm:$0xff] %v7265_v24 }
 0x4d6   :  { %vm2326_vm14 = vmor %vm2324_vm12, %vm2325_vm11  ;;  %9379 = vst [vmem:[#allocation69_spill] sm:$0xff] %v7305_v6 }
 0x4d7   :  { %2639 = vmatpush.msra.mxu1 %v7122_v17  ;;  %2679 = vmatpush.msra.mxu3 %v7125_v62  ;;  %v2321_v20 = vsub.f32 1.0, %v2320_v56  ;;  %v2361_v55 = vmul.f32 %v7108_v47, %v2360_v54  ;;  %v7199_v56 = vld [vmem:[#allocation7 + $0xa8] sm:$0xff]  ;;  %9380 = vst [vmem:[#allocation70_spill] sm:$0xff] %v7308_v41 }
 0x4d8   :  { %v7240_v54 = vld [vmem:[#allocation7 + $0x28] sm:$0xff] }
 0x4d9   :  { %2640 = vmatpush.msra.mxu1 %v7135_v45  ;;  %2680 = vmatpush.msra.mxu3 %v7138_v43  ;;  %v2322_v59 = vmul.f32 %v3635_v50, %v2321_v20  ;;  %v2362_v5 = vadd.f32 %v7108_v47, %v2361_v55  ;;  %v7207_v20 = vld [vmem:[#allocation7 + $0x88] sm:$0xff]  ;;  %v7278_v55 = vld [vmem:[#allocation7 + $0x130] sm:$0xff] }
 0x4da   :  { %9371 = vst [vmem:[#allocation18_spill] sm:$0xff] %v7278_v55 }
 0x4db   :  { %2641 = vmatpush.msra.mxu1 %v7145_v51  ;;  %2681 = vmatpush.msra.mxu3 %v7148_v23  ;;  %v2323_v29 = vadd.f32 %v3635_v50, %v2322_v59  ;;  %v7223_v59 = vld [vmem:[#allocation7 + $0x78] sm:$0xff] }
 0x4dc   :  { %2500 = vmatmul.f32.vlgmr.msrb.gmra.mxu1 %v2219_v53  ;;  %2540 = vmatmul.f32.vlgmr.msrb.gmra.mxu3 %v2219_v53  ;;  %v2366_v53 = vsel %vm2365_vm2, %v7108_v47, %v2362_v5  ;;  %v7298_v5 = vld [vmem:[#allocation7 + $0xf0] sm:$0xff] }
 0x4dd   :  { %2642 = vmatpush.msra.mxu1 %v7152_v60  ;;  %2682 = vmatpush.msra.mxu3 %v7155_v8  ;;  %v2327_v58 = vsel %vm2326_vm14, %v3635_v50, %v2323_v29  ;;  %v7193_v50 = vld [vmem:[#allocation7 + $0xc8] sm:$0xff]  ;;  %v2371_v47 = vsel %vm2368_vm3, %v2370_v19, %v2366_v53  ;;  %v7247_v29 = vld [vmem:[#allocation7 + $0x190] sm:$0xff]  ;;  %9377 = vst [vmem:[#allocation20_spill] sm:$0xff] %v7298_v5  ;;  %v7314_v53 = vld [vmem:[#allocation7 + $0xa0] sm:$0xff] }
 0x4de   :  { %v2332_v25 = vsel %vm2329_vm15, %v2331_v63, %v2327_v58  ;;  %v7250_v63 = vld [vmem:[#allocation7 + $0x8] sm:$0xff]  ;;  %v7268_v58 = vld [vmem:[#allocation7 + $0x150] sm:$0xff]  ;;  %9382 = vst [vmem:[#allocation71_spill] sm:$0xff] %v7314_v53  ;;  %v7317_v19 = vld [vmem:[#allocation9 + $0x340] sm:$0xff] }
 0x4df   :  { %2643 = vmatpush.msra.mxu1 %v7159_v44  ;;  %2683 = vmatpush.msra.mxu3 %v7162_v15  ;;  %v2374_v11 = vmul.f32 %v3637_v7, %v2332_v25  ;;  %9368 = vst [vmem:[#allocation63_spill] sm:$0xff] %v7268_v58  ;;  %v7271_v7 = vld [vmem:[#allocation9 + $0x3e8] sm:$0xff]  ;;  %v7285_v25 = vld [vmem:[#allocation9 + $0x3a0] sm:$0xff] }
 0x4e0   :  { %9369 = vst [vmem:[#allocation17_spill] sm:$0xff] %v7271_v7 }
 0x4e1   :  { %2644 = vmatpush.msra.mxu1 %v7166_v16  ;;  %2684 = vmatpush.msra.mxu3 %v7169_v38  ;;  %v7172_v0 = vadd.f32 %v2374_v11, %v2373_v22  ;;  %9373 = vst [vmem:[#allocation66_spill] sm:$0xff] %v7285_v25  ;;  %v7288_v22 = vld [vmem:[#allocation7 + $0x110] sm:$0xff]  ;;  %v7295_v11 = vld [vmem:[#allocation9 + $0x380] sm:$0xff] }
 0x4e2   :  { %9374 = vst [vmem:[#allocation19_spill] sm:$0xff] %v7288_v22 }
 0x4e3   :  { %2645 = vmatpush.msra.mxu1 %v7176_v13  ;;  %2685 = vmatpush.msra.mxu3 %v7179_v31  ;;  %3638 = vtanh.f32 %v7172_v0  ;;  %9376 = vst [vmem:[#allocation68_spill] sm:$0xff] %v7295_v11 }
 0x4e4   :  { %9383 = vst [vmem:[#allocation72_spill] sm:$0xff] %v7317_v19 }
 0x4e5   :  { %2646 = vmatpush.msra.mxu1 %v7186_v10  ;;  %2686 = vmatpush.msra.mxu3 %v7189_v32 }
 0x4e7   :  { %2647 = vmatpush.msra.mxu1 %v7193_v50  ;;  %2687 = vmatpush.msra.mxu3 %v7196_v27 }
 0x4e9   :  { %2648 = vmatpush.msra.mxu1 %v7199_v56  ;;  %2688 = vmatpush.msra.mxu3 %v7202_v46  ;;  %v3639_v1 = vpop.eup %3638 }
 0x4ea   :  { %v7205_v9 = vmul.f32 %v3639_v1, %v2371_v47  ;;  %v7323_v1 = vld [vmem:[#allocation9 + $0x348] sm:$0xff]  ;;  %v7326_v47 = vld [vmem:[#allocation7 + $0x80] sm:$0xff] }
 0x4eb   :  { %2649 = vmatpush.msra.mxu1 %v7207_v20  ;;  %2689 = vmatpush.msra.mxu3 %v7210_v21  ;;  %9385 = vst [vmem:[#allocation73_spill] sm:$0xff] %v7323_v1 }
 0x4ec   :  { %2381 = vst [vmem:[#allocation12 + $0x50] sm:$0xff] %v7205_v9  ;;  %2400 = vmatmul.f32.vlgmr.msra.gmra.mxu0 %v7205_v9  ;;  %2440 = vmatmul.f32.vlgmr.msra.gmra.mxu2 %v7205_v9 }
 0x4ed   :  { %2618 = vmatpush.msra.mxu0 %v6888_v14  ;;  %2658 = vmatpush.msra.mxu2 %v7217_v2  ;;  %v7233_v14 = vld [vmem:[#allocation7 + $0x58] sm:$0xff]  ;;  %9386 = vst [vmem:[#allocation74_spill] sm:$0xff] %v7326_v47 }
 0x4ee   :  { %2650 = vmatpush.msra.mxu1 %v7220_v37  ;;  %2690 = vmatpush.msra.mxu3 %v7223_v59 }
 0x4ef   :  { %2619 = vmatpush.msra.mxu0 %v6894_v4  ;;  %2659 = vmatpush.msra.mxu2 %v7227_v36  ;;  %v7243_v4 = vld [vmem:[#allocation7 + $0x38] sm:$0xff] }
 0x4f0   :  { %2651 = vmatpush.msra.mxu1 %v7230_v40  ;;  %2691 = vmatpush.msra.mxu3 %v7233_v14 }
 0x4f1   :  { %2620 = vmatpush.msra.mxu0 %v6900_v42  ;;  %2660 = vmatpush.msra.mxu2 %v7237_v35  ;;  %v7253_v42 = vld [vmem:[#allocation7 + $0x18] sm:$0xff] }
 0x4f2   :  { %2652 = vmatpush.msra.mxu1 %v7240_v54  ;;  %2692 = vmatpush.msra.mxu3 %v7243_v4 }
 0x4f3   :  { %2621 = vmatpush.msra.mxu0 %v6906_v18  ;;  %2661 = vmatpush.msra.mxu2 %v7247_v29  ;;  %v7260_v18 = vld [vmem:[#allocation7 + $0x170] sm:$0xff] }
 0x4f4   :  { %2653 = vmatpush.msra.mxu1 %v7250_v63  ;;  %2693 = vmatpush.msra.mxu3 %v7253_v42  ;;  %9366 = vst [vmem:[#allocation60_spill] sm:$0xff] %v7260_v18 }
 0x4f5   :  { %2480 = vmatmul.f32.vlgmr.msrb.gmra.mxu0 %v7205_v9  ;;  %2520 = vmatmul.f32.vlgmr.msrb.gmra.mxu2 %v7205_v9 }
 0x4f6   :  { %2622 = vmatpush.msra.mxu0 %v6912_v28  ;;  %2654 = vmatmul.f32.vlgmr.msra.gmra.mxu1 %v7205_v9  ;;  %v7275_v28 = vld [vmem:[#allocation9 + $0x3c0] sm:$0xff] }
 0x4f7   :  { %2662 = vmatpush.msra.mxu2 %v7260_v18  ;;  %2694 = vmatmul.f32.vlgmr.msra.gmra.mxu3 %v7205_v9  ;;  %9370 = vst [vmem:[#allocation64_spill] sm:$0xff] %v7275_v28 }
 0x4f8   :  { %2623 = vmatpush.msra.mxu0 %v6918_v26  ;;  %2791 = vmatpush.msrb.mxu1 %v7265_v24  ;;  %v7281_v26 = vld [vmem:[#allocation9 + $0x3c8] sm:$0xff] }
 0x4f9   :  { %2663 = vmatpush.msra.mxu2 %v7268_v58  ;;  %2831 = vmatpush.msrb.mxu3 %v7271_v7  ;;  %9372 = vst [vmem:[#allocation65_spill] sm:$0xff] %v7281_v26 }
 0x4fa   :  { %2624 = vmatpush.msra.mxu0 %v6924_v61  ;;  %2792 = vmatpush.msrb.mxu1 %v7275_v28  ;;  %v7291_v61 = vld [vmem:[#allocation9 + $0x3a8] sm:$0xff] }
 0x4fb   :  { %2664 = vmatpush.msra.mxu2 %v7278_v55  ;;  %2832 = vmatpush.msrb.mxu3 %v7281_v26  ;;  %9375 = vst [vmem:[#allocation67_spill] sm:$0xff] %v7291_v61 }
 0x4fc   :  { %2625 = vmatpush.msra.mxu0 %v6930_v3  ;;  %2793 = vmatpush.msrb.mxu1 %v7285_v25  ;;  %v7301_v3 = vld [vmem:[#allocation9 + $0x388] sm:$0xff] }
 0x4fd   :  { %2665 = vmatpush.msra.mxu2 %v7288_v22  ;;  %2833 = vmatpush.msrb.mxu3 %v7291_v61  ;;  %9378 = vst [vmem:[#allocation21_spill] sm:$0xff] %v7301_v3  ;;  %v2615_v61 = vld [vmem:[#allocation4 + $0xc8] sm:$0xff] }
 0x4fe   :  { %2626 = vmatpush.msra.mxu0 %v6936_v39  ;;  %2794 = vmatpush.msrb.mxu1 %v7295_v11  ;;  %v7311_v39 = vld [vmem:[#allocation9 + $0x368] sm:$0xff] }
 0x4ff   :  { %2666 = vmatpush.msra.mxu2 %v7298_v5  ;;  %2834 = vmatpush.msrb.mxu3 %v7301_v3  ;;  %9381 = vst [vmem:[#allocation22_spill] sm:$0xff] %v7311_v39 }
 0x500   :  { %2627 = vmatpush.msra.mxu0 %v6942_v49  ;;  %2795 = vmatpush.msrb.mxu1 %v7305_v6  ;;  %v7320_v49 = vld [vmem:[#allocation7 + $0xb0] sm:$0xff] }
 0x501   :  { %2667 = vmatpush.msra.mxu2 %v7308_v41  ;;  %2835 = vmatpush.msrb.mxu3 %v7311_v39  ;;  %9384 = vst [vmem:[#allocation24_spill] sm:$0xff] %v7320_v49  ;;  %v7329_v39 = vld [vmem:[#allocation9 + $0x320] sm:$0xff] }
 0x502   :  { %2628 = vmatpush.msra.mxu0 %v7314_v53  ;;  %2796 = vmatpush.msrb.mxu1 %v7317_v19  ;;  %9387 = vst [vmem:[#allocation26_spill] sm:$0xff] %v7329_v39  ;;  %v7332_v53 = vld [vmem:[#allocation7 + $0x90] sm:$0xff]  ;;  %v7335_v19 = vld [vmem:[#allocation9 + $0x328] sm:$0xff] }
 0x503   :  { %2668 = vmatpush.msra.mxu2 %v7320_v49  ;;  %2836 = vmatpush.msrb.mxu3 %v7323_v1  ;;  %9388 = vst [vmem:[#allocation75_spill] sm:$0xff] %v7332_v53  ;;  %v7338_v49 = vld [vmem:[#allocation7 + $0x60] sm:$0xff] }
 0x504   :  { %2629 = vmatpush.msra.mxu0 %v7326_v47  ;;  %2797 = vmatpush.msrb.mxu1 %v7329_v39  ;;  %9389 = vst [vmem:[#allocation76_spill] sm:$0xff] %v7335_v19  ;;  %v7341_v1 = vld [vmem:[#allocation9 + $0x300] sm:$0xff]  ;;  %v7344_v47 = vld [vmem:[#allocation7 + $0x70] sm:$0xff]  ;;  %v7347_v39 = vld [vmem:[#allocation9 + $0x308] sm:$0xff] }
 0x505   :  { %2669 = vmatpush.msra.mxu2 %v7332_v53  ;;  %2837 = vmatpush.msrb.mxu3 %v7335_v19  ;;  %9390 = vst [vmem:[#allocation28_spill] sm:$0xff] %v7338_v49  ;;  %v7350_v53 = vld [vmem:[#allocation7 + $0x40] sm:$0xff] }
 0x506   :  { %2630 = vmatpush.msra.mxu0 %v7338_v49  ;;  %9391 = vst [vmem:[#allocation77_spill] sm:$0xff] %v7341_v1  ;;  %2798 = vmatpush.msrb.mxu1 %v7341_v1  ;;  %v7353_v19 = vld [vmem:[#allocation9 + $0x2e0] sm:$0xff]  ;;  %v7356_v49 = vld [vmem:[#allocation7 + $0x50] sm:$0xff]  ;;  %v7359_v1 = vld [vmem:[#allocation9 + $0x2e8] sm:$0xff] }
 0x507   :  { %9392 = vst [vmem:[#allocation78_spill] sm:$0xff] %v7344_v47  ;;  %2670 = vmatpush.msra.mxu2 %v7344_v47  ;;  %2838 = vmatpush.msrb.mxu3 %v7347_v39  ;;  %v7362_v47 = vld [vmem:[#allocation7 + $0x20] sm:$0xff] }
 0x508   :  { %9393 = vst [vmem:[#allocation30_spill] sm:$0xff] %v7347_v39  ;;  %2631 = vmatpush.msra.mxu0 %v7350_v53  ;;  %2799 = vmatpush.msrb.mxu1 %v7353_v19  ;;  %v7365_v39 = vld [vmem:[#allocation9 + $0x2c0] sm:$0xff] }
 0x509   :  { %9394 = vst [vmem:[#allocation79_spill] sm:$0xff] %v7350_v53  ;;  %2671 = vmatpush.msra.mxu2 %v7356_v49  ;;  %2839 = vmatpush.msrb.mxu3 %v7359_v1  ;;  %v7368_v53 = vld [vmem:[#allocation7 + $0x30] sm:$0xff] }
 0x50a   :  { %9395 = vst [vmem:[#allocation23_spill] sm:$0xff] %v7353_v19  ;;  %2632 = vmatpush.msra.mxu0 %v7362_v47  ;;  %2800 = vmatpush.msrb.mxu1 %v7365_v39  ;;  %v7371_v19 = vld [vmem:[#allocation9 + $0x2c8] sm:$0xff] }
 0x50b   :  { %9396 = vst [vmem:[#allocation80_spill] sm:$0xff] %v7356_v49  ;;  %2672 = vmatpush.msra.mxu2 %v7368_v53  ;;  %2840 = vmatpush.msrb.mxu3 %v7371_v19  ;;  %v7374_v49 = vld [vmem:[#allocation7] sm:$0xff] }
 0x50c   :  { %9397 = vst [vmem:[#allocation32_spill] sm:$0xff] %v7359_v1  ;;  %2633 = vmatpush.msra.mxu0 %v7374_v49  ;;  %v7377_v1 = vld [vmem:[#allocation9 + $0x2a0] sm:$0xff] }
 0x50d   :  { %9398 = vst [vmem:[#allocation81_spill] sm:$0xff] %v7362_v47  ;;  %2801 = vmatpush.msrb.mxu1 %v7377_v1  ;;  %v7380_v47 = vld [vmem:[#allocation7 + $0x10] sm:$0xff]  ;;  %2634 = vmatmul.f32.vlgmr.msra.gmra.mxu0 %v7205_v9 }
 0x50e   :  { %9399 = vst [vmem:[#allocation25_spill] sm:$0xff] %v7365_v39  ;;  %2673 = vmatpush.msra.mxu2 %v7380_v47 }
 0x50f   :  { %9400 = vst [vmem:[#allocation82_spill] sm:$0xff] %v7368_v53  ;;  %2674 = vmatmul.f32.vlgmr.msra.gmra.mxu2 %v7205_v9  ;;  %v7385_v53 = vld [vmem:[#allocation9 + $0x2a8] sm:$0xff]  ;;  %v7400_v9 = vld [vmem:[#allocation9 + $0x260] sm:$0xff] }
 0x510   :  { %9401 = vst [vmem:[#allocation34_spill] sm:$0xff] %v7371_v19  ;;  %2841 = vmatpush.msrb.mxu3 %v7385_v53  ;;  %v7388_v19 = vld [vmem:[#allocation9 + $0x280] sm:$0xff] }
 0x511   :  { %9402 = vst [vmem:[#allocation83_spill] sm:$0xff] %v7374_v49  ;;  %2802 = vmatpush.msrb.mxu1 %v7388_v19  ;;  %v7391_v49 = vld [vmem:[#allocation9 + $0x1e0] sm:$0xff] }
 0x512   :  { %9403 = vst [vmem:[#allocation27_spill] sm:$0xff] %v7377_v1  ;;  %2771 = vmatpush.msrb.mxu0 %v7391_v49  ;;  %v7394_v1 = vld [vmem:[#allocation9 + $0x288] sm:$0xff] }
 0x513   :  { %9404 = vst [vmem:[#allocation86_spill] sm:$0xff] %v7380_v47  ;;  %2842 = vmatpush.msrb.mxu3 %v7394_v1  ;;  %v7397_v47 = vld [vmem:[#allocation9 + $0x1e8] sm:$0xff]  ;;  %2803 = vmatpush.msrb.mxu1 %v7400_v9 }
 0x514   :  { %9405 = vst [vmem:[#allocation35_spill] sm:$0xff] %v7385_v53  ;;  %2811 = vmatpush.msrb.mxu2 %v7397_v47  ;;  %v7403_v53 = vld [vmem:[#allocation9 + $0x1c0] sm:$0xff] }
 0x515   :  { %9406 = vst [vmem:[#allocation87_spill] sm:$0xff] %v7388_v19  ;;  %2772 = vmatpush.msrb.mxu0 %v7403_v53  ;;  %v7406_v19 = vld [vmem:[#allocation9 + $0x268] sm:$0xff] }
 0x516   :  { %9407 = vst [vmem:[#allocation29_spill] sm:$0xff] %v7391_v49  ;;  %2843 = vmatpush.msrb.mxu3 %v7406_v19  ;;  %v7409_v49 = vld [vmem:[#allocation9 + $0x1c8] sm:$0xff] }
 0x517   :  { %9408 = vst [vmem:[#allocation90_spill] sm:$0xff] %v7394_v1  ;;  %2812 = vmatpush.msrb.mxu2 %v7409_v49  ;;  %v7412_v1 = vld [vmem:[#allocation9 + $0x240] sm:$0xff] }
 0x518   :  { %9409 = vst [vmem:[#allocation38_spill] sm:$0xff] %v7397_v47  ;;  %2804 = vmatpush.msrb.mxu1 %v7412_v1  ;;  %v7415_v47 = vld [vmem:[#allocation9 + $0x1a0] sm:$0xff] }
 0x519   :  { %9410 = vst [vmem:[#allocation91_spill] sm:$0xff] %v7400_v9  ;;  %2773 = vmatpush.msrb.mxu0 %v7415_v47  ;;  %v7418_v9 = vld [vmem:[#allocation9 + $0x248] sm:$0xff] }
 0x51a   :  { %9411 = vst [vmem:[#allocation31_spill] sm:$0xff] %v7403_v53  ;;  %2844 = vmatpush.msrb.mxu3 %v7418_v9  ;;  %v7421_v53 = vld [vmem:[#allocation9 + $0x1a8] sm:$0xff] }
 0x51b   :  { %9412 = vst [vmem:[#allocation94_spill] sm:$0xff] %v7406_v19  ;;  %2813 = vmatpush.msrb.mxu2 %v7421_v53  ;;  %v7424_v19 = vld [vmem:[#allocation9 + $0x220] sm:$0xff] }
 0x51c   :  { %9413 = vst [vmem:[#allocation40_spill] sm:$0xff] %v7409_v49  ;;  %2805 = vmatpush.msrb.mxu1 %v7424_v19  ;;  %v7427_v49 = vld [vmem:[#allocation9 + $0x180] sm:$0xff] }
 0x51d   :  { %9414 = vst [vmem:[#allocation95_spill] sm:$0xff] %v7412_v1  ;;  %2774 = vmatpush.msrb.mxu0 %v7427_v49  ;;  %v7430_v1 = vld [vmem:[#allocation9 + $0x228] sm:$0xff] }
 0x51e   :  { %9415 = vst [vmem:[#allocation33_spill] sm:$0xff] %v7415_v47  ;;  %2845 = vmatpush.msrb.mxu3 %v7430_v1  ;;  %v7433_v47 = vld [vmem:[#allocation9 + $0x188] sm:$0xff] }
 0x51f   :  { %9416 = vst [vmem:[#allocation98_spill] sm:$0xff] %v7418_v9  ;;  %2814 = vmatpush.msrb.mxu2 %v7433_v47  ;;  %v7436_v9 = vld [vmem:[#allocation9 + $0x200] sm:$0xff] }
 0x520   :  { %9417 = vst [vmem:[#allocation42_spill] sm:$0xff] %v7421_v53  ;;  %2806 = vmatpush.msrb.mxu1 %v7436_v9  ;;  %v7439_v53 = vld [vmem:[#allocation9 + $0x160] sm:$0xff] }
 0x521   :  { %9418 = vst [vmem:[#allocation36_spill] sm:$0xff] %v7424_v19  ;;  %2775 = vmatpush.msrb.mxu0 %v7439_v53  ;;  %v7442_v19 = vld [vmem:[#allocation9 + $0x208] sm:$0xff] }
 0x522   :  { %9419 = vst [vmem:[#allocation43_spill] sm:$0xff] %v7427_v49  ;;  %2846 = vmatpush.msrb.mxu3 %v7442_v19  ;;  %v7445_v49 = vld [vmem:[#allocation9 + $0x168] sm:$0xff] }
 0x523   :  { %9420 = vst [vmem:[#allocation99_spill] sm:$0xff] %v7430_v1  ;;  %2815 = vmatpush.msrb.mxu2 %v7445_v49  ;;  %v7448_v1 = vld [vmem:[#allocation9 + $0x3f0] sm:$0xff] }
 0x524   :  { %9421 = vst [vmem:[#allocation37_spill] sm:$0xff] %v7433_v47  ;;  %2871 = vmatpush.msra.mxu1 %v7448_v1  ;;  %v7451_v47 = vld [vmem:[#allocation9 + $0x3f8] sm:$0xff] }
 0x525   :  { %9422 = vst [vmem:[#allocation102_spill] sm:$0xff] %v7436_v9  ;;  %2911 = vmatpush.msra.mxu3 %v7451_v47  ;;  %v7454_v9 = vld [vmem:[#allocation9 + $0x140] sm:$0xff] }
 0x526   :  { %9423 = vst [vmem:[#allocation45_spill] sm:$0xff] %v7439_v53  ;;  %2776 = vmatpush.msrb.mxu0 %v7454_v9  ;;  %v7457_v53 = vld [vmem:[#allocation9 + $0x148] sm:$0xff] }
 0x527   :  { %9424 = vst [vmem:[#allocation103_spill] sm:$0xff] %v7442_v19  ;;  %2816 = vmatpush.msrb.mxu2 %v7457_v53  ;;  %v7460_v19 = vld [vmem:[#allocation9 + $0x3d0] sm:$0xff] }
 0x528   :  { %9425 = vst [vmem:[#allocation39_spill] sm:$0xff] %v7445_v49  ;;  %2872 = vmatpush.msra.mxu1 %v7460_v19  ;;  %v7463_v49 = vld [vmem:[#allocation9 + $0x3d8] sm:$0xff] }
 0x529   :  { %9426 = vst [vmem:[#allocation106_spill] sm:$0xff] %v7448_v1  ;;  %2912 = vmatpush.msra.mxu3 %v7463_v49  ;;  %v7466_v1 = vld [vmem:[#allocation9 + $0x120] sm:$0xff] }
 0x52a   :  { %9427 = vst [vmem:[#allocation47_spill] sm:$0xff] %v7451_v47  ;;  %2777 = vmatpush.msrb.mxu0 %v7466_v1  ;;  %v7469_v47 = vld [vmem:[#allocation9 + $0x128] sm:$0xff] }
 0x52b   :  { %9428 = vst [vmem:[#allocation107_spill] sm:$0xff] %v7454_v9  ;;  %2817 = vmatpush.msrb.mxu2 %v7469_v47  ;;  %v7472_v9 = vld [vmem:[#allocation9 + $0x3b0] sm:$0xff] }
 0x52c   :  { %9429 = vst [vmem:[#allocation41_spill] sm:$0xff] %v7457_v53  ;;  %2873 = vmatpush.msra.mxu1 %v7472_v9  ;;  %v7475_v53 = vld [vmem:[#allocation9 + $0x3b8] sm:$0xff] }
 0x52d   :  { %9430 = vst [vmem:[#allocation49_spill] sm:$0xff] %v7460_v19  ;;  %2913 = vmatpush.msra.mxu3 %v7475_v53  ;;  %v7478_v19 = vld [vmem:[#allocation9 + $0x100] sm:$0xff] }
 0x52e   :  { %9431 = vst [vmem:[#allocation44_spill] sm:$0xff] %v7463_v49  ;;  %2778 = vmatpush.msrb.mxu0 %v7478_v19  ;;  %v7481_v49 = vld [vmem:[#allocation9 + $0x108] sm:$0xff] }
 0x52f   :  { %9432 = vst [vmem:[#allocation51_spill] sm:$0xff] %v7466_v1  ;;  %2818 = vmatpush.msrb.mxu2 %v7481_v49  ;;  %v7484_v1 = vld [vmem:[#allocation9 + $0x390] sm:$0xff] }
 0x530   :  { %9433 = vst [vmem:[#allocation46_spill] sm:$0xff] %v7469_v47  ;;  %2874 = vmatpush.msra.mxu1 %v7484_v1  ;;  %v7487_v47 = vld [vmem:[#allocation9 + $0x398] sm:$0xff] }
 0x531   :  { %9434 = vst [vmem:[#allocation53_spill] sm:$0xff] %v7472_v9  ;;  %2914 = vmatpush.msra.mxu3 %v7487_v47  ;;  %v7490_v9 = vld [vmem:[#allocation9 + $0xe0] sm:$0xff] }
 0x532   :  { %9435 = vst [vmem:[#allocation48_spill] sm:$0xff] %v7475_v53  ;;  %2779 = vmatpush.msrb.mxu0 %v7490_v9  ;;  %v7493_v53 = vld [vmem:[#allocation9 + $0xe8] sm:$0xff] }
 0x533   :  { %9436 = vst [vmem:[#allocation56_spill] sm:$0xff] %v7478_v19  ;;  %2819 = vmatpush.msrb.mxu2 %v7493_v53  ;;  %v7496_v19 = vld [vmem:[#allocation9 + $0x370] sm:$0xff] }
 0x534   :  { %9437 = vst [vmem:[#allocation50_spill] sm:$0xff] %v7481_v49  ;;  %2875 = vmatpush.msra.mxu1 %v7496_v19  ;;  %v7499_v49 = vld [vmem:[#allocation9 + $0x378] sm:$0xff] }
 0x535   :  { %9438 = vst [vmem:[#allocation59_spill] sm:$0xff] %v7484_v1  ;;  %2915 = vmatpush.msra.mxu3 %v7499_v49  ;;  %v7502_v1 = vld [vmem:[#allocation9 + $0xc0] sm:$0xff] }
 0x536   :  { %9439 = vst [vmem:[#allocation52_spill] sm:$0xff] %v7487_v47  ;;  %2780 = vmatpush.msrb.mxu0 %v7502_v1  ;;  %v7505_v47 = vld [vmem:[#allocation9 + $0xc8] sm:$0xff] }
 0x537   :  { %9440 = vst [vmem:[#allocation61_spill] sm:$0xff] %v7490_v9  ;;  %2820 = vmatpush.msrb.mxu2 %v7505_v47  ;;  %v7508_v9 = vld [vmem:[#allocation9 + $0x350] sm:$0xff] }
 0x538   :  { %9441 = vst [vmem:[#allocation84_spill] sm:$0xff] %v7493_v53  ;;  %2876 = vmatpush.msra.mxu1 %v7508_v9  ;;  %v7511_v53 = vld [vmem:[#allocation9 + $0x358] sm:$0xff] }
 0x539   :  { %9442 = vst [vmem:[#allocation85_spill] sm:$0xff] %v7496_v19  ;;  %2916 = vmatpush.msra.mxu3 %v7511_v53  ;;  %v7514_v19 = vld [vmem:[#allocation9 + $0xa0] sm:$0xff] }
 0x53a   :  { %9443 = vst [vmem:[#allocation88_spill] sm:$0xff] %v7499_v49  ;;  %2781 = vmatpush.msrb.mxu0 %v7514_v19  ;;  %v7517_v49 = vld [vmem:[#allocation9 + $0xa8] sm:$0xff] }
 0x53b   :  { %9444 = vst [vmem:[#allocation89_spill] sm:$0xff] %v7502_v1  ;;  %2821 = vmatpush.msrb.mxu2 %v7517_v49  ;;  %v7520_v1 = vld [vmem:[#allocation9 + $0x330] sm:$0xff] }
 0x53c   :  { %9445 = vst [vmem:[#allocation92_spill] sm:$0xff] %v7505_v47  ;;  %2877 = vmatpush.msra.mxu1 %v7520_v1  ;;  %v7523_v47 = vld [vmem:[#allocation9 + $0x338] sm:$0xff] }
 0x53d   :  { %9446 = vst [vmem:[#allocation93_spill] sm:$0xff] %v7508_v9  ;;  %2917 = vmatpush.msra.mxu3 %v7523_v47  ;;  %v7526_v9 = vld [vmem:[#allocation9 + $0x80] sm:$0xff] }
 0x53e   :  { %9447 = vst [vmem:[#allocation96_spill] sm:$0xff] %v7511_v53  ;;  %2782 = vmatpush.msrb.mxu0 %v7526_v9  ;;  %v7529_v53 = vld [vmem:[#allocation9 + $0x88] sm:$0xff] }
 0x53f   :  { %9448 = vst [vmem:[#allocation97_spill] sm:$0xff] %v7514_v19  ;;  %2822 = vmatpush.msrb.mxu2 %v7529_v53  ;;  %v7532_v19 = vld [vmem:[#allocation9 + $0x310] sm:$0xff] }
 0x540   :  { %9449 = vst [vmem:[#allocation100_spill] sm:$0xff] %v7517_v49  ;;  %2878 = vmatpush.msra.mxu1 %v7532_v19  ;;  %v7535_v49 = vld [vmem:[#allocation9 + $0x318] sm:$0xff] }
 0x541   :  { %9450 = vst [vmem:[#allocation101_spill] sm:$0xff] %v7520_v1  ;;  %2918 = vmatpush.msra.mxu3 %v7535_v49  ;;  %v7538_v1 = vld [vmem:[#allocation9 + $0x60] sm:$0xff] }
 0x542   :  { %9451 = vst [vmem:[#allocation104_spill] sm:$0xff] %v7523_v47  ;;  %2783 = vmatpush.msrb.mxu0 %v7538_v1  ;;  %v7541_v47 = vld [vmem:[#allocation9 + $0x68] sm:$0xff] }
 0x543   :  { %9452 = vst [vmem:[#allocation105_spill] sm:$0xff] %v7526_v9  ;;  %2823 = vmatpush.msrb.mxu2 %v7541_v47  ;;  %v7544_v9 = vld [vmem:[#allocation9 + $0x2f0] sm:$0xff] }
 0x544   :  { %9453 = vst [vmem:[#allocation108_spill] sm:$0xff] %v7529_v53  ;;  %2879 = vmatpush.msra.mxu1 %v7544_v9  ;;  %v7547_v53 = vld [vmem:[#allocation9 + $0x2f8] sm:$0xff] }
 0x545   :  { %9454 = vst [vmem:[#allocation109_spill] sm:$0xff] %v7532_v19  ;;  %2919 = vmatpush.msra.mxu3 %v7547_v53  ;;  %v7550_v19 = vld [vmem:[#allocation9 + $0x40] sm:$0xff] }
 0x546   :  { %9455 = vst [vmem:[#allocation110_spill] sm:$0xff] %v7535_v49  ;;  %2784 = vmatpush.msrb.mxu0 %v7550_v19  ;;  %v7553_v49 = vld [vmem:[#allocation9 + $0x48] sm:$0xff] }
 0x547   :  { %9456 = vst [vmem:[#allocation111_spill] sm:$0xff] %v7538_v1  ;;  %2824 = vmatpush.msrb.mxu2 %v7553_v49  ;;  %v7556_v1 = vld [vmem:[#allocation9 + $0x2d0] sm:$0xff] }
 0x548   :  { %9457 = vst [vmem:[#allocation112_spill] sm:$0xff] %v7541_v47  ;;  %2880 = vmatpush.msra.mxu1 %v7556_v1  ;;  %v7559_v47 = vld [vmem:[#allocation9 + $0x2d8] sm:$0xff] }
 0x549   :  { %9458 = vst [vmem:[#allocation113_spill] sm:$0xff] %v7544_v9  ;;  %2920 = vmatpush.msra.mxu3 %v7559_v47  ;;  %v7562_v9 = vld [vmem:[#allocation9 + $0x20] sm:$0xff] }
 0x54a   :  { %9459 = vst [vmem:[#allocation114_spill] sm:$0xff] %v7547_v53  ;;  %2785 = vmatpush.msrb.mxu0 %v7562_v9  ;;  %v7565_v53 = vld [vmem:[#allocation9 + $0x28] sm:$0xff] }
 0x54b   :  { %9460 = vst [vmem:[#allocation115_spill] sm:$0xff] %v7550_v19  ;;  %2825 = vmatpush.msrb.mxu2 %v7565_v53  ;;  %v7568_v19 = vld [vmem:[#allocation9 + $0x2b0] sm:$0xff] }
 0x54c   :  { %9461 = vst [vmem:[#allocation116_spill] sm:$0xff] %v7553_v49  ;;  %2881 = vmatpush.msra.mxu1 %v7568_v19  ;;  %v7571_v49 = vld [vmem:[#allocation9 + $0x2b8] sm:$0xff] }
 0x54d   :  { %9462 = vst [vmem:[#allocation117_spill] sm:$0xff] %v7556_v1  ;;  %2921 = vmatpush.msra.mxu3 %v7571_v49  ;;  %v7574_v1 = vld [vmem:[#allocation9] sm:$0xff] }
 0x54e   :  { %9463 = vst [vmem:[#allocation118_spill] sm:$0xff] %v7559_v47  ;;  %2786 = vmatpush.msrb.mxu0 %v7574_v1  ;;  %v7577_v47 = vld [vmem:[#allocation9 + $0x8] sm:$0xff] }
 0x54f   :  { %9464 = vst [vmem:[#allocation119_spill] sm:$0xff] %v7562_v9  ;;  %2826 = vmatpush.msrb.mxu2 %v7577_v47  ;;  %v7580_v9 = vld [vmem:[#allocation9 + $0x290] sm:$0xff] }
 0x550   :  { %9465 = vst [vmem:[#allocation120_spill] sm:$0xff] %v7565_v53  ;;  %2882 = vmatpush.msra.mxu1 %v7580_v9  ;;  %v7583_v53 = vld [vmem:[#allocation9 + $0x298] sm:$0xff] }
 0x551   :  { %9466 = vst [vmem:[#allocation121_spill] sm:$0xff] %v7568_v19  ;;  %2922 = vmatpush.msra.mxu3 %v7583_v53  ;;  %v7586_v19 = vld [vmem:[#allocation9 + $0x1f0] sm:$0xff] }
 0x552   :  { %9467 = vst [vmem:[#allocation122_spill] sm:$0xff] %v7571_v49  ;;  %2851 = vmatpush.msra.mxu0 %v7586_v19  ;;  %v7589_v49 = vld [vmem:[#allocation9 + $0x1f8] sm:$0xff] }
 0x553   :  { %9468 = vst [vmem:[#allocation123_spill] sm:$0xff] %v7574_v1  ;;  %2891 = vmatpush.msra.mxu2 %v7589_v49  ;;  %v7592_v1 = vld [vmem:[#allocation9 + $0x270] sm:$0xff] }
 0x554   :  { %9469 = vst [vmem:[#allocation124_spill] sm:$0xff] %v7577_v47  ;;  %2883 = vmatpush.msra.mxu1 %v7592_v1  ;;  %v7595_v47 = vld [vmem:[#allocation9 + $0x278] sm:$0xff] }
 0x555   :  { %9470 = vst [vmem:[#allocation125_spill] sm:$0xff] %v7580_v9  ;;  %2923 = vmatpush.msra.mxu3 %v7595_v47  ;;  %v7598_v9 = vld [vmem:[#allocation9 + $0x1d0] sm:$0xff] }
 0x556   :  { %9471 = vst [vmem:[#allocation126_spill] sm:$0xff] %v7583_v53  ;;  %2852 = vmatpush.msra.mxu0 %v7598_v9  ;;  %v7601_v53 = vld [vmem:[#allocation9 + $0x1d8] sm:$0xff] }
 0x557   :  { %9472 = vst [vmem:[#allocation127_spill] sm:$0xff] %v7586_v19  ;;  %2892 = vmatpush.msra.mxu2 %v7601_v53  ;;  %v7604_v19 = vld [vmem:[#allocation9 + $0x250] sm:$0xff]  ;;  %v2461_v41 = vpop.f32.mrf.mxu3 }
 0x558   :  { %9473 = vst [vmem:[#allocation128_spill] sm:$0xff] %v7589_v49  ;;  %2884 = vmatpush.msra.mxu1 %v7604_v19  ;;  %v7607_v49 = vld [vmem:[#allocation9 + $0x258] sm:$0xff] }
 0x559   :  { %9474 = vst [vmem:[#allocation129_spill] sm:$0xff] %v7592_v1  ;;  %2924 = vmatpush.msra.mxu3 %v7607_v49  ;;  %v7610_v1 = vld [vmem:[#allocation9 + $0x1b0] sm:$0xff] }
 0x55a   :  { %9475 = vst [vmem:[#allocation130_spill] sm:$0xff] %v7595_v47  ;;  %2853 = vmatpush.msra.mxu0 %v7610_v1  ;;  %v7613_v47 = vld [vmem:[#allocation9 + $0x1b8] sm:$0xff] }
 0x55b   :  { %9476 = vst [vmem:[#allocation131_spill] sm:$0xff] %v7598_v9  ;;  %2893 = vmatpush.msra.mxu2 %v7613_v47  ;;  %v7616_v9 = vld [vmem:[#allocation9 + $0x230] sm:$0xff] }
 0x55c   :  { %9477 = vst [vmem:[#allocation132_spill] sm:$0xff] %v7601_v53  ;;  %2885 = vmatpush.msra.mxu1 %v7616_v9  ;;  %v7619_v53 = vld [vmem:[#allocation9 + $0x238] sm:$0xff] }
 0x55d   :  { %9478 = vst [vmem:[#allocation133_spill] sm:$0xff] %v7604_v19  ;;  %2925 = vmatpush.msra.mxu3 %v7619_v53  ;;  %v7622_v19 = vld [vmem:[#allocation9 + $0x190] sm:$0xff] }
 0x55e   :  { %9479 = vst [vmem:[#allocation134_spill] sm:$0xff] %v7607_v49  ;;  %2854 = vmatpush.msra.mxu0 %v7622_v19  ;;  %v7625_v49 = vld [vmem:[#allocation9 + $0x198] sm:$0xff] }
 0x55f   :  { %9480 = vst [vmem:[#allocation135_spill] sm:$0xff] %v7610_v1  ;;  %2894 = vmatpush.msra.mxu2 %v7625_v49  ;;  %v7628_v1 = vld [vmem:[#allocation9 + $0x210] sm:$0xff]  ;;  %v2541_v25 = vpop.f32.mrf.mxu3 }
 0x560   :  { %9481 = vst [vmem:[#allocation136_spill] sm:$0xff] %v7613_v47  ;;  %2886 = vmatpush.msra.mxu1 %v7628_v1  ;;  %v7631_v47 = vld [vmem:[#allocation9 + $0x218] sm:$0xff] }
 0x561   :  { %9482 = vst [vmem:[#allocation137_spill] sm:$0xff] %v7616_v9  ;;  %2926 = vmatpush.msra.mxu3 %v7631_v47  ;;  %v7634_v9 = vld [vmem:[#allocation9 + $0x170] sm:$0xff] }
 0x562   :  { %9483 = vst [vmem:[#allocation138_spill] sm:$0xff] %v7619_v53  ;;  %2855 = vmatpush.msra.mxu0 %v7634_v9  ;;  %v7637_v53 = vld [vmem:[#allocation9 + $0x178] sm:$0xff] }
 0x563   :  { %9484 = vst [vmem:[#allocation139_spill] sm:$0xff] %v7622_v19  ;;  %2895 = vmatpush.msra.mxu2 %v7637_v53  ;;  %v7640_v19 = vld [vmem:[#allocation9 + $0x150] sm:$0xff] }
 0x564   :  { %9485 = vst [vmem:[#allocation140_spill] sm:$0xff] %v7625_v49  ;;  %2856 = vmatpush.msra.mxu0 %v7640_v19  ;;  %v7643_v49 = vld [vmem:[#allocation9 + $0x158] sm:$0xff] }
 0x565   :  { %9486 = vst [vmem:[#allocation141_spill] sm:$0xff] %v7628_v1  ;;  %2896 = vmatpush.msra.mxu2 %v7643_v49  ;;  %v7646_v1 = vld [vmem:[#allocation9 + $0x130] sm:$0xff] }
 0x566   :  { %9487 = vst [vmem:[#allocation142_spill] sm:$0xff] %v7631_v47  ;;  %2857 = vmatpush.msra.mxu0 %v7646_v1  ;;  %v7649_v47 = vld [vmem:[#allocation9 + $0x138] sm:$0xff] }
 0x567   :  { %9488 = vst [vmem:[#allocation143_spill] sm:$0xff] %v7634_v9  ;;  %2897 = vmatpush.msra.mxu2 %v7649_v47  ;;  %v7652_v9 = vld [vmem:[#allocation9 + $0x110] sm:$0xff] }
 0x568   :  { %9489 = vst [vmem:[#allocation144_spill] sm:$0xff] %v7637_v53  ;;  %2858 = vmatpush.msra.mxu0 %v7652_v9  ;;  %v7655_v53 = vld [vmem:[#allocation9 + $0x118] sm:$0xff] }
 0x569   :  { %9490 = vst [vmem:[#allocation145_spill] sm:$0xff] %v7640_v19  ;;  %2898 = vmatpush.msra.mxu2 %v7655_v53  ;;  %v7658_v19 = vld [vmem:[#allocation9 + $0xf0] sm:$0xff]  ;;  %v2401_v39 = vpop.f32.mrf.mxu0 }
 0x56a   :  { %9491 = vst [vmem:[#allocation146_spill] sm:$0xff] %v7643_v49  ;;  %2859 = vmatpush.msra.mxu0 %v7658_v19  ;;  %v7661_v49 = vld [vmem:[#allocation9 + $0xf8] sm:$0xff] }
 0x56b   :  { %9492 = vst [vmem:[#allocation147_spill] sm:$0xff] %v7646_v1  ;;  %2899 = vmatpush.msra.mxu2 %v7661_v49  ;;  %v7664_v1 = vld [vmem:[#allocation9 + $0xd0] sm:$0xff] }
 0x56c   :  { %9493 = vst [vmem:[#allocation148_spill] sm:$0xff] %v7649_v47  ;;  %2860 = vmatpush.msra.mxu0 %v7664_v1  ;;  %v7667_v47 = vld [vmem:[#allocation9 + $0xd8] sm:$0xff] }
 0x56d   :  { %9494 = vst [vmem:[#allocation149_spill] sm:$0xff] %v7652_v9  ;;  %2900 = vmatpush.msra.mxu2 %v7667_v47  ;;  %v7670_v9 = vld [vmem:[#allocation9 + $0xb0] sm:$0xff] }
 0x56e   :  { %9495 = vst [vmem:[#allocation150_spill] sm:$0xff] %v7655_v53  ;;  %2861 = vmatpush.msra.mxu0 %v7670_v9  ;;  %v7673_v53 = vld [vmem:[#allocation9 + $0xb8] sm:$0xff] }
 0x56f   :  { %9496 = vst [vmem:[#allocation151_spill] sm:$0xff] %v7658_v19  ;;  %2901 = vmatpush.msra.mxu2 %v7673_v53  ;;  %v7676_v19 = vld [vmem:[#allocation9 + $0x90] sm:$0xff]  ;;  %v2441_v5 = vpop.f32.mrf.mxu2 }
 0x570   :  { %9497 = vst [vmem:[#allocation152_spill] sm:$0xff] %v7661_v49  ;;  %2862 = vmatpush.msra.mxu0 %v7676_v19  ;;  %v7679_v49 = vld [vmem:[#allocation9 + $0x98] sm:$0xff] }
 0x571   :  { %9498 = vst [vmem:[#allocation153_spill] sm:$0xff] %v7664_v1  ;;  %2902 = vmatpush.msra.mxu2 %v7679_v49  ;;  %v7682_v1 = vld [vmem:[#allocation9 + $0x70] sm:$0xff] }
 0x572   :  { %9499 = vst [vmem:[#allocation154_spill] sm:$0xff] %v7667_v47  ;;  %2863 = vmatpush.msra.mxu0 %v7682_v1  ;;  %v7685_v47 = vld [vmem:[#allocation9 + $0x78] sm:$0xff] }
 0x573   :  { %9500 = vst [vmem:[#allocation155_spill] sm:$0xff] %v7670_v9  ;;  %2903 = vmatpush.msra.mxu2 %v7685_v47  ;;  %v7688_v9 = vld [vmem:[#allocation9 + $0x50] sm:$0xff] }
 0x574   :  { %9501 = vst [vmem:[#allocation156_spill] sm:$0xff] %v7673_v53  ;;  %2864 = vmatpush.msra.mxu0 %v7688_v9  ;;  %v7691_v53 = vld [vmem:[#allocation9 + $0x58] sm:$0xff] }
 0x575   :  { %9502 = vst [vmem:[#allocation157_spill] sm:$0xff] %v7676_v19  ;;  %2904 = vmatpush.msra.mxu2 %v7691_v53  ;;  %v7694_v19 = vld [vmem:[#allocation9 + $0x30] sm:$0xff] }
 0x576   :  { %9503 = vst [vmem:[#allocation158_spill] sm:$0xff] %v7679_v49  ;;  %2865 = vmatpush.msra.mxu0 %v7694_v19  ;;  %v7697_v49 = vld [vmem:[#allocation9 + $0x38] sm:$0xff] }
 0x577   :  { %9504 = vst [vmem:[#allocation159_spill] sm:$0xff] %v7682_v1  ;;  %2905 = vmatpush.msra.mxu2 %v7697_v49  ;;  %v7700_v1 = vld [vmem:[#allocation9 + $0x10] sm:$0xff] }
 0x578   :  { %9505 = vst [vmem:[#allocation160_spill] sm:$0xff] %v7685_v47  ;;  %2866 = vmatpush.msra.mxu0 %v7700_v1  ;;  %v7703_v47 = vld [vmem:[#allocation9 + $0x18] sm:$0xff]  ;;  %v2521_v28 = vpop.f32.mrf.mxu2 }
 0x579   :  { %9506 = vst [vmem:[#allocation161_spill] sm:$0xff] %v7688_v9  ;;  %2906 = vmatpush.msra.mxu2 %v7703_v47  ;;  %v2421_v9 = vpop.f32.mrf.mxu1 }
 0x57a   :  { %9507 = vst [vmem:[#allocation162_spill] sm:$0xff] %v7691_v53  ;;  %v2402_v53 = vadd.f32 %v2401_v39, %v9358_v12  ;;  %v2522_v12 = vadd.f32 %v2521_v28, %v9360_v33 }
 0x57b   :  { %9508 = vst [vmem:[#allocation163_spill] sm:$0xff] %v7694_v19 }
 0x57c   :  { %9509 = vst [vmem:[#allocation164_spill] sm:$0xff] %v7697_v49  ;;  %v2422_v3 = vadd.f32 %v2421_v9, %v2402_v53  ;;  %v2442_v49 = vadd.f32 %v2441_v5, %v9359_v48  ;;  %v2542_v9 = vadd.f32 %v2541_v25, %v2522_v12  ;;  %v2617_v5 = vld [vmem:[#allocation4 + $0xd8] sm:$0xff] }
 0x57d   :  { %9510 = vst [vmem:[#allocation165_spill] sm:$0xff] %v7700_v1 }
 0x57e   :  { %9511 = vst [vmem:[#allocation166_spill] sm:$0xff] %v7703_v47  ;;  %v3439_v19 = vmul.f32 -1.442695, %v2422_v3  ;;  %v2462_v11 = vadd.f32 %v2461_v41, %v2442_v49  ;;  %v2481_v3 = vpop.f32.mrf.mxu0  ;;  %v2695_v41 = vpop.f32.mrf.mxu3  ;;  %v3441_v49 = vmul.f32 -1.442695, %v2542_v9 }
 0x580   :  { %3640 = vpow2.f32 %v3439_v19  ;;  %v3440_v1 = vmul.f32 -1.442695, %v2462_v11 }
 0x581   :  { %v2501_v6 = vpop.f32.mrf.mxu1 }
 0x582   :  { %3642 = vpow2.f32 %v3440_v1 }
 0x586   :  { %v3641_v55 = vpop.eup %3640 }
 0x587   :  { %v2547_v47 = vadd.f32 1.0, %v3641_v55  ;;  %v2701_v55 = vadd.f32 %v2695_v41, %v2617_v5 }
 0x588   :  { %v3643_v53 = vpop.eup %3642 }
 0x589   :  { %v2655_v22 = vpop.f32.mrf.mxu1  ;;  %3644 = vrcp.f32 %v2547_v47  ;;  %v2566_v19 = vadd.f32 1.0, %v3643_v53  ;;  %v3444_v28 = vmul.f32 -1.442695, %v2701_v55  ;;  %v2559_v53 = vand.u32 2147483648, %v2547_v47 }
 0x58a   :  { %v2699_v26 = vadd.f32 %v2655_v22, %v2615_v61  ;;  %v2482_v22 = vadd.f32 %v2481_v3, %v9361_v52  ;;  %vm2553_vm5 = vweird.f32 %v2547_v47  ;;  %v2557_v3 = vand.u32 2147483647, %v2547_v47 }
 0x58b   :  { %v2578_v5 = vand.u32 2147483648, %v2566_v19  ;;  %vm2572_vm8 = vweird.f32 %v2566_v19 }
 0x58c   :  { %v3443_v39 = vmul.f32 -1.442695, %v2699_v26  ;;  %v2502_v26 = vadd.f32 %v2501_v6, %v2482_v22  ;;  %v2576_v6 = vand.u32 2147483647, %v2566_v19  ;;  %vm2558_vm9 = vcmp.eq.f32.partialorder %v2557_v3, 8.507059e+37 }
 0x58e   :  { %3646 = vpow2.f32 %v3443_v39  ;;  %vm2577_vm11 = vcmp.eq.f32.partialorder %v2576_v6, 8.507059e+37 }
 0x58f   :  { %v3645_v48 = vpop.eup %3644  ;;  %3648 = vrcp.f32 %v2566_v19 }
 0x590   :  { %v2549_v61 = vmul.f32 %v3645_v48, %v2547_v47  ;;  %3650 = vpow2.f32 %v3441_v49  ;;  %vm2554_vm4 = vweird.f32 %v3645_v48  ;;  %v2614_v49 = vld [vmem:[#allocation4 + $0xc0] sm:$0xff] }
 0x591   :  { %3652 = vtanh.f32 %v2502_v26  ;;  %vm7712_vm6 = vmor %vm2553_vm5, %vm2554_vm4 }
 0x592   :  { %v2550_v11 = vsub.f32 1.0, %v2549_v61  ;;  %3654 = vpow2.f32 %v3444_v28  ;;  %v2560_v61 = vor.u32 1.1754944e-38, %v2559_v53 }
 0x594   :  { %v3647_v1 = vpop.eup %3646  ;;  %v2551_v7 = vmul.f32 %v3645_v48, %v2550_v11 }
 0x595   :  { %v3649_v33 = vpop.eup %3648  ;;  %v7710_v39 = vadd.f32 1.0, %v3647_v1  ;;  %v2579_v1 = vor.u32 1.1754944e-38, %v2578_v5 }
 0x596   :  { %v3651_v58 = vpop.eup %3650  ;;  %v2568_v12 = vmul.f32 %v3649_v33, %v2566_v19  ;;  %v2552_v25 = vadd.f32 %v3645_v48, %v2551_v7  ;;  %vm2573_vm7 = vweird.f32 %v3649_v33 }
 0x597   :  { %v2586_v9 = vadd.f32 1.0, %v3651_v58  ;;  %v2635_v58 = vpop.f32.mrf.mxu0  ;;  %v3653_v11 = vpop.eup %3652  ;;  %vm2574_vm10 = vmor %vm2572_vm8, %vm2573_vm7  ;;  %vm2730_vm1 = vweird.f32 %v7710_v39 }
 0x598   :  { %v2569_v24 = vsub.f32 1.0, %v2568_v12  ;;  %v2556_v7 = vsel %vm7712_vm6, %v3645_v48, %v2552_v25  ;;  %v2698_v55 = vadd.f32 %v2635_v58, %v2614_v49  ;;  %v3655_v28 = vpop.eup %3654 }
 0x599   :  { %3656 = vrcp.f32 %v2586_v9  ;;  %v2561_v26 = vsel %vm2558_vm9, %v2560_v61, %v2556_v7  ;;  %v7726_v49 = vadd.f32 1.0, %v3655_v28  ;;  %v2598_v6 = vand.u32 2147483648, %v2586_v9  ;;  %v2616_v28 = vld [vmem:[#allocation4 + $0xd0] sm:$0xff] }
 0x59a   :  { %v2570_v22 = vmul.f32 %v3649_v33, %v2569_v24  ;;  %3658 = vrcp.f32 %v7710_v39  ;;  %v3442_v24 = vmul.f32 -1.442695, %v2698_v55  ;;  %v2603_v25 = vmul.f32 %v3653_v11, %v2561_v26 }
 0x59b   :  { %vm2592_vm13 = vweird.f32 %v2586_v9  ;;  %vm2750_vm9 = vweird.f32 %v7726_v49 }
 0x59c   :  { %v2571_v47 = vadd.f32 %v3649_v33, %v2570_v22  ;;  %3660 = vpow2.f32 %v3442_v24  ;;  %v2596_v22 = vand.u32 2147483647, %v2586_v9 }
 0x59e   :  { %v2575_v12 = vsel %vm2574_vm10, %v3649_v33, %v2571_v47  ;;  %v2599_v47 = vor.u32 1.1754944e-38, %v2598_v6  ;;  %vm2597_vm15 = vcmp.eq.f32.partialorder %v2596_v22, 8.507059e+37 }
 0x59f   :  { %v3657_v52 = vpop.eup %3656  ;;  %v2580_v18 = vsel %vm2577_vm11, %v2579_v1, %v2575_v12  ;;  %v2675_v12 = vpop.f32.mrf.mxu2 }
 0x5a0   :  { %v7719_v41 = vpop.eup %3658  ;;  %v2602_v48 = vmul.f32 %v2580_v18, %v7096_v57  ;;  %v2588_v53 = vmul.f32 %v3657_v52, %v2586_v9  ;;  %vm2593_vm12 = vweird.f32 %v3657_v52  ;;  %v2700_v24 = vadd.f32 %v2675_v12, %v2616_v28  ;;  %v9533_v28 = vld [vmem:[#allocation72_spill] sm:$0xff] }
 0x5a1   :  { %v2726_v5 = vmul.f32 %v7719_v41, %v7710_v39  ;;  %vm2594_vm14 = vmor %vm2592_vm13, %vm2593_vm12  ;;  %vm2731_vm0 = vweird.f32 %v7719_v41  ;;  %v9534_v12 = vld [vmem:[#allocation24_spill] sm:$0xff] }
 0x5a2   :  { %v7722_v19 = vadd.f32 %v2603_v25, %v2602_v48  ;;  %v2589_v3 = vsub.f32 1.0, %v2588_v53  ;;  %v3661_v7 = vpop.eup %3660  ;;  %v2736_v53 = vand.u32 2147483648, %v7710_v39  ;;  %vm7746_vm2 = vmor %vm2730_vm1, %vm2731_vm0 }
 0x5a3   :  { %v2705_v18 = vadd.f32 1.0, %v3661_v7  ;;  %v2727_v58 = vsub.f32 1.0, %v2726_v5  ;;  %v9544_v5 = vld [vmem:[#allocation79_spill] sm:$0xff] }
 0x5a4   :  { %3662 = vtanh.f32 %v7722_v19  ;;  %v2590_v33 = vmul.f32 %v3657_v52, %v2589_v3 }
 0x5a5   :  { %3664 = vrcp.f32 %v7726_v49  ;;  %v2728_v26 = vmul.f32 %v7719_v41, %v2727_v58  ;;  %vm2711_vm4 = vweird.f32 %v2705_v18 }
 0x5a6   :  { %v2591_v57 = vadd.f32 %v3657_v52, %v2590_v33  ;;  %3666 = vrcp.f32 %v2705_v18  ;;  %v2715_v33 = vand.u32 2147483647, %v2705_v18 }
 0x5a7   :  { %v2729_v25 = vadd.f32 %v7719_v41, %v2728_v26  ;;  %3668 = vtanh.f32 %v2700_v24  ;;  %v9532_v26 = vld [vmem:[#allocation71_spill] sm:$0xff]  ;;  %v9537_v24 = vld [vmem:[#allocation26_spill] sm:$0xff] }
 0x5a8   :  { %v2595_v61 = vsel %vm2594_vm14, %v3657_v52, %v2591_v57  ;;  %vm2716_vm7 = vcmp.eq.f32.partialorder %v2715_v33, 8.507059e+37  ;;  %v9547_v33 = vld [vmem:[#allocation32_spill] sm:$0xff] }
 0x5a9   :  { %v2600_v11 = vsel %vm2597_vm15, %v2599_v47, %v2595_v61  ;;  %v2733_v6 = vsel %vm7746_vm2, %v7719_v41, %v2729_v25  ;;  %v9528_v61 = vld [vmem:[#allocation21_spill] sm:$0xff]  ;;  %v9539_v25 = vld [vmem:[#allocation76_spill] sm:$0xff] }
 0x5aa   :  { %v3663_v55 = vpop.eup %3662  ;;  %v4305_v47 = vld [vmem:[#allocation7 + $0xc0] sm:$0xff] }
 0x5ab   :  { %v2606_v1 = vmul.f32 %v3663_v55, %v2600_v11  ;;  %v7731_v9 = vpop.eup %3664  ;;  %v9529_v55 = vld [vmem:[#allocation69_spill] sm:$0xff]  ;;  %v9530_v11 = vld [vmem:[#allocation70_spill] sm:$0xff] }
 0x5ac   :  { %v3667_v52 = vpop.eup %3666  ;;  %v2746_v3 = vmul.f32 %v7731_v9, %v7726_v49  ;;  %vm2751_vm8 = vweird.f32 %v7731_v9 }
 0x5ad   :  { %2610 = vst [vmem:[#allocation12 + $0x58] sm:$0xff] %v2606_v1  ;;  %2807 = vmatmul.f32.vlgmr.msrb.gmra.mxu1 %v2606_v1  ;;  %2847 = vmatmul.f32.vlgmr.msrb.gmra.mxu3 %v2606_v1  ;;  %v2707_v48 = vmul.f32 %v3667_v52, %v2705_v18  ;;  %vm2712_vm3 = vweird.f32 %v3667_v52  ;;  %vm2752_vm10 = vmor %vm2750_vm9, %vm2751_vm8 }
 0x5ae   :  { %3025 = vmatpush.msrb.mxu1 %v7110_v34  ;;  %3065 = vmatpush.msrb.mxu3 %v7113_v30  ;;  %v2734_v30 = vand.u32 2147483647, %v7710_v39  ;;  %v2747_v39 = vsub.f32 1.0, %v2746_v3  ;;  %vm2713_vm6 = vmor %vm2711_vm4, %vm2712_vm3  ;;  %v9541_v3 = vld [vmem:[#allocation77_spill] sm:$0xff] }
 0x5af   :  { %v2708_v34 = vsub.f32 1.0, %v2707_v48  ;;  %v9538_v48 = vld [vmem:[#allocation75_spill] sm:$0xff] }
 0x5b0   :  { %3026 = vmatpush.msrb.mxu1 %v7122_v17  ;;  %3066 = vmatpush.msrb.mxu3 %v7125_v62  ;;  %v2717_v17 = vand.u32 2147483648, %v2705_v18  ;;  %vm2735_vm5 = vcmp.eq.f32.partialorder %v2734_v30, 8.507059e+37  ;;  %v9543_v30 = vld [vmem:[#allocation30_spill] sm:$0xff] }
 0x5b1   :  { %v2709_v62 = vmul.f32 %v3667_v52, %v2708_v34  ;;  %v9542_v34 = vld [vmem:[#allocation78_spill] sm:$0xff] }
 0x5b2   :  { %3027 = vmatpush.msrb.mxu1 %v7135_v45  ;;  %3067 = vmatpush.msrb.mxu3 %v7138_v43  ;;  %v2737_v45 = vor.u32 1.1754944e-38, %v2736_v53  ;;  %v2718_v22 = vor.u32 1.1754944e-38, %v2717_v17  ;;  %v9540_v53 = vld [vmem:[#allocation28_spill] sm:$0xff]  ;;  %v9545_v17 = vld [vmem:[#allocation23_spill] sm:$0xff] }
 0x5b3   :  { %v2710_v43 = vadd.f32 %v3667_v52, %v2709_v62  ;;  %v9546_v62 = vld [vmem:[#allocation80_spill] sm:$0xff] }
 0x5b4   :  { %3028 = vmatpush.msrb.mxu1 %v7145_v51  ;;  %3068 = vmatpush.msrb.mxu3 %v7148_v23  ;;  %v2738_v7 = vsel %vm2735_vm5, %v2737_v45, %v2733_v6  ;;  %v3669_v51 = vpop.eup %3668  ;;  %v2748_v23 = vmul.f32 %v7731_v9, %v2747_v39  ;;  %v9548_v6 = vld [vmem:[#allocation81_spill] sm:$0xff]  ;;  %v9550_v39 = vld [vmem:[#allocation82_spill] sm:$0xff] }
 0x5b5   :  { %2887 = vmatmul.f32.vlgmr.msra.gmra.mxu1 %v2606_v1  ;;  %2927 = vmatmul.f32.vlgmr.msra.gmra.mxu3 %v2606_v1  ;;  %v2714_v57 = vsel %vm2713_vm6, %v3667_v52, %v2710_v43  ;;  %v2760_v18 = vmul.f32 %v2738_v7, %v7172_v0  ;;  %v9531_v1 = vld [vmem:[#allocation22_spill] sm:$0xff]  ;;  %v9549_v45 = vld [vmem:[#allocation25_spill] sm:$0xff]  ;;  %v9553_v7 = vld [vmem:[#allocation27_spill] sm:$0xff] }
 0x5b6   :  { %3029 = vmatpush.msrb.mxu1 %v7152_v60  ;;  %3069 = vmatpush.msrb.mxu3 %v7155_v8  ;;  %v2719_v41 = vsel %vm2716_vm7, %v2718_v22, %v2714_v57  ;;  %v2749_v8 = vadd.f32 %v7731_v9, %v2748_v23  ;;  %v9536_v52 = vld [vmem:[#allocation74_spill] sm:$0xff]  ;;  %v9552_v22 = vld [vmem:[#allocation83_spill] sm:$0xff] }
 0x5b7   :  { %v2761_v58 = vmul.f32 %v3669_v51, %v2719_v41  ;;  %v9551_v43 = vld [vmem:[#allocation34_spill] sm:$0xff]  ;;  %v9555_v51 = vld [vmem:[#allocation35_spill] sm:$0xff]  ;;  %v9557_v41 = vld [vmem:[#allocation29_spill] sm:$0xff] }
 0x5b8   :  { %3030 = vmatpush.msrb.mxu1 %v7159_v44  ;;  %3070 = vmatpush.msrb.mxu3 %v7162_v15  ;;  %v2756_v44 = vand.u32 2147483648, %v7726_v49  ;;  %v2754_v15 = vand.u32 2147483647, %v7726_v49  ;;  %v9527_v49 = vld [vmem:[#allocation20_spill] sm:$0xff]  ;;  %v9554_v57 = vld [vmem:[#allocation86_spill] sm:$0xff]  ;;  %v9556_v23 = vld [vmem:[#allocation87_spill] sm:$0xff] }
 0x5b9   :  { %v7763_v60 = vadd.f32 %v2761_v58, %v2760_v18  ;;  %v9558_v18 = vld [vmem:[#allocation90_spill] sm:$0xff] }
 0x5ba   :  { %3031 = vmatpush.msrb.mxu1 %v7166_v16  ;;  %3071 = vmatpush.msrb.mxu3 %v7169_v38  ;;  %v2753_v16 = vsel %vm2752_vm10, %v7731_v9, %v2749_v8  ;;  %v2757_v38 = vor.u32 1.1754944e-38, %v2756_v44  ;;  %vm2755_vm11 = vcmp.eq.f32.partialorder %v2754_v15, 8.507059e+37  ;;  %v9535_v9 = vld [vmem:[#allocation73_spill] sm:$0xff]  ;;  %v9559_v58 = vld [vmem:[#allocation38_spill] sm:$0xff]  ;;  %v9560_v8 = vld [vmem:[#allocation91_spill] sm:$0xff] }
 0x5bb   :  { %3670 = vtanh.f32 %v7763_v60  ;;  %v9561_v44 = vld [vmem:[#allocation31_spill] sm:$0xff]  ;;  %v9562_v15 = vld [vmem:[#allocation94_spill] sm:$0xff] }
 0x5bc   :  { %3032 = vmatpush.msrb.mxu1 %v7176_v13  ;;  %3072 = vmatpush.msrb.mxu3 %v7179_v31  ;;  %v2758_v13 = vsel %vm2755_vm11, %v2757_v38, %v2753_v16  ;;  %v9563_v16 = vld [vmem:[#allocation40_spill] sm:$0xff]  ;;  %v9564_v38 = vld [vmem:[#allocation95_spill] sm:$0xff] }
 0x5be   :  { %3033 = vmatpush.msrb.mxu1 %v7186_v10  ;;  %3073 = vmatpush.msrb.mxu3 %v7189_v32  ;;  %v4296_v10 = vld [vmem:[#allocation7 + $0x1e0] sm:$0xff] }
 0x5bf   :  { %v4297_v32 = vld [vmem:[#allocation7 + $0x1c0] sm:$0xff] }
 0x5c0   :  { %3034 = vmatpush.msrb.mxu1 %v7193_v50  ;;  %3074 = vmatpush.msrb.mxu3 %v7196_v27  ;;  %v4298_v50 = vld [vmem:[#allocation7 + $0x1a0] sm:$0xff] }
 0x5c1   :  { %v3671_v0 = vpop.eup %3670  ;;  %v4299_v27 = vld [vmem:[#allocation7 + $0x180] sm:$0xff] }
 0x5c2   :  { %3035 = vmatpush.msrb.mxu1 %v7199_v56  ;;  %3075 = vmatpush.msrb.mxu3 %v7202_v46  ;;  %v7782_v31 = vmul.f32 %v3671_v0, %v2758_v13  ;;  %v4300_v56 = vld [vmem:[#allocation7 + $0x160] sm:$0xff]  ;;  %v9566_v13 = vld [vmem:[#allocation98_spill] sm:$0xff] }
 0x5c3   :  { %v9516_v46 = vld [vmem:[#allocation60_spill] sm:$0xff]  ;;  %v9565_v0 = vld [vmem:[#allocation33_spill] sm:$0xff] }
 0x5c4   :  { %3036 = vmatpush.msrb.mxu1 %v7207_v20  ;;  %3076 = vmatpush.msrb.mxu3 %v7210_v21  ;;  %2768 = vst [vmem:[#allocation12 + $0x60] sm:$0xff] %v7782_v31  ;;  %v4301_v20 = vld [vmem:[#allocation7 + $0x140] sm:$0xff]  ;;  %v9517_v21 = vld [vmem:[#allocation62_spill] sm:$0xff] }
 0x5c5   :  { %2787 = vmatmul.f32.vlgmr.msrb.gmra.mxu0 %v7782_v31  ;;  %2827 = vmatmul.f32.vlgmr.msrb.gmra.mxu2 %v7782_v31 }
 0x5c6   :  { %3037 = vmatpush.msrb.mxu1 %v7220_v37  ;;  %3077 = vmatpush.msrb.mxu3 %v7223_v59  ;;  %v9519_v37 = vld [vmem:[#allocation17_spill] sm:$0xff] }
 0x5c7   :  { %3005 = vmatpush.msrb.mxu0 %v4296_v10  ;;  %3045 = vmatpush.msrb.mxu2 %v7217_v2  ;;  %v9518_v2 = vld [vmem:[#allocation63_spill] sm:$0xff]  ;;  %v4302_v59 = vld [vmem:[#allocation7 + $0x120] sm:$0xff] }
 0x5c8   :  { %3038 = vmatpush.msrb.mxu1 %v7230_v40  ;;  %3078 = vmatpush.msrb.mxu3 %v7233_v14  ;;  %v9521_v40 = vld [vmem:[#allocation18_spill] sm:$0xff]  ;;  %v9522_v14 = vld [vmem:[#allocation65_spill] sm:$0xff]  ;;  %v9568_v10 = vld [vmem:[#allocation36_spill] sm:$0xff] }
 0x5c9   :  { %3006 = vmatpush.msrb.mxu0 %v4297_v32  ;;  %3046 = vmatpush.msrb.mxu2 %v7227_v36  ;;  %v9520_v36 = vld [vmem:[#allocation64_spill] sm:$0xff]  ;;  %v9569_v32 = vld [vmem:[#allocation43_spill] sm:$0xff] }
 0x5ca   :  { %3039 = vmatpush.msrb.mxu1 %v7240_v54  ;;  %3079 = vmatpush.msrb.mxu3 %v7243_v4  ;;  %v9523_v54 = vld [vmem:[#allocation66_spill] sm:$0xff]  ;;  %v9524_v4 = vld [vmem:[#allocation19_spill] sm:$0xff] }
 0x5cb   :  { %3007 = vmatpush.msrb.mxu0 %v4298_v50  ;;  %3047 = vmatpush.msrb.mxu2 %v7237_v35  ;;  %v4303_v35 = vld [vmem:[#allocation7 + $0x100] sm:$0xff]  ;;  %v9570_v50 = vld [vmem:[#allocation99_spill] sm:$0xff] }
 0x5cc   :  { %3040 = vmatpush.msrb.mxu1 %v7250_v63  ;;  %3080 = vmatpush.msrb.mxu3 %v7253_v42  ;;  %v4304_v63 = vld [vmem:[#allocation7 + $0xe0] sm:$0xff] }
 0x5cd   :  { %3008 = vmatpush.msrb.mxu0 %v4299_v27  ;;  %3048 = vmatpush.msrb.mxu2 %v7247_v29  ;;  %v9525_v29 = vld [vmem:[#allocation67_spill] sm:$0xff]  ;;  %v9526_v42 = vld [vmem:[#allocation68_spill] sm:$0xff]  ;;  %v9571_v27 = vld [vmem:[#allocation37_spill] sm:$0xff] }
 0x5ce   :  { %2867 = vmatmul.f32.vlgmr.msra.gmra.mxu0 %v7782_v31  ;;  %2907 = vmatmul.f32.vlgmr.msra.gmra.mxu2 %v7782_v31 }
 0x5cf   :  { %3009 = vmatpush.msrb.mxu0 %v4300_v56  ;;  %3041 = vmatmul.f32.vlgmr.msrb.gmra.mxu1 %v7782_v31  ;;  %v9572_v56 = vld [vmem:[#allocation102_spill] sm:$0xff] }
 0x5d0   :  { %3049 = vmatpush.msrb.mxu2 %v9516_v46  ;;  %3081 = vmatmul.f32.vlgmr.msrb.gmra.mxu3 %v7782_v31  ;;  %v9573_v46 = vld [vmem:[#allocation45_spill] sm:$0xff] }
 0x5d1   :  { %3010 = vmatpush.msrb.mxu0 %v4301_v20  ;;  %3178 = vmatpush.msra.mxu1 %v9517_v21  ;;  %v9574_v20 = vld [vmem:[#allocation103_spill] sm:$0xff] }
 0x5d2   :  { %3050 = vmatpush.msrb.mxu2 %v9518_v2  ;;  %3218 = vmatpush.msra.mxu3 %v9519_v37  ;;  %v9575_v21 = vld [vmem:[#allocation39_spill] sm:$0xff]  ;;  %v9576_v2 = vld [vmem:[#allocation106_spill] sm:$0xff] }
 0x5d3   :  { %3011 = vmatpush.msrb.mxu0 %v4302_v59  ;;  %3179 = vmatpush.msra.mxu1 %v9520_v36  ;;  %v9577_v37 = vld [vmem:[#allocation47_spill] sm:$0xff]  ;;  %v9579_v36 = vld [vmem:[#allocation41_spill] sm:$0xff] }
 0x5d4   :  { %3051 = vmatpush.msrb.mxu2 %v9521_v40  ;;  %3219 = vmatpush.msra.mxu3 %v9522_v14  ;;  %v9578_v59 = vld [vmem:[#allocation107_spill] sm:$0xff]  ;;  %v9580_v40 = vld [vmem:[#allocation49_spill] sm:$0xff]  ;;  %v9581_v14 = vld [vmem:[#allocation44_spill] sm:$0xff] }
 0x5d5   :  { %3012 = vmatpush.msrb.mxu0 %v4303_v35  ;;  %3180 = vmatpush.msra.mxu1 %v9523_v54  ;;  %v9582_v35 = vld [vmem:[#allocation51_spill] sm:$0xff]  ;;  %v9583_v54 = vld [vmem:[#allocation46_spill] sm:$0xff] }
 0x5d6   :  { %3052 = vmatpush.msrb.mxu2 %v9524_v4  ;;  %3220 = vmatpush.msra.mxu3 %v9525_v29  ;;  %v9584_v4 = vld [vmem:[#allocation53_spill] sm:$0xff]  ;;  %v9585_v29 = vld [vmem:[#allocation48_spill] sm:$0xff] }
 0x5d7   :  { %3013 = vmatpush.msrb.mxu0 %v4304_v63  ;;  %3181 = vmatpush.msra.mxu1 %v9526_v42  ;;  %v9586_v63 = vld [vmem:[#allocation56_spill] sm:$0xff]  ;;  %v9587_v42 = vld [vmem:[#allocation50_spill] sm:$0xff] }
 0x5d8   :  { %3053 = vmatpush.msrb.mxu2 %v9527_v49  ;;  %3221 = vmatpush.msra.mxu3 %v9528_v61  ;;  %v9588_v49 = vld [vmem:[#allocation59_spill] sm:$0xff]  ;;  %v9589_v61 = vld [vmem:[#allocation52_spill] sm:$0xff] }
 0x5d9   :  { %3014 = vmatpush.msrb.mxu0 %v4305_v47  ;;  %3182 = vmatpush.msra.mxu1 %v9529_v55  ;;  %v9590_v47 = vld [vmem:[#allocation61_spill] sm:$0xff]  ;;  %v9591_v55 = vld [vmem:[#allocation84_spill] sm:$0xff] }
 0x5da   :  { %3054 = vmatpush.msrb.mxu2 %v9530_v11  ;;  %3222 = vmatpush.msra.mxu3 %v9531_v1  ;;  %v9592_v11 = vld [vmem:[#allocation85_spill] sm:$0xff]  ;;  %v9593_v1 = vld [vmem:[#allocation88_spill] sm:$0xff] }
 0x5db   :  { %3015 = vmatpush.msrb.mxu0 %v9532_v26  ;;  %3183 = vmatpush.msra.mxu1 %v9533_v28  ;;  %v9594_v26 = vld [vmem:[#allocation89_spill] sm:$0xff]  ;;  %v9595_v28 = vld [vmem:[#allocation92_spill] sm:$0xff] }
 0x5dc   :  { %3055 = vmatpush.msrb.mxu2 %v9534_v12  ;;  %3223 = vmatpush.msra.mxu3 %v9535_v9  ;;  %v9596_v12 = vld [vmem:[#allocation93_spill] sm:$0xff]  ;;  %v9597_v9 = vld [vmem:[#allocation96_spill] sm:$0xff] }
 0x5dd   :  { %3016 = vmatpush.msrb.mxu0 %v9536_v52  ;;  %3184 = vmatpush.msra.mxu1 %v9537_v24  ;;  %v9598_v52 = vld [vmem:[#allocation97_spill] sm:$0xff]  ;;  %v9599_v24 = vld [vmem:[#allocation100_spill] sm:$0xff] }
 0x5de   :  { %3056 = vmatpush.msrb.mxu2 %v9538_v48  ;;  %3224 = vmatpush.msra.mxu3 %v9539_v25  ;;  %v9600_v48 = vld [vmem:[#allocation101_spill] sm:$0xff]  ;;  %v9601_v25 = vld [vmem:[#allocation104_spill] sm:$0xff] }
 0x5df   :  { %3017 = vmatpush.msrb.mxu0 %v9540_v53  ;;  %3185 = vmatpush.msra.mxu1 %v9541_v3  ;;  %v9602_v53 = vld [vmem:[#allocation105_spill] sm:$0xff]  ;;  %v9603_v3 = vld [vmem:[#allocation108_spill] sm:$0xff] }
 0x5e0   :  { %3057 = vmatpush.msrb.mxu2 %v9542_v34  ;;  %3225 = vmatpush.msra.mxu3 %v9543_v30  ;;  %v9604_v34 = vld [vmem:[#allocation109_spill] sm:$0xff]  ;;  %v9605_v30 = vld [vmem:[#allocation110_spill] sm:$0xff] }
 0x5e1   :  { %3018 = vmatpush.msrb.mxu0 %v9544_v5  ;;  %3186 = vmatpush.msra.mxu1 %v9545_v17  ;;  %v9606_v5 = vld [vmem:[#allocation111_spill] sm:$0xff]  ;;  %v9607_v17 = vld [vmem:[#allocation112_spill] sm:$0xff] }
 0x5e2   :  { %3058 = vmatpush.msrb.mxu2 %v9546_v62  ;;  %3226 = vmatpush.msra.mxu3 %v9547_v33  ;;  %v9608_v62 = vld [vmem:[#allocation113_spill] sm:$0xff]  ;;  %v9609_v33 = vld [vmem:[#allocation114_spill] sm:$0xff] }
 0x5e3   :  { %3019 = vmatpush.msrb.mxu0 %v9548_v6  ;;  %3187 = vmatpush.msra.mxu1 %v9549_v45  ;;  %v9610_v6 = vld [vmem:[#allocation115_spill] sm:$0xff]  ;;  %v9611_v45 = vld [vmem:[#allocation116_spill] sm:$0xff] }
 0x5e4   :  { %3059 = vmatpush.msrb.mxu2 %v9550_v39  ;;  %3227 = vmatpush.msra.mxu3 %v9551_v43  ;;  %v9612_v39 = vld [vmem:[#allocation117_spill] sm:$0xff]  ;;  %v9613_v43 = vld [vmem:[#allocation118_spill] sm:$0xff] }
 0x5e5   :  { %3020 = vmatpush.msrb.mxu0 %v9552_v22  ;;  %3188 = vmatpush.msra.mxu1 %v9553_v7  ;;  %v9614_v22 = vld [vmem:[#allocation119_spill] sm:$0xff]  ;;  %v9615_v7 = vld [vmem:[#allocation120_spill] sm:$0xff] }
 0x5e6   :  { %3060 = vmatpush.msrb.mxu2 %v9554_v57  ;;  %3021 = vmatmul.f32.vlgmr.msrb.gmra.mxu0 %v7782_v31  ;;  %v9616_v57 = vld [vmem:[#allocation121_spill] sm:$0xff] }
 0x5e7   :  { %3061 = vmatmul.f32.vlgmr.msrb.gmra.mxu2 %v7782_v31  ;;  %3228 = vmatpush.msra.mxu3 %v9555_v51  ;;  %v9567_v31 = vld [vmem:[#allocation42_spill] sm:$0xff] }
 0x5e8   :  { %3189 = vmatpush.msra.mxu1 %v9556_v23  ;;  %3158 = vmatpush.msra.mxu0 %v9557_v41  ;;  %v9617_v51 = vld [vmem:[#allocation122_spill] sm:$0xff]  ;;  %v9618_v23 = vld [vmem:[#allocation123_spill] sm:$0xff]  ;;  %v9619_v41 = vld [vmem:[#allocation124_spill] sm:$0xff] }
 0x5e9   :  { %3229 = vmatpush.msra.mxu3 %v9558_v18  ;;  %3198 = vmatpush.msra.mxu2 %v9559_v58  ;;  %v9620_v18 = vld [vmem:[#allocation125_spill] sm:$0xff]  ;;  %v9621_v58 = vld [vmem:[#allocation126_spill] sm:$0xff] }
 0x5ea   :  { %3190 = vmatpush.msra.mxu1 %v9560_v8  ;;  %3159 = vmatpush.msra.mxu0 %v9561_v44  ;;  %v9622_v8 = vld [vmem:[#allocation127_spill] sm:$0xff]  ;;  %v9623_v44 = vld [vmem:[#allocation128_spill] sm:$0xff] }
 0x5eb   :  { %3230 = vmatpush.msra.mxu3 %v9562_v15  ;;  %3199 = vmatpush.msra.mxu2 %v9563_v16  ;;  %v9624_v15 = vld [vmem:[#allocation129_spill] sm:$0xff]  ;;  %v9625_v16 = vld [vmem:[#allocation130_spill] sm:$0xff] }
 0x5ec   :  { %3191 = vmatpush.msra.mxu1 %v9564_v38  ;;  %3160 = vmatpush.msra.mxu0 %v9565_v0  ;;  %v9626_v38 = vld [vmem:[#allocation131_spill] sm:$0xff]  ;;  %v9627_v0 = vld [vmem:[#allocation132_spill] sm:$0xff] }
 0x5ed   :  { %3231 = vmatpush.msra.mxu3 %v9566_v13  ;;  %3200 = vmatpush.msra.mxu2 %v9567_v31  ;;  %v9628_v13 = vld [vmem:[#allocation133_spill] sm:$0xff]  ;;  %v9629_v31 = vld [vmem:[#allocation134_spill] sm:$0xff] }
 0x5ee   :  { %3192 = vmatpush.msra.mxu1 %v9568_v10  ;;  %3161 = vmatpush.msra.mxu0 %v9569_v32  ;;  %v9630_v10 = vld [vmem:[#allocation135_spill] sm:$0xff]  ;;  %v9631_v32 = vld [vmem:[#allocation136_spill] sm:$0xff] }
 0x5ef   :  { %3232 = vmatpush.msra.mxu3 %v9570_v50  ;;  %3201 = vmatpush.msra.mxu2 %v9571_v27  ;;  %v9632_v50 = vld [vmem:[#allocation137_spill] sm:$0xff]  ;;  %v9633_v27 = vld [vmem:[#allocation138_spill] sm:$0xff] }
 0x5f0   :  { %3193 = vmatpush.msra.mxu1 %v9572_v56  ;;  %3162 = vmatpush.msra.mxu0 %v9573_v46  ;;  %v9634_v56 = vld [vmem:[#allocation139_spill] sm:$0xff]  ;;  %v9635_v46 = vld [vmem:[#allocation140_spill] sm:$0xff] }
 0x5f1   :  { %3233 = vmatpush.msra.mxu3 %v9574_v20  ;;  %3202 = vmatpush.msra.mxu2 %v9575_v21  ;;  %v9636_v20 = vld [vmem:[#allocation141_spill] sm:$0xff]  ;;  %v9637_v21 = vld [vmem:[#allocation142_spill] sm:$0xff] }
 0x5f2   :  { %3258 = vmatpush.msrb.mxu1 %v9576_v2  ;;  %3163 = vmatpush.msra.mxu0 %v9578_v59  ;;  %v9638_v2 = vld [vmem:[#allocation143_spill] sm:$0xff]  ;;  %v9640_v59 = vld [vmem:[#allocation145_spill] sm:$0xff] }
 0x5f3   :  { %3298 = vmatpush.msrb.mxu3 %v9577_v37  ;;  %3203 = vmatpush.msra.mxu2 %v9579_v36  ;;  %v9639_v37 = vld [vmem:[#allocation144_spill] sm:$0xff]  ;;  %v9641_v36 = vld [vmem:[#allocation146_spill] sm:$0xff] }
 0x5f4   :  { %3259 = vmatpush.msrb.mxu1 %v9580_v40  ;;  %3164 = vmatpush.msra.mxu0 %v9582_v35  ;;  %v9642_v40 = vld [vmem:[#allocation147_spill] sm:$0xff]  ;;  %v9644_v35 = vld [vmem:[#allocation149_spill] sm:$0xff] }
 0x5f5   :  { %3299 = vmatpush.msrb.mxu3 %v9581_v14  ;;  %3204 = vmatpush.msra.mxu2 %v9583_v54  ;;  %v9643_v14 = vld [vmem:[#allocation148_spill] sm:$0xff]  ;;  %v9645_v54 = vld [vmem:[#allocation150_spill] sm:$0xff] }
 0x5f6   :  { %3260 = vmatpush.msrb.mxu1 %v9584_v4  ;;  %3165 = vmatpush.msra.mxu0 %v9586_v63  ;;  %v9646_v4 = vld [vmem:[#allocation151_spill] sm:$0xff]  ;;  %v9648_v63 = vld [vmem:[#allocation153_spill] sm:$0xff] }
 0x5f7   :  { %3300 = vmatpush.msrb.mxu3 %v9585_v29  ;;  %3205 = vmatpush.msra.mxu2 %v9587_v42  ;;  %v9647_v29 = vld [vmem:[#allocation152_spill] sm:$0xff]  ;;  %v9649_v42 = vld [vmem:[#allocation154_spill] sm:$0xff] }
 0x5f8   :  { %3261 = vmatpush.msrb.mxu1 %v9588_v49  ;;  %3166 = vmatpush.msra.mxu0 %v9590_v47  ;;  %v9650_v49 = vld [vmem:[#allocation155_spill] sm:$0xff]  ;;  %v9652_v47 = vld [vmem:[#allocation157_spill] sm:$0xff] }
 0x5f9   :  { %3301 = vmatpush.msrb.mxu3 %v9589_v61  ;;  %3206 = vmatpush.msra.mxu2 %v9591_v55  ;;  %v9651_v61 = vld [vmem:[#allocation156_spill] sm:$0xff]  ;;  %v9653_v55 = vld [vmem:[#allocation158_spill] sm:$0xff] }
 0x5fa   :  { %3262 = vmatpush.msrb.mxu1 %v9592_v11  ;;  %3167 = vmatpush.msra.mxu0 %v9594_v26  ;;  %v9654_v11 = vld [vmem:[#allocation159_spill] sm:$0xff]  ;;  %v9656_v26 = vld [vmem:[#allocation161_spill] sm:$0xff] }
 0x5fb   :  { %3302 = vmatpush.msrb.mxu3 %v9593_v1  ;;  %3207 = vmatpush.msra.mxu2 %v9595_v28  ;;  %v9655_v1 = vld [vmem:[#allocation160_spill] sm:$0xff]  ;;  %v9657_v28 = vld [vmem:[#allocation162_spill] sm:$0xff] }
 0x5fc   :  { %3263 = vmatpush.msrb.mxu1 %v9596_v12  ;;  %3168 = vmatpush.msra.mxu0 %v9598_v52  ;;  %v9658_v12 = vld [vmem:[#allocation163_spill] sm:$0xff]  ;;  %v9660_v52 = vld [vmem:[#allocation165_spill] sm:$0xff] }
 0x5fd   :  { %3303 = vmatpush.msrb.mxu3 %v9597_v9  ;;  %3208 = vmatpush.msra.mxu2 %v9599_v24  ;;  %v9659_v9 = vld [vmem:[#allocation164_spill] sm:$0xff]  ;;  %v9661_v24 = vld [vmem:[#allocation166_spill] sm:$0xff] }
 0x5fe   :  { %3264 = vmatpush.msrb.mxu1 %v9600_v48  ;;  %3169 = vmatpush.msra.mxu0 %v9602_v53 }
 0x5ff   :  { %3304 = vmatpush.msrb.mxu3 %v9601_v25  ;;  %3209 = vmatpush.msra.mxu2 %v9603_v3  ;;  %v9662_v3 = vld [vmem:[#allocation54_spill] sm:$0xff] }
 0x600   :  { %3265 = vmatpush.msrb.mxu1 %v9604_v34  ;;  %3170 = vmatpush.msra.mxu0 %v9606_v5 }
 0x601   :  { %3305 = vmatpush.msrb.mxu3 %v9605_v30  ;;  %3210 = vmatpush.msra.mxu2 %v9607_v17 }
 0x602   :  { %3266 = vmatpush.msrb.mxu1 %v9608_v62  ;;  %3171 = vmatpush.msra.mxu0 %v9610_v6 }
 0x603   :  { %3306 = vmatpush.msrb.mxu3 %v9609_v33  ;;  %3211 = vmatpush.msra.mxu2 %v9611_v45  ;;  %v9663_v33 = vld [vmem:[#allocation55_spill] sm:$0xff] }
 0x604   :  { %3267 = vmatpush.msrb.mxu1 %v9612_v39  ;;  %3172 = vmatpush.msra.mxu0 %v9614_v22  ;;  %v3002_v39 = vld [vmem:[#allocation4 + $0xe8] sm:$0xff] }
 0x605   :  { %3307 = vmatpush.msrb.mxu3 %v9613_v43  ;;  %3212 = vmatpush.msra.mxu2 %v9615_v7 }
 0x606   :  { %3268 = vmatpush.msrb.mxu1 %v9616_v57  ;;  %3173 = vmatpush.msra.mxu0 %v9618_v23 }
 0x607   :  { %3308 = vmatpush.msrb.mxu3 %v9617_v51  ;;  %3213 = vmatpush.msra.mxu2 %v9619_v41 }
 0x608   :  { %3269 = vmatpush.msrb.mxu1 %v9620_v18  ;;  %3238 = vmatpush.msrb.mxu0 %v9622_v8  ;;  %v9664_v18 = vld [vmem:[#allocation57_spill] sm:$0xff] }
 0x609   :  { %3309 = vmatpush.msrb.mxu3 %v9621_v58  ;;  %3278 = vmatpush.msrb.mxu2 %v9623_v44 }
 0x60a   :  { %3270 = vmatpush.msrb.mxu1 %v9624_v15  ;;  %3239 = vmatpush.msrb.mxu0 %v9626_v38 }
 0x60b   :  { %3310 = vmatpush.msrb.mxu3 %v9625_v16  ;;  %3279 = vmatpush.msrb.mxu2 %v9627_v0 }
 0x60c   :  { %3271 = vmatpush.msrb.mxu1 %v9628_v13  ;;  %3240 = vmatpush.msrb.mxu0 %v9630_v10  ;;  %v3004_v13 = vld [vmem:[#allocation4 + $0xf8] sm:$0xff] }
 0x60d   :  { %3311 = vmatpush.msrb.mxu3 %v9629_v31  ;;  %3280 = vmatpush.msrb.mxu2 %v9631_v32 }
 0x60e   :  { %3272 = vmatpush.msrb.mxu1 %v9632_v50  ;;  %3241 = vmatpush.msrb.mxu0 %v9634_v56  ;;  %v9665_v50 = vld [vmem:[#allocation58_spill] sm:$0xff] }
 0x60f   :  { %3312 = vmatpush.msrb.mxu3 %v9633_v27  ;;  %3281 = vmatpush.msrb.mxu2 %v9635_v46 }
 0x610   :  { %3273 = vmatpush.msrb.mxu1 %v9636_v20  ;;  %3242 = vmatpush.msrb.mxu0 %v9638_v2 }
 0x611   :  { %3313 = vmatpush.msrb.mxu3 %v9637_v21  ;;  %3282 = vmatpush.msrb.mxu2 %v9639_v37 }
 0x612   :  { %3243 = vmatpush.msrb.mxu0 %v9640_v59 }
 0x613   :  { %3283 = vmatpush.msrb.mxu2 %v9641_v36 }
 0x614   :  { %3244 = vmatpush.msrb.mxu0 %v9642_v40 }
 0x615   :  { %3284 = vmatpush.msrb.mxu2 %v9643_v14 }
 0x616   :  { %3245 = vmatpush.msrb.mxu0 %v9644_v35 }
 0x617   :  { %3285 = vmatpush.msrb.mxu2 %v9645_v54 }
 0x618   :  { %3246 = vmatpush.msrb.mxu0 %v9646_v4 }
 0x619   :  { %3286 = vmatpush.msrb.mxu2 %v9647_v29 }
 0x61a   :  { %3247 = vmatpush.msrb.mxu0 %v9648_v63 }
 0x61b   :  { %3287 = vmatpush.msrb.mxu2 %v9649_v42  ;;  %v3001_v42 = vld [vmem:[#allocation4 + $0xe0] sm:$0xff] }
 0x61c   :  { %3248 = vmatpush.msrb.mxu0 %v9650_v49 }
 0x61d   :  { %3288 = vmatpush.msrb.mxu2 %v9651_v61 }
 0x61e   :  { %3249 = vmatpush.msrb.mxu0 %v9652_v47 }
 0x61f   :  { %3289 = vmatpush.msrb.mxu2 %v9653_v55 }
 0x620   :  { %3250 = vmatpush.msrb.mxu0 %v9654_v11 }
 0x621   :  { %3290 = vmatpush.msrb.mxu2 %v9655_v1 }
 0x622   :  { %3251 = vmatpush.msrb.mxu0 %v9656_v26 }
 0x623   :  { %3291 = vmatpush.msrb.mxu2 %v9657_v28 }
 0x624   :  { %3252 = vmatpush.msrb.mxu0 %v9658_v12 }
 0x625   :  { %3292 = vmatpush.msrb.mxu2 %v9659_v9 }
 0x626   :  { %3253 = vmatpush.msrb.mxu0 %v9660_v52 }
 0x627   :  { %3293 = vmatpush.msrb.mxu2 %v9661_v24 }
 0x62a   :  { %v2808_v48 = vpop.f32.mrf.mxu1 }
 0x630   :  { %v2848_v30 = vpop.f32.mrf.mxu3 }
 0x632   :  { %v2888_v53 = vpop.f32.mrf.mxu1 }
 0x638   :  { %v2928_v51 = vpop.f32.mrf.mxu3 }
 0x642   :  { %v2788_v25 = vpop.f32.mrf.mxu0 }
 0x643   :  { %v2789_v34 = vadd.f32 %v2788_v25, %v9662_v3 }
 0x645   :  { %v2809_v5 = vadd.f32 %v2808_v48, %v2789_v34 }
 0x647   :  { %v3445_v17 = vmul.f32 -1.442695, %v2809_v5 }
 0x648   :  { %v2828_v62 = vpop.f32.mrf.mxu2 }
 0x649   :  { %3672 = vpow2.f32 %v3445_v17  ;;  %v2829_v6 = vadd.f32 %v2828_v62, %v9663_v33 }
 0x64b   :  { %v2849_v45 = vadd.f32 %v2848_v30, %v2829_v6  ;;  %v2868_v0 = vpop.f32.mrf.mxu0 }
 0x64c   :  { %v3042_v43 = vpop.f32.mrf.mxu1  ;;  %v2869_v27 = vadd.f32 %v2868_v0, %v9665_v50  ;;  %v3003_v0 = vld [vmem:[#allocation4 + $0xf0] sm:$0xff] }
 0x64d   :  { %v3446_v22 = vmul.f32 -1.442695, %v2849_v45  ;;  %v3086_v7 = vadd.f32 %v3042_v43, %v3002_v39 }
 0x64e   :  { %v2889_v2 = vadd.f32 %v2888_v53, %v2869_v27 }
 0x64f   :  { %v3673_v57 = vpop.eup %3672  ;;  %3674 = vpow2.f32 %v3446_v22  ;;  %v3449_v8 = vmul.f32 -1.442695, %v3086_v7 }
 0x650   :  { %v2934_v23 = vadd.f32 1.0, %v3673_v57 }
 0x651   :  { %v2908_v41 = vpop.f32.mrf.mxu2 }
 0x652   :  { %v2909_v58 = vadd.f32 %v2908_v41, %v9664_v18  ;;  %3676 = vrcp.f32 %v2934_v23  ;;  %v2946_v4 = vand.u32 2147483648, %v2934_v23  ;;  %vm2940_vm13 = vweird.f32 %v2934_v23 }
 0x653   :  { %3678 = vpow2.f32 %v3449_v8  ;;  %v3082_v31 = vpop.f32.mrf.mxu3  ;;  %v2944_v63 = vand.u32 2147483647, %v2934_v23 }
 0x654   :  { %v2929_v44 = vadd.f32 %v2928_v51, %v2909_v58  ;;  %v3088_v56 = vadd.f32 %v3082_v31, %v3004_v13  ;;  %v2947_v26 = vor.u32 1.1754944e-38, %v2946_v4 }
 0x655   :  { %v3675_v15 = vpop.eup %3674  ;;  %vm2945_vm1 = vcmp.eq.f32.partialorder %v2944_v63, 8.507059e+37 }
 0x656   :  { %v3447_v16 = vmul.f32 -1.442695, %v2929_v44  ;;  %v2953_v38 = vadd.f32 1.0, %v3675_v15  ;;  %v3450_v40 = vmul.f32 -1.442695, %v3088_v56 }
 0x658   :  { %3680 = vpow2.f32 %v3447_v16  ;;  %v3677_v10 = vpop.eup %3676  ;;  %v2965_v49 = vand.u32 2147483648, %v2953_v38  ;;  %v2963_v47 = vand.u32 2147483647, %v2953_v38  ;;  %vm2959_vm0 = vweird.f32 %v2953_v38 }
 0x659   :  { %3682 = vrcp.f32 %v2953_v38  ;;  %v2936_v32 = vmul.f32 %v3677_v10, %v2934_v23  ;;  %v3679_v20 = vpop.eup %3678  ;;  %vm2941_vm12 = vweird.f32 %v3677_v10 }
 0x65a   :  { %v7955_v54 = vadd.f32 1.0, %v3679_v20  ;;  %vm7957_vm14 = vmor %vm2940_vm13, %vm2941_vm12  ;;  %v2966_v52 = vor.u32 1.1754944e-38, %v2965_v49  ;;  %vm2964_vm3 = vcmp.eq.f32.partialorder %v2963_v47, 8.507059e+37 }
 0x65b   :  { %v2937_v46 = vsub.f32 1.0, %v2936_v32 }
 0x65c   :  { %v3123_v20 = vand.u32 2147483648, %v7955_v54  ;;  %vm3117_vm9 = vweird.f32 %v7955_v54 }
 0x65d   :  { %v2938_v37 = vmul.f32 %v3677_v10, %v2937_v46 }
 0x65e   :  { %v3681_v21 = vpop.eup %3680  ;;  %v3124_v4 = vor.u32 1.1754944e-38, %v3123_v20 }
 0x65f   :  { %v3683_v59 = vpop.eup %3682  ;;  %v2973_v36 = vadd.f32 1.0, %v3681_v21  ;;  %v2939_v35 = vadd.f32 %v3677_v10, %v2938_v37  ;;  %v3121_v37 = vand.u32 2147483647, %v7955_v54 }
 0x660   :  { %v2955_v14 = vmul.f32 %v3683_v59, %v2953_v38  ;;  %vm2960_vm15 = vweird.f32 %v3683_v59 }
 0x661   :  { %3684 = vrcp.f32 %v2973_v36  ;;  %v2943_v1 = vsel %vm7957_vm14, %v3677_v10, %v2939_v35  ;;  %vm2961_vm2 = vmor %vm2959_vm0, %vm2960_vm15  ;;  %v2985_v57 = vand.u32 2147483648, %v2973_v36  ;;  %vm2979_vm5 = vweird.f32 %v2973_v36 }
 0x662   :  { %v2956_v29 = vsub.f32 1.0, %v2955_v14  ;;  %3686 = vtanh.f32 %v2889_v2  ;;  %v2948_v24 = vsel %vm2945_vm1, %v2947_v26, %v2943_v1  ;;  %v2983_v41 = vand.u32 2147483647, %v2973_v36 }
 0x663   :  { %3688 = vpow2.f32 %v3450_v40  ;;  %v3022_v55 = vpop.f32.mrf.mxu0  ;;  %v2986_v44 = vor.u32 1.1754944e-38, %v2985_v57  ;;  %vm3122_vm13 = vcmp.eq.f32.partialorder %v3121_v37, 8.507059e+37 }
 0x664   :  { %v2957_v11 = vmul.f32 %v3683_v59, %v2956_v29  ;;  %3690 = vrcp.f32 %v7955_v54  ;;  %v3085_v28 = vadd.f32 %v3022_v55, %v3001_v42  ;;  %vm2984_vm7 = vcmp.eq.f32.partialorder %v2983_v41, 8.507059e+37 }
 0x666   :  { %v2958_v12 = vadd.f32 %v3683_v59, %v2957_v11  ;;  %v3448_v48 = vmul.f32 -1.442695, %v3085_v28 }
 0x667   :  { %v3685_v9 = vpop.eup %3684 }
 0x668   :  { %v3687_v25 = vpop.eup %3686  ;;  %v2962_v53 = vsel %vm2961_vm2, %v3683_v59, %v2958_v12  ;;  %v2975_v34 = vmul.f32 %v3685_v9, %v2973_v36  ;;  %3692 = vpow2.f32 %v3448_v48  ;;  %vm2980_vm4 = vweird.f32 %v3685_v9 }
 0x669   :  { %v3689_v30 = vpop.eup %3688  ;;  %v2967_v5 = vsel %vm2964_vm3, %v2966_v52, %v2962_v53  ;;  %v2990_v6 = vmul.f32 %v3687_v25, %v2948_v24  ;;  %vm2981_vm6 = vmor %vm2979_vm5, %vm2980_vm4 }
 0x66a   :  { %v3691_v17 = vpop.eup %3690  ;;  %v2989_v62 = vmul.f32 %v2967_v5, %v7722_v19  ;;  %v2976_v45 = vsub.f32 1.0, %v2975_v34  ;;  %v7968_v7 = vadd.f32 1.0, %v3689_v30  ;;  %v3062_v13 = vpop.f32.mrf.mxu2 }
 0x66b   :  { %v3113_v22 = vmul.f32 %v3691_v17, %v7955_v54  ;;  %v3087_v27 = vadd.f32 %v3062_v13, %v3003_v0  ;;  %vm3118_vm8 = vweird.f32 %v3691_v17 }
 0x66c   :  { %v7965_v39 = vadd.f32 %v2990_v6, %v2989_v62  ;;  %v2977_v43 = vmul.f32 %v3685_v9, %v2976_v45  ;;  %vm7976_vm10 = vmor %vm3117_vm9, %vm3118_vm8  ;;  %v3143_v12 = vand.u32 2147483648, %v7968_v7  ;;  %vm3137_vm1 = vweird.f32 %v7968_v7 }
 0x66d   :  { %v3114_v19 = vsub.f32 1.0, %v3113_v22 }
 0x66e   :  { %3694 = vtanh.f32 %v7965_v39  ;;  %v2978_v51 = vadd.f32 %v3685_v9, %v2977_v43  ;;  %v3693_v23 = vpop.eup %3692  ;;  %v3144_v24 = vor.u32 1.1754944e-38, %v3143_v12 }
 0x66f   :  { %v3092_v58 = vadd.f32 1.0, %v3693_v23  ;;  %3696 = vrcp.f32 %v7968_v7  ;;  %v3115_v38 = vmul.f32 %v3691_v17, %v3114_v19 }
 0x670   :  { %v2982_v8 = vsel %vm2981_vm6, %v3685_v9, %v2978_v51  ;;  %v3141_v9 = vand.u32 2147483647, %v7968_v7 }
 0x671   :  { %3698 = vrcp.f32 %v3092_v58  ;;  %v2987_v16 = vsel %vm2984_vm7, %v2986_v44, %v2982_v8  ;;  %v3116_v46 = vadd.f32 %v3691_v17, %v3115_v38  ;;  %v3104_v36 = vand.u32 2147483648, %v3092_v58 }
 0x672   :  { %3700 = vtanh.f32 %v3087_v27  ;;  %v3102_v14 = vand.u32 2147483647, %v3092_v58  ;;  %vm3098_vm12 = vweird.f32 %v3092_v58  ;;  %vm3142_vm3 = vcmp.eq.f32.partialorder %v3141_v9, 8.507059e+37 }
 0x673   :  { %v3120_v35 = vsel %vm7976_vm10, %v3691_v17, %v3116_v46  ;;  %v3105_v54 = vor.u32 1.1754944e-38, %v3104_v36 }
 0x674   :  { %v3695_v15 = vpop.eup %3694  ;;  %v3125_v42 = vsel %vm3122_vm13, %v3124_v4, %v3120_v35  ;;  %vm3103_vm15 = vcmp.eq.f32.partialorder %v3102_v14, 8.507059e+37 }
 0x675   :  { %v2993_v31 = vmul.f32 %v3695_v15, %v2987_v16  ;;  %v3697_v10 = vpop.eup %3696  ;;  %v3147_v11 = vmul.f32 %v3125_v42, %v7763_v60 }
 0x676   :  { %v3133_v21 = vmul.f32 %v3697_v10, %v7968_v7  ;;  %vm3138_vm0 = vweird.f32 %v3697_v10 }
 0x677   :  { %2997 = vst [vmem:[#allocation12 + $0x68] sm:$0xff] %v2993_v31  ;;  %3194 = vmatmul.f32.vlgmr.msra.gmra.mxu1 %v2993_v31  ;;  %3234 = vmatmul.f32.vlgmr.msra.gmra.mxu3 %v2993_v31  ;;  %v3699_v32 = vpop.eup %3698  ;;  %vm3139_vm2 = vmor %vm3137_vm1, %vm3138_vm0 }
 0x678   :  { %v3094_v56 = vmul.f32 %v3699_v32, %v3092_v58  ;;  %vm3099_vm11 = vweird.f32 %v3699_v32  ;;  %v3134_v29 = vsub.f32 1.0, %v3133_v21  ;;  %v3701_v61 = vpop.eup %3700 }
 0x679   :  { %vm3100_vm14 = vmor %vm3098_vm12, %vm3099_vm11 }
 0x67a   :  { %v3095_v2 = vsub.f32 1.0, %v3094_v56  ;;  %v3135_v47 = vmul.f32 %v3697_v10, %v3134_v29 }
 0x67c   :  { %v3096_v40 = vmul.f32 %v3699_v32, %v3095_v2  ;;  %v3136_v28 = vadd.f32 %v3697_v10, %v3135_v47 }
 0x67e   :  { %v3097_v63 = vadd.f32 %v3699_v32, %v3096_v40  ;;  %v3140_v52 = vsel %vm3139_vm2, %v3697_v10, %v3136_v28 }
 0x67f   :  { %3274 = vmatmul.f32.vlgmr.msrb.gmra.mxu1 %v2993_v31  ;;  %3314 = vmatmul.f32.vlgmr.msrb.gmra.mxu3 %v2993_v31  ;;  %v3145_v25 = vsel %vm3142_vm3, %v3144_v24, %v3140_v52 }
 0x680   :  { %v3101_v49 = vsel %vm3100_vm14, %v3699_v32, %v3097_v63 }
 0x681   :  { %v3106_v55 = vsel %vm3103_vm15, %v3105_v54, %v3101_v49 }
 0x682   :  { %v3148_v1 = vmul.f32 %v3701_v61, %v3106_v55 }
 0x684   :  { %v3149_v26 = vadd.f32 %v3148_v1, %v3147_v11 }
 0x686   :  { %3702 = vtanh.f32 %v3149_v26 }
 0x68c   :  { %v3703_v48 = vpop.eup %3702 }
 0x68d   :  { %v3151_v53 = vmul.f32 %v3703_v48, %v3145_v25 }
 0x68f   :  { %3155 = vst [vmem:[#allocation12 + $0x70] sm:$0xff] %v3151_v53  ;;  %3174 = vmatmul.f32.vlgmr.msra.gmra.mxu0 %v3151_v53  ;;  %3214 = vmatmul.f32.vlgmr.msra.gmra.mxu2 %v3151_v53 }
 0x697   :  { %3254 = vmatmul.f32.vlgmr.msrb.gmra.mxu0 %v3151_v53  ;;  %3294 = vmatmul.f32.vlgmr.msrb.gmra.mxu2 %v3151_v53 }
 0x6f4   :  { %v3195_v30 = vpop.f32.mrf.mxu1 }
 0x6fa   :  { %v3235_v62 = vpop.f32.mrf.mxu3 }
 0x6fc   :  { %v3275_v13 = vpop.f32.mrf.mxu1 }
 0x702   :  { %v3315_v41 = vpop.f32.mrf.mxu3 }
 0x70c   :  { %v3175_v60 = vpop.f32.mrf.mxu0 }
 0x70d   :  { %v3176_v34 = vadd.f32 %v3175_v60, %v9662_v3 }
 0x70f   :  { %v3196_v5 = vadd.f32 %v3195_v30, %v3176_v34 }
 0x711   :  { %v3451_v17 = vmul.f32 -1.442695, %v3196_v5 }
 0x712   :  { %v3215_v6 = vpop.f32.mrf.mxu2 }
 0x713   :  { %3704 = vpow2.f32 %v3451_v17  ;;  %v3216_v45 = vadd.f32 %v3215_v6, %v9663_v33 }
 0x714   :  { %v3255_v44 = vpop.f32.mrf.mxu0 }
 0x715   :  { %v3236_v43 = vadd.f32 %v3235_v62, %v3216_v45  ;;  %v3256_v33 = vadd.f32 %v3255_v44, %v9665_v50 }
 0x717   :  { %v3452_v22 = vmul.f32 -1.442695, %v3236_v43  ;;  %v3276_v32 = vadd.f32 %v3275_v13, %v3256_v33 }
 0x719   :  { %v3705_v7 = vpop.eup %3704  ;;  %3706 = vpow2.f32 %v3452_v22 }
 0x71a   :  { %v3321_v57 = vadd.f32 1.0, %v3705_v7  ;;  %v3295_v51 = vpop.f32.mrf.mxu2 }
 0x71b   :  { %v3296_v23 = vadd.f32 %v3295_v51, %v9664_v18 }
 0x71c   :  { %3708 = vrcp.f32 %v3321_v57  ;;  %v3333_v46 = vand.u32 2147483648, %v3321_v57  ;;  %vm3327_vm5 = vweird.f32 %v3321_v57  ;;  %v3331_v21 = vand.u32 2147483647, %v3321_v57 }
 0x71d   :  { %v3316_v58 = vadd.f32 %v3315_v41, %v3296_v23 }
 0x71e   :  { %v3334_v36 = vor.u32 1.1754944e-38, %v3333_v46  ;;  %vm3332_vm9 = vcmp.eq.f32.partialorder %v3331_v21, 8.507059e+37 }
 0x71f   :  { %v3707_v3 = vpop.eup %3706  ;;  %v3453_v19 = vmul.f32 -1.442695, %v3316_v58 }
 0x720   :  { %v3340_v8 = vadd.f32 1.0, %v3707_v3 }
 0x721   :  { %3710 = vpow2.f32 %v3453_v19 }
 0x722   :  { %v3709_v15 = vpop.eup %3708  ;;  %3712 = vrcp.f32 %v3340_v8  ;;  %v3352_v2 = vand.u32 2147483648, %v3340_v8  ;;  %v3350_v59 = vand.u32 2147483647, %v3340_v8  ;;  %vm3346_vm8 = vweird.f32 %v3340_v8 }
 0x723   :  { %v3323_v16 = vmul.f32 %v3709_v15, %v3321_v57  ;;  %vm3328_vm4 = vweird.f32 %v3709_v15 }
 0x724   :  { %vm3329_vm6 = vmor %vm3327_vm5, %vm3328_vm4  ;;  %v3353_v35 = vor.u32 1.1754944e-38, %v3352_v2  ;;  %vm3351_vm11 = vcmp.eq.f32.partialorder %v3350_v59, 8.507059e+37 }
 0x725   :  { %v3324_v38 = vsub.f32 1.0, %v3323_v16 }
 0x727   :  { %v3711_v0 = vpop.eup %3710  ;;  %v3325_v31 = vmul.f32 %v3709_v15, %v3324_v38 }
 0x728   :  { %v3713_v10 = vpop.eup %3712  ;;  %v3360_v18 = vadd.f32 1.0, %v3711_v0 }
 0x729   :  { %v3342_v27 = vmul.f32 %v3713_v10, %v3340_v8  ;;  %v3326_v56 = vadd.f32 %v3709_v15, %v3325_v31  ;;  %vm3347_vm7 = vweird.f32 %v3713_v10 }
 0x72a   :  { %3714 = vrcp.f32 %v3360_v18  ;;  %vm3348_vm10 = vmor %vm3346_vm8, %vm3347_vm7  ;;  %v3372_v26 = vand.u32 2147483648, %v3360_v18  ;;  %vm3366_vm13 = vweird.f32 %v3360_v18  ;;  %v3370_v28 = vand.u32 2147483647, %v3360_v18 }
 0x72b   :  { %v3343_v20 = vsub.f32 1.0, %v3342_v27  ;;  %3716 = vtanh.f32 %v3276_v32  ;;  %v3330_v50 = vsel %vm3329_vm6, %v3709_v15, %v3326_v56 }
 0x72c   :  { %v3335_v4 = vsel %vm3332_vm9, %v3334_v36, %v3330_v50  ;;  %v3373_v9 = vor.u32 1.1754944e-38, %v3372_v26  ;;  %vm3371_vm15 = vcmp.eq.f32.partialorder %v3370_v28, 8.507059e+37 }
 0x72d   :  { %v3344_v37 = vmul.f32 %v3713_v10, %v3343_v20 }
 0x72f   :  { %v3345_v40 = vadd.f32 %v3713_v10, %v3344_v37 }
 0x730   :  { %v3715_v14 = vpop.eup %3714 }
 0x731   :  { %v3349_v29 = vsel %vm3348_vm10, %v3713_v10, %v3345_v40  ;;  %v3362_v63 = vmul.f32 %v3715_v14, %v3360_v18  ;;  %v3717_v54 = vpop.eup %3716  ;;  %vm3367_vm12 = vweird.f32 %v3715_v14 }
 0x732   :  { %v3354_v42 = vsel %vm3351_vm11, %v3353_v35, %v3349_v29  ;;  %v3377_v61 = vmul.f32 %v3717_v54, %v3335_v4  ;;  %vm3368_vm14 = vmor %vm3366_vm13, %vm3367_vm12 }
 0x733   :  { %v3376_v49 = vmul.f32 %v3354_v42, %v7965_v39  ;;  %v3363_v47 = vsub.f32 1.0, %v3362_v63 }
 0x735   :  { %v3378_v55 = vadd.f32 %v3377_v61, %v3376_v49  ;;  %v3364_v11 = vmul.f32 %v3715_v14, %v3363_v47 }
 0x737   :  { %3718 = vtanh.f32 %v3378_v55  ;;  %v3365_v1 = vadd.f32 %v3715_v14, %v3364_v11 }
 0x739   :  { %v3369_v12 = vsel %vm3368_vm14, %v3715_v14, %v3365_v1 }
 0x73a   :  { %v3374_v52 = vsel %vm3371_vm15, %v3373_v9, %v3369_v12 }
 0x73d   :  { %v3719_v39 = vpop.eup %3718 }
 0x73e   :  { %v3380_v24 = vmul.f32 %v3719_v39, %v3374_v52 }
 0x740   :  { %3384 = vst [vmem:[#allocation12 + $0x78] sm:$0xff] %v3380_v24 }
 0x741   :  { %3397 = dma.vmem_to_hbm [thread:$0]  %s3390_s3, 2048, %s3392_s11, [#allocation6], %s4442_s12, %s4442_s12, %s4443_s13  }
 0x742   :  { %4432 = dma.done.wait [#allocation6], 2048  }
 0x743   :  { %4433 = vsyncadd [#allocation6], 4294965248 }
 0x744   :  { %3402 = vsyncpa [#allocation5], 1 }
 0x745   :  { %3403 = vsyncpa [#allocation8], 1 }
 0x746   :  { %3404 = vsyncpa [#allocation11], 1 }
 0x747   :  { %3405 = vsyncpa [#allocation6], 1 }

</bundles_post_ra>
